<compile_context>
chip_gen: v6e
topology: v6e:2x2x1
jax: 0.10.0
libtpu: 0.0.40
codegen_flags: <defaults>
</compile_context>

<pallas_src>
import functools

import numpy as np
import jax
import jax.numpy as jnp
from jax import lax
from jax.experimental import pallas as pl
from jax.experimental.pallas import tpu as pltpu

BN_EPS = 1e-5
LANE = 128


def _round_up(x, m):
    return ((x + m - 1) // m) * m


def _post_conv_size(size, n_convs):
    # (size - 3 + 2 * 1) // 2 + 1 applied n_convs times
    for _ in range(n_convs):
        size = (size - 1) // 2 + 1
    return size


# ----------------------------------------------------------------------------
# Fused kernel: conv stack + GRU input projection + GRU recurrence.
# ----------------------------------------------------------------------------
def _decimation_matrix(ho, h, offset):
    """[ho, h] 0/1 matrix whose row i selects input row 2*i + offset.

    Rows whose source index falls outside [0, h) are all-zero, which realizes
    the stride-2 / pad-1 boundary of the frame-axis convolution exactly.
    Applying it as a matmul keeps everything on well-supported MXU/VPU ops
    (no strided loads / sublane shuffles) and is exact for 0/1 coefficients.
    """
    r = lax.broadcasted_iota(jnp.int32, (ho, h), 0)
    c = lax.broadcasted_iota(jnp.int32, (ho, h), 1)
    return jnp.where(c == 2 * r + offset, 1.0, 0.0).astype(jnp.bfloat16)


def _reference_encoder_kernel(n_layers, t_prime, hp, x_ref, *refs):
    g_refs = refs[:n_layers]                         # [3, F_in, F_out] bf16
    b_refs = refs[n_layers:2 * n_layers]             # [1, F_out] f32
    wi_ref, bi_ref, wh_ref, bh_ref = refs[2 * n_layers:2 * n_layers + 4]
    o_ref = refs[-1]                                 # [1, 1, Hp] f32

    # ---- conv + BN(eval, folded) + ReLU stack, fully VMEM resident ---------
    a = x_ref[0]                                     # [T, num_mel] f32
    for li in range(n_layers):
        h = a.shape[0]
        ho = (h - 1) // 2 + 1
        ab = a.astype(jnp.bfloat16)
        # frame-axis taps: rows 2i-1 / 2i / 2i+1 (kernel 3, stride 2, pad 1)
        xm = jnp.dot(_decimation_matrix(ho, h, -1), ab,
                     preferred_element_type=jnp.float32).astype(jnp.bfloat16)
        xe = jnp.dot(_decimation_matrix(ho, h, 0), ab,
                     preferred_element_type=jnp.float32).astype(jnp.bfloat16)
        xo = jnp.dot(_decimation_matrix(ho, h, 1), ab,
                     preferred_element_type=jnp.float32).astype(jnp.bfloat16)
        g_ref = g_refs[li]
        acc = jnp.dot(xm, g_ref[0], preferred_element_type=jnp.float32)
        acc = acc + jnp.dot(xe, g_ref[1], preferred_element_type=jnp.float32)
        acc = acc + jnp.dot(xo, g_ref[2], preferred_element_type=jnp.float32)
        a = jnp.maximum(acc + b_refs[li][...], 0.0)  # [ho, F_out] f32
    assert a.shape[0] == t_prime

    # ---- GRU: hoisted input projection + unrolled recurrence (all f32) -----
    xp = jnp.dot(a, wi_ref[...], preferred_element_type=jnp.float32) + bi_ref[...]
    wh = wh_ref[...]                                 # [Hp, 3*Hp]
    bh = bh_ref[...]                                 # [1, 3*Hp]
    hstate = jnp.zeros((1, hp), jnp.float32)
    for t in range(t_prime):
        hg = jnp.dot(hstate, wh, preferred_element_type=jnp.float32) + bh
        xg = xp[t:t + 1, :]
        r = jax.nn.sigmoid(xg[:, :hp] + hg[:, :hp])
        z = jax.nn.sigmoid(xg[:, hp:2 * hp] + hg[:, hp:2 * hp])
        n_gate = jnp.tanh(xg[:, 2 * hp:] + r * hg[:, 2 * hp:])
        hstate = (1.0 - z) * n_gate + z * hstate
    o_ref[0] = hstate                                # lane-dense [1, Hp] store


def reference_encoder_forward(inputs, kparams):
    """Pallas forward pass (input_lengths=None path of ReferenceEncoder)."""
    b, t, num_mel = inputs.shape
    convs = kparams["convs"]
    gru = kparams["gru"]
    n_layers = len(convs)
    t_prime = _post_conv_size(t, n_layers)
    hp = gru["wh"].shape[0]

    operands = [inputs]
    in_specs = [pl.BlockSpec((1, t, num_mel), lambda i: (i, 0, 0))]
    for g, _ in convs:
        operands.append(g)
        in_specs.append(pl.BlockSpec(g.shape, lambda i: (0, 0, 0)))
    for _, bias in convs:
        operands.append(bias)
        in_specs.append(pl.BlockSpec(bias.shape, lambda i: (0, 0)))
    for name in ("wi", "bi", "wh", "bh"):
        operands.append(gru[name])
        in_specs.append(pl.BlockSpec(gru[name].shape, lambda i: (0, 0)))

    out = pl.pallas_call(
        functools.partial(_reference_encoder_kernel, n_layers, t_prime, hp),
        out_shape=jax.ShapeDtypeStruct((b, 1, hp), jnp.float32),
        grid=(b,),
        in_specs=in_specs,
        out_specs=pl.BlockSpec((1, 1, hp), lambda i: (i, 0, 0)),
        compiler_params=pltpu.CompilerParams(
            dimension_semantics=("parallel",)),
    )(*operands)
    return out[:, 0, :gru["hidden"]]


# ----------------------------------------------------------------------------
# Parameters: torch-layout synthetic init + packing into kernel form.
# ----------------------------------------------------------------------------
def init_torch_like_params(key, num_mel, embedding_dim):
    filters = [1, 32, 32, 64, 64, 128, 128]
    n_convs = len(filters) - 1
    keys = jax.random.split(key, n_convs + 1)
    convs = []
    for i in range(n_convs):
        k1, k2, k3 = jax.random.split(keys[i], 3)
        cin, cout = filters[i], filters[i + 1]
        fan_in = cin * 9
        weight = jax.random.normal(k1, (cout, cin, 3, 3), jnp.float32) * (2.0 / fan_in) ** 0.5
        gamma = 1.0 + 0.1 * jax.random.normal(k2, (cout,), jnp.float32)
        beta = 0.1 * jax.random.normal(k3, (cout,), jnp.float32)
        convs.append(dict(weight=weight, gamma=gamma, beta=beta,
                          mean=jnp.zeros((cout,), jnp.float32),
                          var=jnp.ones((cout,), jnp.float32)))
    post_h = _post_conv_size(num_mel, n_convs)
    in_size = filters[-1] * post_h
    hid = embedding_dim
    lim = 1.0 / (hid ** 0.5)
    ks = jax.random.split(keys[-1], 4)
    gru = dict(
        w_ih=jax.random.uniform(ks[0], (3 * hid, in_size), jnp.float32, -lim, lim),
        w_hh=jax.random.uniform(ks[1], (3 * hid, hid), jnp.float32, -lim, lim),
        b_ih=jax.random.uniform(ks[2], (3 * hid,), jnp.float32, -lim, lim),
        b_hh=jax.random.uniform(ks[3], (3 * hid,), jnp.float32, -lim, lim),
        hidden=hid)
    return dict(convs=convs, gru=gru)


def pack_params(tparams, num_mel):
    """Convert torch-layout parameters into the fused-kernel form."""
    convs = tparams["convs"]
    n = len(convs)
    packed_convs = []
    w_in = num_mel
    f_out = None
    for li, cv in enumerate(convs):
        weight = np.asarray(cv["weight"])                       # [cout, cin, 3, 3]
        cout, cin = weight.shape[0], weight.shape[1]
        scale = np.asarray(cv["gamma"]) / np.sqrt(np.asarray(cv["var"]) + BN_EPS)
        shift = np.asarray(cv["beta"]) - np.asarray(cv["mean"]) * scale
        w_f = np.transpose(weight, (2, 3, 1, 0)) * scale        # [kh, kw, cin, cout], BN folded
        w_out = (w_in - 1) // 2 + 1
        f_in, f_out = w_in * cin, w_out * cout
        g = np.zeros((3, f_in, f_out), np.float32)
        for di in range(3):
            for wp in range(w_out):
                for dj in range(3):
                    wcol = 2 * wp + dj - 1
                    if 0 <= wcol < w_in:
                        g[di, wcol * cin:(wcol + 1) * cin,
                          wp * cout:(wp + 1) * cout] = w_f[di, dj]
        b_row = np.tile(shift, w_out)                           # (w'-major, c-minor)
        if li == n - 1:
            # last layer feeds the GRU: reorder to torch's (channel-major,
            # mel-minor) flattening of [C, W'].
            order = np.arange(f_out).reshape(w_out, cout).T.reshape(-1)
            g = g[:, :, order]
            b_row = b_row[order]
        packed_convs.append((jnp.asarray(g, jnp.bfloat16),
                             jnp.asarray(b_row[None, :], jnp.float32)))
        w_in = w_out

    gru = tparams["gru"]
    hid = gru["hidden"]
    hp = _round_up(hid, LANE)
    w_ih = np.asarray(gru["w_ih"])
    w_hh = np.asarray(gru["w_hh"])
    b_ih = np.asarray(gru["b_ih"])
    b_hh = np.asarray(gru["b_hh"])
    in_size = w_ih.shape[1]
    assert in_size == f_out, (in_size, f_out)
    wi = np.zeros((in_size, 3 * hp), np.float32)
    wh = np.zeros((hp, 3 * hp), np.float32)
    bi = np.zeros((1, 3 * hp), np.float32)
    bh = np.zeros((1, 3 * hp), np.float32)
    for gate in range(3):                                       # gate order: r, z, n
        wi[:, gate * hp:gate * hp + hid] = w_ih[gate * hid:(gate + 1) * hid, :].T
        wh[:hid, gate * hp:gate * hp + hid] = w_hh[gate * hid:(gate + 1) * hid, :].T
        bi[0, gate * hp:gate * hp + hid] = b_ih[gate * hid:(gate + 1) * hid]
        bh[0, gate * hp:gate * hp + hid] = b_hh[gate * hid:(gate + 1) * hid]
    # Padded hidden lanes must be exactly zero so the recurrence keeps them zero.
    assert not wh[hid:, :].any()
    for gate in range(3):
        assert not wi[:, gate * hp + hid:(gate + 1) * hp].any()
        assert not wh[:, gate * hp + hid:(gate + 1) * hp].any()
    gru_packed = dict(wi=jnp.asarray(wi), bi=jnp.asarray(bi),
                      wh=jnp.asarray(wh), bh=jnp.asarray(bh), hidden=hid)
    return dict(convs=packed_convs, gru=gru_packed)


# ----------------------------------------------------------------------------
# Independent plain-JAX reference (torch-layout params, same bf16 conv policy)
# used only for the self-check in __main__.
# ----------------------------------------------------------------------------
def reference_forward_plain_jax(inputs, tparams, num_mel):
    b = inputs.shape[0]
    x = inputs.reshape(b, 1, -1, num_mel)                       # NCHW
    for cv in tparams["convs"]:
        scale = cv["gamma"] / jnp.sqrt(cv["var"] + BN_EPS)
        shift = cv["beta"] - cv["mean"] * scale
        w_fold = cv["weight"] * scale[:, None, None, None]
        y = lax.conv_general_dilated(
            x.astype(jnp.bfloat16), w_fold.astype(jnp.bfloat16),
            window_strides=(2, 2), padding=((1, 1), (1, 1)),
            dimension_numbers=("NCHW", "OIHW", "NCHW"),
            preferred_element_type=jnp.float32)
        x = jnp.maximum(y + shift[None, :, None, None], 0.0)
    hprime = x.shape[2]
    feats = jnp.transpose(x, (0, 2, 1, 3)).reshape(b, hprime, -1)
    g = tparams["gru"]
    hid = g["hidden"]
    h = jnp.zeros((b, hid), jnp.float32)
    for t in range(hprime):
        xt = feats[:, t, :]
        gi = xt @ g["w_ih"].T + g["b_ih"]
        gh = h @ g["w_hh"].T + g["b_hh"]
        r = jax.nn.sigmoid(gi[:, :hid] + gh[:, :hid])
        z = jax.nn.sigmoid(gi[:, hid:2 * hid] + gh[:, hid:2 * hid])
        n_gate = jnp.tanh(gi[:, 2 * hid:] + r * gh[:, 2 * hid:])
        h = (1.0 - z) * n_gate + z * h
    return h


if __name__ == "__main__":
    num_mel = 32
    embedding_dim = 32
    B, T = 2, 256   # T' after 6 stride-2 convs = 4; post-conv mel height = 1

    key = jax.random.PRNGKey(0)
    k_in, k_par = jax.random.split(key)
    inputs = jax.random.normal(k_in, (B, T, num_mel), jnp.float32)
    tparams = init_torch_like_params(k_par, num_mel, embedding_dim)
    kparams = pack_params(tparams, num_mel)

    fwd = jax.jit(lambda x: reference_encoder_forward(x, kparams))
    out = jax.block_until_ready(fwd(inputs))
    assert out.shape == (B, embedding_dim), out.shape
    assert bool(jnp.all(jnp.isfinite(out)))

    # Self-check against an independent plain-JAX implementation (loose
    # tolerance covers bf16/accumulation-order differences only).
    ref = jax.block_until_ready(
        jax.jit(lambda x: reference_forward_plain_jax(x, tparams, num_mel))(inputs))
    max_err = float(jnp.max(jnp.abs(out - ref)))
    assert max_err < 5e-2, max_err
    print("KERNEL_OK")
</pallas_src>

<mosaic_0001>
module attributes {stable_mosaic.version = 11 : i64} {
  func.func @_reference_encoder_kernel(%arg0: i32, %arg1: memref<1x256x32xf32, #tpu.memory_space<vmem>>, %arg2: memref<3x32x512xbf16, #tpu.memory_space<vmem>>, %arg3: memref<3x512x256xbf16, #tpu.memory_space<vmem>>, %arg4: memref<3x256x256xbf16, #tpu.memory_space<vmem>>, %arg5: memref<3x256x128xbf16, #tpu.memory_space<vmem>>, %arg6: memref<3x128x128xbf16, #tpu.memory_space<vmem>>, %arg7: memref<3x128x128xbf16, #tpu.memory_space<vmem>>, %arg8: memref<1x512xf32, #tpu.memory_space<vmem>>, %arg9: memref<1x256xf32, #tpu.memory_space<vmem>>, %arg10: memref<1x256xf32, #tpu.memory_space<vmem>>, %arg11: memref<1x128xf32, #tpu.memory_space<vmem>>, %arg12: memref<1x128xf32, #tpu.memory_space<vmem>>, %arg13: memref<1x128xf32, #tpu.memory_space<vmem>>, %arg14: memref<128x384xf32, #tpu.memory_space<vmem>>, %arg15: memref<1x384xf32, #tpu.memory_space<vmem>>, %arg16: memref<128x384xf32, #tpu.memory_space<vmem>>, %arg17: memref<1x384xf32, #tpu.memory_space<vmem>>, %arg18: memref<1x1x128xf32, #tpu.memory_space<vmem>>) attributes {dimension_semantics = [#tpu.dimension_semantics<parallel>], iteration_bounds = array<i64: 2>, scalar_prefetch = 0 : i64, scratch_operands = 0 : i64, tpu.core_type = #tpu.core_type<tc>, window_params = [{transform_indices = @transform_0, window_bounds = array<i64: 1, 256, 32>}, {pipeline_mode = #tpu.pipeline_mode<synchronous>, transform_indices = @transform_1, window_bounds = array<i64: 3, 32, 512>}, {pipeline_mode = #tpu.pipeline_mode<synchronous>, transform_indices = @transform_2, window_bounds = array<i64: 3, 512, 256>}, {pipeline_mode = #tpu.pipeline_mode<synchronous>, transform_indices = @transform_3, window_bounds = array<i64: 3, 256, 256>}, {pipeline_mode = #tpu.pipeline_mode<synchronous>, transform_indices = @transform_4, window_bounds = array<i64: 3, 256, 128>}, {pipeline_mode = #tpu.pipeline_mode<synchronous>, transform_indices = @transform_5, window_bounds = array<i64: 3, 128, 128>}, {pipeline_mode = #tpu.pipeline_mode<synchronous>, transform_indices = @transform_6, window_bounds = array<i64: 3, 128, 128>}, {pipeline_mode = #tpu.pipeline_mode<synchronous>, transform_indices = @transform_7, window_bounds = array<i64: 1, 512>}, {pipeline_mode = #tpu.pipeline_mode<synchronous>, transform_indices = @transform_8, window_bounds = array<i64: 1, 256>}, {pipeline_mode = #tpu.pipeline_mode<synchronous>, transform_indices = @transform_9, window_bounds = array<i64: 1, 256>}, {pipeline_mode = #tpu.pipeline_mode<synchronous>, transform_indices = @transform_10, window_bounds = array<i64: 1, 128>}, {pipeline_mode = #tpu.pipeline_mode<synchronous>, transform_indices = @transform_11, window_bounds = array<i64: 1, 128>}, {pipeline_mode = #tpu.pipeline_mode<synchronous>, transform_indices = @transform_12, window_bounds = array<i64: 1, 128>}, {pipeline_mode = #tpu.pipeline_mode<synchronous>, transform_indices = @transform_13, window_bounds = array<i64: 128, 384>}, {pipeline_mode = #tpu.pipeline_mode<synchronous>, transform_indices = @transform_14, window_bounds = array<i64: 1, 384>}, {pipeline_mode = #tpu.pipeline_mode<synchronous>, transform_indices = @transform_15, window_bounds = array<i64: 128, 384>}, {pipeline_mode = #tpu.pipeline_mode<synchronous>, transform_indices = @transform_16, window_bounds = array<i64: 1, 384>}, {transform_indices = @transform_17, window_bounds = array<i64: 1, 1, 128>}]} {
    %c0 = arith.constant 0 : index
    %c0_0 = arith.constant 0 : index
    %c0_1 = arith.constant 0 : index
    %0 = vector.load %arg1[%c0, %c0_0, %c0_1] : memref<1x256x32xf32, #tpu.memory_space<vmem>>, vector<1x256x32xf32>
    %1 = vector.shape_cast %0 : vector<1x256x32xf32> to vector<256x32xf32>
    %2 = arith.truncf %1 : vector<256x32xf32> to vector<256x32xbf16>
    %3 = tpu.iota {dimensions = array<i32: 0>} : vector<128x256xi32>
    %4 = tpu.iota {dimensions = array<i32: 1>} : vector<128x256xi32>
    %c2_i32 = arith.constant 2 : i32
    %5 = vector.broadcast %c2_i32 : i32 to vector<128x256xi32>
    %6 = arith.muli %5, %3 : vector<128x256xi32>
    %c-1_i32 = arith.constant -1 : i32
    %7 = vector.broadcast %c-1_i32 : i32 to vector<128x256xi32>
    %8 = arith.addi %6, %7 : vector<128x256xi32>
    %9 = arith.cmpi eq, %4, %8 : vector<128x256xi32>
    %cst = arith.constant 1.000000e+00 : f32
    %cst_2 = arith.constant 0.000000e+00 : f32
    %10 = vector.broadcast %cst : f32 to vector<128x256xf32>
    %11 = vector.broadcast %cst_2 : f32 to vector<128x256xf32>
    %12 = arith.select %9, %10, %11 : vector<128x256xi1>, vector<128x256xf32>
    %13 = arith.truncf %12 : vector<128x256xf32> to vector<128x256xbf16>
    %cst_3 = arith.constant dense<0.000000e+00> : vector<128x32xf32>
    %14 = tpu.matmul %13, %2, %cst_3 {dimension_numbers = #tpu.dot_dimension_numbers<[1], [0], [0], [1], [0, 0, 1, 1], [], []>} : vector<128x256xbf16>, vector<256x32xbf16>, vector<128x32xf32> -> vector<128x32xf32>
    %15 = arith.truncf %14 : vector<128x32xf32> to vector<128x32xbf16>
    %16 = tpu.iota {dimensions = array<i32: 0>} : vector<128x256xi32>
    %17 = tpu.iota {dimensions = array<i32: 1>} : vector<128x256xi32>
    %c2_i32_4 = arith.constant 2 : i32
    %18 = vector.broadcast %c2_i32_4 : i32 to vector<128x256xi32>
    %19 = arith.muli %18, %16 : vector<128x256xi32>
    %c0_i32 = arith.constant 0 : i32
    %20 = vector.broadcast %c0_i32 : i32 to vector<128x256xi32>
    %21 = arith.addi %19, %20 : vector<128x256xi32>
    %22 = arith.cmpi eq, %17, %21 : vector<128x256xi32>
    %cst_5 = arith.constant 1.000000e+00 : f32
    %cst_6 = arith.constant 0.000000e+00 : f32
    %23 = vector.broadcast %cst_5 : f32 to vector<128x256xf32>
    %24 = vector.broadcast %cst_6 : f32 to vector<128x256xf32>
    %25 = arith.select %22, %23, %24 : vector<128x256xi1>, vector<128x256xf32>
    %26 = arith.truncf %25 : vector<128x256xf32> to vector<128x256xbf16>
    %cst_7 = arith.constant dense<0.000000e+00> : vector<128x32xf32>
    %27 = tpu.matmul %26, %2, %cst_7 {dimension_numbers = #tpu.dot_dimension_numbers<[1], [0], [0], [1], [0, 0, 1, 1], [], []>} : vector<128x256xbf16>, vector<256x32xbf16>, vector<128x32xf32> -> vector<128x32xf32>
    %28 = arith.truncf %27 : vector<128x32xf32> to vector<128x32xbf16>
    %29 = tpu.iota {dimensions = array<i32: 0>} : vector<128x256xi32>
    %30 = tpu.iota {dimensions = array<i32: 1>} : vector<128x256xi32>
    %c2_i32_8 = arith.constant 2 : i32
    %31 = vector.broadcast %c2_i32_8 : i32 to vector<128x256xi32>
    %32 = arith.muli %31, %29 : vector<128x256xi32>
    %c1_i32 = arith.constant 1 : i32
    %33 = vector.broadcast %c1_i32 : i32 to vector<128x256xi32>
    %34 = arith.addi %32, %33 : vector<128x256xi32>
    %35 = arith.cmpi eq, %30, %34 : vector<128x256xi32>
    %cst_9 = arith.constant 1.000000e+00 : f32
    %cst_10 = arith.constant 0.000000e+00 : f32
    %36 = vector.broadcast %cst_9 : f32 to vector<128x256xf32>
    %37 = vector.broadcast %cst_10 : f32 to vector<128x256xf32>
    %38 = arith.select %35, %36, %37 : vector<128x256xi1>, vector<128x256xf32>
    %39 = arith.truncf %38 : vector<128x256xf32> to vector<128x256xbf16>
    %cst_11 = arith.constant dense<0.000000e+00> : vector<128x32xf32>
    %40 = tpu.matmul %39, %2, %cst_11 {dimension_numbers = #tpu.dot_dimension_numbers<[1], [0], [0], [1], [0, 0, 1, 1], [], []>} : vector<128x256xbf16>, vector<256x32xbf16>, vector<128x32xf32> -> vector<128x32xf32>
    %41 = arith.truncf %40 : vector<128x32xf32> to vector<128x32xbf16>
    %c0_12 = arith.constant 0 : index
    %c0_13 = arith.constant 0 : index
    %c0_14 = arith.constant 0 : index
    %42 = vector.load %arg2[%c0_12, %c0_13, %c0_14] : memref<3x32x512xbf16, #tpu.memory_space<vmem>>, vector<1x32x512xbf16>
    %43 = vector.shape_cast %42 : vector<1x32x512xbf16> to vector<32x512xbf16>
    %cst_15 = arith.constant dense<0.000000e+00> : vector<128x512xf32>
    %44 = tpu.matmul %15, %43, %cst_15 {dimension_numbers = #tpu.dot_dimension_numbers<[1], [0], [0], [1], [0, 0, 1, 1], [], []>} : vector<128x32xbf16>, vector<32x512xbf16>, vector<128x512xf32> -> vector<128x512xf32>
    %c1 = arith.constant 1 : index
    %c0_16 = arith.constant 0 : index
    %c0_17 = arith.constant 0 : index
    %45 = vector.load %arg2[%c1, %c0_16, %c0_17] : memref<3x32x512xbf16, #tpu.memory_space<vmem>>, vector<1x32x512xbf16>
    %46 = vector.shape_cast %45 : vector<1x32x512xbf16> to vector<32x512xbf16>
    %cst_18 = arith.constant dense<0.000000e+00> : vector<128x512xf32>
    %47 = tpu.matmul %28, %46, %cst_18 {dimension_numbers = #tpu.dot_dimension_numbers<[1], [0], [0], [1], [0, 0, 1, 1], [], []>} : vector<128x32xbf16>, vector<32x512xbf16>, vector<128x512xf32> -> vector<128x512xf32>
    %48 = arith.addf %44, %47 : vector<128x512xf32>
    %c2 = arith.constant 2 : index
    %c0_19 = arith.constant 0 : index
    %c0_20 = arith.constant 0 : index
    %49 = vector.load %arg2[%c2, %c0_19, %c0_20] : memref<3x32x512xbf16, #tpu.memory_space<vmem>>, vector<1x32x512xbf16>
    %50 = vector.shape_cast %49 : vector<1x32x512xbf16> to vector<32x512xbf16>
    %cst_21 = arith.constant dense<0.000000e+00> : vector<128x512xf32>
    %51 = tpu.matmul %41, %50, %cst_21 {dimension_numbers = #tpu.dot_dimension_numbers<[1], [0], [0], [1], [0, 0, 1, 1], [], []>} : vector<128x32xbf16>, vector<32x512xbf16>, vector<128x512xf32> -> vector<128x512xf32>
    %52 = arith.addf %48, %51 : vector<128x512xf32>
    %c0_22 = arith.constant 0 : index
    %c0_23 = arith.constant 0 : index
    %53 = vector.load %arg8[%c0_22, %c0_23] : memref<1x512xf32, #tpu.memory_space<vmem>>, vector<1x512xf32>
    %54 = vector.broadcast %53 : vector<1x512xf32> to vector<128x512xf32>
    %55 = arith.addf %52, %54 : vector<128x512xf32>
    %cst_24 = arith.constant 0.000000e+00 : f32
    %56 = vector.broadcast %cst_24 : f32 to vector<128x512xf32>
    %57 = arith.maximumf %55, %56 : vector<128x512xf32>
    %58 = arith.truncf %57 : vector<128x512xf32> to vector<128x512xbf16>
    %59 = tpu.iota {dimensions = array<i32: 0>} : vector<64x128xi32>
    %60 = tpu.iota {dimensions = array<i32: 1>} : vector<64x128xi32>
    %c2_i32_25 = arith.constant 2 : i32
    %61 = vector.broadcast %c2_i32_25 : i32 to vector<64x128xi32>
    %62 = arith.muli %61, %59 : vector<64x128xi32>
    %c-1_i32_26 = arith.constant -1 : i32
    %63 = vector.broadcast %c-1_i32_26 : i32 to vector<64x128xi32>
    %64 = arith.addi %62, %63 : vector<64x128xi32>
    %65 = arith.cmpi eq, %60, %64 : vector<64x128xi32>
    %cst_27 = arith.constant 1.000000e+00 : f32
    %cst_28 = arith.constant 0.000000e+00 : f32
    %66 = vector.broadcast %cst_27 : f32 to vector<64x128xf32>
    %67 = vector.broadcast %cst_28 : f32 to vector<64x128xf32>
    %68 = arith.select %65, %66, %67 : vector<64x128xi1>, vector<64x128xf32>
    %69 = arith.truncf %68 : vector<64x128xf32> to vector<64x128xbf16>
    %cst_29 = arith.constant dense<0.000000e+00> : vector<64x512xf32>
    %70 = tpu.matmul %69, %58, %cst_29 {dimension_numbers = #tpu.dot_dimension_numbers<[1], [0], [0], [1], [0, 0, 1, 1], [], []>} : vector<64x128xbf16>, vector<128x512xbf16>, vector<64x512xf32> -> vector<64x512xf32>
    %71 = arith.truncf %70 : vector<64x512xf32> to vector<64x512xbf16>
    %72 = tpu.iota {dimensions = array<i32: 0>} : vector<64x128xi32>
    %73 = tpu.iota {dimensions = array<i32: 1>} : vector<64x128xi32>
    %c2_i32_30 = arith.constant 2 : i32
    %74 = vector.broadcast %c2_i32_30 : i32 to vector<64x128xi32>
    %75 = arith.muli %74, %72 : vector<64x128xi32>
    %c0_i32_31 = arith.constant 0 : i32
    %76 = vector.broadcast %c0_i32_31 : i32 to vector<64x128xi32>
    %77 = arith.addi %75, %76 : vector<64x128xi32>
    %78 = arith.cmpi eq, %73, %77 : vector<64x128xi32>
    %cst_32 = arith.constant 1.000000e+00 : f32
    %cst_33 = arith.constant 0.000000e+00 : f32
    %79 = vector.broadcast %cst_32 : f32 to vector<64x128xf32>
    %80 = vector.broadcast %cst_33 : f32 to vector<64x128xf32>
    %81 = arith.select %78, %79, %80 : vector<64x128xi1>, vector<64x128xf32>
    %82 = arith.truncf %81 : vector<64x128xf32> to vector<64x128xbf16>
    %cst_34 = arith.constant dense<0.000000e+00> : vector<64x512xf32>
    %83 = tpu.matmul %82, %58, %cst_34 {dimension_numbers = #tpu.dot_dimension_numbers<[1], [0], [0], [1], [0, 0, 1, 1], [], []>} : vector<64x128xbf16>, vector<128x512xbf16>, vector<64x512xf32> -> vector<64x512xf32>
    %84 = arith.truncf %83 : vector<64x512xf32> to vector<64x512xbf16>
    %85 = tpu.iota {dimensions = array<i32: 0>} : vector<64x128xi32>
    %86 = tpu.iota {dimensions = array<i32: 1>} : vector<64x128xi32>
    %c2_i32_35 = arith.constant 2 : i32
    %87 = vector.broadcast %c2_i32_35 : i32 to vector<64x128xi32>
    %88 = arith.muli %87, %85 : vector<64x128xi32>
    %c1_i32_36 = arith.constant 1 : i32
    %89 = vector.broadcast %c1_i32_36 : i32 to vector<64x128xi32>
    %90 = arith.addi %88, %89 : vector<64x128xi32>
    %91 = arith.cmpi eq, %86, %90 : vector<64x128xi32>
    %cst_37 = arith.constant 1.000000e+00 : f32
    %cst_38 = arith.constant 0.000000e+00 : f32
    %92 = vector.broadcast %cst_37 : f32 to vector<64x128xf32>
    %93 = vector.broadcast %cst_38 : f32 to vector<64x128xf32>
    %94 = arith.select %91, %92, %93 : vector<64x128xi1>, vector<64x128xf32>
    %95 = arith.truncf %94 : vector<64x128xf32> to vector<64x128xbf16>
    %cst_39 = arith.constant dense<0.000000e+00> : vector<64x512xf32>
    %96 = tpu.matmul %95, %58, %cst_39 {dimension_numbers = #tpu.dot_dimension_numbers<[1], [0], [0], [1], [0, 0, 1, 1], [], []>} : vector<64x128xbf16>, vector<128x512xbf16>, vector<64x512xf32> -> vector<64x512xf32>
    %97 = arith.truncf %96 : vector<64x512xf32> to vector<64x512xbf16>
    %c0_40 = arith.constant 0 : index
    %c0_41 = arith.constant 0 : index
    %c0_42 = arith.constant 0 : index
    %98 = vector.load %arg3[%c0_40, %c0_41, %c0_42] : memref<3x512x256xbf16, #tpu.memory_space<vmem>>, vector<1x512x256xbf16>
    %99 = vector.shape_cast %98 : vector<1x512x256xbf16> to vector<512x256xbf16>
    %cst_43 = arith.constant dense<0.000000e+00> : vector<64x256xf32>
    %100 = tpu.matmul %71, %99, %cst_43 {dimension_numbers = #tpu.dot_dimension_numbers<[1], [0], [0], [1], [0, 0, 1, 1], [], []>} : vector<64x512xbf16>, vector<512x256xbf16>, vector<64x256xf32> -> vector<64x256xf32>
    %c1_44 = arith.constant 1 : index
    %c0_45 = arith.constant 0 : index
    %c0_46 = arith.constant 0 : index
    %101 = vector.load %arg3[%c1_44, %c0_45, %c0_46] : memref<3x512x256xbf16, #tpu.memory_space<vmem>>, vector<1x512x256xbf16>
    %102 = vector.shape_cast %101 : vector<1x512x256xbf16> to vector<512x256xbf16>
    %cst_47 = arith.constant dense<0.000000e+00> : vector<64x256xf32>
    %103 = tpu.matmul %84, %102, %cst_47 {dimension_numbers = #tpu.dot_dimension_numbers<[1], [0], [0], [1], [0, 0, 1, 1], [], []>} : vector<64x512xbf16>, vector<512x256xbf16>, vector<64x256xf32> -> vector<64x256xf32>
    %104 = arith.addf %100, %103 : vector<64x256xf32>
    %c2_48 = arith.constant 2 : index
    %c0_49 = arith.constant 0 : index
    %c0_50 = arith.constant 0 : index
    %105 = vector.load %arg3[%c2_48, %c0_49, %c0_50] : memref<3x512x256xbf16, #tpu.memory_space<vmem>>, vector<1x512x256xbf16>
    %106 = vector.shape_cast %105 : vector<1x512x256xbf16> to vector<512x256xbf16>
    %cst_51 = arith.constant dense<0.000000e+00> : vector<64x256xf32>
    %107 = tpu.matmul %97, %106, %cst_51 {dimension_numbers = #tpu.dot_dimension_numbers<[1], [0], [0], [1], [0, 0, 1, 1], [], []>} : vector<64x512xbf16>, vector<512x256xbf16>, vector<64x256xf32> -> vector<64x256xf32>
    %108 = arith.addf %104, %107 : vector<64x256xf32>
    %c0_52 = arith.constant 0 : index
    %c0_53 = arith.constant 0 : index
    %109 = vector.load %arg9[%c0_52, %c0_53] : memref<1x256xf32, #tpu.memory_space<vmem>>, vector<1x256xf32>
    %110 = vector.broadcast %109 : vector<1x256xf32> to vector<64x256xf32>
    %111 = arith.addf %108, %110 : vector<64x256xf32>
    %cst_54 = arith.constant 0.000000e+00 : f32
    %112 = vector.broadcast %cst_54 : f32 to vector<64x256xf32>
    %113 = arith.maximumf %111, %112 : vector<64x256xf32>
    %114 = arith.truncf %113 : vector<64x256xf32> to vector<64x256xbf16>
    %115 = tpu.iota {dimensions = array<i32: 0>} : vector<32x64xi32>
    %116 = tpu.iota {dimensions = array<i32: 1>} : vector<32x64xi32>
    %c2_i32_55 = arith.constant 2 : i32
    %117 = vector.broadcast %c2_i32_55 : i32 to vector<32x64xi32>
    %118 = arith.muli %117, %115 : vector<32x64xi32>
    %c-1_i32_56 = arith.constant -1 : i32
    %119 = vector.broadcast %c-1_i32_56 : i32 to vector<32x64xi32>
    %120 = arith.addi %118, %119 : vector<32x64xi32>
    %121 = arith.cmpi eq, %116, %120 : vector<32x64xi32>
    %cst_57 = arith.constant 1.000000e+00 : f32
    %cst_58 = arith.constant 0.000000e+00 : f32
    %122 = vector.broadcast %cst_57 : f32 to vector<32x64xf32>
    %123 = vector.broadcast %cst_58 : f32 to vector<32x64xf32>
    %124 = arith.select %121, %122, %123 : vector<32x64xi1>, vector<32x64xf32>
    %125 = arith.truncf %124 : vector<32x64xf32> to vector<32x64xbf16>
    %cst_59 = arith.constant dense<0.000000e+00> : vector<32x256xf32>
    %126 = tpu.matmul %125, %114, %cst_59 {dimension_numbers = #tpu.dot_dimension_numbers<[1], [0], [0], [1], [0, 0, 1, 1], [], []>} : vector<32x64xbf16>, vector<64x256xbf16>, vector<32x256xf32> -> vector<32x256xf32>
    %127 = arith.truncf %126 : vector<32x256xf32> to vector<32x256xbf16>
    %128 = tpu.iota {dimensions = array<i32: 0>} : vector<32x64xi32>
    %129 = tpu.iota {dimensions = array<i32: 1>} : vector<32x64xi32>
    %c2_i32_60 = arith.constant 2 : i32
    %130 = vector.broadcast %c2_i32_60 : i32 to vector<32x64xi32>
    %131 = arith.muli %130, %128 : vector<32x64xi32>
    %c0_i32_61 = arith.constant 0 : i32
    %132 = vector.broadcast %c0_i32_61 : i32 to vector<32x64xi32>
    %133 = arith.addi %131, %132 : vector<32x64xi32>
    %134 = arith.cmpi eq, %129, %133 : vector<32x64xi32>
    %cst_62 = arith.constant 1.000000e+00 : f32
    %cst_63 = arith.constant 0.000000e+00 : f32
    %135 = vector.broadcast %cst_62 : f32 to vector<32x64xf32>
    %136 = vector.broadcast %cst_63 : f32 to vector<32x64xf32>
    %137 = arith.select %134, %135, %136 : vector<32x64xi1>, vector<32x64xf32>
    %138 = arith.truncf %137 : vector<32x64xf32> to vector<32x64xbf16>
    %cst_64 = arith.constant dense<0.000000e+00> : vector<32x256xf32>
    %139 = tpu.matmul %138, %114, %cst_64 {dimension_numbers = #tpu.dot_dimension_numbers<[1], [0], [0], [1], [0, 0, 1, 1], [], []>} : vector<32x64xbf16>, vector<64x256xbf16>, vector<32x256xf32> -> vector<32x256xf32>
    %140 = arith.truncf %139 : vector<32x256xf32> to vector<32x256xbf16>
    %141 = tpu.iota {dimensions = array<i32: 0>} : vector<32x64xi32>
    %142 = tpu.iota {dimensions = array<i32: 1>} : vector<32x64xi32>
    %c2_i32_65 = arith.constant 2 : i32
    %143 = vector.broadcast %c2_i32_65 : i32 to vector<32x64xi32>
    %144 = arith.muli %143, %141 : vector<32x64xi32>
    %c1_i32_66 = arith.constant 1 : i32
    %145 = vector.broadcast %c1_i32_66 : i32 to vector<32x64xi32>
    %146 = arith.addi %144, %145 : vector<32x64xi32>
    %147 = arith.cmpi eq, %142, %146 : vector<32x64xi32>
    %cst_67 = arith.constant 1.000000e+00 : f32
    %cst_68 = arith.constant 0.000000e+00 : f32
    %148 = vector.broadcast %cst_67 : f32 to vector<32x64xf32>
    %149 = vector.broadcast %cst_68 : f32 to vector<32x64xf32>
    %150 = arith.select %147, %148, %149 : vector<32x64xi1>, vector<32x64xf32>
    %151 = arith.truncf %150 : vector<32x64xf32> to vector<32x64xbf16>
    %cst_69 = arith.constant dense<0.000000e+00> : vector<32x256xf32>
    %152 = tpu.matmul %151, %114, %cst_69 {dimension_numbers = #tpu.dot_dimension_numbers<[1], [0], [0], [1], [0, 0, 1, 1], [], []>} : vector<32x64xbf16>, vector<64x256xbf16>, vector<32x256xf32> -> vector<32x256xf32>
    %153 = arith.truncf %152 : vector<32x256xf32> to vector<32x256xbf16>
    %c0_70 = arith.constant 0 : index
    %c0_71 = arith.constant 0 : index
    %c0_72 = arith.constant 0 : index
    %154 = vector.load %arg4[%c0_70, %c0_71, %c0_72] : memref<3x256x256xbf16, #tpu.memory_space<vmem>>, vector<1x256x256xbf16>
    %155 = vector.shape_cast %154 : vector<1x256x256xbf16> to vector<256x256xbf16>
    %cst_73 = arith.constant dense<0.000000e+00> : vector<32x256xf32>
    %156 = tpu.matmul %127, %155, %cst_73 {dimension_numbers = #tpu.dot_dimension_numbers<[1], [0], [0], [1], [0, 0, 1, 1], [], []>} : vector<32x256xbf16>, vector<256x256xbf16>, vector<32x256xf32> -> vector<32x256xf32>
    %c1_74 = arith.constant 1 : index
    %c0_75 = arith.constant 0 : index
    %c0_76 = arith.constant 0 : index
    %157 = vector.load %arg4[%c1_74, %c0_75, %c0_76] : memref<3x256x256xbf16, #tpu.memory_space<vmem>>, vector<1x256x256xbf16>
    %158 = vector.shape_cast %157 : vector<1x256x256xbf16> to vector<256x256xbf16>
    %cst_77 = arith.constant dense<0.000000e+00> : vector<32x256xf32>
    %159 = tpu.matmul %140, %158, %cst_77 {dimension_numbers = #tpu.dot_dimension_numbers<[1], [0], [0], [1], [0, 0, 1, 1], [], []>} : vector<32x256xbf16>, vector<256x256xbf16>, vector<32x256xf32> -> vector<32x256xf32>
    %160 = arith.addf %156, %159 : vector<32x256xf32>
    %c2_78 = arith.constant 2 : index
    %c0_79 = arith.constant 0 : index
    %c0_80 = arith.constant 0 : index
    %161 = vector.load %arg4[%c2_78, %c0_79, %c0_80] : memref<3x256x256xbf16, #tpu.memory_space<vmem>>, vector<1x256x256xbf16>
    %162 = vector.shape_cast %161 : vector<1x256x256xbf16> to vector<256x256xbf16>
    %cst_81 = arith.constant dense<0.000000e+00> : vector<32x256xf32>
    %163 = tpu.matmul %153, %162, %cst_81 {dimension_numbers = #tpu.dot_dimension_numbers<[1], [0], [0], [1], [0, 0, 1, 1], [], []>} : vector<32x256xbf16>, vector<256x256xbf16>, vector<32x256xf32> -> vector<32x256xf32>
    %164 = arith.addf %160, %163 : vector<32x256xf32>
    %c0_82 = arith.constant 0 : index
    %c0_83 = arith.constant 0 : index
    %165 = vector.load %arg10[%c0_82, %c0_83] : memref<1x256xf32, #tpu.memory_space<vmem>>, vector<1x256xf32>
    %166 = vector.broadcast %165 : vector<1x256xf32> to vector<32x256xf32>
    %167 = arith.addf %164, %166 : vector<32x256xf32>
    %cst_84 = arith.constant 0.000000e+00 : f32
    %168 = vector.broadcast %cst_84 : f32 to vector<32x256xf32>
    %169 = arith.maximumf %167, %168 : vector<32x256xf32>
    %170 = arith.truncf %169 : vector<32x256xf32> to vector<32x256xbf16>
    %171 = tpu.iota {dimensions = array<i32: 0>} : vector<16x32xi32>
    %172 = tpu.iota {dimensions = array<i32: 1>} : vector<16x32xi32>
    %c2_i32_85 = arith.constant 2 : i32
    %173 = vector.broadcast %c2_i32_85 : i32 to vector<16x32xi32>
    %174 = arith.muli %173, %171 : vector<16x32xi32>
    %c-1_i32_86 = arith.constant -1 : i32
    %175 = vector.broadcast %c-1_i32_86 : i32 to vector<16x32xi32>
    %176 = arith.addi %174, %175 : vector<16x32xi32>
    %177 = arith.cmpi eq, %172, %176 : vector<16x32xi32>
    %cst_87 = arith.constant 1.000000e+00 : f32
    %cst_88 = arith.constant 0.000000e+00 : f32
    %178 = vector.broadcast %cst_87 : f32 to vector<16x32xf32>
    %179 = vector.broadcast %cst_88 : f32 to vector<16x32xf32>
    %180 = arith.select %177, %178, %179 : vector<16x32xi1>, vector<16x32xf32>
    %181 = arith.truncf %180 : vector<16x32xf32> to vector<16x32xbf16>
    %cst_89 = arith.constant dense<0.000000e+00> : vector<16x256xf32>
    %182 = tpu.matmul %181, %170, %cst_89 {dimension_numbers = #tpu.dot_dimension_numbers<[1], [0], [0], [1], [0, 0, 1, 1], [], []>} : vector<16x32xbf16>, vector<32x256xbf16>, vector<16x256xf32> -> vector<16x256xf32>
    %183 = arith.truncf %182 : vector<16x256xf32> to vector<16x256xbf16>
    %184 = tpu.iota {dimensions = array<i32: 0>} : vector<16x32xi32>
    %185 = tpu.iota {dimensions = array<i32: 1>} : vector<16x32xi32>
    %c2_i32_90 = arith.constant 2 : i32
    %186 = vector.broadcast %c2_i32_90 : i32 to vector<16x32xi32>
    %187 = arith.muli %186, %184 : vector<16x32xi32>
    %c0_i32_91 = arith.constant 0 : i32
    %188 = vector.broadcast %c0_i32_91 : i32 to vector<16x32xi32>
    %189 = arith.addi %187, %188 : vector<16x32xi32>
    %190 = arith.cmpi eq, %185, %189 : vector<16x32xi32>
    %cst_92 = arith.constant 1.000000e+00 : f32
    %cst_93 = arith.constant 0.000000e+00 : f32
    %191 = vector.broadcast %cst_92 : f32 to vector<16x32xf32>
    %192 = vector.broadcast %cst_93 : f32 to vector<16x32xf32>
    %193 = arith.select %190, %191, %192 : vector<16x32xi1>, vector<16x32xf32>
    %194 = arith.truncf %193 : vector<16x32xf32> to vector<16x32xbf16>
    %cst_94 = arith.constant dense<0.000000e+00> : vector<16x256xf32>
    %195 = tpu.matmul %194, %170, %cst_94 {dimension_numbers = #tpu.dot_dimension_numbers<[1], [0], [0], [1], [0, 0, 1, 1], [], []>} : vector<16x32xbf16>, vector<32x256xbf16>, vector<16x256xf32> -> vector<16x256xf32>
    %196 = arith.truncf %195 : vector<16x256xf32> to vector<16x256xbf16>
    %197 = tpu.iota {dimensions = array<i32: 0>} : vector<16x32xi32>
    %198 = tpu.iota {dimensions = array<i32: 1>} : vector<16x32xi32>
    %c2_i32_95 = arith.constant 2 : i32
    %199 = vector.broadcast %c2_i32_95 : i32 to vector<16x32xi32>
    %200 = arith.muli %199, %197 : vector<16x32xi32>
    %c1_i32_96 = arith.constant 1 : i32
    %201 = vector.broadcast %c1_i32_96 : i32 to vector<16x32xi32>
    %202 = arith.addi %200, %201 : vector<16x32xi32>
    %203 = arith.cmpi eq, %198, %202 : vector<16x32xi32>
    %cst_97 = arith.constant 1.000000e+00 : f32
    %cst_98 = arith.constant 0.000000e+00 : f32
    %204 = vector.broadcast %cst_97 : f32 to vector<16x32xf32>
    %205 = vector.broadcast %cst_98 : f32 to vector<16x32xf32>
    %206 = arith.select %203, %204, %205 : vector<16x32xi1>, vector<16x32xf32>
    %207 = arith.truncf %206 : vector<16x32xf32> to vector<16x32xbf16>
    %cst_99 = arith.constant dense<0.000000e+00> : vector<16x256xf32>
    %208 = tpu.matmul %207, %170, %cst_99 {dimension_numbers = #tpu.dot_dimension_numbers<[1], [0], [0], [1], [0, 0, 1, 1], [], []>} : vector<16x32xbf16>, vector<32x256xbf16>, vector<16x256xf32> -> vector<16x256xf32>
    %209 = arith.truncf %208 : vector<16x256xf32> to vector<16x256xbf16>
    %c0_100 = arith.constant 0 : index
    %c0_101 = arith.constant 0 : index
    %c0_102 = arith.constant 0 : index
    %210 = vector.load %arg5[%c0_100, %c0_101, %c0_102] : memref<3x256x128xbf16, #tpu.memory_space<vmem>>, vector<1x256x128xbf16>
    %211 = vector.shape_cast %210 : vector<1x256x128xbf16> to vector<256x128xbf16>
    %cst_103 = arith.constant dense<0.000000e+00> : vector<16x128xf32>
    %212 = tpu.matmul %183, %211, %cst_103 {dimension_numbers = #tpu.dot_dimension_numbers<[1], [0], [0], [1], [0, 0, 1, 1], [], []>} : vector<16x256xbf16>, vector<256x128xbf16>, vector<16x128xf32> -> vector<16x128xf32>
    %c1_104 = arith.constant 1 : index
    %c0_105 = arith.constant 0 : index
    %c0_106 = arith.constant 0 : index
    %213 = vector.load %arg5[%c1_104, %c0_105, %c0_106] : memref<3x256x128xbf16, #tpu.memory_space<vmem>>, vector<1x256x128xbf16>
    %214 = vector.shape_cast %213 : vector<1x256x128xbf16> to vector<256x128xbf16>
    %cst_107 = arith.constant dense<0.000000e+00> : vector<16x128xf32>
    %215 = tpu.matmul %196, %214, %cst_107 {dimension_numbers = #tpu.dot_dimension_numbers<[1], [0], [0], [1], [0, 0, 1, 1], [], []>} : vector<16x256xbf16>, vector<256x128xbf16>, vector<16x128xf32> -> vector<16x128xf32>
    %216 = arith.addf %212, %215 : vector<16x128xf32>
    %c2_108 = arith.constant 2 : index
    %c0_109 = arith.constant 0 : index
    %c0_110 = arith.constant 0 : index
    %217 = vector.load %arg5[%c2_108, %c0_109, %c0_110] : memref<3x256x128xbf16, #tpu.memory_space<vmem>>, vector<1x256x128xbf16>
    %218 = vector.shape_cast %217 : vector<1x256x128xbf16> to vector<256x128xbf16>
    %cst_111 = arith.constant dense<0.000000e+00> : vector<16x128xf32>
    %219 = tpu.matmul %209, %218, %cst_111 {dimension_numbers = #tpu.dot_dimension_numbers<[1], [0], [0], [1], [0, 0, 1, 1], [], []>} : vector<16x256xbf16>, vector<256x128xbf16>, vector<16x128xf32> -> vector<16x128xf32>
    %220 = arith.addf %216, %219 : vector<16x128xf32>
    %c0_112 = arith.constant 0 : index
    %c0_113 = arith.constant 0 : index
    %221 = vector.load %arg11[%c0_112, %c0_113] : memref<1x128xf32, #tpu.memory_space<vmem>>, vector<1x128xf32>
    %222 = vector.broadcast %221 : vector<1x128xf32> to vector<16x128xf32>
    %223 = arith.addf %220, %222 : vector<16x128xf32>
    %cst_114 = arith.constant 0.000000e+00 : f32
    %224 = vector.broadcast %cst_114 : f32 to vector<16x128xf32>
    %225 = arith.maximumf %223, %224 : vector<16x128xf32>
    %226 = arith.truncf %225 : vector<16x128xf32> to vector<16x128xbf16>
    %227 = tpu.iota {dimensions = array<i32: 0>} : vector<8x16xi32>
    %228 = tpu.iota {dimensions = array<i32: 1>} : vector<8x16xi32>
    %c2_i32_115 = arith.constant 2 : i32
    %229 = vector.broadcast %c2_i32_115 : i32 to vector<8x16xi32>
    %230 = arith.muli %229, %227 : vector<8x16xi32>
    %c-1_i32_116 = arith.constant -1 : i32
    %231 = vector.broadcast %c-1_i32_116 : i32 to vector<8x16xi32>
    %232 = arith.addi %230, %231 : vector<8x16xi32>
    %233 = arith.cmpi eq, %228, %232 : vector<8x16xi32>
    %cst_117 = arith.constant 1.000000e+00 : f32
    %cst_118 = arith.constant 0.000000e+00 : f32
    %234 = vector.broadcast %cst_117 : f32 to vector<8x16xf32>
    %235 = vector.broadcast %cst_118 : f32 to vector<8x16xf32>
    %236 = arith.select %233, %234, %235 : vector<8x16xi1>, vector<8x16xf32>
    %237 = arith.truncf %236 : vector<8x16xf32> to vector<8x16xbf16>
    %cst_119 = arith.constant dense<0.000000e+00> : vector<8x128xf32>
    %238 = tpu.matmul %237, %226, %cst_119 {dimension_numbers = #tpu.dot_dimension_numbers<[1], [0], [0], [1], [0, 0, 1, 1], [], []>} : vector<8x16xbf16>, vector<16x128xbf16>, vector<8x128xf32> -> vector<8x128xf32>
    %239 = arith.truncf %238 : vector<8x128xf32> to vector<8x128xbf16>
    %240 = tpu.iota {dimensions = array<i32: 0>} : vector<8x16xi32>
    %241 = tpu.iota {dimensions = array<i32: 1>} : vector<8x16xi32>
    %c2_i32_120 = arith.constant 2 : i32
    %242 = vector.broadcast %c2_i32_120 : i32 to vector<8x16xi32>
    %243 = arith.muli %242, %240 : vector<8x16xi32>
    %c0_i32_121 = arith.constant 0 : i32
    %244 = vector.broadcast %c0_i32_121 : i32 to vector<8x16xi32>
    %245 = arith.addi %243, %244 : vector<8x16xi32>
    %246 = arith.cmpi eq, %241, %245 : vector<8x16xi32>
    %cst_122 = arith.constant 1.000000e+00 : f32
    %cst_123 = arith.constant 0.000000e+00 : f32
    %247 = vector.broadcast %cst_122 : f32 to vector<8x16xf32>
    %248 = vector.broadcast %cst_123 : f32 to vector<8x16xf32>
    %249 = arith.select %246, %247, %248 : vector<8x16xi1>, vector<8x16xf32>
    %250 = arith.truncf %249 : vector<8x16xf32> to vector<8x16xbf16>
    %cst_124 = arith.constant dense<0.000000e+00> : vector<8x128xf32>
    %251 = tpu.matmul %250, %226, %cst_124 {dimension_numbers = #tpu.dot_dimension_numbers<[1], [0], [0], [1], [0, 0, 1, 1], [], []>} : vector<8x16xbf16>, vector<16x128xbf16>, vector<8x128xf32> -> vector<8x128xf32>
    %252 = arith.truncf %251 : vector<8x128xf32> to vector<8x128xbf16>
    %253 = tpu.iota {dimensions = array<i32: 0>} : vector<8x16xi32>
    %254 = tpu.iota {dimensions = array<i32: 1>} : vector<8x16xi32>
    %c2_i32_125 = arith.constant 2 : i32
    %255 = vector.broadcast %c2_i32_125 : i32 to vector<8x16xi32>
    %256 = arith.muli %255, %253 : vector<8x16xi32>
    %c1_i32_126 = arith.constant 1 : i32
    %257 = vector.broadcast %c1_i32_126 : i32 to vector<8x16xi32>
    %258 = arith.addi %256, %257 : vector<8x16xi32>
    %259 = arith.cmpi eq, %254, %258 : vector<8x16xi32>
    %cst_127 = arith.constant 1.000000e+00 : f32
    %cst_128 = arith.constant 0.000000e+00 : f32
    %260 = vector.broadcast %cst_127 : f32 to vector<8x16xf32>
    %261 = vector.broadcast %cst_128 : f32 to vector<8x16xf32>
    %262 = arith.select %259, %260, %261 : vector<8x16xi1>, vector<8x16xf32>
    %263 = arith.truncf %262 : vector<8x16xf32> to vector<8x16xbf16>
    %cst_129 = arith.constant dense<0.000000e+00> : vector<8x128xf32>
    %264 = tpu.matmul %263, %226, %cst_129 {dimension_numbers = #tpu.dot_dimension_numbers<[1], [0], [0], [1], [0, 0, 1, 1], [], []>} : vector<8x16xbf16>, vector<16x128xbf16>, vector<8x128xf32> -> vector<8x128xf32>
    %265 = arith.truncf %264 : vector<8x128xf32> to vector<8x128xbf16>
    %c0_130 = arith.constant 0 : index
    %c0_131 = arith.constant 0 : index
    %c0_132 = arith.constant 0 : index
    %266 = vector.load %arg6[%c0_130, %c0_131, %c0_132] : memref<3x128x128xbf16, #tpu.memory_space<vmem>>, vector<1x128x128xbf16>
    %267 = vector.shape_cast %266 : vector<1x128x128xbf16> to vector<128x128xbf16>
    %cst_133 = arith.constant dense<0.000000e+00> : vector<8x128xf32>
    %268 = tpu.matmul %239, %267, %cst_133 {dimension_numbers = #tpu.dot_dimension_numbers<[1], [0], [0], [1], [0, 0, 1, 1], [], []>} : vector<8x128xbf16>, vector<128x128xbf16>, vector<8x128xf32> -> vector<8x128xf32>
    %c1_134 = arith.constant 1 : index
    %c0_135 = arith.constant 0 : index
    %c0_136 = arith.constant 0 : index
    %269 = vector.load %arg6[%c1_134, %c0_135, %c0_136] : memref<3x128x128xbf16, #tpu.memory_space<vmem>>, vector<1x128x128xbf16>
    %270 = vector.shape_cast %269 : vector<1x128x128xbf16> to vector<128x128xbf16>
    %cst_137 = arith.constant dense<0.000000e+00> : vector<8x128xf32>
    %271 = tpu.matmul %252, %270, %cst_137 {dimension_numbers = #tpu.dot_dimension_numbers<[1], [0], [0], [1], [0, 0, 1, 1], [], []>} : vector<8x128xbf16>, vector<128x128xbf16>, vector<8x128xf32> -> vector<8x128xf32>
    %272 = arith.addf %268, %271 : vector<8x128xf32>
    %c2_138 = arith.constant 2 : index
    %c0_139 = arith.constant 0 : index
    %c0_140 = arith.constant 0 : index
    %273 = vector.load %arg6[%c2_138, %c0_139, %c0_140] : memref<3x128x128xbf16, #tpu.memory_space<vmem>>, vector<1x128x128xbf16>
    %274 = vector.shape_cast %273 : vector<1x128x128xbf16> to vector<128x128xbf16>
    %cst_141 = arith.constant dense<0.000000e+00> : vector<8x128xf32>
    %275 = tpu.matmul %265, %274, %cst_141 {dimension_numbers = #tpu.dot_dimension_numbers<[1], [0], [0], [1], [0, 0, 1, 1], [], []>} : vector<8x128xbf16>, vector<128x128xbf16>, vector<8x128xf32> -> vector<8x128xf32>
    %276 = arith.addf %272, %275 : vector<8x128xf32>
    %c0_142 = arith.constant 0 : index
    %c0_143 = arith.constant 0 : index
    %277 = vector.load %arg12[%c0_142, %c0_143] : memref<1x128xf32, #tpu.memory_space<vmem>>, vector<1x128xf32>
    %278 = vector.broadcast %277 : vector<1x128xf32> to vector<8x128xf32>
    %279 = arith.addf %276, %278 : vector<8x128xf32>
    %cst_144 = arith.constant 0.000000e+00 : f32
    %280 = vector.broadcast %cst_144 : f32 to vector<8x128xf32>
    %281 = arith.maximumf %279, %280 : vector<8x128xf32>
    %282 = arith.truncf %281 : vector<8x128xf32> to vector<8x128xbf16>
    %283 = tpu.iota {dimensions = array<i32: 0>} : vector<4x8xi32>
    %284 = tpu.iota {dimensions = array<i32: 1>} : vector<4x8xi32>
    %c2_i32_145 = arith.constant 2 : i32
    %285 = vector.broadcast %c2_i32_145 : i32 to vector<4x8xi32>
    %286 = arith.muli %285, %283 : vector<4x8xi32>
    %c-1_i32_146 = arith.constant -1 : i32
    %287 = vector.broadcast %c-1_i32_146 : i32 to vector<4x8xi32>
    %288 = arith.addi %286, %287 : vector<4x8xi32>
    %289 = arith.cmpi eq, %284, %288 : vector<4x8xi32>
    %cst_147 = arith.constant 1.000000e+00 : f32
    %cst_148 = arith.constant 0.000000e+00 : f32
    %290 = vector.broadcast %cst_147 : f32 to vector<4x8xf32>
    %291 = vector.broadcast %cst_148 : f32 to vector<4x8xf32>
    %292 = arith.select %289, %290, %291 : vector<4x8xi1>, vector<4x8xf32>
    %293 = arith.truncf %292 : vector<4x8xf32> to vector<4x8xbf16>
    %cst_149 = arith.constant dense<0.000000e+00> : vector<4x128xf32>
    %294 = tpu.matmul %293, %282, %cst_149 {dimension_numbers = #tpu.dot_dimension_numbers<[1], [0], [0], [1], [0, 0, 1, 1], [], []>} : vector<4x8xbf16>, vector<8x128xbf16>, vector<4x128xf32> -> vector<4x128xf32>
    %295 = arith.truncf %294 : vector<4x128xf32> to vector<4x128xbf16>
    %296 = tpu.iota {dimensions = array<i32: 0>} : vector<4x8xi32>
    %297 = tpu.iota {dimensions = array<i32: 1>} : vector<4x8xi32>
    %c2_i32_150 = arith.constant 2 : i32
    %298 = vector.broadcast %c2_i32_150 : i32 to vector<4x8xi32>
    %299 = arith.muli %298, %296 : vector<4x8xi32>
    %c0_i32_151 = arith.constant 0 : i32
    %300 = vector.broadcast %c0_i32_151 : i32 to vector<4x8xi32>
    %301 = arith.addi %299, %300 : vector<4x8xi32>
    %302 = arith.cmpi eq, %297, %301 : vector<4x8xi32>
    %cst_152 = arith.constant 1.000000e+00 : f32
    %cst_153 = arith.constant 0.000000e+00 : f32
    %303 = vector.broadcast %cst_152 : f32 to vector<4x8xf32>
    %304 = vector.broadcast %cst_153 : f32 to vector<4x8xf32>
    %305 = arith.select %302, %303, %304 : vector<4x8xi1>, vector<4x8xf32>
    %306 = arith.truncf %305 : vector<4x8xf32> to vector<4x8xbf16>
    %cst_154 = arith.constant dense<0.000000e+00> : vector<4x128xf32>
    %307 = tpu.matmul %306, %282, %cst_154 {dimension_numbers = #tpu.dot_dimension_numbers<[1], [0], [0], [1], [0, 0, 1, 1], [], []>} : vector<4x8xbf16>, vector<8x128xbf16>, vector<4x128xf32> -> vector<4x128xf32>
    %308 = arith.truncf %307 : vector<4x128xf32> to vector<4x128xbf16>
    %309 = tpu.iota {dimensions = array<i32: 0>} : vector<4x8xi32>
    %310 = tpu.iota {dimensions = array<i32: 1>} : vector<4x8xi32>
    %c2_i32_155 = arith.constant 2 : i32
    %311 = vector.broadcast %c2_i32_155 : i32 to vector<4x8xi32>
    %312 = arith.muli %311, %309 : vector<4x8xi32>
    %c1_i32_156 = arith.constant 1 : i32
    %313 = vector.broadcast %c1_i32_156 : i32 to vector<4x8xi32>
    %314 = arith.addi %312, %313 : vector<4x8xi32>
    %315 = arith.cmpi eq, %310, %314 : vector<4x8xi32>
    %cst_157 = arith.constant 1.000000e+00 : f32
    %cst_158 = arith.constant 0.000000e+00 : f32
    %316 = vector.broadcast %cst_157 : f32 to vector<4x8xf32>
    %317 = vector.broadcast %cst_158 : f32 to vector<4x8xf32>
    %318 = arith.select %315, %316, %317 : vector<4x8xi1>, vector<4x8xf32>
    %319 = arith.truncf %318 : vector<4x8xf32> to vector<4x8xbf16>
    %cst_159 = arith.constant dense<0.000000e+00> : vector<4x128xf32>
    %320 = tpu.matmul %319, %282, %cst_159 {dimension_numbers = #tpu.dot_dimension_numbers<[1], [0], [0], [1], [0, 0, 1, 1], [], []>} : vector<4x8xbf16>, vector<8x128xbf16>, vector<4x128xf32> -> vector<4x128xf32>
    %321 = arith.truncf %320 : vector<4x128xf32> to vector<4x128xbf16>
    %c0_160 = arith.constant 0 : index
    %c0_161 = arith.constant 0 : index
    %c0_162 = arith.constant 0 : index
    %322 = vector.load %arg7[%c0_160, %c0_161, %c0_162] : memref<3x128x128xbf16, #tpu.memory_space<vmem>>, vector<1x128x128xbf16>
    %323 = vector.shape_cast %322 : vector<1x128x128xbf16> to vector<128x128xbf16>
    %cst_163 = arith.constant dense<0.000000e+00> : vector<4x128xf32>
    %324 = tpu.matmul %295, %323, %cst_163 {dimension_numbers = #tpu.dot_dimension_numbers<[1], [0], [0], [1], [0, 0, 1, 1], [], []>} : vector<4x128xbf16>, vector<128x128xbf16>, vector<4x128xf32> -> vector<4x128xf32>
    %c1_164 = arith.constant 1 : index
    %c0_165 = arith.constant 0 : index
    %c0_166 = arith.constant 0 : index
    %325 = vector.load %arg7[%c1_164, %c0_165, %c0_166] : memref<3x128x128xbf16, #tpu.memory_space<vmem>>, vector<1x128x128xbf16>
    %326 = vector.shape_cast %325 : vector<1x128x128xbf16> to vector<128x128xbf16>
    %cst_167 = arith.constant dense<0.000000e+00> : vector<4x128xf32>
    %327 = tpu.matmul %308, %326, %cst_167 {dimension_numbers = #tpu.dot_dimension_numbers<[1], [0], [0], [1], [0, 0, 1, 1], [], []>} : vector<4x128xbf16>, vector<128x128xbf16>, vector<4x128xf32> -> vector<4x128xf32>
    %328 = arith.addf %324, %327 : vector<4x128xf32>
    %c2_168 = arith.constant 2 : index
    %c0_169 = arith.constant 0 : index
    %c0_170 = arith.constant 0 : index
    %329 = vector.load %arg7[%c2_168, %c0_169, %c0_170] : memref<3x128x128xbf16, #tpu.memory_space<vmem>>, vector<1x128x128xbf16>
    %330 = vector.shape_cast %329 : vector<1x128x128xbf16> to vector<128x128xbf16>
    %cst_171 = arith.constant dense<0.000000e+00> : vector<4x128xf32>
    %331 = tpu.matmul %321, %330, %cst_171 {dimension_numbers = #tpu.dot_dimension_numbers<[1], [0], [0], [1], [0, 0, 1, 1], [], []>} : vector<4x128xbf16>, vector<128x128xbf16>, vector<4x128xf32> -> vector<4x128xf32>
    %332 = arith.addf %328, %331 : vector<4x128xf32>
    %c0_172 = arith.constant 0 : index
    %c0_173 = arith.constant 0 : index
    %333 = vector.load %arg13[%c0_172, %c0_173] : memref<1x128xf32, #tpu.memory_space<vmem>>, vector<1x128xf32>
    %334 = vector.broadcast %333 : vector<1x128xf32> to vector<4x128xf32>
    %335 = arith.addf %332, %334 : vector<4x128xf32>
    %cst_174 = arith.constant 0.000000e+00 : f32
    %336 = vector.broadcast %cst_174 : f32 to vector<4x128xf32>
    %337 = arith.maximumf %335, %336 : vector<4x128xf32>
    %c0_175 = arith.constant 0 : index
    %c0_176 = arith.constant 0 : index
    %338 = vector.load %arg14[%c0_175, %c0_176] : memref<128x384xf32, #tpu.memory_space<vmem>>, vector<128x384xf32>
    %cst_177 = arith.constant dense<0.000000e+00> : vector<4x384xf32>
    %339 = tpu.matmul %337, %338, %cst_177 {dimension_numbers = #tpu.dot_dimension_numbers<[1], [0], [0], [1], [0, 0, 1, 1], [], []>} : vector<4x128xf32>, vector<128x384xf32>, vector<4x384xf32> -> vector<4x384xf32>
    %c0_178 = arith.constant 0 : index
    %c0_179 = arith.constant 0 : index
    %340 = vector.load %arg15[%c0_178, %c0_179] : memref<1x384xf32, #tpu.memory_space<vmem>>, vector<1x384xf32>
    %341 = vector.broadcast %340 : vector<1x384xf32> to vector<4x384xf32>
    %342 = arith.addf %339, %341 : vector<4x384xf32>
    %c0_180 = arith.constant 0 : index
    %c0_181 = arith.constant 0 : index
    %343 = vector.load %arg16[%c0_180, %c0_181] : memref<128x384xf32, #tpu.memory_space<vmem>>, vector<128x384xf32>
    %c0_182 = arith.constant 0 : index
    %c0_183 = arith.constant 0 : index
    %344 = vector.load %arg17[%c0_182, %c0_183] : memref<1x384xf32, #tpu.memory_space<vmem>>, vector<1x384xf32>
    %cst_184 = arith.constant 0.000000e+00 : f32
    %345 = vector.broadcast %cst_184 : f32 to vector<1x128xf32>
    %cst_185 = arith.constant dense<0.000000e+00> : vector<1x384xf32>
    %346 = tpu.matmul %345, %343, %cst_185 {dimension_numbers = #tpu.dot_dimension_numbers<[1], [0], [0], [1], [0, 0, 1, 1], [], []>} : vector<1x128xf32>, vector<128x384xf32>, vector<1x384xf32> -> vector<1x384xf32>
    %347 = arith.addf %346, %344 : vector<1x384xf32>
    %348 = vector.extract_strided_slice %342 {offsets = [0, 0], sizes = [1, 384], strides = [1, 1]} : vector<4x384xf32> to vector<1x384xf32>
    %349 = vector.extract_strided_slice %348 {offsets = [0, 0], sizes = [1, 128], strides = [1, 1]} : vector<1x384xf32> to vector<1x128xf32>
    %350 = vector.extract_strided_slice %347 {offsets = [0, 0], sizes = [1, 128], strides = [1, 1]} : vector<1x384xf32> to vector<1x128xf32>
    %351 = arith.addf %349, %350 : vector<1x128xf32>
    %352 = arith.negf %351 : vector<1x128xf32>
    %353 = math.exp %352 : vector<1x128xf32>
    %cst_186 = arith.constant 1.000000e+00 : f32
    %354 = vector.broadcast %cst_186 : f32 to vector<1x128xf32>
    %355 = arith.addf %354, %353 : vector<1x128xf32>
    %356 = arith.divf %354, %355 : vector<1x128xf32>
    %357 = vector.extract_strided_slice %348 {offsets = [0, 128], sizes = [1, 128], strides = [1, 1]} : vector<1x384xf32> to vector<1x128xf32>
    %358 = vector.extract_strided_slice %347 {offsets = [0, 128], sizes = [1, 128], strides = [1, 1]} : vector<1x384xf32> to vector<1x128xf32>
    %359 = arith.addf %357, %358 : vector<1x128xf32>
    %360 = arith.negf %359 : vector<1x128xf32>
    %361 = math.exp %360 : vector<1x128xf32>
    %cst_187 = arith.constant 1.000000e+00 : f32
    %362 = vector.broadcast %cst_187 : f32 to vector<1x128xf32>
    %363 = arith.addf %362, %361 : vector<1x128xf32>
    %364 = arith.divf %362, %363 : vector<1x128xf32>
    %365 = vector.extract_strided_slice %348 {offsets = [0, 256], sizes = [1, 128], strides = [1, 1]} : vector<1x384xf32> to vector<1x128xf32>
    %366 = vector.extract_strided_slice %347 {offsets = [0, 256], sizes = [1, 128], strides = [1, 1]} : vector<1x384xf32> to vector<1x128xf32>
    %367 = arith.mulf %356, %366 : vector<1x128xf32>
    %368 = arith.addf %365, %367 : vector<1x128xf32>
    %369 = math.tanh %368 : vector<1x128xf32>
    %cst_188 = arith.constant 1.000000e+00 : f32
    %370 = vector.broadcast %cst_188 : f32 to vector<1x128xf32>
    %371 = arith.subf %370, %364 : vector<1x128xf32>
    %372 = arith.mulf %371, %369 : vector<1x128xf32>
    %373 = arith.mulf %364, %345 : vector<1x128xf32>
    %374 = arith.addf %372, %373 : vector<1x128xf32>
    %cst_189 = arith.constant dense<0.000000e+00> : vector<1x384xf32>
    %375 = tpu.matmul %374, %343, %cst_189 {dimension_numbers = #tpu.dot_dimension_numbers<[1], [0], [0], [1], [0, 0, 1, 1], [], []>} : vector<1x128xf32>, vector<128x384xf32>, vector<1x384xf32> -> vector<1x384xf32>
    %376 = arith.addf %375, %344 : vector<1x384xf32>
    %377 = vector.extract_strided_slice %342 {offsets = [1, 0], sizes = [1, 384], strides = [1, 1]} : vector<4x384xf32> to vector<1x384xf32>
    %378 = vector.extract_strided_slice %377 {offsets = [0, 0], sizes = [1, 128], strides = [1, 1]} : vector<1x384xf32> to vector<1x128xf32>
    %379 = vector.extract_strided_slice %376 {offsets = [0, 0], sizes = [1, 128], strides = [1, 1]} : vector<1x384xf32> to vector<1x128xf32>
    %380 = arith.addf %378, %379 : vector<1x128xf32>
    %381 = arith.negf %380 : vector<1x128xf32>
    %382 = math.exp %381 : vector<1x128xf32>
    %cst_190 = arith.constant 1.000000e+00 : f32
    %383 = vector.broadcast %cst_190 : f32 to vector<1x128xf32>
    %384 = arith.addf %383, %382 : vector<1x128xf32>
    %385 = arith.divf %383, %384 : vector<1x128xf32>
    %386 = vector.extract_strided_slice %377 {offsets = [0, 128], sizes = [1, 128], strides = [1, 1]} : vector<1x384xf32> to vector<1x128xf32>
    %387 = vector.extract_strided_slice %376 {offsets = [0, 128], sizes = [1, 128], strides = [1, 1]} : vector<1x384xf32> to vector<1x128xf32>
    %388 = arith.addf %386, %387 : vector<1x128xf32>
    %389 = arith.negf %388 : vector<1x128xf32>
    %390 = math.exp %389 : vector<1x128xf32>
    %cst_191 = arith.constant 1.000000e+00 : f32
    %391 = vector.broadcast %cst_191 : f32 to vector<1x128xf32>
    %392 = arith.addf %391, %390 : vector<1x128xf32>
    %393 = arith.divf %391, %392 : vector<1x128xf32>
    %394 = vector.extract_strided_slice %377 {offsets = [0, 256], sizes = [1, 128], strides = [1, 1]} : vector<1x384xf32> to vector<1x128xf32>
    %395 = vector.extract_strided_slice %376 {offsets = [0, 256], sizes = [1, 128], strides = [1, 1]} : vector<1x384xf32> to vector<1x128xf32>
    %396 = arith.mulf %385, %395 : vector<1x128xf32>
    %397 = arith.addf %394, %396 : vector<1x128xf32>
    %398 = math.tanh %397 : vector<1x128xf32>
    %cst_192 = arith.constant 1.000000e+00 : f32
    %399 = vector.broadcast %cst_192 : f32 to vector<1x128xf32>
    %400 = arith.subf %399, %393 : vector<1x128xf32>
    %401 = arith.mulf %400, %398 : vector<1x128xf32>
    %402 = arith.mulf %393, %374 : vector<1x128xf32>
    %403 = arith.addf %401, %402 : vector<1x128xf32>
    %cst_193 = arith.constant dense<0.000000e+00> : vector<1x384xf32>
    %404 = tpu.matmul %403, %343, %cst_193 {dimension_numbers = #tpu.dot_dimension_numbers<[1], [0], [0], [1], [0, 0, 1, 1], [], []>} : vector<1x128xf32>, vector<128x384xf32>, vector<1x384xf32> -> vector<1x384xf32>
    %405 = arith.addf %404, %344 : vector<1x384xf32>
    %406 = vector.extract_strided_slice %342 {offsets = [2, 0], sizes = [1, 384], strides = [1, 1]} : vector<4x384xf32> to vector<1x384xf32>
    %407 = vector.extract_strided_slice %406 {offsets = [0, 0], sizes = [1, 128], strides = [1, 1]} : vector<1x384xf32> to vector<1x128xf32>
    %408 = vector.extract_strided_slice %405 {offsets = [0, 0], sizes = [1, 128], strides = [1, 1]} : vector<1x384xf32> to vector<1x128xf32>
    %409 = arith.addf %407, %408 : vector<1x128xf32>
    %410 = arith.negf %409 : vector<1x128xf32>
    %411 = math.exp %410 : vector<1x128xf32>
    %cst_194 = arith.constant 1.000000e+00 : f32
    %412 = vector.broadcast %cst_194 : f32 to vector<1x128xf32>
    %413 = arith.addf %412, %411 : vector<1x128xf32>
    %414 = arith.divf %412, %413 : vector<1x128xf32>
    %415 = vector.extract_strided_slice %406 {offsets = [0, 128], sizes = [1, 128], strides = [1, 1]} : vector<1x384xf32> to vector<1x128xf32>
    %416 = vector.extract_strided_slice %405 {offsets = [0, 128], sizes = [1, 128], strides = [1, 1]} : vector<1x384xf32> to vector<1x128xf32>
    %417 = arith.addf %415, %416 : vector<1x128xf32>
    %418 = arith.negf %417 : vector<1x128xf32>
    %419 = math.exp %418 : vector<1x128xf32>
    %cst_195 = arith.constant 1.000000e+00 : f32
    %420 = vector.broadcast %cst_195 : f32 to vector<1x128xf32>
    %421 = arith.addf %420, %419 : vector<1x128xf32>
    %422 = arith.divf %420, %421 : vector<1x128xf32>
    %423 = vector.extract_strided_slice %406 {offsets = [0, 256], sizes = [1, 128], strides = [1, 1]} : vector<1x384xf32> to vector<1x128xf32>
    %424 = vector.extract_strided_slice %405 {offsets = [0, 256], sizes = [1, 128], strides = [1, 1]} : vector<1x384xf32> to vector<1x128xf32>
    %425 = arith.mulf %414, %424 : vector<1x128xf32>
    %426 = arith.addf %423, %425 : vector<1x128xf32>
    %427 = math.tanh %426 : vector<1x128xf32>
    %cst_196 = arith.constant 1.000000e+00 : f32
    %428 = vector.broadcast %cst_196 : f32 to vector<1x128xf32>
    %429 = arith.subf %428, %422 : vector<1x128xf32>
    %430 = arith.mulf %429, %427 : vector<1x128xf32>
    %431 = arith.mulf %422, %403 : vector<1x128xf32>
    %432 = arith.addf %430, %431 : vector<1x128xf32>
    %cst_197 = arith.constant dense<0.000000e+00> : vector<1x384xf32>
    %433 = tpu.matmul %432, %343, %cst_197 {dimension_numbers = #tpu.dot_dimension_numbers<[1], [0], [0], [1], [0, 0, 1, 1], [], []>} : vector<1x128xf32>, vector<128x384xf32>, vector<1x384xf32> -> vector<1x384xf32>
    %434 = arith.addf %433, %344 : vector<1x384xf32>
    %435 = vector.extract_strided_slice %342 {offsets = [3, 0], sizes = [1, 384], strides = [1, 1]} : vector<4x384xf32> to vector<1x384xf32>
    %436 = vector.extract_strided_slice %435 {offsets = [0, 0], sizes = [1, 128], strides = [1, 1]} : vector<1x384xf32> to vector<1x128xf32>
    %437 = vector.extract_strided_slice %434 {offsets = [0, 0], sizes = [1, 128], strides = [1, 1]} : vector<1x384xf32> to vector<1x128xf32>
    %438 = arith.addf %436, %437 : vector<1x128xf32>
    %439 = arith.negf %438 : vector<1x128xf32>
    %440 = math.exp %439 : vector<1x128xf32>
    %cst_198 = arith.constant 1.000000e+00 : f32
    %441 = vector.broadcast %cst_198 : f32 to vector<1x128xf32>
    %442 = arith.addf %441, %440 : vector<1x128xf32>
    %443 = arith.divf %441, %442 : vector<1x128xf32>
    %444 = vector.extract_strided_slice %435 {offsets = [0, 128], sizes = [1, 128], strides = [1, 1]} : vector<1x384xf32> to vector<1x128xf32>
    %445 = vector.extract_strided_slice %434 {offsets = [0, 128], sizes = [1, 128], strides = [1, 1]} : vector<1x384xf32> to vector<1x128xf32>
    %446 = arith.addf %444, %445 : vector<1x128xf32>
    %447 = arith.negf %446 : vector<1x128xf32>
    %448 = math.exp %447 : vector<1x128xf32>
    %cst_199 = arith.constant 1.000000e+00 : f32
    %449 = vector.broadcast %cst_199 : f32 to vector<1x128xf32>
    %450 = arith.addf %449, %448 : vector<1x128xf32>
    %451 = arith.divf %449, %450 : vector<1x128xf32>
    %452 = vector.extract_strided_slice %435 {offsets = [0, 256], sizes = [1, 128], strides = [1, 1]} : vector<1x384xf32> to vector<1x128xf32>
    %453 = vector.extract_strided_slice %434 {offsets = [0, 256], sizes = [1, 128], strides = [1, 1]} : vector<1x384xf32> to vector<1x128xf32>
    %454 = arith.mulf %443, %453 : vector<1x128xf32>
    %455 = arith.addf %452, %454 : vector<1x128xf32>
    %456 = math.tanh %455 : vector<1x128xf32>
    %cst_200 = arith.constant 1.000000e+00 : f32
    %457 = vector.broadcast %cst_200 : f32 to vector<1x128xf32>
    %458 = arith.subf %457, %451 : vector<1x128xf32>
    %459 = arith.mulf %458, %456 : vector<1x128xf32>
    %460 = arith.mulf %451, %432 : vector<1x128xf32>
    %461 = arith.addf %459, %460 : vector<1x128xf32>
    %c0_201 = arith.constant 0 : index
    %c0_202 = arith.constant 0 : index
    %c0_203 = arith.constant 0 : index
    %462 = vector.load %arg18[%c0_201, %c0_202, %c0_203] : memref<1x1x128xf32, #tpu.memory_space<vmem>>, vector<1x1x128xf32>
    %463 = vector.shape_cast %462 : vector<1x1x128xf32> to vector<1x128xf32>
    %464 = vector.shape_cast %461 : vector<1x128xf32> to vector<1x1x128xf32>
    tpu.vector_store %arg18[%c0_201, %c0_202, %c0_203], %464 {strides = array<i32>} : memref<1x1x128xf32, #tpu.memory_space<vmem>>, vector<1x1x128xf32>,
    return
  }
  func.func @transform_0(%arg0: i32) -> (i32, i32, i32) {
    %c0_i32 = arith.constant 0 : i32
    %c0_i32_0 = arith.constant 0 : i32
    %c0_i32_1 = arith.constant 0 : i32
    return %arg0, %c0_i32, %c0_i32_0 : i32, i32, i32
  }
  func.func @transform_1(%arg0: i32) -> (i32, i32, i32) {
    %c0_i32 = arith.constant 0 : i32
    %c0_i32_0 = arith.constant 0 : i32
    %c0_i32_1 = arith.constant 0 : i32
    %c0_i32_2 = arith.constant 0 : i32
    return %c0_i32, %c0_i32_0, %c0_i32_1 : i32, i32, i32
  }
  func.func @transform_2(%arg0: i32) -> (i32, i32, i32) {
    %c0_i32 = arith.constant 0 : i32
    %c0_i32_0 = arith.constant 0 : i32
    %c0_i32_1 = arith.constant 0 : i32
    %c0_i32_2 = arith.constant 0 : i32
    return %c0_i32, %c0_i32_0, %c0_i32_1 : i32, i32, i32
  }
  func.func @transform_3(%arg0: i32) -> (i32, i32, i32) {
    %c0_i32 = arith.constant 0 : i32
    %c0_i32_0 = arith.constant 0 : i32
    %c0_i32_1 = arith.constant 0 : i32
    %c0_i32_2 = arith.constant 0 : i32
    return %c0_i32, %c0_i32_0, %c0_i32_1 : i32, i32, i32
  }
  func.func @transform_4(%arg0: i32) -> (i32, i32, i32) {
    %c0_i32 = arith.constant 0 : i32
    %c0_i32_0 = arith.constant 0 : i32
    %c0_i32_1 = arith.constant 0 : i32
    %c0_i32_2 = arith.constant 0 : i32
    return %c0_i32, %c0_i32_0, %c0_i32_1 : i32, i32, i32
  }
  func.func @transform_5(%arg0: i32) -> (i32, i32, i32) {
    %c0_i32 = arith.constant 0 : i32
    %c0_i32_0 = arith.constant 0 : i32
    %c0_i32_1 = arith.constant 0 : i32
    %c0_i32_2 = arith.constant 0 : i32
    return %c0_i32, %c0_i32_0, %c0_i32_1 : i32, i32, i32
  }
  func.func @transform_6(%arg0: i32) -> (i32, i32, i32) {
    %c0_i32 = arith.constant 0 : i32
    %c0_i32_0 = arith.constant 0 : i32
    %c0_i32_1 = arith.constant 0 : i32
    %c0_i32_2 = arith.constant 0 : i32
    return %c0_i32, %c0_i32_0, %c0_i32_1 : i32, i32, i32
  }
  func.func @transform_7(%arg0: i32) -> (i32, i32) {
    %c0_i32 = arith.constant 0 : i32
    %c0_i32_0 = arith.constant 0 : i32
    %c0_i32_1 = arith.constant 0 : i32
    return %c0_i32, %c0_i32_0 : i32, i32
  }
  func.func @transform_8(%arg0: i32) -> (i32, i32) {
    %c0_i32 = arith.constant 0 : i32
    %c0_i32_0 = arith.constant 0 : i32
    %c0_i32_1 = arith.constant 0 : i32
    return %c0_i32, %c0_i32_0 : i32, i32
  }
  func.func @transform_9(%arg0: i32) -> (i32, i32) {
    %c0_i32 = arith.constant 0 : i32
    %c0_i32_0 = arith.constant 0 : i32
    %c0_i32_1 = arith.constant 0 : i32
    return %c0_i32, %c0_i32_0 : i32, i32
  }
  func.func @transform_10(%arg0: i32) -> (i32, i32) {
    %c0_i32 = arith.constant 0 : i32
    %c0_i32_0 = arith.constant 0 : i32
    %c0_i32_1 = arith.constant 0 : i32
    return %c0_i32, %c0_i32_0 : i32, i32
  }
  func.func @transform_11(%arg0: i32) -> (i32, i32) {
    %c0_i32 = arith.constant 0 : i32
    %c0_i32_0 = arith.constant 0 : i32
    %c0_i32_1 = arith.constant 0 : i32
    return %c0_i32, %c0_i32_0 : i32, i32
  }
  func.func @transform_12(%arg0: i32) -> (i32, i32) {
    %c0_i32 = arith.constant 0 : i32
    %c0_i32_0 = arith.constant 0 : i32
    %c0_i32_1 = arith.constant 0 : i32
    return %c0_i32, %c0_i32_0 : i32, i32
  }
  func.func @transform_13(%arg0: i32) -> (i32, i32) {
    %c0_i32 = arith.constant 0 : i32
    %c0_i32_0 = arith.constant 0 : i32
    %c0_i32_1 = arith.constant 0 : i32
    return %c0_i32, %c0_i32_0 : i32, i32
  }
  func.func @transform_14(%arg0: i32) -> (i32, i32) {
    %c0_i32 = arith.constant 0 : i32
    %c0_i32_0 = arith.constant 0 : i32
    %c0_i32_1 = arith.constant 0 : i32
    return %c0_i32, %c0_i32_0 : i32, i32
  }
  func.func @transform_15(%arg0: i32) -> (i32, i32) {
    %c0_i32 = arith.constant 0 : i32
    %c0_i32_0 = arith.constant 0 : i32
    %c0_i32_1 = arith.constant 0 : i32
    return %c0_i32, %c0_i32_0 : i32, i32
  }
  func.func @transform_16(%arg0: i32) -> (i32, i32) {
    %c0_i32 = arith.constant 0 : i32
    %c0_i32_0 = arith.constant 0 : i32
    %c0_i32_1 = arith.constant 0 : i32
    return %c0_i32, %c0_i32_0 : i32, i32
  }
  func.func @transform_17(%arg0: i32) -> (i32, i32, i32) {
    %c0_i32 = arith.constant 0 : i32
    %c0_i32_0 = arith.constant 0 : i32
    %c0_i32_1 = arith.constant 0 : i32
    return %arg0, %c0_i32, %c0_i32_0 : i32, i32, i32
  }
}

</mosaic_0001>

<bundles_post_ra>
// kernel: _lambda_.1
= control target key start
LH: loop header
LB: loop body
LE: loop exit
PB: predicated region body
PF: predicated region fallthrough
CT: control target
= control target key end

     0   :  { %s13940_s0 = inlined_call_operand.vmem [shape: f32[2,256,32], index: 0, kind: input, shape index: {}]   ;;  %s13941_s1 = inlined_call_operand.hbm [shape: bf16[3,32,512], index: 1, kind: input, shape index: {}]   ;;  %s13942_s2 = inlined_call_operand.hbm [shape: bf16[3,512,256], index: 2, kind: input, shape index: {}]   ;;  %s13943_s3 = inlined_call_operand.hbm [shape: bf16[3,256,256], index: 3, kind: input, shape index: {}]   ;;  %s13944_s4 = inlined_call_operand.hbm [shape: bf16[3,256,128], index: 4, kind: input, shape index: {}]   ;;  %s13945_s5 = inlined_call_operand.hbm [shape: bf16[3,128,128], index: 5, kind: input, shape index: {}]   ;;  %s13946_s6 = inlined_call_operand.vmem [shape: bf16[3,128,128], index: 6, kind: input, shape index: {}]   ;;  %s13947_s7 = inlined_call_operand.vmem [shape: f32[1,512], index: 7, kind: input, shape index: {}]   ;;  %s13948_s8 = inlined_call_operand.vmem [shape: f32[1,256], index: 8, kind: input, shape index: {}]   ;;  %s13949_s9 = inlined_call_operand.vmem [shape: f32[1,256], index: 9, kind: input, shape index: {}]   ;;  %s13950_s10 = inlined_call_operand.vmem [shape: f32[1,128], index: 10, kind: input, shape index: {}]   ;;  %s13951_s11 = inlined_call_operand.vmem [shape: f32[1,128], index: 11, kind: input, shape index: {}]   ;;  %s13952_s12 = inlined_call_operand.vmem [shape: f32[1,128], index: 12, kind: input, shape index: {}]   ;;  %s13953_s13 = inlined_call_operand.hbm [shape: f32[128,384], index: 13, kind: input, shape index: {}]   ;;  %s13954_s14 = inlined_call_operand.vmem [shape: f32[1,384], index: 14, kind: input, shape index: {}]   ;;  %s13955_s15 = inlined_call_operand.vmem [shape: f32[128,384], index: 15, kind: input, shape index: {}]   ;;  %s13956_s16 = inlined_call_operand.vmem [shape: f32[1,384], index: 16, kind: input, shape index: {}]   ;;  %s13957_s17 = inlined_call_operand.hbm [shape: f32[2,1,128], index: 17, kind: output, shape index: {}]  }
   0x1   :  { %14063 = sst [smem:[#allocation97_spill]] %s13940_s0 }
   0x2   :  { %14064 = sst [smem:[#allocation98_spill]] %s13941_s1 }
   0x3   :  { %14065 = sst [smem:[#allocation99_spill]] %s13942_s2 }
   0x4   :  { %14066 = sst [smem:[#allocation100_spill]] %s13944_s4 }
   0x5   :  { %14067 = sst [smem:[#allocation101_spill]] %s13957_s17 }
   0x6   :  { %22 = vsyncpa [#allocation3], 0 }
   0x7   :  { %23 = vsyncpa [#allocation6], 0 }
   0x8   :  { %24 = vsyncpa [#allocation9], 0 }
   0x9   :  { %25 = vsyncpa [#allocation12], 0 }
   0xa   :  { %26 = vsyncpa [#allocation4], 0 }
   0xb   :  { %28 = vsyncpa [#allocation4 + $0x1], 0  ;;  %s10728_s24 = smov 0   ;;  %s10730_s25 = smov 0  }
   0xc   :  { %s10732_s26 = smov 0   ;;  %s10734_s27 = smov 0  }
   0xd LB: > { %14068 = sst [smem:[#allocation19_spill]] %s10605_s24  ;;  %s10749_s28 = sadd.s32 4294967295, %s10617_s27   ;;  %s10617_s27 = sphi %s10734_s27, %s14441_s27   ;;  %s10613_s26 = sphi %s10732_s26, %s14443_s26   ;;  %s10609_s25 = sphi %s10730_s25, %s14445_s25   ;;  %s10605_s24 = sphi %s10728_s24, %s14444_s24  }
   0xe   : > { %14069 = sst [smem:[#allocation20_spill]] %s10613_s26  ;;  %s8233_s29 = sadd.s32 4294967294, %s10617_s27  }
   0xf   : > { %14070 = sst [smem:[#allocation21_spill]] %s10617_s27  ;;  %s10753_s0 = sadd.s32 1, %s10617_s27  }
  0x10   : > { %14071 = sst [smem:[#allocation22_spill]] %s10753_s0  ;;  %s403_s30 = sadd.s32 1, %s10613_s26 }
  0x11   : > { %s400_s18 = ssub.s32 %s10617_s27, %s10753_s0  ;;  %p413_p0 = scmp.ne.s32.totalorder %s10613_s26, %s10609_s25 }
  0x12   : > { %p401_p1 = scmp.eq.s32.totalorder %s400_s18, 0  ;;  %p414_p2 = scmp.eq.s32.totalorder %s10749_s28, 1 }
  0x13   : > { %p419_p3 = scmp.ne.s32.totalorder %s10609_s25, %s10605_s24  ;;  %p420_p4 = scmp.eq.s32.totalorder %s8233_s29, 1 }
  0x14   : > { %s10764_s19 = scalar_select %p401_p1, %s10613_s26, %s403_s30  }
  0x15   : > { %p10766_p5 = por %p414_p2, %p413_p0  ;;  %p10770_p6 = por %p420_p4, %p419_p3 }
  0x16   : > { %14072 = sst [smem:[#allocation23_spill]] %s10764_s19  ;;  %p8234_p7 = scmp.ge.s32.totalorder %s10617_s27, 1 }
  0x17   : > { %s14074_s20 = scalar_select %p10770_p6, 1, 0 }
  0x18   : > { %p427_p8 = scmp.lt.s32.totalorder %s10617_s27, 3  ;;  %p13969_p9 = scmp.eq.s32.totalorder %s10749_s28, 0 }
  0x19   : > { %14075 = sst [smem:[#allocation24_spill]] %s14074_s20  ;;  %s10619_s22 = smov [#allocation5]  }
  0x1a   : > { %p10777_p10 = pnand %p8234_p7, %p427_p8  ;;  %s452_s23 = sshll.u32 %s10619_s22, 4  ;;  %s453_s23 = int_to_ptr.vmem [resolvable:$true] %s452_s23 }
  0x1b   : > { %s10620_s30 = smov [#allocation8]   ;;  %s10396_s26 = scalar_lea.vmem %s453_s23, 24576 }
  0x1c   : > { %p9695_p11 = pneg %p10777_p10  ;;  %s478_s18 = sshll.u32 %s10620_s30, 4  ;;  %s479_s18 = int_to_ptr.vmem [resolvable:$true] %s478_s18 }
  0x1d   : > { %p10397_p0 = scmp.ne.s32.totalorder %s453_s23, %s10396_s26  ;;  %p10404_p3 = scmp.lt.s32.totalorder %s453_s23, %s453_s23 }
  0x1e   : > { %p10785_p12 = pnand %p13969_p9, %p9695_p11  ;;  %p10405_p4 = scmp.lt.s32.totalorder %s10396_s26, %s10396_s26 }
  0x20   : > { %p10791_p13 = pneg %p10785_p12  ;;  %p10406_p7 = por %p10405_p4, %p10404_p3 }
  0x22   : > { %p10399_p1 = pnand %p10397_p0, %p10791_p13 }
  0x24   : > { %p10400_p2 = pneg %p10399_p1 }
  0x26   : > { %p10407_p8 = pnand %p10406_p7, %p10400_p2 }
  0x28   : > { %10410 = shalt.err (!%p10407_p8)
}
  0x29   : > { %s13964_s22 = smov 128   ;;  %s13965_s30 = smov 8  }
  0x2a   : > { %s14079_s2 = sld [smem:[#allocation99_spill]]  ;;  %s10422_s24 = scalar_lea.vmem %s479_s18, 6144 }
  0x2b   : > { %p10423_p11 = scmp.ne.s32.totalorder %s479_s18, %s10422_s24  ;;  %p10430_p3 = scmp.lt.s32.totalorder %s479_s18, %s479_s18 }
  0x2c   : > { %p10431_p2 = scmp.lt.s32.totalorder %s10422_s24, %s10422_s24 }
  0x2d   : > { %p10425_p0 = pnand %p10423_p11, %p10791_p13 }
  0x2e   : > { %p10432_p4 = por %p10431_p2, %p10430_p3 }
  0x2f   : > { %p10426_p1 = pneg %p10425_p0 }
  0x30   : > { %9701 = dma.hbm_to_vmem [thread:$0]  (!%p10785_p12), %s14079_s2, 24576, %s453_s23, [#allocation6], %s13964_s22, %s13964_s22, %s13965_s30  }
  0x31   : > { %p10433_p7 = pnand %p10432_p4, %p10426_p1 }
  0x33   : > { %10436 = shalt.err (!%p10433_p7)
}
  0x34   : > { %s13966_s26 = smov 64   ;;  %s13967_s27 = smov 4  }
  0x35   : > { %s14080_s4 = sld [smem:[#allocation100_spill]]  ;;  %s10625_s23 = smov [#allocation2]  }
  0x36   : > { %s439_s22 = sshll.u32 %s10625_s23, 4  ;;  %s440_s22 = int_to_ptr.vmem [resolvable:$true] %s439_s22 }
  0x37   : > { %s10448_s30 = scalar_lea.vmem %s440_s22, 3072  ;;  %p10456_p1 = scmp.lt.s32.totalorder %s440_s22, %s440_s22 }
  0x38   : > { %p10449_p8 = scmp.ne.s32.totalorder %s440_s22, %s10448_s30  ;;  %p10457_p3 = scmp.lt.s32.totalorder %s10448_s30, %s10448_s30 }
  0x3a   : > { %p10451_p11 = pnand %p10449_p8, %p10791_p13  ;;  %p10458_p2 = por %p10457_p3, %p10456_p1 }
  0x3b   : > { %9707 = dma.hbm_to_vmem [thread:$0]  (!%p10785_p12), %s14080_s4, 6144, %s479_s18, [#allocation9], %s13966_s26, %s13966_s26, %s13967_s27  }
  0x3c   : > { %p10452_p0 = pneg %p10451_p11 }
  0x3e   : > { %p10459_p4 = pnand %p10458_p2, %p10452_p0 }
  0x40   : > { %10462 = shalt.err (!%p10459_p4)
}
  0x41   : > { %s10626_s24 = smov 256   ;;  %s10627_s2 = smov 16  }
  0x42   : > { %s14081_s20 = sld [smem:[#allocation98_spill]]  ;;  %s10628_s23 = smov [#allocation7]  }
  0x43   : > { %s465_s26 = sshll.u32 %s10628_s23, 4  ;;  %s10629_s27 = smov [#allocation10]   ;;  %s466_s26 = int_to_ptr.vmem [resolvable:$true] %s465_s26 }
  0x44   : > { %s491_s4 = sshll.u32 %s10629_s27, 4  ;;  %s10474_s17 = scalar_lea.vmem %s466_s26, 12288  ;;  %s492_s4 = int_to_ptr.vmem [resolvable:$true] %s491_s4 }
  0x45   : > { %p10475_p7 = scmp.ne.s32.totalorder %s466_s26, %s10474_s17  ;;  %p10482_p0 = scmp.lt.s32.totalorder %s466_s26, %s466_s26 }
  0x46   : > { %p10483_p1 = scmp.lt.s32.totalorder %s10474_s17, %s10474_s17 }
  0x47   : > { %p10477_p8 = pnand %p10475_p7, %p10791_p13 }
  0x48   : > { %9698 = dma.hbm_to_vmem [thread:$0]  (!%p10785_p12), %s14081_s20, 3072, %s440_s22, [#allocation3], %s10626_s24, %s10626_s24, %s10627_s2  }
  0x49   : > { %p10478_p11 = pneg %p10477_p8  ;;  %p10484_p3 = por %p10483_p1, %p10482_p0 }
  0x4b   : > { %p10485_p2 = pnand %p10484_p3, %p10478_p11 }
  0x4d   : > { %10488 = shalt.err (!%p10485_p2)
}
  0x4e   : > { %s14082_s30 = smov 8   ;;  %s14083_s0 = smov 128  }
  0x4f   : > { %9704 = dma.hbm_to_vmem [thread:$0]  (!%p10785_p12), %s13943_s3, 12288, %s466_s26, [#allocation6], %s14083_s0, %s14083_s0, %s14082_s30  }
  0x50   : > { %s10500_s27 = scalar_lea.vmem %s492_s4, 3072  ;;  %p10508_p9 = scmp.lt.s32.totalorder %s492_s4, %s492_s4 }
  0x51   : > { %p10501_p4 = scmp.ne.s32.totalorder %s492_s4, %s10500_s27  ;;  %p10509_p0 = scmp.lt.s32.totalorder %s10500_s27, %s10500_s27 }
  0x53   : > { %p10503_p7 = pnand %p10501_p4, %p10791_p13  ;;  %p10510_p11 = por %p10509_p0, %p10508_p9 }
  0x55   : > { %p10504_p8 = pneg %p10503_p7 }
  0x57   : > { %p10511_p1 = pnand %p10510_p11, %p10504_p8 }
  0x59   : > { %10514 = shalt.err (!%p10511_p1)
}
  0x5a   : > { %s14084_s17 = smov 4   ;;  %s14085_s24 = smov 64  }
  0x5b   : > { %9710 = dma.hbm_to_vmem [thread:$0]  (!%p10785_p12), %s13945_s5, 3072, %s492_s4, [#allocation9], %s14085_s24, %s14085_s24, %s14084_s17  }
  0x5c   : > { %s10630_s26 = smov [#allocation11]  }
  0x5d   : > { %s525_s23 = sshll.u32 %s10630_s26, 4  ;;  %s526_s23 = int_to_ptr.vmem [resolvable:$true] %s525_s23 }
  0x5e   : > { %s10526_s30 = scalar_lea.vmem %s526_s23, 6144  ;;  %p10534_p4 = scmp.lt.s32.totalorder %s526_s23, %s526_s23 }
  0x5f   : > { %p10527_p3 = scmp.ne.s32.totalorder %s526_s23, %s10526_s30  ;;  %p10535_p7 = scmp.lt.s32.totalorder %s10526_s30, %s10526_s30 }
  0x61   : > { %p10529_p2 = pnand %p10527_p3, %p10791_p13  ;;  %p10536_p8 = por %p10535_p7, %p10534_p4 }
  0x63   : > { %p10530_p9 = pneg %p10529_p2 }
  0x65   : > { %p10537_p0 = pnand %p10536_p8, %p10530_p9 }
  0x67   : > { %10540 = shalt.err (!%p10537_p0)
}
  0x68   : > { %s10631_s0 = smov 384   ;;  %s10632_s2 = smov 24  }
  0x69   : > { %9713 = dma.hbm_to_vmem [thread:$0]  (!%p10785_p12), %s13953_s13, 6144, %s526_s23, [#allocation12], %s10631_s0, %s10631_s0, %s10632_s2  }
  0x6a   : > { %558 = sbr.rel (%p10777_p10) target bundleno = 4310 (0x10d6), region = 88 }
  0x6f   : > { %p14086_p11 = scmp.eq.s32.totalorder %s10749_s28, 0 }
  0x71   : > { %10584 = dma.done.wait (%p14086_p11), [#allocation3], 3072   ;;  %p14087_p13 = pmov %p14086_p11 }
  0x72   : > { %p14088_p1 = pmov %p14086_p11 }
  0x73   : > { %10586 = vsyncadd (%p14087_p13), [#allocation3], 4294964224 }
  0x74   : > { %10588 = dma.done.wait (%p14088_p1), [#allocation6], 36864   ;;  %p14089_p3 = pmov %p14088_p1 }
  0x75   : > { %p14090_p2 = pmov %p14088_p1 }
  0x76   : > { %10590 = vsyncadd (%p14089_p3), [#allocation6], 4294930432 }
  0x77   : > { %10592 = dma.done.wait (%p14090_p2), [#allocation9], 9216   ;;  %p14091_p12 = pmov %p14088_p1 }
  0x78   : > { %p14092_p10 = pmov %p14088_p1 }
  0x79   : > { %10594 = vsyncadd (%p14091_p12), [#allocation9], 4294958080 }
  0x7a   : > { %10596 = dma.done.wait (%p14092_p10), [#allocation12], 6144   ;;  %p14093_p9 = pmov %p14088_p1 }
  0x7b   : > { %p629_p4 = scmp.lt.s32.totalorder %s10749_s28, 1  ;;  %v683_v0 = vlaneseq  ;;  %s14094_s17 = sld [smem:[#allocation97_spill]]  ;;  %v13975_v12 = vmov 0.0   ;;  %v13996_v44 = vmov 1.0|1.0  }
  0x7c   : > { %10598 = vsyncadd (%p14093_p9), [#allocation12], 4294961152  ;;  %s8909_s21 = sshll.u32 %s10749_s28, 4  ;;  %s14437_s20 = sld [smem:[#allocation101_spill]] }
  0x7d   : > { %s630_s4 = scalar_select %p629_p4, %s10749_s28, 1  ;;  %v10869_v1 = vshrl.u32 %v683_v0, 7  ;;  %v10872_v3 = vand.u32 127, %v683_v0 }
  0x7e   : > { %s10637_s0 = smov [#allocation13]  }
  0x7f   : > { %s8912_s19 = sshll.u32 %s630_s4, 8  ;;  %v685_v2 = vadd.s32 8, %v10869_v1  ;;  %v10875_v4 = vmul.u32 2, %v10869_v1  ;;  %v686_v5 = vadd.s32 16, %v10869_v1  ;;  %v687_v6 = vadd.s32 24, %v10869_v1  ;;  %s10545_s2 = sshll.u32 %s10637_s0, 4  ;;  %s10546_s2 = int_to_ptr.vmem [resolvable:$false] %s10545_s2 }
  0x80   : > { %v10922_v26 = vadd.s32 128, %v10872_v3  ;;  %v688_v59 = vadd.s32 32, %v10869_v1  ;;  %v689_v60 = vadd.s32 40, %v10869_v1  ;;  %s10547_s28 = scalar_lea.vmem %s10546_s2, 32 }
  0x81   : > { %s10881_s24 = scalar_lea.vmem %s14094_s17, %s8912_s19  ;;  %v10884_v7 = vmul.u32 2, %v685_v2  ;;  %vm920_vm0 = vcmp.eq.s32.totalorder %v10872_v3, %v10875_v4  ;;  %v10888_v8 = vmul.u32 2, %v686_v5  ;;  %v10993_v53 = vadd.s32 4294967295, %v10875_v4  ;;  %s627_s19 = sand.u32 1, %s10609_s25  }
  0x82   : > { %v665_v9 = vld [vmem:[%s10881_s24 + $0xf0] sm:$0xff]  ;;  %v666_v10 = vld [vmem:[%s10881_s24 + $0xf8] sm:$0xff]  ;;  %v10897_v13 = vsel %vm920_vm0, 1.0, %v13975_v12  ;;  %v10899_v14 = vmul.u32 2, %v687_v6  ;;  %v663_v17 = vld [vmem:[%s10881_s24 + $0xe0] sm:$0xff]  ;;  %vm921_vm4 = vcmp.eq.s32.totalorder %v10922_v26, %v10875_v4  ;;  %s628_s29 = scalar_lea.vmem [#allocation13], %s627_s19  ;;  %s8116_s26 = scalar_lea.hbm %s14437_s20, %s8909_s21 }
  0x83   : > { %v649_v11 = vld [vmem:[%s10881_s24 + $0x70] sm:$0xff]  ;;  %14095 = vst [vmem:[#allocation25_spill] sm:$0xff] %v10897_v13  ;;  %v10901_v15 = vpack.c.bf16 %v666_v10, %v665_v9  ;;  %v650_v16 = vld [vmem:[%s10881_s24 + $0x78] sm:$0xff]  ;;  %v664_v18 = vld [vmem:[%s10881_s24 + $0xe8] sm:$0xff]  ;;  %vm922_vm1 = vcmp.eq.s32.totalorder %v10872_v3, %v10884_v7  ;;  %vm924_vm2 = vcmp.eq.s32.totalorder %v10872_v3, %v10888_v8  ;;  %vm923_vm5 = vcmp.eq.s32.totalorder %v10922_v26, %v10884_v7  ;;  %s8118_s17 = sshll.u32 %s628_s29, 4  ;;  %s8106_s23 = scalar_lea.sflag [#allocation4], %s627_s19  ;;  %s8119_s17 = int_to_ptr.vmem [resolvable:$true] %s8118_s17 }
  0x84   : > { %v10908_v19 = vpack.c.bf16 %v650_v16, %v649_v11  ;;  %v10910_v20 = vpack.c.bf16 %v664_v18, %v663_v17  ;;  %v647_v21 = vld [vmem:[%s10881_s24 + $0x60] sm:$0xff]  ;;  %v648_v22 = vld [vmem:[%s10881_s24 + $0x68] sm:$0xff]  ;;  %v661_v23 = vld [vmem:[%s10881_s24 + $0xd0] sm:$0xff]  ;;  %v954_v24 = vsel %vm922_vm1, 1.0, %v13975_v12  ;;  %vm926_vm3 = vcmp.eq.s32.totalorder %v10872_v3, %v10899_v14  ;;  %s10541_s30 = scalar_lea.vmem %s8119_s17, 16  ;;  %p10548_p11 = scmp.lt.s32.totalorder %s8119_s17, %s10546_s2 }
  0x85   : > { %8977 = vmatprep.subr.bf16.mxu1 %v10901_v15  ;;  %v662_v25 = vld [vmem:[%s10881_s24 + $0xd8] sm:$0xff]  ;;  %v10925_v27 = vpack.c.bf16 %v954_v24, %v10897_v13  ;;  %v10930_v28 = vpack.c.bf16 %v648_v22, %v647_v21  ;;  %v10938_v29 = vsel %vm924_vm2, 1.0, %v13975_v12  ;;  %8913 = vmatprep.subr.bf16.mxu0 %v10901_v15  ;;  %v645_v31 = vld [vmem:[%s10881_s24 + $0x50] sm:$0xff]  ;;  %v10950_v33 = vsel %vm926_vm3, 1.0, %v13975_v12  ;;  %v659_v34 = vld [vmem:[%s10881_s24 + $0xc0] sm:$0xff]  ;;  %p10542_p7 = scmp.ne.s32.totalorder %s8119_s17, %s10541_s30  ;;  %p10549_p13 = scmp.lt.s32.totalorder %s10547_s28, %s10541_s30 }
  0x86   : > { %8978 = vmatpush3.bf16.msra.mxu1 %v10908_v19  ;;  %14097 = vst [vmem:[#allocation27_spill] sm:$0xff] %v10938_v29  ;;  %v10942_v30 = vpack.c.bf16 %v662_v25, %v661_v23  ;;  %v646_v32 = vld [vmem:[%s10881_s24 + $0x58] sm:$0xff]  ;;  %14098 = vst [vmem:[#allocation28_spill] sm:$0xff] %v10950_v33  ;;  %8914 = vmatpush3.bf16.msra.mxu0 %v10908_v19  ;;  %v660_v35 = vld [vmem:[%s10881_s24 + $0xc8] sm:$0xff]  ;;  %v11003_v57 = vadd.s32 4294967295, %v10884_v7  ;;  %vm735_vm7 = vcmp.eq.s32.totalorder %v10872_v3, %v10993_v53 }
  0x87   : > { %14096 = vst [vmem:[#allocation26_spill] sm:$0xff] %v10925_v27  ;;  %8979 = vmatprep.subr.bf16.mxu1 %v10910_v20  ;;  %8915 = vmatprep.subr.bf16.mxu0 %v10910_v20  ;;  %v10963_v37 = vpack.c.bf16 %v646_v32, %v645_v31  ;;  %v10966_v38 = vpack.c.bf16 %v660_v35, %v659_v34  ;;  %v643_v39 = vld [vmem:[%s10881_s24 + $0x40] sm:$0xff]  ;;  %v644_v40 = vld [vmem:[%s10881_s24 + $0x48] sm:$0xff]  ;;  %v657_v41 = vld [vmem:[%s10881_s24 + $0xb0] sm:$0xff]  ;;  %v11020_v63 = vsel %vm735_vm7, 1.0, %v13975_v12  ;;  %v11023_v0 = vadd.s32 4294967295, %v10888_v8  ;;  %p10543_p8 = pnand %p10542_p7, %p10766_p5  ;;  %p10550_p1 = por %p10549_p13, %p10548_p11 }
  0x88   : > { %v658_v42 = vld [vmem:[%s10881_s24 + $0xb8] sm:$0xff]  ;;  %vm8283_vm6 = vmpackc.low %vm923_vm5, %vm921_vm4  ;;  %v641_v43 = vld [vmem:[%s10881_s24 + $0x30] sm:$0xff]  ;;  %v10977_v45 = vpack.c.bf16 %v644_v40, %v643_v39  ;;  %vm737_vm8 = vcmp.eq.s32.totalorder %v10872_v3, %v11003_v57  ;;  %14099 = vst [vmem:[#allocation29_spill] sm:$0xff] %v11020_v63  ;;  %v11035_v9 = vadd.s32 4294967295, %v10899_v14  ;;  %v690_v11 = vadd.s32 48, %v10869_v1 }
  0x89   : > { %8284 = vmatprep.mubr.msk.bf16.mxu1 %vm8283_vm6, %v13996_v44  ;;  %v642_v46 = vld [vmem:[%s10881_s24 + $0x38] sm:$0xff]  ;;  %v10981_v47 = vpack.c.bf16 %v658_v42, %v657_v41  ;;  %v655_v48 = vld [vmem:[%s10881_s24 + $0xa0] sm:$0xff]  ;;  %v656_v49 = vld [vmem:[%s10881_s24 + $0xa8] sm:$0xff]  ;;  %v769_v6 = vsel %vm737_vm8, 1.0, %v13975_v12  ;;  %v691_v16 = vadd.s32 56, %v10869_v1  ;;  %vm739_vm9 = vcmp.eq.s32.totalorder %v10872_v3, %v11023_v0  ;;  %p10544_p0 = pneg %p10543_p8 }
  0x8a   : > { %8980 = vmatpush3.bf16.msra.mxu1 %v10930_v28  ;;  %8916 = vmatpush3.bf16.msra.mxu0 %v10930_v28  ;;  %v639_v50 = vld [vmem:[%s10881_s24 + $0x20] sm:$0xff]  ;;  %v10989_v51 = vpack.c.bf16 %v642_v46, %v641_v43  ;;  %v640_v52 = vld [vmem:[%s10881_s24 + $0x28] sm:$0xff]  ;;  %v10996_v54 = vpack.c.bf16 %v656_v49, %v655_v48  ;;  %v653_v55 = vld [vmem:[%s10881_s24 + $0x90] sm:$0xff]  ;;  %v11042_v17 = vpack.c.bf16 %v769_v6, %v11020_v63  ;;  %v11056_v18 = vsel %vm739_vm9, 1.0, %v13975_v12 }
  0x8b   : > { %8981 = vmatprep.subr.bf16.mxu1 %v10942_v30  ;;  %8917 = vmatprep.subr.bf16.mxu0 %v10942_v30  ;;  %v654_v56 = vld [vmem:[%s10881_s24 + $0x98] sm:$0xff]  ;;  %v637_v58 = vld [vmem:[%s10881_s24 + $0x10] sm:$0xff]  ;;  %v11011_v61 = vpack.c.bf16 %v640_v52, %v639_v50  ;;  %v651_v5 = vld [vmem:[%s10881_s24 + $0x80] sm:$0xff]  ;;  %vm736_vm10 = vcmp.eq.s32.totalorder %v10922_v26, %v10993_v53  ;;  %vm738_vm11 = vcmp.eq.s32.totalorder %v10922_v26, %v11003_v57  ;;  %v11062_v23 = vmul.u32 2, %v688_v59  ;;  %p10551_p3 = pnand %p10550_p1, %p10544_p0 }
  0x8c   : > { %v638_v62 = vld [vmem:[%s10881_s24 + $0x18] sm:$0xff]  ;;  %v11026_v2 = vpack.c.bf16 %v654_v56, %v653_v55  ;;  %v652_v10 = vld [vmem:[%s10881_s24 + $0x88] sm:$0xff]  ;;  %14100 = vst [vmem:[#allocation30_spill] sm:$0xff] %v11042_v17  ;;  %vm13970_vm12 = vcmp.eq.s32.totalorder %v10872_v3, %v11035_v9  ;;  %14101 = vst [vmem:[#allocation31_spill] sm:$0xff] %v11056_v18  ;;  %v11064_v24 = vmul.u32 2, %v689_v60  ;;  %v692_v34 = vadd.s32 64, %v10869_v1 }
  0x8d   : > { %v11059_v21 = vpack.c.bf16 %v638_v62, %v637_v58  ;;  %v635_v22 = vld [vmem:[%s10881_s24] sm:$0xff]  ;;  %v11070_v25 = vsel %vm13970_vm12, 1.0, %v13975_v12  ;;  %v11073_v31 = vpack.c.bf16 %v652_v10, %v651_v5  ;;  %v636_v32 = vld [vmem:[%s10881_s24 + $0x8] sm:$0xff]  ;;  %v693_v35 = vadd.s32 72, %v10869_v1  ;;  %vm8251_vm13 = vmpackc.low %vm738_vm11, %vm736_vm10 }
  0x8e   : > { %8982 = vmatpush3.bf16.msra.mxu1 %v10963_v37  ;;  %8918 = vmatpush3.bf16.msra.mxu0 %v10963_v37  ;;  %14102 = vst [vmem:[#allocation32_spill] sm:$0xff] %v11070_v25  ;;  %v11081_v40 = vmul.u32 2, %v690_v11  ;;  %v11083_v41 = vmul.u32 2, %v691_v16  ;;  %v694_v42 = vadd.s32 80, %v10869_v1  ;;  %v695_v43 = vadd.s32 88, %v10869_v1  ;;  %vm11142_vm6 = vmpackc.low %vm922_vm1, %vm920_vm0 }
  0x8f   : > { %8983 = vmatprep.subr.bf16.mxu1 %v10966_v38  ;;  %8919 = vmatprep.subr.bf16.mxu0 %v10966_v38  ;;  %vm925_vm14 = vcmp.eq.s32.totalorder %v10922_v26, %v10888_v8  ;;  %vm927_vm15 = vcmp.eq.s32.totalorder %v10922_v26, %v10899_v14  ;;  %v11100_v46 = vadd.s32 4294967295, %v11062_v23  ;;  %v11103_v48 = vpack.c.bf16 %v636_v32, %v635_v22 }
  0x90   : > { %8252 = vmatprep.mubr.msk.bf16.mxu0 %vm8251_vm13, %v13996_v44  ;;  %vm929_vm4 = vcmp.eq.s32.totalorder %v10922_v26, %v11062_v23  ;;  %vm931_vm5 = vcmp.eq.s32.totalorder %v10922_v26, %v11064_v24  ;;  %v11110_v49 = vadd.s32 4294967295, %v11064_v24  ;;  %v11117_v50 = vmul.u32 2, %v692_v34  ;;  %vm11163_vm0 = vmpackc.low %vm927_vm15, %vm925_vm14 }
  0x91   : > { %v11119_v52 = vmul.u32 2, %v693_v35  ;;  %v11123_v55 = vadd.s32 4294967295, %v11081_v40  ;;  %v11129_v56 = vmul.u32 2, %v694_v42  ;;  %vm740_vm10 = vcmp.eq.s32.totalorder %v10922_v26, %v11023_v0  ;;  %vm11184_vm14 = vmpackc.low %vm737_vm8, %vm735_vm7  ;;  %v9792_v0 = vld [vmem:[#allocation2 + $0x4c] ss:$16 sps:$4 sm:$0xff]  }
  0x92   : > { %8984 = vmatpush3.bf16.msra.mxu1 %v10977_v45  ;;  %8920 = vmatpush3.bf16.msra.mxu0 %v10977_v45  ;;  %v11131_v58 = vmul.u32 2, %v695_v43  ;;  %v14103_v59 = vmov 0  ;;  %vm742_vm13 = vcmp.eq.s32.totalorder %v10922_v26, %v11035_v9  ;;  %v11151_v60 = vadd.s32 4294967295, %v11083_v41 }
  0x93   : > { %8985 = vmatprep.subr.bf16.mxu1 %v10981_v47  ;;  %8921 = vmatprep.subr.bf16.mxu0 %v10981_v47  ;;  %v14104_v59 = vsel %vm11142_vm6, 4294967295, %v14103_v59  ;;  %v11154_v62 = vadd.s32 1, %v10875_v4  ;;  %v11172_v4 = vadd.s32 1, %v10884_v7  ;;  %v11175_v6 = vadd.s32 1, %v10888_v8  ;;  %vm11202_vm7 = vmpackc.low %vm742_vm13, %vm740_vm10 }
  0x94   : > { %14105 = vst [vmem:[#allocation33_spill] sm:$0xff] %v14104_v59  ;;  %v14108_v10 = vmov 0  ;;  %v11218_v57 = vadd.s32 1, %v10899_v14  ;;  %v14116_v22 = vmov 0  ;;  %v1109_v8 = vadd.s32 1, %v11062_v23 }
  0x95   : > { %v14109_v10 = vsel %vm11184_vm14, 4294967295, %v14108_v10  ;;  %vm13971_vm1 = vcmp.eq.s32.totalorder %v10872_v3, %v11154_v62  ;;  %vm13972_vm8 = vcmp.eq.s32.totalorder %v10872_v3, %v11172_v4  ;;  %v1110_v14 = vadd.s32 1, %v11064_v24 }
  0x96   : > { %8986 = vmatpush3.bf16.msra.mxu1 %v10989_v51  ;;  %8922 = vmatpush3.bf16.msra.mxu0 %v10989_v51  ;;  %14110 = vst [vmem:[#allocation34_spill] sm:$0xff] %v14109_v10  ;;  %v11215_v53 = vsel %vm13971_vm1, 1.0, %v13975_v12  ;;  %v1155_v11 = vsel %vm13972_vm8, 1.0, %v13975_v12  ;;  %vm13974_vm1 = vcmp.eq.s32.totalorder %v10872_v3, %v11175_v6  ;;  %vm13973_vm13 = vcmp.eq.s32.totalorder %v10872_v3, %v11218_v57 }
  0x97   : > { %8987 = vmatprep.subr.bf16.mxu1 %v10996_v54  ;;  %8923 = vmatprep.subr.bf16.mxu0 %v10996_v54  ;;  %14113 = vst [vmem:[#allocation35_spill] sm:$0xff] %v11215_v53  ;;  %v11251_v16 = vsel %vm13974_vm1, 1.0, %v13975_v12  ;;  %v11271_v32 = vsel %vm13973_vm13, 1.0, %v13975_v12  ;;  %v1111_v34 = vadd.s32 1, %v11081_v40  ;;  %v1112_v43 = vadd.s32 1, %v11083_v41 }
  0x98   : > { %14115 = vst [vmem:[#allocation37_spill] sm:$0xff] %v11251_v16  ;;  %14119 = vst [vmem:[#allocation39_spill] sm:$0xff] %v11271_v32  ;;  %v11292_v5 = vadd.s32 1, %v11117_v50  ;;  %v1114_v7 = vadd.s32 1, %v11119_v52  ;;  %vm14126_vm8 = vcmp.eq.s32.totalorder %v10872_v3, %v11062_v23  ;;  %vm14127_vm11 = vcmp.eq.s32.totalorder %v10872_v3, %v11064_v24 }
  0x99   : > { %vm14132_vm13 = vcmp.eq.s32.totalorder %v10922_v26, %v11110_v49  ;;  %vm14136_vm10 = vcmp.eq.s32.totalorder %v10922_v26, %v11083_v41  ;;  %vm14144_vm1 = vcmp.eq.s32.totalorder %v10922_v26, %v11123_v55  ;;  %v14150_v24 = vmov 0 }
  0x9a   : > { %8988 = vmatpush3.bf16.msra.mxu1 %v11011_v61  ;;  %8924 = vmatpush3.bf16.msra.mxu0 %v11011_v61  ;;  %v14154_v12 = vmov 0  ;;  %vm14158_vm12 = vcmp.eq.s32.totalorder %v10922_v26, %v11218_v57  ;;  %v697_v35 = vadd.s32 104, %v10869_v1 }
  0x9b   : > { %8989 = vmatprep.subr.bf16.mxu1 %v11026_v2  ;;  %8925 = vmatprep.subr.bf16.mxu0 %v11026_v2 }
  0x9e   : > { %8990 = vmatpush3.bf16.msra.mxu1 %v11059_v21  ;;  %8926 = vmatpush3.bf16.msra.mxu0 %v11059_v21 }
  0x9f   : > { %8991 = vmatprep.subr.bf16.mxu1 %v11073_v31  ;;  %8927 = vmatprep.subr.bf16.mxu0 %v11073_v31 }
  0xa2   : > { %8992 = vmatpush3.bf16.msra.mxu1 %v11103_v48  ;;  %8928 = vmatpush3.bf16.msra.mxu0 %v11103_v48 }
  0xa3   : > { %9041 = vmatprep.subr.bf16.mxu0 %v10901_v15  ;;  %9653 = vmatprep.subr.bf16.mxu1 %v10901_v15  ;;  %v11241_v15 = vpack.c.bf16 %v1155_v11, %v11215_v53  ;;  %v14123_v11 = vmov 0 }
  0xa5   : > { %8286 = vmatmul.mubr.msk.bf16.vlgmr.msra.gmra.mxu1 %vm11142_vm6, %v13996_v44  ;;  %8254 = vmatmul.mubr.msk.bf16.vlgmr.msra.gmra.mxu0 %vm11184_vm14, %v13996_v44  ;;  %14114 = vst [vmem:[#allocation36_spill] sm:$0xff] %v11241_v15  ;;  %vm932_vm6 = vcmp.eq.s32.totalorder %v10872_v3, %v11081_v40 }
  0xa6   : > { %8288 = vmatprep.mubr.msk.bf16.mxu1 %vm11163_vm0, %v13996_v44  ;;  %vm11259_vm0 = vmpackc.low %vm926_vm3, %vm924_vm2  ;;  %8256 = vmatprep.mubr.msk.bf16.mxu0 %vm11202_vm7, %v13996_v44  ;;  %vm14122_vm3 = vcmp.eq.s32.totalorder %v10872_v3, %v11035_v9  ;;  %v14141_v9 = vmov 0 }
  0xa7   : > { %v14117_v22 = vsel %vm11259_vm0, 4294967295, %v14116_v22  ;;  %9042 = vmatpush3.bf16.msra.mxu0 %v10908_v19  ;;  %vm11282_vm2 = vmpackc.low %vm931_vm5, %vm929_vm4  ;;  %9661 = vmatpush3.bf16.msra.mxu1 %v10908_v19  ;;  %v14128_v19 = vmov 0 }
  0xa8   : > { %14118 = vst [vmem:[#allocation38_spill] sm:$0xff] %v14117_v22  ;;  %9043 = vmatprep.subr.bf16.mxu0 %v10910_v20  ;;  %vm11301_vm4 = vmpackc.low %vm14122_vm3, %vm739_vm9  ;;  %9654 = vmatprep.subr.bf16.mxu1 %v10910_v20  ;;  %vm14131_vm3 = vcmp.eq.s32.totalorder %v10922_v26, %v11100_v46 }
  0xa9   : > { %v14124_v11 = vsel %vm11301_vm4, 4294967295, %v14123_v11  ;;  %vm11316_vm9 = vmpackc.low %vm14127_vm11, %vm14126_vm8  ;;  %vm14135_vm8 = vcmp.eq.s32.totalorder %v10922_v26, %v11081_v40  ;;  %v14168_v40 = vmov 0 }
  0xaa   : > { %14125 = vst [vmem:[#allocation40_spill] sm:$0xff] %v14124_v11  ;;  %v14129_v19 = vsel %vm11316_vm9, 4294967295, %v14128_v19  ;;  %vm11326_vm7 = vmpackc.low %vm14132_vm13, %vm14131_vm3  ;;  %vm14139_vm13 = vcmp.eq.s32.totalorder %v10872_v3, %v11100_v46  ;;  %vm14140_vm3 = vcmp.eq.s32.totalorder %v10872_v3, %v11110_v49  ;;  %v1115_v46 = vadd.s32 1, %v11129_v56 }
  0xab   : > { %14130 = vst [vmem:[#allocation41_spill] sm:$0xff] %v14129_v19  ;;  %vm11340_vm15 = vmpackc.low %vm14136_vm10, %vm14135_vm8  ;;  %9044 = vmatpush3.bf16.msra.mxu0 %v10930_v28  ;;  %vm14148_vm10 = vcmp.eq.s32.totalorder %v10922_v26, %v11154_v62  ;;  %vm14149_vm8 = vcmp.eq.s32.totalorder %v10922_v26, %v11172_v4  ;;  %9662 = vmatpush3.bf16.msra.mxu1 %v10930_v28  ;;  %v1116_v49 = vadd.s32 1, %v11131_v58  ;;  %v14159_v28 = vmov 0 }
  0xac   : > { %vm11350_vm5 = vmpackc.low %vm14140_vm3, %vm14139_vm13  ;;  %vm14145_vm13 = vcmp.eq.s32.totalorder %v10922_v26, %v11151_v60  ;;  %9045 = vmatprep.subr.bf16.mxu0 %v10942_v30  ;;  %9655 = vmatprep.subr.bf16.mxu1 %v10942_v30  ;;  %v14163_v30 = vmov 0 }
  0xad   : > { %v14142_v9 = vsel %vm11350_vm5, 4294967295, %v14141_v9  ;;  %vm11367_vm3 = vmpackc.low %vm14145_vm13, %vm14144_vm1  ;;  %8290 = vmatmul.mubr.msk.bf16.gmra.mxu1 %vm11259_vm0, %v13996_v44  ;;  %vm14152_vm1 = vcmp.eq.s32.totalorder %v10872_v3, %v11154_v62  ;;  %vm14153_vm13 = vcmp.eq.s32.totalorder %v10872_v3, %v11172_v4  ;;  %8258 = vmatmul.mubr.msk.bf16.gmra.mxu0 %vm11301_vm4, %v13996_v44  ;;  %vm934_vm4 = vcmp.eq.s32.totalorder %v10872_v3, %v11083_v41 }
  0xae   : > { %14143 = vst [vmem:[#allocation42_spill] sm:$0xff] %v14142_v9  ;;  %vm11378_vm11 = vmpackc.low %vm14149_vm8, %vm14148_vm10  ;;  %8292 = vmatprep.mubr.msk.bf16.mxu1 %vm11282_vm2, %v13996_v44  ;;  %vm14157_vm8 = vcmp.eq.s32.totalorder %v10922_v26, %v11175_v6  ;;  %8260 = vmatprep.mubr.msk.bf16.mxu0 %vm11326_vm7, %v13996_v44  ;;  %vm14167_vm7 = vcmp.eq.s32.totalorder %v10922_v26, %v1110_v14  ;;  %v14172_v41 = vmov 0  ;;  %v14175_v62 = vmov 0 }
  0xaf   : > { %v14151_v24 = vsel %vm11378_vm11, 4294967295, %v14150_v24  ;;  %vm11394_vm10 = vmpackc.low %vm14153_vm13, %vm14152_vm1  ;;  %9046 = vmatpush3.bf16.msra.mxu0 %v10963_v37  ;;  %vm14166_vm13 = vcmp.eq.s32.totalorder %v10922_v26, %v1109_v8  ;;  %9663 = vmatpush3.bf16.msra.mxu1 %v10963_v37  ;;  %v14180_v37 = vmov 0  ;;  %v727_v4 = vadd.s32 4294967295, %v11117_v50 }
  0xb0   : > { %v14155_v12 = vsel %vm11394_vm10, 4294967295, %v14154_v12  ;;  %vm11411_vm1 = vmpackc.low %vm14158_vm12, %vm14157_vm8  ;;  %vm14161_vm12 = vcmp.eq.s32.totalorder %v10872_v3, %v11175_v6  ;;  %vm14162_vm8 = vcmp.eq.s32.totalorder %v10872_v3, %v11218_v57  ;;  %9047 = vmatprep.subr.bf16.mxu0 %v10966_v38  ;;  %9656 = vmatprep.subr.bf16.mxu1 %v10966_v38  ;;  %v728_v6 = vadd.s32 4294967295, %v11119_v52 }
  0xb1   : > { %14156 = vst [vmem:[#allocation43_spill] sm:$0xff] %v14155_v12  ;;  %v14160_v28 = vsel %vm11411_vm1, 4294967295, %v14159_v28  ;;  %vm11432_vm0 = vmpackc.low %vm14162_vm8, %vm14161_vm12  ;;  %vm14170_vm1 = vcmp.eq.s32.totalorder %v10872_v3, %v1109_v8  ;;  %vm14171_vm12 = vcmp.eq.s32.totalorder %v10872_v3, %v1110_v14  ;;  %v14184_v38 = vmov 0 }
  0xb2   : > { %v14164_v30 = vsel %vm11432_vm0, 4294967295, %v14163_v30  ;;  %vm11442_vm14 = vmpackc.low %vm14167_vm7, %vm14166_vm13  ;;  %vm14178_vm13 = vcmp.eq.s32.totalorder %v10922_v26, %v1111_v34  ;;  %vm14179_vm7 = vcmp.eq.s32.totalorder %v10922_v26, %v1112_v43  ;;  %v14189_v57 = vmov 0 }
  0xb3   : > { %14165 = vst [vmem:[#allocation44_spill] sm:$0xff] %v14164_v30  ;;  %v14169_v40 = vsel %vm11442_vm14, 4294967295, %v14168_v40  ;;  %vm11451_vm8 = vmpackc.low %vm14171_vm12, %vm14170_vm1  ;;  %9048 = vmatpush3.bf16.msra.mxu0 %v10977_v45  ;;  %vm14182_vm1 = vcmp.eq.s32.totalorder %v10872_v3, %v1111_v34  ;;  %9664 = vmatpush3.bf16.msra.mxu1 %v10977_v45  ;;  %v11500_v45 = vadd.s32 4294967295, %v11129_v56  ;;  %v730_v8 = vadd.s32 4294967295, %v11131_v58 }
  0xb4   : > { %v14173_v41 = vsel %vm11451_vm8, 4294967295, %v14172_v41  ;;  %vm11456_vm2 = vmpackc.low %vm934_vm4, %vm932_vm6  ;;  %vm14183_vm6 = vcmp.eq.s32.totalorder %v10872_v3, %v1112_v43  ;;  %9049 = vmatprep.subr.bf16.mxu0 %v10981_v47  ;;  %9657 = vmatprep.subr.bf16.mxu1 %v10981_v47  ;;  %v14193_v14 = vmov 0  ;;  %v696_v34 = vadd.s32 96, %v10869_v1 }
  0xb5   : > { %14174 = vst [vmem:[#allocation45_spill] sm:$0xff] %v14173_v41  ;;  %v14176_v62 = vsel %vm11456_vm2, 4294967295, %v14175_v62  ;;  %vm11464_vm14 = vmpackc.low %vm14179_vm7, %vm14178_vm13  ;;  %vm14187_vm13 = vcmp.eq.s32.totalorder %v10922_v26, %v11292_v5  ;;  %vm14188_vm7 = vcmp.eq.s32.totalorder %v10922_v26, %v1114_v7  ;;  %8294 = vmatmul.mubr.msk.bf16.gmra.mxu1 %vm11316_vm9, %v13996_v44  ;;  %8262 = vmatmul.mubr.msk.bf16.gmra.mxu0 %vm11350_vm5, %v13996_v44  ;;  %v14197_v47 = vmov 0 }
  0xb6   : > { %14177 = vst [vmem:[#allocation46_spill] sm:$0xff] %v14176_v62  ;;  %v14181_v37 = vsel %vm11464_vm14, 4294967295, %v14180_v37  ;;  %vm11475_vm4 = vmpackc.low %vm14183_vm6, %vm14182_vm1  ;;  %8296 = vmatprep.mubr.msk.bf16.mxu1 %vm11340_vm15, %v13996_v44  ;;  %vm14196_vm9 = vcmp.eq.s32.totalorder %v10922_v26, %v1116_v49  ;;  %8264 = vmatprep.mubr.msk.bf16.mxu0 %vm11367_vm3, %v13996_v44  ;;  %v14201_v43 = vmov 0  ;;  %vm14203_vm6 = vcmp.eq.s32.totalorder %v10922_v26, %v11117_v50 }
  0xb7   : > { %v14185_v38 = vsel %vm11475_vm4, 4294967295, %v14184_v38  ;;  %vm11488_vm14 = vmpackc.low %vm14188_vm7, %vm14187_vm13  ;;  %vm14191_vm13 = vcmp.eq.s32.totalorder %v10872_v3, %v11292_v5  ;;  %vm14192_vm7 = vcmp.eq.s32.totalorder %v10872_v3, %v1114_v7  ;;  %9050 = vmatpush3.bf16.msra.mxu0 %v10989_v51  ;;  %vm14204_vm3 = vcmp.eq.s32.totalorder %v10922_v26, %v11119_v52  ;;  %9665 = vmatpush3.bf16.msra.mxu1 %v10989_v51 }
  0xb8   : > { %14186 = vst [vmem:[#allocation47_spill] sm:$0xff] %v14185_v38  ;;  %v14190_v57 = vsel %vm11488_vm14, 4294967295, %v14189_v57  ;;  %vm11509_vm12 = vmpackc.low %vm14192_vm7, %vm14191_vm13  ;;  %vm14195_vm7 = vcmp.eq.s32.totalorder %v10922_v26, %v1115_v46  ;;  %vm754_vm13 = vcmp.eq.s32.totalorder %v10922_v26, %v728_v6  ;;  %vm943_vm1 = vcmp.eq.s32.totalorder %v10922_v26, %v11131_v58  ;;  %9051 = vmatprep.subr.bf16.mxu0 %v10996_v54 }
  0xb9   : > { %v14194_v14 = vsel %vm11509_vm12, 4294967295, %v14193_v14  ;;  %vm11530_vm15 = vmpackc.low %vm14196_vm9, %vm14195_vm7  ;;  %vm14199_vm9 = vcmp.eq.s32.totalorder %v10872_v3, %v1115_v46  ;;  %vm14200_vm7 = vcmp.eq.s32.totalorder %v10872_v3, %v1116_v49  ;;  %vm751_vm12 = vcmp.eq.s32.totalorder %v10872_v3, %v727_v4  ;;  %9658 = vmatprep.subr.bf16.mxu1 %v10996_v54 }
  0xba   : > { %v14198_v47 = vsel %vm11530_vm15, 4294967295, %v14197_v47  ;;  %vm11547_vm5 = vmpackc.low %vm14200_vm7, %vm14199_vm9  ;;  %vm753_vm9 = vcmp.eq.s32.totalorder %v10872_v3, %v728_v6  ;;  %vm14207_vm7 = vcmp.eq.s32.totalorder %v10872_v3, %v11123_v55  ;;  %v14209_v7 = vmov 0 }
  0xbb   : > { %v14202_v43 = vsel %vm11547_vm5, 4294967295, %v14201_v43  ;;  %vm11557_vm15 = vmpackc.low %vm14204_vm3, %vm14203_vm6  ;;  %vm14208_vm6 = vcmp.eq.s32.totalorder %v10872_v3, %v11151_v60  ;;  %vm756_vm5 = vcmp.eq.s32.totalorder %v10922_v26, %v11500_v45  ;;  %vm758_vm14 = vcmp.eq.s32.totalorder %v10922_v26, %v730_v8  ;;  %9052 = vmatpush3.bf16.msra.mxu0 %v11011_v61  ;;  %9666 = vmatpush3.bf16.msra.mxu1 %v11011_v61 }
  0xbc   : > { %vm11573_vm3 = vmpackc.low %vm14208_vm6, %vm14207_vm7  ;;  %vm14212_vm4 = vcmp.eq.s32.totalorder %v10872_v3, %v11117_v50  ;;  %vm14213_vm8 = vcmp.eq.s32.totalorder %v10872_v3, %v11119_v52  ;;  %vm14216_vm7 = vcmp.eq.s32.totalorder %v10922_v26, %v727_v4  ;;  %vm14219_vm10 = vcmp.eq.s32.totalorder %v10922_v26, %v11129_v56  ;;  %9053 = vmatprep.subr.bf16.mxu0 %v11026_v2  ;;  %v9789_v52 = vld [vmem:[#allocation2 + $0x44] ss:$16 sps:$4 sm:$0xff]  }
  0xbd   : > { %v14210_v7 = vsel %vm11573_vm3, 4294967295, %v14209_v7  ;;  %vm11587_vm0 = vmpackc.low %vm14213_vm8, %vm14212_vm4  ;;  %v715_v50 = vmul.u32 2, %v696_v34  ;;  %v716_v60 = vmul.u32 2, %v697_v35  ;;  %8298 = vmatmul.mubr.msk.bf16.gmra.mxu1 %vm11456_vm2, %v13996_v44  ;;  %9659 = vmatprep.subr.bf16.mxu1 %v11026_v2  ;;  %v698_v46 = vadd.s32 112, %v10869_v1  ;;  %v9804_v34 = vld [vmem:[#allocation2 + $0xc] ss:$16 sps:$4 sm:$0xff]  }
  0xbe   : > { %14211 = vst [vmem:[#allocation48_spill] sm:$0xff] %v14210_v7  ;;  %vm11593_vm6 = vmpackc.low %vm754_vm13, %vm14216_vm7  ;;  %8300 = vmatprep.mubr.msk.bf16.mxu1 %vm11557_vm15, %v13996_v44  ;;  %v699_v61 = vadd.s32 120, %v10869_v1  ;;  %vm757_vm13 = vcmp.eq.s32.totalorder %v10872_v3, %v730_v8  ;;  %v9801_v8 = vld [vmem:[#allocation2 + $0x4] ss:$16 sps:$4 sm:$0xff]  }
  0xbf   : > { %vm11600_vm11 = vmpackc.low %vm943_vm1, %vm14219_vm10  ;;  %v731_v20 = vadd.s32 4294967295, %v715_v50  ;;  %v732_v23 = vadd.s32 4294967295, %v716_v60  ;;  %vm942_vm10 = vcmp.eq.s32.totalorder %v10872_v3, %v11131_v58  ;;  %vm945_vm4 = vcmp.eq.s32.totalorder %v10922_v26, %v715_v50  ;;  %9054 = vmatpush3.bf16.msra.mxu0 %v11059_v21  ;;  %9667 = vmatpush3.bf16.msra.mxu1 %v11059_v21 }
  0xc0   : > { %vm11604_vm3 = vmpackc.low %vm753_vm9, %vm751_vm12  ;;  %vm947_vm12 = vcmp.eq.s32.totalorder %v10922_v26, %v716_v60  ;;  %vm755_vm1 = vcmp.eq.s32.totalorder %v10872_v3, %v11500_v45  ;;  %9055 = vmatprep.subr.bf16.mxu0 %v11073_v31  ;;  %9660 = vmatprep.subr.bf16.mxu1 %v11073_v31  ;;  %v717_v58 = vmul.u32 2, %v698_v46  ;;  %v718_v49 = vmul.u32 2, %v699_v61 }
  0xc1   : > { %vm11609_vm8 = vmpackc.low %vm758_vm14, %vm756_vm5  ;;  %vm14226_vm14 = vnez %v14210_v7  ;;  %vm940_vm5 = vcmp.eq.s32.totalorder %v10872_v3, %v11129_v56  ;;  %vm760_vm15 = vcmp.eq.s32.totalorder %v10922_v26, %v731_v20  ;;  %vm762_vm9 = vcmp.eq.s32.totalorder %v10922_v26, %v732_v23 }
  0xc2   : > { %8266 = vmatmul.mubr.msk.bf16.gmra.mxu0 %vm14226_vm14, %v13996_v44  ;;  %vm11645_vm7 = vmpackc.low %vm942_vm10, %vm940_vm5  ;;  %v733_v31 = vadd.s32 4294967295, %v717_v58  ;;  %v734_v6 = vadd.s32 4294967295, %v718_v49  ;;  %vm944_vm5 = vcmp.eq.s32.totalorder %v10872_v3, %v715_v50  ;;  %vm946_vm10 = vcmp.eq.s32.totalorder %v10872_v3, %v716_v60 }
  0xc3   : > { %8268 = vmatprep.mubr.msk.bf16.mxu0 %vm11593_vm6, %v13996_v44  ;;  %vm11649_vm6 = vmpackc.low %vm947_vm12, %vm945_vm4  ;;  %9056 = vmatpush3.bf16.msra.mxu0 %v11103_v48  ;;  %vm951_vm4 = vcmp.eq.s32.totalorder %v10922_v26, %v718_v49  ;;  %vm759_vm12 = vcmp.eq.s32.totalorder %v10872_v3, %v731_v20  ;;  %v1117_v35 = vadd.s32 1, %v715_v50  ;;  %v1118_v5 = vadd.s32 1, %v716_v60  ;;  %v9783_v50 = vld [vmem:[#allocation2 + $0x64] ss:$16 sps:$4 sm:$0xff]   ;;  %v9786_v60 = vld [vmem:[#allocation2 + $0x6c] ss:$16 sps:$4 sm:$0xff]  }
  0xc4   : > { %vm11653_vm2 = vmpackc.low %vm757_vm13, %vm755_vm1  ;;  %9668 = vmatpush3.bf16.msra.mxu1 %v11103_v48  ;;  %vm764_vm1 = vcmp.eq.s32.totalorder %v10922_v26, %v733_v31  ;;  %v1119_v55 = vadd.s32 1, %v717_v58  ;;  %v1120_v54 = vadd.s32 1, %v718_v49  ;;  %1513 = vmatprep.subr.bf16.mxu0 %v9786_v60  ;;  %v9787_v20 = vld [vmem:[#allocation2 + $0x40] ss:$16 sps:$4 sm:$0xff]   ;;  %v9796_v48 = vld [vmem:[#allocation2 + $0x28] ss:$16 sps:$4 sm:$0xff]  }
  0xc5   : > { %vm11658_vm14 = vmpackc.low %vm762_vm9, %vm760_vm15  ;;  %8302 = vmatmul.mubr.msk.bf16.gmra.mxu1 %vm11587_vm0, %v13996_v44  ;;  %vm949_vm0 = vcmp.eq.s32.totalorder %v10922_v26, %v717_v58  ;;  %1400 = vmatprep.subr.bf16.mxu1 %v9783_v50  ;;  %v9807_v50 = vld [vmem:[#allocation2 + $0xa4] ss:$16 sps:$4 sm:$0xff]   ;;  %v9810_v60 = vld [vmem:[#allocation2 + $0xac] ss:$16 sps:$4 sm:$0xff]  }
  0xc6   : > { %8304 = vmatprep.mubr.msk.bf16.mxu1 %vm11600_vm11, %v13996_v44  ;;  %vm761_vm11 = vcmp.eq.s32.totalorder %v10872_v3, %v732_v23  ;;  %vm11683_vm13 = vmpackc.low %vm946_vm10, %vm944_vm5  ;;  %vm948_vm5 = vcmp.eq.s32.totalorder %v10872_v3, %v717_v58  ;;  %vm950_vm10 = vcmp.eq.s32.totalorder %v10872_v3, %v718_v49  ;;  %v9790_v23 = vld [vmem:[#allocation2 + $0x48] ss:$16 sps:$4 sm:$0xff]  }
  0xc7   : > { %vm11687_vm15 = vmpackc.low %vm951_vm4, %vm949_vm0  ;;  %vm763_vm0 = vcmp.eq.s32.totalorder %v10872_v3, %v733_v31  ;;  %vm1146_vm4 = vcmp.eq.s32.totalorder %v10922_v26, %v1117_v35  ;;  %v9793_v31 = vld [vmem:[#allocation2 + $0x20] ss:$16 sps:$4 sm:$0xff]  }
  0xca   : > { %8270 = vmatmul.mubr.msk.bf16.gmra.mxu0 %vm11604_vm3, %v13996_v44  ;;  %vm766_vm3 = vcmp.eq.s32.totalorder %v10922_v26, %v734_v6 }
  0xcb   : > { %8272 = vmatprep.mubr.msk.bf16.mxu0 %vm11609_vm8, %v13996_v44  ;;  %vm11691_vm8 = vmpackc.low %vm761_vm11, %vm759_vm12 }
  0xcc   : > { %vm11695_vm9 = vmpackc.low %vm766_vm3, %vm764_vm1  ;;  %vm1147_vm1 = vcmp.eq.s32.totalorder %v10872_v3, %v1118_v5  ;;  %vm1150_vm3 = vcmp.eq.s32.totalorder %v10922_v26, %v1119_v55 }
  0xcd   : > { %8306 = vmatmul.mubr.msk.bf16.gmra.mxu1 %vm11645_vm7, %v13996_v44  ;;  %vm765_vm7 = vcmp.eq.s32.totalorder %v10872_v3, %v734_v6  ;;  %vm11717_vm12 = vmpackc.low %vm950_vm10, %vm948_vm5 }
  0xce   : > { %8308 = vmatprep.mubr.msk.bf16.mxu1 %vm11649_vm6, %v13996_v44  ;;  %vm1148_vm6 = vcmp.eq.s32.totalorder %v10922_v26, %v1118_v5 }
  0xcf   : > { %vm8339_vm11 = vmpackc.low %vm1148_vm6, %vm1146_vm4  ;;  %vm14249_vm4 = vnez %v14160_v28  ;;  %vm14250_vm6 = vnez %v14164_v30  ;;  %v14001_v28 = vmov 0  }
  0xd2   : > { %8274 = vmatmul.mubr.msk.bf16.gmra.mxu0 %vm11653_vm2, %v13996_v44  ;;  %vm8281_vm2 = vmpackc.low %vm765_vm7, %vm763_vm0  ;;  %vm14248_vm7 = vnez %v14155_v12 }
  0xd3   : > { %8276 = vmatprep.mubr.msk.bf16.mxu0 %vm11658_vm14, %v13996_v44  ;;  %vm1145_vm14 = vcmp.eq.s32.totalorder %v10872_v3, %v1117_v35 }
  0xd4   : > { %vm8341_vm5 = vmpackc.low %vm1147_vm1, %vm1145_vm14  ;;  %vm14254_vm14 = vnez %v14185_v38  ;;  %vm14255_vm1 = vnez %v14190_v57 }
  0xd5   : > { %8310 = vmatmul.mubr.msk.bf16.gmra.mxu1 %vm11683_vm13, %v13996_v44  ;;  %vm1152_vm13 = vcmp.eq.s32.totalorder %v10922_v26, %v1120_v54 }
  0xd6   : > { %8312 = vmatprep.mubr.msk.bf16.mxu1 %vm11687_vm15, %v13996_v44  ;;  %vm8343_vm10 = vmpackc.low %vm1152_vm13, %vm1150_vm3  ;;  %vm14245_vm15 = vnez %v14151_v24  ;;  %v9781_v24 = vld [vmem:[#allocation2 + $0x60] ss:$16 sps:$4 sm:$0xff]   ;;  %vm14256_vm3 = vnez %v14194_v14  ;;  %vm14257_vm13 = vnez %v14198_v47 }
  0xda   : > { %8278 = vmatmul.mubr.msk.bf16.gmra.mxu0 %vm11691_vm8, %v13996_v44  ;;  %vm1149_vm8 = vcmp.eq.s32.totalorder %v10872_v3, %v1119_v55  ;;  %v9799_v55 = vld [vmem:[#allocation2] ss:$16 sps:$4 sm:$0xff]  }
  0xdb   : > { %8280 = vmatprep.mubr.msk.bf16.mxu0 %vm11695_vm9, %v13996_v44  ;;  %vm1151_vm9 = vcmp.eq.s32.totalorder %v10872_v3, %v1120_v54  ;;  %v9784_v3 = vld [vmem:[#allocation2 + $0x68] ss:$16 sps:$4 sm:$0xff]  }
  0xdc   : > { %vm11747_vm0 = vmpackc.low %vm1151_vm9, %vm1149_vm8  ;;  %v9802_v54 = vld [vmem:[#allocation2 + $0x8] ss:$16 sps:$4 sm:$0xff]  }
  0xdd   : > { %8314 = vmatmul.mubr.msk.bf16.gmra.mxu1 %vm11717_vm12, %v13996_v44  ;;  %vm14251_vm12 = vnez %v14169_v40  ;;  %v9795_v40 = vld [vmem:[#allocation2 + $0x24] ss:$16 sps:$4 sm:$0xff]  }
  0xde   : > { %8340 = vmatprep.mubr.msk.bf16.mxu1 %vm8339_vm11, %v13996_v44  ;;  %vm14253_vm11 = vnez %v14181_v37  ;;  %v9798_v37 = vld [vmem:[#allocation2 + $0x2c] ss:$16 sps:$4 sm:$0xff]  }
  0xe2   : > { %8282 = vmatmul.mubr.msk.bf16.gmra.mxu0 %vm8281_vm2, %v13996_v44  ;;  %vm14252_vm2 = vnez %v14173_v41 }
  0xe3   : > { %8316 = vmatprep.mubr.msk.bf16.mxu0 %vm14245_vm15, %v13996_v44 }
  0xe5   : > { %8342 = vmatmul.mubr.msk.bf16.vlgmr.msra.gmra.mxu1 %vm8341_vm5, %v13996_v44  ;;  %vm14258_vm5 = vnez %v14202_v43 }
  0xe6   : > { %8344 = vmatprep.mubr.msk.bf16.mxu1 %vm8343_vm10, %v13996_v44  ;;  %1401 = vmatpush1.bf16.msra.mxu1 %v9781_v24  ;;  %vm1363_vm10 = vcmask 261120  }
  0xe7   : > { %1402 = vmatprep.subr.bf16.mxu1 %v9789_v52 }
  0xea   : > { %8318 = vmatmul.mubr.msk.bf16.vlgmr.msra.gmra.mxu0 %vm14248_vm7, %v13996_v44  ;;  %1403 = vmatpush1.bf16.msra.mxu1 %v9787_v20 }
  0xeb   : > { %8320 = vmatprep.mubr.msk.bf16.mxu0 %vm14249_vm4, %v13996_v44  ;;  %1514 = vmatpush1.bf16.msra.mxu0 %v9784_v3 }
  0xec   : > { %1515 = vmatprep.subr.bf16.mxu0 %v9792_v0  ;;  %1690 = vmatprep.subr.bf16.mxu1 %v9795_v40 }
  0xed   : > { %8346 = vmatmul.mubr.msk.bf16.gmra.mxu1 %vm11747_vm0, %v13996_v44 }
  0xee   : > { %1420 = vmatprep.mubr.bf16.mxu1 %v14001_v28 }
  0xef   : > { %1516 = vmatpush1.bf16.msra.mxu0 %v9790_v23 }
  0xf0   : > { %1803 = vmatprep.subr.bf16.mxu0 %v9798_v37 }
  0xf2   : > { %8322 = vmatmul.mubr.msk.bf16.gmra.mxu0 %vm14250_vm6, %v13996_v44 }
  0xf3   : > { %8324 = vmatprep.mubr.msk.bf16.mxu0 %vm14251_vm12, %v13996_v44 }
  0xfa   : > { %8326 = vmatmul.mubr.msk.bf16.gmra.mxu0 %vm14252_vm2, %v13996_v44 }
  0xfb   : > { %8328 = vmatprep.mubr.msk.bf16.mxu0 %vm14253_vm11, %v13996_v44 }
 0x102   : > { %8330 = vmatmul.mubr.msk.bf16.gmra.mxu0 %vm14254_vm14, %v13996_v44 }
 0x103   : > { %8332 = vmatprep.mubr.msk.bf16.mxu0 %vm14255_vm1, %v13996_v44 }
 0x10a   : > { %8334 = vmatmul.mubr.msk.bf16.gmra.mxu0 %vm14256_vm3, %v13996_v44  ;;  %vm6687_vm3 = vcmask 64512  }
 0x10b   : > { %8336 = vmatprep.mubr.msk.bf16.mxu0 %vm14257_vm13, %v13996_v44 }
 0x112   : > { %8338 = vmatmul.mubr.msk.bf16.gmra.mxu0 %vm14258_vm5, %v13996_v44 }
 0x113   : > { %1533 = vmatprep.mubr.bf16.mxu0 %v14001_v28 }
 0x165   : > { %v8993_v57 = vpop.f32.mrf.mxu1  ;;  %v11791_v46 = vpop.f32.mrf.mxu0 }
 0x167   : > { %v8994_v61 = vpop.f32.mrf.mxu1  ;;  %v11793_v14 = vpop.f32.mrf.mxu0 }
 0x168   : > { %v8995_v58 = vadd.f32 %v8994_v61, %v8993_v57 }
 0x169   : > { %v8996_v2 = vpop.f32.mrf.mxu1  ;;  %v11795_v56 = vpop.f32.mrf.mxu0 }
 0x16b   : > { %v8997_v47 = vpop.f32.mrf.mxu1  ;;  %v11797_v43 = vpop.f32.mrf.mxu0 }
 0x16c   : > { %v8998_v49 = vadd.f32 %v8997_v47, %v8996_v2 }
 0x16d   : > { %v8999_v4 = vpop.f32.mrf.mxu1  ;;  %v11799_v6 = vpop.f32.mrf.mxu0 }
 0x16e   : > { %v1097_v21 = vpack.c.bf16 %v8998_v49, %v8995_v58 }
 0x16f   : > { %v9000_v45 = vpop.f32.mrf.mxu1  ;;  %v11803_v35 = vpop.f32.mrf.mxu0 }
 0x170   : > { %8355 = vmatmul.mubr.msk.bf16.vlgmr.msra.gmra.mxu1 %vm1363_vm10, %v1097_v21  ;;  %8363 = vmatmul.mubr.msk.bf16.vlgmr.msra.gmra.mxu0 %vm1363_vm10, %v1097_v21  ;;  %v9001_v24 = vadd.f32 %v9000_v45, %v8999_v4 }
 0x171   : > { %v9002_v5 = vpop.f32.mrf.mxu1  ;;  %1430 = vmatprep.mubr.bf16.mxu1 %v14001_v28  ;;  %1543 = vmatprep.mubr.bf16.mxu0 %v14001_v28  ;;  %v11807_v51 = vpop.f32.mrf.mxu0 }
 0x172   : > { %1691 = vmatpush1.bf16.msra.mxu1 %v9793_v31  ;;  %1804 = vmatpush1.bf16.msra.mxu0 %v9796_v48 }
 0x173   : > { %v9003_v26 = vpop.f32.mrf.mxu1  ;;  %1692 = vmatprep.subr.bf16.mxu1 %v9801_v8  ;;  %1805 = vmatprep.subr.bf16.mxu0 %v9804_v34  ;;  %v11809_v52 = vpop.f32.mrf.mxu0 }
 0x174   : > { %v9004_v3 = vadd.f32 %v9003_v26, %v9002_v5 }
 0x175   : > { %v9005_v0 = vpop.f32.mrf.mxu1  ;;  %v11811_v23 = vpop.f32.mrf.mxu0 }
 0x176   : > { %v1098_v20 = vpack.c.bf16 %v9004_v3, %v9001_v24  ;;  %1693 = vmatpush1.bf16.msra.mxu1 %v9799_v55  ;;  %1806 = vmatpush1.bf16.msra.mxu0 %v9802_v54 }
 0x177   : > { %v9006_v40 = vpop.f32.mrf.mxu1  ;;  %1989 = vmatprep.subr.bf16.mxu1 %v9807_v50  ;;  %2102 = vmatprep.subr.bf16.mxu0 %v9810_v60  ;;  %v11815_v37 = vpop.f32.mrf.mxu0 }
 0x178   : > { %8356 = vmatmul.mubr.msk.bf16.gmra.mxu1 %vm1363_vm10, %v1098_v20  ;;  %8364 = vmatmul.mubr.msk.bf16.gmra.mxu0 %vm1363_vm10, %v1098_v20  ;;  %v9007_v47 = vadd.f32 %v9006_v40, %v9005_v0 }
 0x179   : > { %v9008_v57 = vpop.f32.mrf.mxu1  ;;  %1440 = vmatprep.mubr.bf16.mxu1 %v14001_v28  ;;  %1553 = vmatprep.mubr.bf16.mxu0 %v14001_v28  ;;  %v11819_v61 = vpop.f32.mrf.mxu0 }
 0x17b   : > { %v9009_v2 = vpop.f32.mrf.mxu1  ;;  %v11821_v49 = vpop.f32.mrf.mxu0 }
 0x17c   : > { %v9010_v58 = vadd.f32 %v9009_v2, %v9008_v57 }
 0x17d   : > { %v9011_v4 = vpop.f32.mrf.mxu1 }
 0x17e   : > { %v1099_v21 = vpack.c.bf16 %v9010_v58, %v9007_v47 }
 0x17f   : > { %v9012_v48 = vpop.f32.mrf.mxu1 }
 0x180   : > { %8357 = vmatmul.mubr.msk.bf16.gmra.mxu1 %vm1363_vm10, %v1099_v21  ;;  %8365 = vmatmul.mubr.msk.bf16.gmra.mxu0 %vm1363_vm10, %v1099_v21  ;;  %v9013_v55 = vadd.f32 %v9012_v48, %v9011_v4 }
 0x181   : > { %v9014_v8 = vpop.f32.mrf.mxu1  ;;  %1450 = vmatprep.mubr.bf16.mxu1 %v14001_v28  ;;  %1563 = vmatprep.mubr.bf16.mxu0 %v14001_v28 }
 0x182   : > { %v11823_v31 = vpop.f32.mrf.mxu0 }
 0x183   : > { %v9015_v5 = vpop.f32.mrf.mxu1 }
 0x184   : > { %v11827_v45 = vpop.f32.mrf.mxu0  ;;  %v9016_v54 = vadd.f32 %v9015_v5, %v9014_v8 }
 0x185   : > { %v9017_v50 = vpop.f32.mrf.mxu1 }
 0x186   : > { %v11831_v34 = vpop.f32.mrf.mxu0  ;;  %v1100_v60 = vpack.c.bf16 %v9016_v54, %v9013_v55 }
 0x187   : > { %v9018_v3 = vpop.f32.mrf.mxu1 }
 0x188   : > { %v11833_v26 = vpop.f32.mrf.mxu0  ;;  %8358 = vmatmul.mubr.msk.bf16.gmra.mxu1 %vm1363_vm10, %v1100_v60  ;;  %8366 = vmatmul.mubr.msk.bf16.gmra.mxu0 %vm1363_vm10, %v1100_v60  ;;  %v9019_v2 = vadd.f32 %v9018_v3, %v9017_v50 }
 0x189   : > { %v9020_v20 = vpop.f32.mrf.mxu1  ;;  %1460 = vmatprep.mubr.bf16.mxu1 %v14001_v28  ;;  %1573 = vmatprep.mubr.bf16.mxu0 %v14001_v28 }
 0x18a   : > { %v11835_v24 = vpop.f32.mrf.mxu0 }
 0x18b   : > { %v9021_v57 = vpop.f32.mrf.mxu1 }
 0x18c   : > { %v11839_v0 = vpop.f32.mrf.mxu0  ;;  %v9022_v47 = vadd.f32 %v9021_v57, %v9020_v20 }
 0x18d   : > { %v9023_v4 = vpop.f32.mrf.mxu1 }
 0x18e   : > { %v11843_v40 = vpop.f32.mrf.mxu0  ;;  %v1101_v21 = vpack.c.bf16 %v9022_v47, %v9019_v2 }
 0x18f   : > { %v9024_v8 = vpop.f32.mrf.mxu1 }
 0x190   : > { %v11845_v58 = vpop.f32.mrf.mxu0  ;;  %8359 = vmatmul.mubr.msk.bf16.gmra.mxu1 %vm1363_vm10, %v1101_v21  ;;  %8367 = vmatmul.mubr.msk.bf16.gmra.mxu0 %vm1363_vm10, %v1101_v21  ;;  %v9025_v60 = vadd.f32 %v9024_v8, %v9023_v4 }
 0x191   : > { %v9026_v55 = vpop.f32.mrf.mxu1  ;;  %1470 = vmatprep.mubr.bf16.mxu1 %v14001_v28  ;;  %1583 = vmatprep.mubr.bf16.mxu0 %v14001_v28 }
 0x192   : > { %v11847_v48 = vpop.f32.mrf.mxu0 }
 0x193   : > { %v9027_v50 = vpop.f32.mrf.mxu1 }
 0x194   : > { %v11851_v5 = vpop.f32.mrf.mxu0  ;;  %v9028_v3 = vadd.f32 %v9027_v50, %v9026_v55 }
 0x195   : > { %v9029_v57 = vpop.f32.mrf.mxu1 }
 0x196   : > { %v11855_v54 = vpop.f32.mrf.mxu0  ;;  %v1102_v2 = vpack.c.bf16 %v9028_v3, %v9025_v60 }
 0x197   : > { %v9030_v42 = vpop.f32.mrf.mxu1 }
 0x198   : > { %v11857_v20 = vpop.f32.mrf.mxu0  ;;  %8360 = vmatmul.mubr.msk.bf16.gmra.mxu1 %vm1363_vm10, %v1102_v2  ;;  %8368 = vmatmul.mubr.msk.bf16.gmra.mxu0 %vm1363_vm10, %v1102_v2  ;;  %v9031_v55 = vadd.f32 %v9030_v42, %v9029_v57 }
 0x199   : > { %v9032_v36 = vpop.f32.mrf.mxu1  ;;  %1480 = vmatprep.mubr.bf16.mxu1 %v14001_v28  ;;  %1593 = vmatprep.mubr.bf16.mxu0 %v14001_v28 }
 0x19a   : > { %v11859_v47 = vpop.f32.mrf.mxu0 }
 0x19b   : > { %v9033_v4 = vpop.f32.mrf.mxu1 }
 0x19c   : > { %v11863_v21 = vpop.f32.mrf.mxu0  ;;  %v9034_v50 = vadd.f32 %v9033_v4, %v9032_v36  ;;  %v8931_v4 = vadd.f32 %v11793_v14, %v11791_v46  ;;  %v8937_v46 = vadd.f32 %v11803_v35, %v11799_v6  ;;  %v8940_v14 = vadd.f32 %v11809_v52, %v11807_v51 }
 0x19d   : > { %v9035_v60 = vpop.f32.mrf.mxu1  ;;  %v8943_v6 = vadd.f32 %v11815_v37, %v11811_v23  ;;  %v8946_v35 = vadd.f32 %v11821_v49, %v11819_v61  ;;  %v8952_v23 = vadd.f32 %v11833_v26, %v11831_v34  ;;  %v8955_v49 = vadd.f32 %v11839_v0, %v11835_v24 }
 0x19e   : > { %v11867_v8 = vpop.f32.mrf.mxu0  ;;  %v1103_v3 = vpack.c.bf16 %v9034_v50, %v9031_v55  ;;  %v8934_v55 = vadd.f32 %v11797_v43, %v11795_v56  ;;  %v9811_v56 = vld [vmem:[#allocation2 + $0x80] ss:$16 sps:$4 sm:$0xff]   ;;  %v9814_v43 = vld [vmem:[#allocation2 + $0x88] ss:$16 sps:$4 sm:$0xff]   ;;  %v8961_v26 = vadd.f32 %v11851_v5, %v11847_v48  ;;  %v8964_v24 = vadd.f32 %v11857_v20, %v11855_v54 }
 0x19f   : > { %v9036_v39 = vpop.f32.mrf.mxu1  ;;  %v914_v52 = vpack.c.bf16 %v8946_v35, %v8943_v6 }
 0x1a0   : > { %v11869_v44 = vpop.f32.mrf.mxu0  ;;  %8361 = vmatmul.mubr.msk.bf16.gmra.mxu1 %vm1363_vm10, %v1103_v3  ;;  %8369 = vmatmul.mubr.msk.bf16.gmra.mxu0 %vm1363_vm10, %v1103_v3  ;;  %v9037_v63 = vadd.f32 %v9036_v39, %v9035_v60  ;;  %v9808_v39 = vld [vmem:[#allocation2 + $0xa8] ss:$16 sps:$4 sm:$0xff]   ;;  %v9813_v3 = vld [vmem:[#allocation2 + $0x84] ss:$16 sps:$4 sm:$0xff]  }
 0x1a1   : > { %v9038_v2 = vpop.f32.mrf.mxu1  ;;  %1490 = vmatprep.mubr.bf16.mxu1 %v14001_v28  ;;  %1603 = vmatprep.mubr.bf16.mxu0 %v14001_v28  ;;  %v8970_v48 = vadd.f32 %v11869_v44, %v11867_v8 }
 0x1a2   : > { %v11875_v53 = vpop.f32.mrf.mxu0 }
 0x1a3   : > { %v9039_v13 = vpop.f32.mrf.mxu1 }
 0x1a4   : > { %v9040_v42 = vadd.f32 %v9039_v13, %v9038_v2  ;;  %v11877_v57 = vpop.f32.mrf.mxu0  ;;  %v912_v13 = vpack.c.bf16 %v8934_v55, %v8931_v4  ;;  %v9816_v2 = vld [vmem:[#allocation2 + $0x8c] ss:$16 sps:$4 sm:$0xff]  }
 0x1a5   : > { %v8973_v20 = vadd.f32 %v11877_v57, %v11875_v53 }
 0x1a6   : > { %v1104_v36 = vpack.c.bf16 %v9040_v42, %v9037_v63  ;;  %v11887_v50 = vpop.f32.mrf.mxu0  ;;  %v9805_v63 = vld [vmem:[#allocation2 + $0xa0] ss:$16 sps:$4 sm:$0xff]  }
 0x1a8   : > { %8362 = vmatmul.mubr.msk.bf16.gmra.mxu1 %vm1363_vm10, %v1104_v36  ;;  %8370 = vmatmul.mubr.msk.bf16.gmra.mxu0 %vm1363_vm10, %v1104_v36  ;;  %v11889_v60 = vpop.f32.mrf.mxu0  ;;  %v913_v36 = vpack.c.bf16 %v8940_v14, %v8937_v46 }
 0x1a9   : > { %1710 = vmatprep.mubr.bf16.mxu1 %v14001_v28  ;;  %1823 = vmatprep.mubr.bf16.mxu0 %v14001_v28 }
 0x1aa   : > { %v11899_v42 = vpop.f32.mrf.mxu0 }
 0x1ac   : > { %v9058_v4 = vpop.f32.mrf.mxu0 }
 0x1ad   : > { %v9059_v8 = vadd.f32 %v9058_v4, %v11899_v42 }
 0x1ae   : > { %v9060_v51 = vpop.f32.mrf.mxu0 }
 0x1b0   : > { %8379 = vmatmul.mubr.msk.bf16.vlgmr.msra.gmra.mxu1 %vm1363_vm10, %v912_v13  ;;  %8387 = vmatmul.mubr.msk.bf16.vlgmr.msra.gmra.mxu0 %vm1363_vm10, %v912_v13  ;;  %v9061_v55 = vpop.f32.mrf.mxu0  ;;  %v8949_v13 = vadd.f32 %v11827_v45, %v11823_v31  ;;  %v8958_v31 = vadd.f32 %v11845_v58, %v11843_v40  ;;  %v8967_v58 = vadd.f32 %v11863_v21, %v11859_v47 }
 0x1b1   : > { %1720 = vmatprep.mubr.bf16.mxu1 %v14001_v28  ;;  %1833 = vmatprep.mubr.bf16.mxu0 %v14001_v28  ;;  %v8976_v47 = vadd.f32 %v11889_v60, %v11887_v50  ;;  %v9062_v14 = vadd.f32 %v9061_v55, %v9060_v51 }
 0x1b2   : > { %1990 = vmatpush1.bf16.msra.mxu1 %v9805_v63  ;;  %2103 = vmatpush1.bf16.msra.mxu0 %v9808_v39  ;;  %v9063_v37 = vpop.f32.mrf.mxu0  ;;  %v915_v63 = vpack.c.bf16 %v8952_v23, %v8949_v13  ;;  %v916_v39 = vpack.c.bf16 %v8958_v31, %v8955_v49 }
 0x1b3   : > { %1991 = vmatprep.subr.bf16.mxu1 %v9813_v3  ;;  %2104 = vmatprep.subr.bf16.mxu0 %v9816_v2  ;;  %v917_v3 = vpack.c.bf16 %v8964_v24, %v8961_v26  ;;  %v918_v2 = vpack.c.bf16 %v8970_v48, %v8967_v58  ;;  %v919_v46 = vpack.c.bf16 %v8976_v47, %v8973_v20 }
 0x1b4   : > { %v9064_v61 = vpop.f32.mrf.mxu0 }
 0x1b5   : > { %v9065_v57 = vadd.f32 %v9064_v61, %v9063_v37  ;;  %v9093_v37 = vpop.f32.mrf.mxu1 }
 0x1b6   : > { %1992 = vmatpush1.bf16.msra.mxu1 %v9811_v56  ;;  %2105 = vmatpush1.bf16.msra.mxu0 %v9814_v43  ;;  %v9066_v45 = vpop.f32.mrf.mxu0  ;;  %v1298_v43 = vpack.c.bf16 %v9062_v14, %v9059_v8 }
 0x1b7   : > { %v9094_v49 = vpop.f32.mrf.mxu1 }
 0x1b8   : > { %8380 = vmatmul.mubr.msk.bf16.gmra.mxu1 %vm1363_vm10, %v913_v36  ;;  %8388 = vmatmul.mubr.msk.bf16.gmra.mxu0 %vm1363_vm10, %v913_v36  ;;  %v9067_v34 = vpop.f32.mrf.mxu0 }
 0x1b9   : > { %1730 = vmatprep.mubr.bf16.mxu1 %v14001_v28  ;;  %1843 = vmatprep.mubr.bf16.mxu0 %v14001_v28  ;;  %v9068_v50 = vadd.f32 %v9067_v34, %v9066_v45  ;;  %v9096_v34 = vpop.f32.mrf.mxu1 }
 0x1ba   : > { %v9069_v0 = vpop.f32.mrf.mxu0 }
 0x1bb   : > { %v1299_v36 = vpack.c.bf16 %v9068_v50, %v9065_v57 }
 0x1bc   : > { %v9070_v40 = vpop.f32.mrf.mxu0 }
 0x1bd   : > { %v9071_v42 = vadd.f32 %v9070_v40, %v9069_v0  ;;  %v9097_v0 = vpop.f32.mrf.mxu1 }
 0x1be   : > { %v9072_v5 = vpop.f32.mrf.mxu0 }
 0x1bf   : > { %v9099_v58 = vpop.f32.mrf.mxu1 }
 0x1c0   : > { %8381 = vmatmul.mubr.msk.bf16.gmra.mxu1 %vm1363_vm10, %v914_v52  ;;  %8389 = vmatmul.mubr.msk.bf16.gmra.mxu0 %vm1363_vm10, %v914_v52  ;;  %v9073_v54 = vpop.f32.mrf.mxu0 }
 0x1c1   : > { %1740 = vmatprep.mubr.bf16.mxu1 %v14001_v28  ;;  %1853 = vmatprep.mubr.bf16.mxu0 %v14001_v28  ;;  %v9074_v4 = vadd.f32 %v9073_v54, %v9072_v5  ;;  %v9100_v5 = vpop.f32.mrf.mxu1  ;;  %v9098_v54 = vadd.f32 %v9097_v0, %v9096_v34 }
 0x1c2   : > { %v9075_v21 = vpop.f32.mrf.mxu0 }
 0x1c3   : > { %v1300_v51 = vpack.c.bf16 %v9074_v4, %v9071_v42  ;;  %v9102_v20 = vpop.f32.mrf.mxu1 }
 0x1c4   : > { %v9076_v44 = vpop.f32.mrf.mxu0 }
 0x1c5   : > { %v9077_v55 = vadd.f32 %v9076_v44, %v9075_v21  ;;  %v9103_v21 = vpop.f32.mrf.mxu1 }
 0x1c6   : > { %v9078_v56 = vpop.f32.mrf.mxu0  ;;  %v9104_v44 = vadd.f32 %v9103_v21, %v9102_v20 }
 0x1c8   : > { %8382 = vmatmul.mubr.msk.bf16.gmra.mxu1 %vm1363_vm10, %v915_v63  ;;  %8390 = vmatmul.mubr.msk.bf16.gmra.mxu0 %vm1363_vm10, %v915_v63  ;;  %v9079_v53 = vpop.f32.mrf.mxu0 }
 0x1c9   : > { %1750 = vmatprep.mubr.bf16.mxu1 %v14001_v28  ;;  %1863 = vmatprep.mubr.bf16.mxu0 %v14001_v28  ;;  %v9080_v13 = vadd.f32 %v9079_v53, %v9078_v56 }
 0x1ca   : > { %v9081_v60 = vpop.f32.mrf.mxu0 }
 0x1cb   : > { %v1301_v63 = vpack.c.bf16 %v9080_v13, %v9077_v55 }
 0x1cc   : > { %v9082_v6 = vpop.f32.mrf.mxu0 }
 0x1cd   : > { %v9083_v31 = vadd.f32 %v9082_v6, %v9081_v60 }
 0x1ce   : > { %v9084_v35 = vpop.f32.mrf.mxu0 }
 0x1d0   : > { %8383 = vmatmul.mubr.msk.bf16.gmra.mxu1 %vm1363_vm10, %v916_v39  ;;  %8391 = vmatmul.mubr.msk.bf16.gmra.mxu0 %vm1363_vm10, %v916_v39  ;;  %v9085_v52 = vpop.f32.mrf.mxu0 }
 0x1d1   : > { %1760 = vmatprep.mubr.bf16.mxu1 %v14001_v28  ;;  %1873 = vmatprep.mubr.bf16.mxu0 %v14001_v28  ;;  %v9086_v45 = vadd.f32 %v9085_v52, %v9084_v35 }
 0x1d2   : > { %v9087_v23 = vpop.f32.mrf.mxu0 }
 0x1d3   : > { %v1302_v26 = vpack.c.bf16 %v9086_v45, %v9083_v31 }
 0x1d4   : > { %v9088_v61 = vpop.f32.mrf.mxu0 }
 0x1d6   : > { %v9090_v39 = vpop.f32.mrf.mxu0 }
 0x1d8   : > { %8384 = vmatmul.mubr.msk.bf16.gmra.mxu1 %vm1363_vm10, %v917_v3  ;;  %8392 = vmatmul.mubr.msk.bf16.gmra.mxu0 %vm1363_vm10, %v917_v3  ;;  %v9091_v24 = vpop.f32.mrf.mxu0  ;;  %v9089_v3 = vadd.f32 %v9088_v61, %v9087_v23 }
 0x1d9   : > { %1770 = vmatprep.mubr.bf16.mxu1 %v14001_v28  ;;  %1883 = vmatprep.mubr.bf16.mxu0 %v14001_v28  ;;  %v9092_v40 = vadd.f32 %v9091_v24, %v9090_v39 }
 0x1db   : > { %v1303_v48 = vpack.c.bf16 %v9092_v40, %v9089_v3 }
 0x1e0   : > { %8385 = vmatmul.mubr.msk.bf16.gmra.mxu1 %vm1363_vm10, %v918_v2  ;;  %8393 = vmatmul.mubr.msk.bf16.gmra.mxu0 %vm1363_vm10, %v918_v2  ;;  %v9095_v2 = vadd.f32 %v9094_v49, %v9093_v37 }
 0x1e1   : > { %1780 = vmatprep.mubr.bf16.mxu1 %v14001_v28  ;;  %1893 = vmatprep.mubr.bf16.mxu0 %v14001_v28 }
 0x1e2   : > { %v1304_v47 = vpack.c.bf16 %v9098_v54, %v9095_v2 }
 0x1e8   : > { %8386 = vmatmul.mubr.msk.bf16.gmra.mxu1 %vm1363_vm10, %v919_v46  ;;  %8394 = vmatmul.mubr.msk.bf16.gmra.mxu0 %vm1363_vm10, %v919_v46  ;;  %v9101_v46 = vadd.f32 %v9100_v5, %v9099_v58 }
 0x1e9   : > { %2009 = vmatprep.mubr.bf16.mxu1 %v14001_v28  ;;  %2122 = vmatprep.mubr.bf16.mxu0 %v14001_v28 }
 0x1ea   : > { %v1305_v8 = vpack.c.bf16 %v9104_v44, %v9101_v46 }
 0x1f0   : > { %8403 = vmatmul.mubr.msk.bf16.vlgmr.msra.gmra.mxu1 %vm1363_vm10, %v1298_v43  ;;  %8411 = vmatmul.mubr.msk.bf16.vlgmr.msra.gmra.mxu0 %vm1363_vm10, %v1298_v43 }
 0x1f1   : > { %2019 = vmatprep.mubr.bf16.mxu1 %v14001_v28  ;;  %2132 = vmatprep.mubr.bf16.mxu0 %v14001_v28 }
 0x1f8   : > { %8404 = vmatmul.mubr.msk.bf16.gmra.mxu1 %vm1363_vm10, %v1299_v36  ;;  %8412 = vmatmul.mubr.msk.bf16.gmra.mxu0 %vm1363_vm10, %v1299_v36 }
 0x1f9   : > { %2029 = vmatprep.mubr.bf16.mxu1 %v14001_v28  ;;  %2142 = vmatprep.mubr.bf16.mxu0 %v14001_v28 }
 0x200   : > { %8405 = vmatmul.mubr.msk.bf16.gmra.mxu1 %vm1363_vm10, %v1300_v51  ;;  %8413 = vmatmul.mubr.msk.bf16.gmra.mxu0 %vm1363_vm10, %v1300_v51 }
 0x201   : > { %2039 = vmatprep.mubr.bf16.mxu1 %v14001_v28  ;;  %2152 = vmatprep.mubr.bf16.mxu0 %v14001_v28 }
 0x208   : > { %8406 = vmatmul.mubr.msk.bf16.gmra.mxu1 %vm1363_vm10, %v1301_v63  ;;  %8414 = vmatmul.mubr.msk.bf16.gmra.mxu0 %vm1363_vm10, %v1301_v63 }
 0x209   : > { %2049 = vmatprep.mubr.bf16.mxu1 %v14001_v28  ;;  %2162 = vmatprep.mubr.bf16.mxu0 %v14001_v28 }
 0x210   : > { %8407 = vmatmul.mubr.msk.bf16.gmra.mxu1 %vm1363_vm10, %v1302_v26  ;;  %8415 = vmatmul.mubr.msk.bf16.gmra.mxu0 %vm1363_vm10, %v1302_v26 }
 0x211   : > { %2059 = vmatprep.mubr.bf16.mxu1 %v14001_v28  ;;  %2172 = vmatprep.mubr.bf16.mxu0 %v14001_v28 }
 0x218   : > { %8408 = vmatmul.mubr.msk.bf16.gmra.mxu1 %vm1363_vm10, %v1303_v48  ;;  %8416 = vmatmul.mubr.msk.bf16.gmra.mxu0 %vm1363_vm10, %v1303_v48 }
 0x219   : > { %2069 = vmatprep.mubr.bf16.mxu1 %v14001_v28  ;;  %2182 = vmatprep.mubr.bf16.mxu0 %v14001_v28 }
 0x220   : > { %8409 = vmatmul.mubr.msk.bf16.gmra.mxu1 %vm1363_vm10, %v1304_v47  ;;  %8417 = vmatmul.mubr.msk.bf16.gmra.mxu0 %vm1363_vm10, %v1304_v47 }
 0x221   : > { %2079 = vmatprep.mubr.bf16.mxu1 %v14001_v28  ;;  %2192 = vmatprep.mubr.bf16.mxu0 %v14001_v28 }
 0x228   : > { %8410 = vmatmul.mubr.msk.bf16.gmra.mxu1 %vm1363_vm10, %v1305_v8  ;;  %8418 = vmatmul.mubr.msk.bf16.gmra.mxu0 %vm1363_vm10, %v1305_v8 }
 0x229   : > { %2481 = vmatprep.mubr.bf16.mxu1 %v14001_v28  ;;  %2643 = vmatprep.mubr.bf16.mxu0 %v14001_v28 }
 0x230   : > { %v11986_v14 = vpop.f32.mrf.mxu1  ;;  %v11988_v56 = vpop.f32.mrf.mxu0 }
 0x232   : > { %v11990_v43 = vpop.f32.mrf.mxu1  ;;  %v11992_v53 = vpop.f32.mrf.mxu0 }
 0x234   : > { %v11994_v57 = vpop.f32.mrf.mxu1  ;;  %v11996_v50 = vpop.f32.mrf.mxu0 }
 0x236   : > { %v11998_v60 = vpop.f32.mrf.mxu1  ;;  %v12000_v36 = vpop.f32.mrf.mxu0 }
 0x237   : > { %14259 = vst [vmem:[#allocation49_spill] sm:$0xff] %v11998_v60  ;;  %14260 = vst [vmem:[#allocation50_spill] sm:$0xff] %v12000_v36 }
 0x238   : > { %v12002_v6 = vpop.f32.mrf.mxu1  ;;  %v12004_v42 = vpop.f32.mrf.mxu0 }
 0x23a   : > { %v12006_v4 = vpop.f32.mrf.mxu1  ;;  %v12008_v35 = vpop.f32.mrf.mxu0 }
 0x23c   : > { %v12010_v51 = vpop.f32.mrf.mxu1  ;;  %v12012_v52 = vpop.f32.mrf.mxu0 }
 0x23e   : > { %v12014_v55 = vpop.f32.mrf.mxu1  ;;  %v12016_v13 = vpop.f32.mrf.mxu0 }
 0x23f   : > { %14261 = vst [vmem:[#allocation51_spill] sm:$0xff] %v12014_v55  ;;  %14262 = vst [vmem:[#allocation52_spill] sm:$0xff] %v12016_v13 }
 0x240   : > { %v12018_v23 = vpop.f32.mrf.mxu1  ;;  %v12020_v37 = vpop.f32.mrf.mxu0 }
 0x242   : > { %v12022_v63 = vpop.f32.mrf.mxu1  ;;  %v12024_v61 = vpop.f32.mrf.mxu0 }
 0x244   : > { %v12026_v49 = vpop.f32.mrf.mxu1  ;;  %v12028_v31 = vpop.f32.mrf.mxu0 }
 0x246   : > { %v12030_v45 = vpop.f32.mrf.mxu1  ;;  %v12032_v39 = vpop.f32.mrf.mxu0 }
 0x247   : > { %14263 = vst [vmem:[#allocation53_spill] sm:$0xff] %v12030_v45  ;;  %14264 = vst [vmem:[#allocation54_spill] sm:$0xff] %v12032_v39 }
 0x248   : > { %v12034_v34 = vpop.f32.mrf.mxu1  ;;  %v12036_v26 = vpop.f32.mrf.mxu0 }
 0x24a   : > { %v12038_v24 = vpop.f32.mrf.mxu1  ;;  %v12040_v0 = vpop.f32.mrf.mxu0 }
 0x24c   : > { %v12042_v3 = vpop.f32.mrf.mxu1  ;;  %v12044_v40 = vpop.f32.mrf.mxu0 }
 0x24e   : > { %v12046_v58 = vpop.f32.mrf.mxu1  ;;  %v12048_v48 = vpop.f32.mrf.mxu0 }
 0x24f   : > { %14265 = vst [vmem:[#allocation55_spill] sm:$0xff] %v12046_v58  ;;  %14266 = vst [vmem:[#allocation56_spill] sm:$0xff] %v12048_v48 }
 0x250   : > { %v12050_v5 = vpop.f32.mrf.mxu1  ;;  %v12052_v2 = vpop.f32.mrf.mxu0 }
 0x252   : > { %v12054_v54 = vpop.f32.mrf.mxu1  ;;  %v12056_v20 = vpop.f32.mrf.mxu0 }
 0x254   : > { %v12058_v47 = vpop.f32.mrf.mxu1  ;;  %v12060_v21 = vpop.f32.mrf.mxu0 }
 0x256   : > { %v12062_v46 = vpop.f32.mrf.mxu1  ;;  %v12064_v44 = vpop.f32.mrf.mxu0 }
 0x257   : > { %14267 = vst [vmem:[#allocation57_spill] sm:$0xff] %v12062_v46  ;;  %14268 = vst [vmem:[#allocation58_spill] sm:$0xff] %v12064_v44 }
 0x258   : > { %v12066_v8 = vpop.f32.mrf.mxu1  ;;  %v12068_v28 = vpop.f32.mrf.mxu0 }
 0x25a   : > { %v12070_v16 = vpop.f32.mrf.mxu1  ;;  %v12072_v32 = vpop.f32.mrf.mxu0 }
 0x25c   : > { %v12074_v15 = vpop.f32.mrf.mxu1  ;;  %v12076_v29 = vpop.f32.mrf.mxu0 }
 0x25e   : > { %v12078_v33 = vpop.f32.mrf.mxu1  ;;  %v12080_v18 = vpop.f32.mrf.mxu0 }
 0x25f   : > { %14269 = vst [vmem:[#allocation59_spill] sm:$0xff] %v12080_v18 }
 0x260   : > { %v12082_v25 = vpop.f32.mrf.mxu1  ;;  %v12084_v17 = vpop.f32.mrf.mxu0 }
 0x262   : > { %v12086_v27 = vpop.f32.mrf.mxu1  ;;  %v12088_v38 = vpop.f32.mrf.mxu0 }
 0x264   : > { %v12090_v41 = vpop.f32.mrf.mxu1  ;;  %v12092_v30 = vpop.f32.mrf.mxu0 }
 0x266   : > { %v12094_v12 = vpop.f32.mrf.mxu1  ;;  %v12096_v62 = vpop.f32.mrf.mxu0 }
 0x267   : > { %14270 = vst [vmem:[#allocation60_spill] sm:$0xff] %v12096_v62 }
 0x268   : > { %v12098_v7 = vpop.f32.mrf.mxu1  ;;  %v12100_v19 = vpop.f32.mrf.mxu0 }
 0x26a   : > { %v12102_v9 = vpop.f32.mrf.mxu1  ;;  %v12104_v36 = vpop.f32.mrf.mxu0 }
 0x26c   : > { %v12106_v22 = vpop.f32.mrf.mxu1  ;;  %v12108_v11 = vpop.f32.mrf.mxu0 }
 0x26e   : > { %v12110_v13 = vpop.f32.mrf.mxu1  ;;  %v12112_v39 = vpop.f32.mrf.mxu0 }
 0x26f   : > { %14271 = vst [vmem:[#allocation61_spill] sm:$0xff] %v12112_v39 }
 0x270   : > { %v1712_v59 = vpop.f32.mrf.mxu1  ;;  %v1825_v10 = vpop.f32.mrf.mxu0 }
 0x271   : > { %v12115_v48 = vadd.f32 %v1712_v59, %v11986_v14  ;;  %v12118_v44 = vadd.f32 %v1825_v10, %v11988_v56 }
 0x272   : > { %v1714_v18 = vpop.f32.mrf.mxu1  ;;  %v1827_v62 = vpop.f32.mrf.mxu0 }
 0x273   : > { %v12121_v60 = vadd.f32 %v1714_v18, %v11990_v43  ;;  %v12124_v55 = vadd.f32 %v1827_v62, %v11992_v53 }
 0x274   : > { %v1716_v45 = vpop.f32.mrf.mxu1  ;;  %v1829_v58 = vpop.f32.mrf.mxu0 }
 0x275   : > { %v12127_v39 = vadd.f32 %v1716_v45, %v11994_v57  ;;  %v12130_v46 = vadd.f32 %v1829_v58, %v11996_v50 }
 0x276   : > { %v12132_v59 = vpop.f32.mrf.mxu1  ;;  %v12134_v10 = vpop.f32.mrf.mxu0 }
 0x277   : > { %14272 = vst [vmem:[#allocation62_spill] sm:$0xff] %v12132_v59  ;;  %14273 = vst [vmem:[#allocation63_spill] sm:$0xff] %v12134_v10 }
 0x278   : > { %v1722_v14 = vpop.f32.mrf.mxu1  ;;  %v1835_v56 = vpop.f32.mrf.mxu0 }
 0x279   : > { %v12137_v18 = vadd.f32 %v1722_v14, %v12002_v6  ;;  %v12140_v62 = vadd.f32 %v1835_v56, %v12004_v42 }
 0x27a   : > { %v1724_v43 = vpop.f32.mrf.mxu1  ;;  %v1837_v53 = vpop.f32.mrf.mxu0 }
 0x27b   : > { %v12143_v57 = vadd.f32 %v1724_v43, %v12006_v4  ;;  %v12146_v50 = vadd.f32 %v1837_v53, %v12008_v35 }
 0x27c   : > { %v1726_v45 = vpop.f32.mrf.mxu1  ;;  %v1839_v58 = vpop.f32.mrf.mxu0 }
 0x27d   : > { %v12149_v10 = vadd.f32 %v1726_v45, %v12010_v51  ;;  %v12152_v59 = vadd.f32 %v1839_v58, %v12012_v52 }
 0x27e   : > { %v12154_v6 = vpop.f32.mrf.mxu1  ;;  %v12156_v42 = vpop.f32.mrf.mxu0 }
 0x27f   : > { %14274 = vst [vmem:[#allocation64_spill] sm:$0xff] %v12154_v6  ;;  %14275 = vst [vmem:[#allocation65_spill] sm:$0xff] %v12156_v42 }
 0x280   : > { %v1732_v14 = vpop.f32.mrf.mxu1  ;;  %v1845_v56 = vpop.f32.mrf.mxu0 }
 0x281   : > { %v12159_v4 = vadd.f32 %v1732_v14, %v12018_v23  ;;  %v12162_v35 = vadd.f32 %v1845_v56, %v12020_v37 }
 0x282   : > { %v1734_v43 = vpop.f32.mrf.mxu1  ;;  %v1847_v53 = vpop.f32.mrf.mxu0 }
 0x283   : > { %v12165_v51 = vadd.f32 %v1734_v43, %v12022_v63  ;;  %v12168_v52 = vadd.f32 %v1847_v53, %v12024_v61 }
 0x284   : > { %v1736_v45 = vpop.f32.mrf.mxu1  ;;  %v1849_v58 = vpop.f32.mrf.mxu0 }
 0x285   : > { %14276 = vst [vmem:[#allocation66_spill] sm:$0xff] %v12165_v51  ;;  %v12171_v42 = vadd.f32 %v1736_v45, %v12026_v49  ;;  %v12174_v6 = vadd.f32 %v1849_v58, %v12028_v31 }
 0x286   : > { %v12176_v23 = vpop.f32.mrf.mxu1  ;;  %v12178_v37 = vpop.f32.mrf.mxu0 }
 0x287   : > { %14277 = vst [vmem:[#allocation67_spill] sm:$0xff] %v12176_v23  ;;  %14278 = vst [vmem:[#allocation68_spill] sm:$0xff] %v12178_v37 }
 0x288   : > { %v1742_v14 = vpop.f32.mrf.mxu1  ;;  %v1855_v56 = vpop.f32.mrf.mxu0 }
 0x289   : > { %v12181_v63 = vadd.f32 %v1742_v14, %v12034_v34  ;;  %v12184_v61 = vadd.f32 %v1855_v56, %v12036_v26 }
 0x28a   : > { %v1744_v43 = vpop.f32.mrf.mxu1  ;;  %v1857_v53 = vpop.f32.mrf.mxu0 }
 0x28b   : > { %v12187_v49 = vadd.f32 %v1744_v43, %v12038_v24  ;;  %v12190_v31 = vadd.f32 %v1857_v53, %v12040_v0 }
 0x28c   : > { %v1746_v45 = vpop.f32.mrf.mxu1  ;;  %v1859_v58 = vpop.f32.mrf.mxu0 }
 0x28d   : > { %14279 = vst [vmem:[#allocation69_spill] sm:$0xff] %v12187_v49  ;;  %14280 = vst [vmem:[#allocation70_spill] sm:$0xff] %v12190_v31  ;;  %v12193_v37 = vadd.f32 %v1746_v45, %v12042_v3  ;;  %v12196_v51 = vadd.f32 %v1859_v58, %v12044_v40 }
 0x28e   : > { %v12198_v34 = vpop.f32.mrf.mxu1  ;;  %v12200_v26 = vpop.f32.mrf.mxu0 }
 0x28f   : > { %14281 = vst [vmem:[#allocation71_spill] sm:$0xff] %v12198_v34  ;;  %14282 = vst [vmem:[#allocation72_spill] sm:$0xff] %v12200_v26 }
 0x290   : > { %v1752_v14 = vpop.f32.mrf.mxu1  ;;  %v1865_v56 = vpop.f32.mrf.mxu0 }
 0x291   : > { %v12203_v24 = vadd.f32 %v1752_v14, %v12050_v5  ;;  %v12206_v0 = vadd.f32 %v1865_v56, %v12052_v2 }
 0x292   : > { %v1754_v43 = vpop.f32.mrf.mxu1  ;;  %v1867_v53 = vpop.f32.mrf.mxu0 }
 0x293   : > { %v12209_v3 = vadd.f32 %v1754_v43, %v12054_v54  ;;  %v12212_v40 = vadd.f32 %v1867_v53, %v12056_v20 }
 0x294   : > { %v1756_v45 = vpop.f32.mrf.mxu1  ;;  %v1869_v58 = vpop.f32.mrf.mxu0 }
 0x295   : > { %14283 = vst [vmem:[#allocation73_spill] sm:$0xff] %v12209_v3  ;;  %14284 = vst [vmem:[#allocation74_spill] sm:$0xff] %v12212_v40  ;;  %v12215_v31 = vadd.f32 %v1756_v45, %v12058_v47  ;;  %v12218_v26 = vadd.f32 %v1869_v58, %v12060_v21 }
 0x296   : > { %v12220_v5 = vpop.f32.mrf.mxu1  ;;  %v12222_v2 = vpop.f32.mrf.mxu0 }
 0x297   : > { %14285 = vst [vmem:[#allocation75_spill] sm:$0xff] %v12222_v2 }
 0x298   : > { %v1762_v14 = vpop.f32.mrf.mxu1  ;;  %v1875_v56 = vpop.f32.mrf.mxu0 }
 0x299   : > { %v12225_v54 = vadd.f32 %v1762_v14, %v12066_v8  ;;  %v12228_v20 = vadd.f32 %v1875_v56, %v12068_v28 }
 0x29a   : > { %v1764_v43 = vpop.f32.mrf.mxu1  ;;  %v1877_v53 = vpop.f32.mrf.mxu0 }
 0x29b   : > { %v12231_v47 = vadd.f32 %v1764_v43, %v12070_v16  ;;  %v12234_v21 = vadd.f32 %v1877_v53, %v12072_v32 }
 0x29c   : > { %v1766_v45 = vpop.f32.mrf.mxu1  ;;  %v1879_v58 = vpop.f32.mrf.mxu0 }
 0x29d   : > { %14286 = vst [vmem:[#allocation76_spill] sm:$0xff] %v12234_v21  ;;  %v12237_v40 = vadd.f32 %v1766_v45, %v12074_v15  ;;  %v12240_v2 = vadd.f32 %v1879_v58, %v12076_v29 }
 0x29e   : > { %v12242_v8 = vpop.f32.mrf.mxu1  ;;  %v12244_v28 = vpop.f32.mrf.mxu0 }
 0x29f   : > { %14287 = vst [vmem:[#allocation77_spill] sm:$0xff] %v12244_v28 }
 0x2a0   : > { %v1772_v14 = vpop.f32.mrf.mxu1  ;;  %v1885_v56 = vpop.f32.mrf.mxu0 }
 0x2a1   : > { %v12247_v16 = vadd.f32 %v1772_v14, %v12082_v25  ;;  %v12250_v32 = vadd.f32 %v1885_v56, %v12084_v17 }
 0x2a2   : > { %v1774_v43 = vpop.f32.mrf.mxu1  ;;  %v1887_v53 = vpop.f32.mrf.mxu0 }
 0x2a3   : > { %v12253_v15 = vadd.f32 %v1774_v43, %v12086_v27  ;;  %v12256_v29 = vadd.f32 %v1887_v53, %v12088_v38 }
 0x2a4   : > { %v1776_v45 = vpop.f32.mrf.mxu1  ;;  %v1889_v58 = vpop.f32.mrf.mxu0 }
 0x2a5   : > { %14288 = vst [vmem:[#allocation78_spill] sm:$0xff] %v12256_v29  ;;  %v12259_v21 = vadd.f32 %v1776_v45, %v12090_v41  ;;  %v12262_v28 = vadd.f32 %v1889_v58, %v12092_v30 }
 0x2a6   : > { %v12264_v25 = vpop.f32.mrf.mxu1  ;;  %v12266_v17 = vpop.f32.mrf.mxu0 }
 0x2a7   : > { %14289 = vst [vmem:[#allocation79_spill] sm:$0xff] %v12266_v17 }
 0x2a8   : > { %v1782_v14 = vpop.f32.mrf.mxu1  ;;  %v1895_v56 = vpop.f32.mrf.mxu0 }
 0x2a9   : > { %v12269_v27 = vadd.f32 %v1782_v14, %v12098_v7  ;;  %v12272_v38 = vadd.f32 %v1895_v56, %v12100_v19  ;;  %v12291_v14 = vsub.s32 0, %v10869_v1 }
 0x2aa   : > { %v1784_v43 = vpop.f32.mrf.mxu1  ;;  %v1897_v53 = vpop.f32.mrf.mxu0 }
 0x2ab   : > { %v12275_v41 = vadd.f32 %v1784_v43, %v12102_v9  ;;  %v12278_v30 = vadd.f32 %v1897_v53, %v12104_v36  ;;  %14292 = vst [vmem:[#allocation82_spill] sm:$0xff] %v12291_v14  ;;  %v12294_v9 = vsub.s32 2, %v10869_v1  ;;  %v12299_v36 = vld [vmem:[%s13947_s7] sm:$0xf] }
 0x2ac   : > { %v1786_v45 = vpop.f32.mrf.mxu1  ;;  %v1899_v58 = vpop.f32.mrf.mxu0  ;;  %v12305_v53 = vrot.slane %v12299_v36, %v12291_v14 }
 0x2ad   : > { %14290 = vst [vmem:[#allocation80_spill] sm:$0xff] %v12278_v30  ;;  %v12281_v29 = vadd.f32 %v1786_v45, %v12106_v22  ;;  %v12284_v17 = vadd.f32 %v1899_v58, %v12108_v11  ;;  %14293 = vst [vmem:[#allocation83_spill] sm:$0xff] %v12294_v9  ;;  %v12309_v45 = vrot.slane %v12299_v36, %v12294_v9 }
 0x2ae   : > { %v12286_v7 = vpop.f32.mrf.mxu1  ;;  %v12288_v19 = vpop.f32.mrf.mxu0 }
 0x2af   : > { %14291 = vst [vmem:[#allocation81_spill] sm:$0xff] %v12288_v19 }
 0x2b0   : > { %v2011_v22 = vpop.f32.mrf.mxu1  ;;  %v2124_v56 = vpop.f32.mrf.mxu0 }
 0x2b1   : > { %v2203_v11 = vadd.f32 %v2011_v22, %v12115_v48  ;;  %v2205_v43 = vadd.f32 %v2124_v56, %v12118_v44 }
 0x2b2   : > { %v2013_v58 = vpop.f32.mrf.mxu1  ;;  %v2126_v30 = vpop.f32.mrf.mxu0 }
 0x2b3   : > { %v12312_v19 = vadd.f32 %v2013_v58, %v12121_v60  ;;  %v12315_v49 = vadd.f32 %v2126_v30, %v12124_v55  ;;  %v2289_v44 = vadd.f32 %v12305_v53, %v2203_v11  ;;  %v2291_v22 = vadd.f32 %v12309_v45, %v2205_v43 }
 0x2b4   : > { %v2015_v23 = vpop.f32.mrf.mxu1  ;;  %v2128_v48 = vpop.f32.mrf.mxu0 }
 0x2b5   : > { %14294 = vst [vmem:[#allocation84_spill] sm:$0xff] %v12312_v19  ;;  %14295 = vst [vmem:[#allocation85_spill] sm:$0xff] %v12315_v49  ;;  %v2207_v56 = vadd.f32 %v2015_v23, %v12127_v39  ;;  %v2209_v14 = vadd.f32 %v2128_v48, %v12130_v46  ;;  %v2353_v19 = vmax.f32 %v2289_v44, 0.0  ;;  %v2355_v43 = vmax.f32 %v2291_v22, 0.0 }
 0x2b6   : > { %v12321_v9 = vpop.f32.mrf.mxu1  ;;  %v12323_v3 = vpop.f32.mrf.mxu0 }
 0x2b7   : > { %14296 = vst [vmem:[#allocation86_spill] sm:$0xff] %v12321_v9  ;;  %14297 = vst [vmem:[#allocation87_spill] sm:$0xff] %v12323_v3  ;;  %v2293_v60 = vadd.f32 %v12305_v53, %v2207_v56  ;;  %v2295_v58 = vadd.f32 %v12309_v45, %v2209_v14 }
 0x2b8   : > { %v2021_v55 = vpop.f32.mrf.mxu1  ;;  %v2134_v30 = vpop.f32.mrf.mxu0 }
 0x2b9   : > { %v2211_v49 = vadd.f32 %v2021_v55, %v12137_v18  ;;  %v2213_v11 = vadd.f32 %v2134_v30, %v12140_v62  ;;  %v2357_v34 = vmax.f32 %v2293_v60, 0.0  ;;  %v2359_v39 = vmax.f32 %v2295_v58, 0.0 }
 0x2ba   : > { %v2023_v23 = vpop.f32.mrf.mxu1  ;;  %v2136_v46 = vpop.f32.mrf.mxu0 }
 0x2bb   : > { %v12329_v48 = vpack.c.bf16 %v2357_v34, %v2353_v19  ;;  %v12331_v9 = vpack.c.bf16 %v2359_v39, %v2355_v43  ;;  %v12334_v56 = vadd.f32 %v2023_v23, %v12143_v57  ;;  %v12337_v14 = vadd.f32 %v2136_v46, %v12146_v50 }
 0x2bc   : > { %v2025_v3 = vpop.f32.mrf.mxu1  ;;  %v2138_v18 = vpop.f32.mrf.mxu0  ;;  %v2297_v62 = vadd.f32 %v12305_v53, %v2211_v49  ;;  %v2299_v44 = vadd.f32 %v12309_v45, %v2213_v11 }
 0x2bd   : > { %14298 = vst [vmem:[#allocation88_spill] sm:$0xff] %v12331_v9  ;;  %14299 = vst [vmem:[#allocation89_spill] sm:$0xff] %v12337_v14  ;;  %v2215_v22 = vadd.f32 %v2025_v3, %v12149_v10  ;;  %v2217_v60 = vadd.f32 %v2138_v18, %v12152_v59 }
 0x2be   : > { %v12343_v34 = vpop.f32.mrf.mxu1  ;;  %v12345_v19 = vpop.f32.mrf.mxu0  ;;  %v2361_v30 = vmax.f32 %v2297_v62, 0.0  ;;  %v2363_v43 = vmax.f32 %v2299_v44, 0.0 }
 0x2bf   : > { %14300 = vst [vmem:[#allocation90_spill] sm:$0xff] %v12345_v19  ;;  %v2301_v57 = vadd.f32 %v12305_v53, %v2215_v22  ;;  %v2303_v58 = vadd.f32 %v12309_v45, %v2217_v60 }
 0x2c0   : > { %v2031_v50 = vpop.f32.mrf.mxu1  ;;  %v2144_v55 = vpop.f32.mrf.mxu0 }
 0x2c1   : > { %v2365_v39 = vmax.f32 %v2301_v57, 0.0  ;;  %v2367_v49 = vmax.f32 %v2303_v58, 0.0  ;;  %v2219_v11 = vadd.f32 %v2031_v50, %v12159_v4  ;;  %v2221_v10 = vadd.f32 %v2144_v55, %v12162_v35 }
 0x2c2   : > { %v12351_v3 = vpop.f32.mrf.mxu1  ;;  %v2146_v59 = vpop.f32.mrf.mxu0 }
 0x2c3   : > { %v12353_v23 = vpack.c.bf16 %v2365_v39, %v2361_v30  ;;  %v12355_v46 = vpack.c.bf16 %v2367_v49, %v2363_v43  ;;  %v12358_v18 = vadd.f32 %v2146_v59, %v12168_v52  ;;  %v2305_v62 = vadd.f32 %v12305_v53, %v2219_v11 }
 0x2c4   : > { %v2035_v22 = vpop.f32.mrf.mxu1  ;;  %v2148_v60 = vpop.f32.mrf.mxu0  ;;  %v2307_v44 = vadd.f32 %v12309_v45, %v2221_v10 }
 0x2c5   : > { %14301 = vst [vmem:[#allocation91_spill] sm:$0xff] %v12355_v46  ;;  %14302 = vst [vmem:[#allocation92_spill] sm:$0xff] %v12358_v18  ;;  %v2223_v4 = vadd.f32 %v2035_v22, %v12171_v42  ;;  %v2225_v35 = vadd.f32 %v2148_v60, %v12174_v6  ;;  %v2369_v43 = vmax.f32 %v2305_v62, 0.0 }
 0x2c6   : > { %v12364_v57 = vpop.f32.mrf.mxu1  ;;  %v12366_v58 = vpop.f32.mrf.mxu0  ;;  %v2371_v39 = vmax.f32 %v2307_v44, 0.0 }
 0x2c7   : > { %v2309_v50 = vadd.f32 %v12305_v53, %v2223_v4  ;;  %v2311_v55 = vadd.f32 %v12309_v45, %v2225_v35 }
 0x2c8   : > { %v2041_v52 = vpop.f32.mrf.mxu1  ;;  %v2154_v30 = vpop.f32.mrf.mxu0 }
 0x2c9   : > { %v2373_v49 = vmax.f32 %v2309_v50, 0.0  ;;  %v2375_v11 = vmax.f32 %v2311_v55, 0.0  ;;  %v2227_v10 = vadd.f32 %v2041_v52, %v12181_v63  ;;  %v2229_v42 = vadd.f32 %v2154_v30, %v12184_v61 }
 0x2ca   : > { %v12372_v59 = vpop.f32.mrf.mxu1  ;;  %v12374_v6 = vpop.f32.mrf.mxu0 }
 0x2cb   : > { %v12376_v22 = vpack.c.bf16 %v2373_v49, %v2369_v43  ;;  %v12378_v60 = vpack.c.bf16 %v2375_v11, %v2371_v39  ;;  %v2313_v9 = vadd.f32 %v12305_v53, %v2227_v10  ;;  %v2315_v62 = vadd.f32 %v12309_v45, %v2229_v42 }
 0x2cc   : > { %v2045_v4 = vpop.f32.mrf.mxu1  ;;  %v2158_v35 = vpop.f32.mrf.mxu0 }
 0x2cd   : > { %14303 = vst [vmem:[#allocation93_spill] sm:$0xff] %v12378_v60  ;;  %v2231_v44 = vadd.f32 %v2045_v4, %v12193_v37  ;;  %v2233_v63 = vadd.f32 %v2158_v35, %v12196_v51  ;;  %v2377_v39 = vmax.f32 %v2313_v9, 0.0  ;;  %v2379_v49 = vmax.f32 %v2315_v62, 0.0 }
 0x2ce   : > { %v12384_v50 = vpop.f32.mrf.mxu1  ;;  %v12386_v61 = vpop.f32.mrf.mxu0 }
 0x2cf   : > { %v2317_v55 = vadd.f32 %v12305_v53, %v2231_v44  ;;  %v2319_v52 = vadd.f32 %v12309_v45, %v2233_v63 }
 0x2d0   : > { %v2051_v30 = vpop.f32.mrf.mxu1  ;;  %v2164_v43 = vpop.f32.mrf.mxu0 }
 0x2d1   : > { %v2381_v11 = vmax.f32 %v2317_v55, 0.0  ;;  %v2383_v10 = vmax.f32 %v2319_v52, 0.0  ;;  %v2235_v42 = vadd.f32 %v2051_v30, %v12203_v24  ;;  %v2237_v37 = vadd.f32 %v2164_v43, %v12206_v0 }
 0x2d2   : > { %v12392_v4 = vpop.f32.mrf.mxu1  ;;  %v12394_v51 = vpop.f32.mrf.mxu0 }
 0x2d3   : > { %v12396_v35 = vpack.c.bf16 %v2381_v11, %v2377_v39  ;;  %v12398_v46 = vpack.c.bf16 %v2383_v10, %v2379_v49  ;;  %v2321_v60 = vadd.f32 %v12305_v53, %v2235_v42  ;;  %v2323_v9 = vadd.f32 %v12309_v45, %v2237_v37 }
 0x2d4   : > { %v2055_v44 = vpop.f32.mrf.mxu1  ;;  %v2168_v63 = vpop.f32.mrf.mxu0 }
 0x2d5   : > { %14304 = vst [vmem:[#allocation94_spill] sm:$0xff] %v12398_v46  ;;  %v2239_v62 = vadd.f32 %v2055_v44, %v12215_v31  ;;  %v2241_v24 = vadd.f32 %v2168_v63, %v12218_v26  ;;  %v2385_v49 = vmax.f32 %v2321_v60, 0.0  ;;  %v2387_v11 = vmax.f32 %v2323_v9, 0.0 }
 0x2d6   : > { %v12404_v55 = vpop.f32.mrf.mxu1  ;;  %v12406_v0 = vpop.f32.mrf.mxu0 }
 0x2d7   : > { %v2325_v52 = vadd.f32 %v12305_v53, %v2239_v62  ;;  %v2327_v30 = vadd.f32 %v12309_v45, %v2241_v24 }
 0x2d8   : > { %v2061_v43 = vpop.f32.mrf.mxu1  ;;  %v2174_v39 = vpop.f32.mrf.mxu0 }
 0x2d9   : > { %v2389_v10 = vmax.f32 %v2325_v52, 0.0  ;;  %v2391_v42 = vmax.f32 %v2327_v30, 0.0  ;;  %v2243_v37 = vadd.f32 %v2061_v43, %v12225_v54  ;;  %v2245_v31 = vadd.f32 %v2174_v39, %v12228_v20 }
 0x2da   : > { %v12412_v44 = vpop.f32.mrf.mxu1  ;;  %v12414_v26 = vpop.f32.mrf.mxu0 }
 0x2db   : > { %v12416_v63 = vpack.c.bf16 %v2389_v10, %v2385_v49  ;;  %v12418_v46 = vpack.c.bf16 %v2391_v42, %v2387_v11  ;;  %v2329_v14 = vadd.f32 %v12305_v53, %v2243_v37  ;;  %v2331_v60 = vadd.f32 %v12309_v45, %v2245_v31 }
 0x2dc   : > { %v2065_v62 = vpop.f32.mrf.mxu1  ;;  %v2178_v24 = vpop.f32.mrf.mxu0 }
 0x2dd   : > { %14305 = vst [vmem:[#allocation95_spill] sm:$0xff] %v12418_v46  ;;  %v2247_v9 = vadd.f32 %v2065_v62, %v12237_v40  ;;  %v2249_v54 = vadd.f32 %v2178_v24, %v12240_v2  ;;  %v2393_v11 = vmax.f32 %v2329_v14, 0.0  ;;  %v2395_v10 = vmax.f32 %v2331_v60, 0.0 }
 0x2de   : > { %v2067_v52 = vpop.f32.mrf.mxu1  ;;  %v12424_v20 = vpop.f32.mrf.mxu0 }
 0x2df   : > { %v2333_v30 = vadd.f32 %v12305_v53, %v2247_v9  ;;  %v2335_v43 = vadd.f32 %v12309_v45, %v2249_v54 }
 0x2e0   : > { %v2071_v39 = vpop.f32.mrf.mxu1  ;;  %v2184_v49 = vpop.f32.mrf.mxu0 }
 0x2e1   : > { %v2397_v42 = vmax.f32 %v2333_v30, 0.0  ;;  %v2399_v46 = vmax.f32 %v2335_v43, 0.0  ;;  %v2251_v37 = vadd.f32 %v2071_v39, %v12247_v16  ;;  %v2253_v31 = vadd.f32 %v2184_v49, %v12250_v32 }
 0x2e2   : > { %v2073_v40 = vpop.f32.mrf.mxu1  ;;  %v12430_v62 = vpop.f32.mrf.mxu0  ;;  %v12443_v32 = vsub.s32 1, %v10869_v1  ;;  %v1779_v49 = vadd.f32 %v12264_v25, %v12094_v12  ;;  %v1769_v25 = vadd.f32 %v12242_v8, %v12078_v33 }
 0x2e3   : > { %v12432_v2 = vpack.c.bf16 %v2397_v42, %v2393_v11  ;;  %v12434_v24 = vpack.c.bf16 %v2399_v46, %v2395_v10  ;;  %v2337_v54 = vadd.f32 %v12305_v53, %v2251_v37  ;;  %v2339_v14 = vadd.f32 %v12309_v45, %v2253_v31 }
 0x2e4   : > { %v2075_v9 = vpop.f32.mrf.mxu1  ;;  %v2188_v18 = vpop.f32.mrf.mxu0 }
 0x2e5   : > { %14306 = vst [vmem:[#allocation96_spill] sm:$0xff] %v12434_v24  ;;  %v2255_v60 = vadd.f32 %v2075_v9, %v12259_v21  ;;  %v2257_v30 = vadd.f32 %v2188_v18, %v12262_v28  ;;  %v2401_v42 = vmax.f32 %v2337_v54, 0.0  ;;  %v2403_v37 = vmax.f32 %v2339_v14, 0.0 }
 0x2e6   : > { %v2077_v16 = vpop.f32.mrf.mxu1  ;;  %v12440_v43 = vpop.f32.mrf.mxu0  ;;  %v2252_v54 = vadd.f32 %v2073_v40, %v12253_v15 }
 0x2e7   : > { %v2341_v39 = vadd.f32 %v12305_v53, %v2255_v60  ;;  %v2343_v46 = vadd.f32 %v12309_v45, %v2257_v30  ;;  %v2256_v28 = vadd.f32 %v2077_v16, %v1779_v49  ;;  %v12455_v60 = vrot.slane %v12299_v36, %v12443_v32 }
 0x2e8   : > { %v2081_v11 = vpop.f32.mrf.mxu1  ;;  %v2194_v10 = vpop.f32.mrf.mxu0 }
 0x2e9   : > { %v2405_v21 = vmax.f32 %v2341_v39, 0.0  ;;  %v2407_v31 = vmax.f32 %v2343_v46, 0.0  ;;  %v2259_v18 = vadd.f32 %v2081_v11, %v12269_v27  ;;  %v2261_v9 = vadd.f32 %v2194_v10, %v12272_v38 }
 0x2ea   : > { %v2083_v24 = vpop.f32.mrf.mxu1  ;;  %v12451_v19 = vpop.f32.mrf.mxu0  ;;  %v1789_v39 = vadd.f32 %v12286_v7, %v12110_v13  ;;  %v2248_v10 = vadd.f32 %v2067_v52, %v1769_v25  ;;  %v2342_v33 = vadd.f32 %v12455_v60, %v2256_v28  ;;  %v2244_v7 = vadd.f32 %v12412_v44, %v12231_v47  ;;  %v14308_v47 = vld [vmem:[#allocation55_spill] sm:$0xff] }
 0x2eb   : > { %v12457_v30 = vpack.c.bf16 %v2405_v21, %v2401_v42  ;;  %v12459_v12 = vpack.c.bf16 %v2407_v31, %v2403_v37  ;;  %v2345_v27 = vadd.f32 %v12305_v53, %v2259_v18  ;;  %v2260_v38 = vadd.f32 %v2083_v24, %v12275_v41  ;;  %v14307_v42 = vld [vmem:[#allocation57_spill] sm:$0xff]  ;;  %v14309_v44 = vld [vmem:[#allocation71_spill] sm:$0xff] }
 0x2ec   : > { %v2085_v14 = vpop.f32.mrf.mxu1  ;;  %v2198_v16 = vpop.f32.mrf.mxu0  ;;  %v2347_v46 = vadd.f32 %v12309_v45, %v2261_v9  ;;  %v1759_v13 = vadd.f32 %v12220_v5, %v14307_v42 }
 0x2ed   : > { %v2263_v49 = vadd.f32 %v2085_v14, %v12281_v29  ;;  %v2265_v11 = vadd.f32 %v2198_v16, %v12284_v17  ;;  %v2346_v15 = vadd.f32 %v12455_v60, %v2260_v38  ;;  %v2338_v29 = vadd.f32 %v12455_v60, %v2252_v54 }
 0x2ee   : > { %v2087_v8 = vpop.f32.mrf.mxu1  ;;  %v2409_v17 = vmax.f32 %v2345_v27, 0.0  ;;  %v2411_v52 = vmax.f32 %v2347_v46, 0.0  ;;  %v2240_v28 = vadd.f32 %v12404_v55, %v1759_v13  ;;  %v1749_v54 = vadd.f32 %v14309_v44, %v14308_v47  ;;  %v14310_v27 = vld [vmem:[#allocation73_spill] sm:$0xff] }
 0x2ef   : > { %v2349_v40 = vadd.f32 %v12305_v53, %v2263_v49  ;;  %v2351_v41 = vadd.f32 %v12309_v45, %v2265_v11  ;;  %v2264_v24 = vadd.f32 %v2087_v8, %v1789_v39  ;;  %v2334_v53 = vadd.f32 %v12455_v60, %v2248_v10  ;;  %v14312_v10 = vld [vmem:[#allocation67_spill] sm:$0xff]  ;;  %v14313_v8 = vld [vmem:[#allocation69_spill] sm:$0xff] }
 0x2f0   : > { %v2406_v45 = vmax.f32 %v2342_v33, 0.0  ;;  %v2410_v18 = vmax.f32 %v2346_v15, 0.0  ;;  %v2236_v38 = vadd.f32 %v12392_v4, %v14310_v27  ;;  %v2330_v14 = vadd.f32 %v12455_v60, %v2244_v7  ;;  %v14311_v4 = vld [vmem:[#allocation53_spill] sm:$0xff]  ;;  %v14314_v7 = vld [vmem:[#allocation51_spill] sm:$0xff] }
 0x2f1   : > { %v2413_v37 = vmax.f32 %v2349_v40, 0.0  ;;  %v2415_v21 = vmax.f32 %v2351_v41, 0.0  ;;  %v2350_v31 = vadd.f32 %v12455_v60, %v2264_v24  ;;  %v2402_v16 = vmax.f32 %v2338_v29, 0.0 }
 0x2f2   : > { %v2232_v55 = vadd.f32 %v12384_v50, %v1749_v54  ;;  %v2326_v46 = vadd.f32 %v12455_v60, %v2240_v28  ;;  %v2398_v49 = vmax.f32 %v2334_v53, 0.0  ;;  %v1739_v33 = vadd.f32 %v14312_v10, %v14311_v4 }
 0x2f3   : > { %v12483_v9 = vpack.c.bf16 %v2413_v37, %v2409_v17  ;;  %v12485_v5 = vpack.c.bf16 %v2415_v21, %v2411_v52  ;;  %v2414_v25 = vmax.f32 %v2350_v31, 0.0  ;;  %v12498_v11 = vpack.c.bf16 %v2406_v45, %v2402_v16  ;;  %v14316_v17 = vld [vmem:[#allocation66_spill] sm:$0xff]  ;;  %v14317_v45 = vld [vmem:[#allocation49_spill] sm:$0xff]  ;;  %v2200_v16 = vpop.f32.mrf.mxu0 }
 0x2f4   : > { %v2228_v15 = vadd.f32 %v12372_v59, %v14313_v8  ;;  %v2322_v50 = vadd.f32 %v12455_v60, %v2236_v38  ;;  %v2394_v40 = vmax.f32 %v2330_v14, 0.0  ;;  %v2224_v41 = vadd.f32 %v12364_v57, %v1739_v33  ;;  %v14315_v59 = vld [vmem:[#allocation64_spill] sm:$0xff] }
 0x2f5   : > { %v12492_v39 = vpack.c.bf16 %v2414_v25, %v2410_v18  ;;  %v2318_v24 = vadd.f32 %v12455_v60, %v2232_v55  ;;  %v2390_v42 = vmax.f32 %v2326_v46, 0.0  ;;  %v1729_v29 = vadd.f32 %v14315_v59, %v14314_v7  ;;  %v14320_v55 = vld [vmem:[#allocation61_spill] sm:$0xff]  ;;  %v14325_v59 = vld [vmem:[#allocation80_spill] sm:$0xff] }
 0x2f6   : > { %v12511_v13 = vpack.c.bf16 %v2398_v49, %v2394_v40  ;;  %v2220_v52 = vadd.f32 %v12351_v3, %v14316_v17  ;;  %v2314_v37 = vadd.f32 %v12455_v60, %v2228_v15  ;;  %v2386_v21 = vmax.f32 %v2322_v50, 0.0  ;;  %v14318_v3 = vld [vmem:[#allocation62_spill] sm:$0xff]  ;;  %v14321_v46 = vld [vmem:[#allocation81_spill] sm:$0xff]  ;;  %v14322_v40 = vld [vmem:[#allocation60_spill] sm:$0xff] }
 0x2f7   : > { %2449 = vmatprep.subr.bf16.mxu1 %v12492_v39  ;;  %2611 = vmatprep.subr.bf16.mxu0 %v12492_v39  ;;  %v2216_v57 = vadd.f32 %v12343_v34, %v1729_v29  ;;  %v2310_v31 = vadd.f32 %v12455_v60, %v2224_v41  ;;  %v2382_v28 = vmax.f32 %v2318_v24, 0.0  ;;  %v1719_v18 = vadd.f32 %v14318_v3, %v14317_v45  ;;  %v14319_v34 = vld [vmem:[#allocation86_spill] sm:$0xff]  ;;  %v14324_v24 = vld [vmem:[#allocation84_spill] sm:$0xff] }
 0x2f8   : > { %2450 = vmatpush1.bf16.msra.mxu1 %v12483_v9  ;;  %2612 = vmatpush1.bf16.msra.mxu0 %v12483_v9  ;;  %v12524_v53 = vpack.c.bf16 %v2390_v42, %v2386_v21  ;;  %v2306_v25 = vadd.f32 %v12455_v60, %v2220_v52  ;;  %v2378_v47 = vmax.f32 %v2314_v37, 0.0  ;;  %v2283_v14 = vsub.s32 3, %v10869_v1  ;;  %v14327_v21 = vld [vmem:[#allocation77_spill] sm:$0xff] }
 0x2f9   : > { %2451 = vmatprep.subr.bf16.mxu1 %v12498_v11  ;;  %2613 = vmatprep.subr.bf16.mxu0 %v12498_v11  ;;  %v2208_v44 = vadd.f32 %v14319_v34, %v1719_v18  ;;  %v2302_v54 = vadd.f32 %v12455_v60, %v2216_v57  ;;  %v2374_v27 = vmax.f32 %v2310_v31, 0.0  ;;  %v1902_v49 = vadd.f32 %v14321_v46, %v14320_v55  ;;  %v14330_v34 = vld [vmem:[#allocation75_spill] sm:$0xff] }
 0x2fa   : > { %v12535_v38 = vpack.c.bf16 %v2382_v28, %v2378_v47  ;;  %v2298_v4 = vadd.f32 %v12455_v60, %v12334_v56  ;;  %v2370_v10 = vmax.f32 %v2306_v25, 0.0  ;;  %v12550_v50 = vrot.slane %v12299_v36, %v2283_v14  ;;  %v14323_v56 = vld [vmem:[#allocation79_spill] sm:$0xff]  ;;  %v14329_v47 = vld [vmem:[#allocation58_spill] sm:$0xff] }
 0x2fb   : > { %v2294_v33 = vadd.f32 %v12455_v60, %v2208_v44  ;;  %v2366_v8 = vmax.f32 %v2302_v54, 0.0  ;;  %v2266_v1 = vadd.f32 %v2200_v16, %v1902_v49  ;;  %v1892_v41 = vadd.f32 %v14323_v56, %v14322_v40  ;;  %v14331_v44 = vld [vmem:[#allocation76_spill] sm:$0xff] }
 0x2fc   : > { %2452 = vmatpush1.bf16.msra.mxu1 %v12457_v30  ;;  %2614 = vmatpush1.bf16.msra.mxu0 %v12457_v30  ;;  %v12547_v15 = vpack.c.bf16 %v2374_v27, %v2370_v10  ;;  %v2290_v42 = vadd.f32 %v12455_v60, %v14324_v24  ;;  %v2362_v7 = vmax.f32 %v2298_v4, 0.0  ;;  %v2262_v29 = vadd.f32 %v12451_v19, %v14325_v59  ;;  %v14326_v60 = vld [vmem:[#allocation59_spill] sm:$0xff]  ;;  %v14328_v19 = vld [vmem:[#allocation78_spill] sm:$0xff]  ;;  %v14332_v49 = vld [vmem:[#allocation56_spill] sm:$0xff] }
 0x2fd   : > { %2453 = vmatprep.subr.bf16.mxu1 %v12511_v13  ;;  %2615 = vmatprep.subr.bf16.mxu0 %v12511_v13  ;;  %v2358_v36 = vmax.f32 %v2294_v33, 0.0  ;;  %v2258_v17 = vadd.f32 %v12440_v43, %v1892_v41  ;;  %v2352_v52 = vadd.f32 %v12550_v50, %v2266_v1  ;;  %v1882_v57 = vadd.f32 %v14327_v21, %v14326_v60  ;;  %v14334_v10 = vld [vmem:[#allocation74_spill] sm:$0xff] }
 0x2fe   : > { %v12564_v37 = vpack.c.bf16 %v2366_v8, %v2362_v7  ;;  %v2354_v31 = vmax.f32 %v2290_v42, 0.0  ;;  %v2254_v28 = vadd.f32 %v12430_v62, %v14328_v19  ;;  %v2348_v45 = vadd.f32 %v12550_v50, %v2262_v29  ;;  %v14336_v24 = vld [vmem:[#allocation34_spill] sm:$0xff]  ;;  %v14338_v42 = vld [vmem:[#allocation33_spill] sm:$0xff]  ;;  %v14341_v7 = vld [vmem:[#allocation68_spill] sm:$0xff] }
 0x2ff   : > { %v2250_v43 = vadd.f32 %v12424_v20, %v1882_v57  ;;  %v2344_v3 = vadd.f32 %v12550_v50, %v2258_v17  ;;  %v2416_v18 = vmax.f32 %v2352_v52, 0.0  ;;  %v1872_v62 = vadd.f32 %v14330_v34, %v14329_v47  ;;  %v14342_v59 = vld [vmem:[#allocation70_spill] sm:$0xff]  ;;  %v14351_v34 = vld [vmem:[#allocation96_spill] sm:$0xff] }
 0x300   : > { %2454 = vmatpush1.bf16.msra.mxu1 %v12432_v2  ;;  %2616 = vmatpush1.bf16.msra.mxu0 %v12432_v2  ;;  %v12577_v25 = vpack.c.bf16 %v2358_v36, %v2354_v31  ;;  %v2246_v54 = vadd.f32 %v12414_v26, %v14331_v44  ;;  %v2340_v27 = vadd.f32 %v12550_v50, %v2254_v28  ;;  %v2412_v14 = vmax.f32 %v2348_v45, 0.0  ;;  %v14333_v26 = vld [vmem:[#allocation72_spill] sm:$0xff]  ;;  %v14345_v31 = vld [vmem:[#allocation65_spill] sm:$0xff] }
 0x301   : > { %2455 = vmatprep.subr.bf16.mxu1 %v12524_v53  ;;  %2617 = vmatprep.subr.bf16.mxu0 %v12524_v53  ;;  %v2242_v20 = vadd.f32 %v12406_v0, %v1872_v62  ;;  %v2336_v16 = vadd.f32 %v12550_v50, %v2250_v43  ;;  %v2408_v55 = vmax.f32 %v2344_v3, 0.0  ;;  %v1862_v4 = vadd.f32 %v14333_v26, %v14332_v49  ;;  %v14353_v62 = vld [vmem:[#allocation63_spill] sm:$0xff] }
 0x302   : > { %v12590_v46 = vpack.c.bf16 %v2416_v18, %v2412_v14  ;;  %v2238_v33 = vadd.f32 %v12394_v51, %v14334_v10  ;;  %v2332_v8 = vadd.f32 %v12550_v50, %v2246_v54  ;;  %v2404_v1 = vmax.f32 %v2340_v27, 0.0  ;;  %v14347_v18 = vld [vmem:[#allocation40_spill] sm:$0xff]  ;;  %v14356_v26 = vld [vmem:[#allocation95_spill] sm:$0xff] }
 0x303   : > { %v2234_v0 = vadd.f32 %v12386_v61, %v1862_v4  ;;  %v2328_v40 = vadd.f32 %v12550_v50, %v2242_v20  ;;  %v2400_v56 = vmax.f32 %v2336_v16, 0.0  ;;  %v14335_v41 = vmov 1.0|1.0   ;;  %v14354_v54 = vld [vmem:[#allocation92_spill] sm:$0xff]  ;;  %v14355_v20 = vld [vmem:[#allocation87_spill] sm:$0xff]  ;;  %v14357_v4 = vld [vmem:[#allocation89_spill] sm:$0xff] }
 0x304   : > { %2456 = vmatpush1.bf16.msra.mxu1 %v12416_v63  ;;  %2618 = vmatpush1.bf16.msra.mxu0 %v12416_v63  ;;  %vm14337_vm15 = vnez %v14336_v24  ;;  %vm14339_vm8 = vnez %v14338_v42  ;;  %v12609_v51 = vpack.c.bf16 %v2408_v55, %v2404_v1  ;;  %v2230_v29 = vadd.f32 %v12374_v6, %v14342_v59  ;;  %v14344_v6 = vld [vmem:[#allocation52_spill] sm:$0xff]  ;;  %v14358_v1 = vld [vmem:[#allocation42_spill] sm:$0xff]  ;;  %v14364_v59 = vld [vmem:[#allocation93_spill] sm:$0xff] }
 0x305   : > { %2457 = vmatprep.subr.bf16.mxu1 %v12535_v38  ;;  %2619 = vmatprep.subr.bf16.mxu0 %v12535_v38  ;;  %v2324_v36 = vadd.f32 %v12550_v50, %v2238_v33  ;;  %v2396_v17 = vmax.f32 %v2332_v8, 0.0  ;;  %v14343_v52 = vmov 0   ;;  %v2392_v21 = vmax.f32 %v2328_v40, 0.0  ;;  %v14362_v40 = vld [vmem:[#allocation94_spill] sm:$0xff] }
 0x306   : > { %v1842_v19 = vadd.f32 %v14345_v31, %v14344_v6  ;;  %vm14348_vm9 = vnez %v14347_v18  ;;  %v2308_v27 = vadd.f32 %v12550_v50, %v14354_v54  ;;  %v2300_v10 = vadd.f32 %v12550_v50, %v14357_v4  ;;  %v9823_v24 = vld [vmem:[#allocation5 + $0x250] ss:$8 sps:$4 sm:$0xff]   ;;  %v9826_v6 = vld [vmem:[#allocation5 + $0x240] ss:$8 sps:$4 sm:$0xff]   ;;  %v9831_v31 = vld [vmem:[#allocation5 + $0x234] ss:$8 sps:$4 sm:$0xff]  }
 0x307   : > { %v12624_v57 = vpack.c.bf16 %v2400_v56, %v2396_v17  ;;  %v2388_v28 = vmax.f32 %v2324_v36, 0.0  ;;  %vm14359_vm4 = vnez %v14358_v1  ;;  %v14363_v56 = vld [vmem:[#allocation85_spill] sm:$0xff]  ;;  %v14369_v36 = vld [vmem:[#allocation91_spill] sm:$0xff] }
 0x308   : > { %2458 = vmatpush1.bf16.msra.mxu1 %v12396_v35  ;;  %2620 = vmatpush1.bf16.msra.mxu0 %v12396_v35  ;;  %v2372_v33 = vmax.f32 %v2308_v27, 0.0  ;;  %v9817_v17 = vld [vmem:[#allocation5 + $0x270] ss:$8 sps:$4 sm:$0xff]   ;;  %v9846_v54 = vld [vmem:[#allocation5 + $0x2e4] ss:$8 sps:$4 sm:$0xff]  }
 0x309   : > { %2459 = vmatprep.subr.bf16.mxu1 %v12547_v15  ;;  %2621 = vmatprep.subr.bf16.mxu0 %v12547_v15  ;;  %v12641_v47 = vpack.c.bf16 %v2392_v21, %v2388_v28  ;;  %v9844_v27 = vld [vmem:[#allocation5 + $0x2e0] ss:$8 sps:$4 sm:$0xff]   ;;  %v9853_v42 = vld [vmem:[#allocation5 + $0x2b0] ss:$8 sps:$4 sm:$0xff]   ;;  %v9891_v1 = vld [vmem:[#allocation5 + $0x334] ss:$8 sps:$4 sm:$0xff]  }
 0x30a   : > { %v9871_v4 = vld [vmem:[#allocation5 + $0x360] ss:$8 sps:$4 sm:$0xff]  }
 0x30c   : > { %2460 = vmatpush1.bf16.msra.mxu1 %v12376_v22  ;;  %2622 = vmatpush1.bf16.msra.mxu0 %v12376_v22 }
 0x30d   : > { %2461 = vmatprep.subr.bf16.mxu1 %v12564_v37  ;;  %2623 = vmatprep.subr.bf16.mxu0 %v12564_v37 }
 0x310   : > { %2462 = vmatpush1.bf16.msra.mxu1 %v12353_v23  ;;  %2624 = vmatpush1.bf16.msra.mxu0 %v12353_v23 }
 0x311   : > { %2463 = vmatprep.subr.bf16.mxu1 %v12577_v25  ;;  %2625 = vmatprep.subr.bf16.mxu0 %v12577_v25 }
 0x314   : > { %2464 = vmatpush1.bf16.msra.mxu1 %v12329_v48  ;;  %2626 = vmatpush1.bf16.msra.mxu0 %v12329_v48 }
 0x315   : > { %2522 = vmatprep.subr.bf16.mxu1 %v12590_v46  ;;  %2773 = vmatprep.subr.bf16.mxu0 %v12492_v39  ;;  %v14340_v39 = vld [vmem:[#allocation54_spill] sm:$0xff] }
 0x316   : > { %v1852_v61 = vadd.f32 %v14341_v7, %v14340_v39  ;;  %v2364_v39 = vmax.f32 %v2300_v10, 0.0  ;;  %v9879_v10 = vld [vmem:[#allocation5 + $0x354] ss:$8 sps:$4 sm:$0xff]  }
 0x317   : > { %8420 = vmatmul.mubr.msk.bf16.vlgmr.msra.gmra.mxu1 %vm14337_vm15, %v14335_v41  ;;  %8436 = vmatmul.mubr.msk.bf16.vlgmr.msra.gmra.mxu0 %vm14339_vm8, %v14335_v41 }
 0x318   : > { %2523 = vmatpush1.bf16.msra.mxu1 %v12485_v5  ;;  %2774 = vmatpush1.bf16.msra.mxu0 %v12483_v9  ;;  %v2226_v60 = vadd.f32 %v12366_v58, %v1852_v61  ;;  %v2320_v9 = vadd.f32 %v12550_v50, %v2234_v0  ;;  %v14346_v58 = vld [vmem:[#allocation90_spill] sm:$0xff]  ;;  %v14360_v0 = vld [vmem:[#allocation41_spill] sm:$0xff] }
 0x319   : > { %2524 = vmatprep.subr.bf16.mxu1 %v12609_v51  ;;  %2775 = vmatprep.subr.bf16.mxu0 %v12498_v11  ;;  %v2316_v11 = vadd.f32 %v12550_v50, %v2230_v29  ;;  %v2218_v45 = vadd.f32 %v14346_v58, %v1842_v19  ;;  %vm14361_vm12 = vnez %v14360_v0  ;;  %v9829_v19 = vld [vmem:[#allocation5 + $0x230] ss:$8 sps:$4 sm:$0xff]   ;;  %v9832_v58 = vld [vmem:[#allocation5 + $0x220] ss:$8 sps:$4 sm:$0xff]  }
 0x31a   : > { %2491 = vmatprep.mubr.bf16.mxu1 %v14343_v52  ;;  %2653 = vmatprep.mubr.bf16.mxu0 %v14343_v52  ;;  %v2312_v43 = vadd.f32 %v12550_v50, %v2226_v60  ;;  %v2384_v3 = vmax.f32 %v2320_v9, 0.0  ;;  %v9822_v60 = vld [vmem:[#allocation5 + $0x264] ss:$8 sps:$4 sm:$0xff]   ;;  %v9889_v0 = vld [vmem:[#allocation5 + $0x330] ss:$8 sps:$4 sm:$0xff]  }
 0x31b   : > { %v2380_v14 = vmax.f32 %v2316_v11, 0.0  ;;  %v2304_v55 = vadd.f32 %v12550_v50, %v2218_v45  ;;  %v9828_v9 = vld [vmem:[#allocation5 + $0x244] ss:$8 sps:$4 sm:$0xff]   ;;  %v9837_v45 = vld [vmem:[#allocation5 + $0x214] ss:$8 sps:$4 sm:$0xff]  }
 0x31c   : > { %2525 = vmatpush1.bf16.msra.mxu1 %v12459_v12  ;;  %2776 = vmatpush1.bf16.msra.mxu0 %v12457_v30  ;;  %v14349_v30 = vld [vmem:[#allocation38_spill] sm:$0xff] }
 0x31d   : > { %2526 = vmatprep.subr.bf16.mxu1 %v12624_v57  ;;  %2777 = vmatprep.subr.bf16.mxu0 %v12511_v13  ;;  %vm14350_vm0 = vnez %v14349_v30  ;;  %v14352_v13 = vld [vmem:[#allocation50_spill] sm:$0xff]  ;;  %v12655_v49 = vpack.c.bf16 %v2384_v3, %v2380_v14  ;;  %v2368_v8 = vmax.f32 %v2304_v55, 0.0  ;;  %v9849_v14 = vld [vmem:[#allocation5 + $0x2d4] ss:$8 sps:$4 sm:$0xff]  }
 0x31e   : > { %v1832_v44 = vadd.f32 %v14353_v62, %v14352_v13  ;;  %v9834_v11 = vld [vmem:[#allocation5 + $0x224] ss:$8 sps:$4 sm:$0xff]   ;;  %v9838_v13 = vld [vmem:[#allocation5 + $0x200] ss:$8 sps:$4 sm:$0xff]   ;;  %v9843_v62 = vld [vmem:[#allocation5 + $0x2f4] ss:$8 sps:$4 sm:$0xff]  }
 0x31f   : > { %8422 = vmatmul.mubr.msk.bf16.gmra.mxu1 %vm14348_vm9, %v14335_v41  ;;  %8438 = vmatmul.mubr.msk.bf16.gmra.mxu0 %vm14350_vm0, %v14335_v41  ;;  %v12680_v61 = vpack.c.bf16 %v2368_v8, %v2364_v39  ;;  %v9840_v3 = vld [vmem:[#allocation5 + $0x204] ss:$8 sps:$4 sm:$0xff]   ;;  %v9861_v30 = vld [vmem:[#allocation5 + $0x294] ss:$8 sps:$4 sm:$0xff]   ;;  %v9883_v8 = vld [vmem:[#allocation5 + $0x340] ss:$8 sps:$4 sm:$0xff]  }
 0x320   : > { %2527 = vmatpush1.bf16.msra.mxu1 %v14351_v34  ;;  %2778 = vmatpush1.bf16.msra.mxu0 %v12432_v2  ;;  %v2210_v16 = vadd.f32 %v14355_v20, %v1832_v44  ;;  %v2376_v2 = vmax.f32 %v2312_v43, 0.0  ;;  %v9835_v43 = vld [vmem:[#allocation5 + $0x210] ss:$8 sps:$4 sm:$0xff]   ;;  %v9852_v20 = vld [vmem:[#allocation5 + $0x2c4] ss:$8 sps:$4 sm:$0xff]  }
 0x321   : > { %2528 = vmatprep.subr.bf16.mxu1 %v12641_v47  ;;  %2779 = vmatprep.subr.bf16.mxu0 %v12524_v53  ;;  %v9841_v44 = vld [vmem:[#allocation5 + $0x2f0] ss:$8 sps:$4 sm:$0xff]   ;;  %v9867_v55 = vld [vmem:[#allocation5 + $0x374] ss:$8 sps:$4 sm:$0xff]   ;;  %v9909_v39 = vld [vmem:[#allocation5 + $0x304] ss:$8 sps:$4 sm:$0xff]  }
 0x322   : > { %2501 = vmatprep.mubr.bf16.mxu1 %v14343_v52  ;;  %2663 = vmatprep.mubr.bf16.mxu0 %v14343_v52  ;;  %v2296_v53 = vadd.f32 %v12550_v50, %v2210_v16  ;;  %v9862_v16 = vld [vmem:[#allocation5 + $0x280] ss:$8 sps:$4 sm:$0xff]  }
 0x324   : > { %2529 = vmatpush1.bf16.msra.mxu1 %v14356_v26  ;;  %2780 = vmatpush1.bf16.msra.mxu0 %v12416_v63  ;;  %v12670_v63 = vpack.c.bf16 %v2376_v2, %v2372_v33  ;;  %v2360_v7 = vmax.f32 %v2296_v53, 0.0  ;;  %v9870_v2 = vld [vmem:[#allocation5 + $0x74] ss:$8 sps:$4 sm:$0xff]   ;;  %v9877_v33 = vld [vmem:[#allocation5 + $0x350] ss:$8 sps:$4 sm:$0xff]  }
 0x325   : > { %2530 = vmatprep.subr.bf16.mxu1 %v12655_v49  ;;  %2781 = vmatprep.subr.bf16.mxu0 %v12535_v38  ;;  %v2292_v38 = vadd.f32 %v12550_v50, %v14363_v56  ;;  %v14365_v50 = vld [vmem:[#allocation48_spill] sm:$0xff]  ;;  %v9885_v53 = vld [vmem:[#allocation5 + $0x344] ss:$8 sps:$4 sm:$0xff]  }
 0x326   : > { %vm14366_vm11 = vnez %v14365_v50  ;;  %v9903_v56 = vld [vmem:[#allocation5 + $0x314] ss:$8 sps:$4 sm:$0xff]   ;;  %v9919_v50 = vld [vmem:[#allocation5 + $0x3e0] ss:$8 sps:$4 sm:$0xff]  }
 0x327   : > { %8424 = vmatmul.mubr.msk.bf16.gmra.mxu1 %vm14359_vm4, %v14335_v41  ;;  %8440 = vmatmul.mubr.msk.bf16.gmra.mxu0 %vm14361_vm12, %v14335_v41 }
 0x328   : > { %2531 = vmatpush1.bf16.msra.mxu1 %v14362_v40  ;;  %2782 = vmatpush1.bf16.msra.mxu0 %v12396_v35  ;;  %v2356_v35 = vmax.f32 %v2292_v38, 0.0  ;;  %v9901_v38 = vld [vmem:[#allocation5 + $0x310] ss:$8 sps:$4 sm:$0xff]  }
 0x329   : > { %2532 = vmatprep.subr.bf16.mxu1 %v12670_v63  ;;  %2783 = vmatprep.subr.bf16.mxu0 %v12547_v15  ;;  %v14367_v15 = vld [vmem:[#allocation46_spill] sm:$0xff] }
 0x32a   : > { %2511 = vmatprep.mubr.bf16.mxu1 %v14343_v52  ;;  %2673 = vmatprep.mubr.bf16.mxu0 %v14343_v52  ;;  %vm14368_vm1 = vnez %v14367_v15  ;;  %v12692_v29 = vpack.c.bf16 %v2360_v7, %v2356_v35  ;;  %v9907_v7 = vld [vmem:[#allocation5 + $0x300] ss:$8 sps:$4 sm:$0xff]   ;;  %v9921_v35 = vld [vmem:[#allocation5 + $0x3e4] ss:$8 sps:$4 sm:$0xff]   ;;  %v9927_v15 = vld [vmem:[#allocation5 + $0x3d4] ss:$8 sps:$4 sm:$0xff]  }
 0x32c   : > { %2533 = vmatpush1.bf16.msra.mxu1 %v14364_v59  ;;  %2784 = vmatpush1.bf16.msra.mxu0 %v12376_v22  ;;  %v9819_v22 = vld [vmem:[#allocation5 + $0x274] ss:$8 sps:$4 sm:$0xff]  }
 0x32d   : > { %2534 = vmatprep.subr.bf16.mxu1 %v12680_v61  ;;  %2785 = vmatprep.subr.bf16.mxu0 %v12564_v37  ;;  %v14370_v37 = vld [vmem:[#allocation88_spill] sm:$0xff] }
 0x32f   : > { %8426 = vmatmul.mubr.msk.bf16.gmra.mxu1 %vm14366_vm11, %v14335_v41  ;;  %8442 = vmatmul.mubr.msk.bf16.gmra.mxu0 %vm14368_vm1, %v14335_v41 }
 0x330   : > { %2535 = vmatpush1.bf16.msra.mxu1 %v14369_v36  ;;  %2786 = vmatpush1.bf16.msra.mxu0 %v12353_v23  ;;  %v9951_v23 = vld [vmem:[#allocation5 + $0x394] ss:$8 sps:$4 sm:$0xff]  }
 0x331   : > { %2536 = vmatprep.subr.bf16.mxu1 %v12692_v29  ;;  %2787 = vmatprep.subr.bf16.mxu0 %v12577_v25  ;;  %v9825_v25 = vld [vmem:[#allocation5 + $0x254] ss:$8 sps:$4 sm:$0xff]  }
 0x332   : > { %2554 = vmatprep.mubr.bf16.mxu1 %v14343_v52  ;;  %2805 = vmatprep.mubr.bf16.mxu0 %v14343_v52 }
 0x334   : > { %2537 = vmatpush1.bf16.msra.mxu1 %v14370_v37  ;;  %2788 = vmatpush1.bf16.msra.mxu0 %v12329_v48  ;;  %v9820_v48 = vld [vmem:[#allocation5 + $0x260] ss:$8 sps:$4 sm:$0xff]  }
 0x335   : > { %2684 = vmatprep.subr.bf16.mxu1 %v12590_v46  ;;  %3384 = vmatprep.subr.bf16.mxu0 %v9819_v22  ;;  %v9931_v22 = vld [vmem:[#allocation5 + $0x3c0] ss:$8 sps:$4 sm:$0xff]  }
 0x337   : > { %8428 = vmatmul.mubr.msk.bf16.vlgmr.msra.gmra.mxu1 %vm14337_vm15, %v14335_v41  ;;  %8452 = vmatmul.mubr.msk.bf16.vlgmr.msra.gmra.mxu0 %vm14248_vm7, %v14335_v41 }
 0x338   : > { %2685 = vmatpush1.bf16.msra.mxu1 %v12485_v5  ;;  %2564 = vmatprep.mubr.bf16.mxu1 %v14343_v52 }
 0x339   : > { %2686 = vmatprep.subr.bf16.mxu1 %v12609_v51  ;;  %3385 = vmatpush1.bf16.msra.mxu0 %v9817_v17  ;;  %v9945_v17 = vld [vmem:[#allocation5 + $0x3a4] ss:$8 sps:$4 sm:$0xff]  }
 0x33a   : > { %3386 = vmatprep.subr.bf16.mxu0 %v9822_v60  ;;  %2815 = vmatprep.mubr.bf16.mxu0 %v14343_v52  ;;  %v9943_v60 = vld [vmem:[#allocation5 + $0x3a0] ss:$8 sps:$4 sm:$0xff]  }
 0x33c   : > { %2687 = vmatpush1.bf16.msra.mxu1 %v12459_v12 }
 0x33d   : > { %2688 = vmatprep.subr.bf16.mxu1 %v12624_v57  ;;  %3387 = vmatpush1.bf16.msra.mxu0 %v9820_v48  ;;  %v9949_v48 = vld [vmem:[#allocation5 + $0x390] ss:$8 sps:$4 sm:$0xff]  }
 0x33e   : > { %3388 = vmatprep.subr.bf16.mxu0 %v9825_v25  ;;  %v9957_v25 = vld [vmem:[#allocation5 + $0x384] ss:$8 sps:$4 sm:$0xff]  }
 0x33f   : > { %8430 = vmatmul.mubr.msk.bf16.gmra.mxu1 %vm14348_vm9, %v14335_v41  ;;  %8454 = vmatmul.mubr.msk.bf16.gmra.mxu0 %vm14250_vm6, %v14335_v41 }
 0x340   : > { %2689 = vmatpush1.bf16.msra.mxu1 %v14351_v34  ;;  %2574 = vmatprep.mubr.bf16.mxu1 %v14343_v52 }
 0x341   : > { %2690 = vmatprep.subr.bf16.mxu1 %v12641_v47  ;;  %3389 = vmatpush1.bf16.msra.mxu0 %v9823_v24  ;;  %v9955_v24 = vld [vmem:[#allocation5 + $0x380] ss:$8 sps:$4 sm:$0xff]  }
 0x342   : > { %3390 = vmatprep.subr.bf16.mxu0 %v9828_v9  ;;  %2825 = vmatprep.mubr.bf16.mxu0 %v14343_v52  ;;  %v9963_v9 = vld [vmem:[#allocation5 + $0x174] ss:$8 sps:$4 sm:$0xff]  }
 0x344   : > { %2691 = vmatpush1.bf16.msra.mxu1 %v14356_v26 }
 0x345   : > { %2692 = vmatprep.subr.bf16.mxu1 %v12655_v49  ;;  %3391 = vmatpush1.bf16.msra.mxu0 %v9826_v6 }
 0x346   : > { %3392 = vmatprep.subr.bf16.mxu0 %v9831_v31 }
 0x347   : > { %8432 = vmatmul.mubr.msk.bf16.gmra.mxu1 %vm14359_vm4, %v14335_v41  ;;  %8456 = vmatmul.mubr.msk.bf16.gmra.mxu0 %vm14252_vm2, %v14335_v41 }
 0x348   : > { %2693 = vmatpush1.bf16.msra.mxu1 %v14362_v40  ;;  %2584 = vmatprep.mubr.bf16.mxu1 %v14343_v52 }
 0x349   : > { %2694 = vmatprep.subr.bf16.mxu1 %v12670_v63  ;;  %3393 = vmatpush1.bf16.msra.mxu0 %v9829_v19 }
 0x34a   : > { %3394 = vmatprep.subr.bf16.mxu0 %v9834_v11  ;;  %2835 = vmatprep.mubr.bf16.mxu0 %v14343_v52 }
 0x34c   : > { %2695 = vmatpush1.bf16.msra.mxu1 %v14364_v59 }
 0x34d   : > { %2696 = vmatprep.subr.bf16.mxu1 %v12680_v61  ;;  %3395 = vmatpush1.bf16.msra.mxu0 %v9832_v58 }
 0x34e   : > { %3396 = vmatprep.subr.bf16.mxu0 %v9837_v45 }
 0x34f   : > { %8434 = vmatmul.mubr.msk.bf16.gmra.mxu1 %vm14366_vm11, %v14335_v41  ;;  %8458 = vmatmul.mubr.msk.bf16.gmra.mxu0 %vm14254_vm14, %v14335_v41 }
 0x350   : > { %2697 = vmatpush1.bf16.msra.mxu1 %v14369_v36  ;;  %2716 = vmatprep.mubr.bf16.mxu1 %v14343_v52 }
 0x351   : > { %2698 = vmatprep.subr.bf16.mxu1 %v12692_v29  ;;  %3397 = vmatpush1.bf16.msra.mxu0 %v9835_v43 }
 0x352   : > { %3398 = vmatprep.subr.bf16.mxu0 %v9840_v3 }
 0x354   : > { %2699 = vmatpush1.bf16.msra.mxu1 %v14370_v37 }
 0x355   : > { %2846 = vmatprep.subr.bf16.mxu1 %v12590_v46  ;;  %3399 = vmatpush1.bf16.msra.mxu0 %v9838_v13  ;;  %v9847_v46 = vld [vmem:[#allocation5 + $0x2d0] ss:$8 sps:$4 sm:$0xff]  }
 0x356   : > { %3400 = vmatprep.subr.bf16.mxu0 %v9843_v62  ;;  %v9868_v13 = vld [vmem:[#allocation5 + $0x70] ss:$8 sps:$4 sm:$0xff]  }
 0x357   : > { %8444 = vmatmul.mubr.msk.bf16.vlgmr.msra.gmra.mxu1 %vm14339_vm8, %v14335_v41 }
 0x358   : > { %2847 = vmatpush1.bf16.msra.mxu1 %v12485_v5  ;;  %2726 = vmatprep.mubr.bf16.mxu1 %v14343_v52  ;;  %v9850_v5 = vld [vmem:[#allocation5 + $0x2c0] ss:$8 sps:$4 sm:$0xff]  }
 0x359   : > { %2848 = vmatprep.subr.bf16.mxu1 %v12609_v51  ;;  %3401 = vmatpush2.bf16.msra.mxu0 %v9841_v44  ;;  %v9858_v51 = vld [vmem:[#allocation5 + $0x2a4] ss:$8 sps:$4 sm:$0xff]  }
 0x35a   : > { %3402 = vmatprep.subr.bf16.mxu0 %v9846_v54  ;;  %v9876_v54 = vld [vmem:[#allocation5 + $0x64] ss:$8 sps:$4 sm:$0xff]  }
 0x35c   : > { %2849 = vmatpush1.bf16.msra.mxu1 %v12459_v12  ;;  %v9855_v12 = vld [vmem:[#allocation5 + $0x2b4] ss:$8 sps:$4 sm:$0xff]  }
 0x35d   : > { %2850 = vmatprep.subr.bf16.mxu1 %v12624_v57  ;;  %3403 = vmatpush2.bf16.msra.mxu0 %v9844_v27  ;;  %v9856_v57 = vld [vmem:[#allocation5 + $0x2a0] ss:$8 sps:$4 sm:$0xff]  }
 0x35e   : > { %3404 = vmatprep.subr.bf16.mxu0 %v9849_v14 }
 0x35f   : > { %8446 = vmatmul.mubr.msk.bf16.gmra.mxu1 %vm14350_vm0, %v14335_v41 }
 0x360   : > { %2851 = vmatpush1.bf16.msra.mxu1 %v14351_v34  ;;  %2736 = vmatprep.mubr.bf16.mxu1 %v14343_v52  ;;  %v9864_v34 = vld [vmem:[#allocation5 + $0x284] ss:$8 sps:$4 sm:$0xff]  }
 0x361   : > { %2852 = vmatprep.subr.bf16.mxu1 %v12641_v47  ;;  %3405 = vmatpush2.bf16.msra.mxu0 %v9847_v46  ;;  %v9859_v47 = vld [vmem:[#allocation5 + $0x290] ss:$8 sps:$4 sm:$0xff]   ;;  %v9874_v46 = vld [vmem:[#allocation5 + $0x60] ss:$8 sps:$4 sm:$0xff]  }
 0x362   : > { %3406 = vmatprep.subr.bf16.mxu0 %v9852_v20 }
 0x364   : > { %2853 = vmatpush1.bf16.msra.mxu1 %v14356_v26  ;;  %v9873_v26 = vld [vmem:[#allocation5 + $0x364] ss:$8 sps:$4 sm:$0xff]  }
 0x365   : > { %2854 = vmatprep.subr.bf16.mxu1 %v12655_v49  ;;  %3407 = vmatpush2.bf16.msra.mxu0 %v9850_v5  ;;  %v9865_v49 = vld [vmem:[#allocation5 + $0x370] ss:$8 sps:$4 sm:$0xff]  }
 0x366   : > { %3408 = vmatprep.subr.bf16.mxu0 %v9855_v12  ;;  %v9882_v12 = vld [vmem:[#allocation5 + $0x54] ss:$8 sps:$4 sm:$0xff]  }
 0x367   : > { %8448 = vmatmul.mubr.msk.bf16.gmra.mxu1 %vm14361_vm12, %v14335_v41 }
 0x368   : > { %2855 = vmatpush1.bf16.msra.mxu1 %v14362_v40  ;;  %2746 = vmatprep.mubr.bf16.mxu1 %v14343_v52  ;;  %v9895_v40 = vld [vmem:[#allocation5 + $0x320] ss:$8 sps:$4 sm:$0xff]  }
 0x369   : > { %2856 = vmatprep.subr.bf16.mxu1 %v12670_v63  ;;  %3409 = vmatpush2.bf16.msra.mxu0 %v9853_v42  ;;  %v9897_v63 = vld [vmem:[#allocation5 + $0x324] ss:$8 sps:$4 sm:$0xff]  }
 0x36a   : > { %3410 = vmatprep.subr.bf16.mxu0 %v9858_v51 }
 0x36c   : > { %2857 = vmatpush1.bf16.msra.mxu1 %v14364_v59  ;;  %v9913_v59 = vld [vmem:[#allocation5 + $0x3f0] ss:$8 sps:$4 sm:$0xff]  }
 0x36d   : > { %2858 = vmatprep.subr.bf16.mxu1 %v12680_v61  ;;  %3411 = vmatpush2.bf16.msra.mxu0 %v9856_v57  ;;  %v9915_v61 = vld [vmem:[#allocation5 + $0x3f4] ss:$8 sps:$4 sm:$0xff]  }
 0x36e   : > { %3412 = vmatprep.subr.bf16.mxu0 %v9861_v30 }
 0x36f   : > { %8450 = vmatmul.mubr.msk.bf16.gmra.mxu1 %vm14368_vm1, %v14335_v41 }
 0x370   : > { %2859 = vmatpush1.bf16.msra.mxu1 %v14369_v36  ;;  %2878 = vmatprep.mubr.bf16.mxu1 %v14343_v52  ;;  %v9933_v36 = vld [vmem:[#allocation5 + $0x3c4] ss:$8 sps:$4 sm:$0xff]  }
 0x371   : > { %2860 = vmatprep.subr.bf16.mxu1 %v12692_v29  ;;  %3413 = vmatpush2.bf16.msra.mxu0 %v9859_v47  ;;  %v9925_v29 = vld [vmem:[#allocation5 + $0x3d0] ss:$8 sps:$4 sm:$0xff]  }
 0x372   : > { %3414 = vmatprep.subr.bf16.mxu0 %v9864_v34  ;;  %v9880_v34 = vld [vmem:[#allocation5 + $0x50] ss:$8 sps:$4 sm:$0xff]  }
 0x374   : > { %2861 = vmatpush1.bf16.msra.mxu1 %v14370_v37  ;;  %v9937_v37 = vld [vmem:[#allocation5 + $0x3b0] ss:$8 sps:$4 sm:$0xff]  }
 0x375   : > { %3415 = vmatpush2.bf16.msra.mxu0 %v9862_v16  ;;  %3457 = vmatprep.subr.bf16.mxu1 %v9867_v55 }
 0x376   : > { %3850 = vmatprep.subr.bf16.mxu0 %v9870_v2  ;;  %v9888_v2 = vld [vmem:[#allocation5 + $0x44] ss:$8 sps:$4 sm:$0xff]  }
 0x377   : > { %8460 = vmatmul.mubr.msk.bf16.vlgmr.msra.gmra.mxu1 %vm14248_vm7, %v14335_v41  ;;  %vm4595_vm7 = vcmask 523264  }
 0x378   : > { %2888 = vmatprep.mubr.bf16.mxu1 %v14343_v52  ;;  %3458 = vmatpush1.bf16.msra.mxu1 %v9865_v49 }
 0x379   : > { %3459 = vmatprep.subr.bf16.mxu1 %v9873_v26 }
 0x37c   : > { %3460 = vmatpush1.bf16.msra.mxu1 %v9871_v4  ;;  %v9886_v4 = vld [vmem:[#allocation5 + $0x40] ss:$8 sps:$4 sm:$0xff]  }
 0x37d   : > { %3461 = vmatprep.subr.bf16.mxu1 %v9879_v10 }
 0x37f   : > { %8462 = vmatmul.mubr.msk.bf16.gmra.mxu1 %vm14250_vm6, %v14335_v41  ;;  %vm10636_vm6 = vmmov 0  }
 0x380   : > { %2898 = vmatprep.mubr.bf16.mxu1 %v14343_v52  ;;  %3462 = vmatpush1.bf16.msra.mxu1 %v9877_v33 }
 0x381   : > { %3463 = vmatprep.subr.bf16.mxu1 %v9885_v53  ;;  %v9894_v53 = vld [vmem:[#allocation5 + $0x34] ss:$8 sps:$4 sm:$0xff]  }
 0x384   : > { %3464 = vmatpush1.bf16.msra.mxu1 %v9883_v8 }
 0x385   : > { %3465 = vmatprep.subr.bf16.mxu1 %v9891_v1 }
 0x387   : > { %8464 = vmatmul.mubr.msk.bf16.gmra.mxu1 %vm14252_vm2, %v14335_v41  ;;  %vm6227_vm2 = vcmask 130048  }
 0x388   : > { %2908 = vmatprep.mubr.bf16.mxu1 %v14343_v52  ;;  %3466 = vmatpush1.bf16.msra.mxu1 %v9889_v0 }
 0x389   : > { %3467 = vmatprep.subr.bf16.mxu1 %v9897_v63 }
 0x38c   : > { %3468 = vmatpush1.bf16.msra.mxu1 %v9895_v40 }
 0x38d   : > { %3469 = vmatprep.subr.bf16.mxu1 %v9903_v56  ;;  %v9892_v56 = vld [vmem:[#allocation5 + $0x30] ss:$8 sps:$4 sm:$0xff]  }
 0x38f   : > { %8466 = vmatmul.mubr.msk.bf16.gmra.mxu1 %vm14254_vm14, %v14335_v41  ;;  %v9939_v41 = vld [vmem:[#allocation5 + $0x3b4] ss:$8 sps:$4 sm:$0xff]   ;;  %vm6690_vm14 = vcmask 1043456  }
 0x390   : > { %3470 = vmatpush1.bf16.msra.mxu1 %v9901_v38 }
 0x391   : > { %3471 = vmatprep.subr.bf16.mxu1 %v9909_v39 }
 0x394   : > { %3472 = vmatpush1.bf16.msra.mxu1 %v9907_v7  ;;  %v9900_v7 = vld [vmem:[#allocation5 + $0x24] ss:$8 sps:$4 sm:$0xff]  }
 0x395   : > { %3473 = vmatprep.subr.bf16.mxu1 %v9915_v61 }
 0x398   : > { %3474 = vmatpush2.bf16.msra.mxu1 %v9913_v59 }
 0x399   : > { %3475 = vmatprep.subr.bf16.mxu1 %v9921_v35  ;;  %v9898_v35 = vld [vmem:[#allocation5 + $0x20] ss:$8 sps:$4 sm:$0xff]  }
 0x39c   : > { %3476 = vmatpush2.bf16.msra.mxu1 %v9919_v50 }
 0x39d   : > { %3477 = vmatprep.subr.bf16.mxu1 %v9927_v15 }
 0x3a0   : > { %3478 = vmatpush2.bf16.msra.mxu1 %v9925_v29  ;;  %v9906_v29 = vld [vmem:[#allocation5 + $0x14] ss:$8 sps:$4 sm:$0xff]  }
 0x3a1   : > { %3479 = vmatprep.subr.bf16.mxu1 %v9933_v36 }
 0x3a4   : > { %3480 = vmatpush2.bf16.msra.mxu1 %v9931_v22 }
 0x3a5   : > { %3481 = vmatprep.subr.bf16.mxu1 %v9939_v41 }
 0x3a8   : > { %3482 = vmatpush2.bf16.msra.mxu1 %v9937_v37 }
 0x3a9   : > { %3483 = vmatprep.subr.bf16.mxu1 %v9945_v17 }
 0x3ac   : > { %3484 = vmatpush2.bf16.msra.mxu1 %v9943_v60  ;;  %v9904_v60 = vld [vmem:[#allocation5 + $0x10] ss:$8 sps:$4 sm:$0xff]  }
 0x3ad   : > { %3485 = vmatprep.subr.bf16.mxu1 %v9951_v23 }
 0x3b0   : > { %3486 = vmatpush2.bf16.msra.mxu1 %v9949_v48  ;;  %v9912_v48 = vld [vmem:[#allocation5 + $0x4] ss:$8 sps:$4 sm:$0xff]  }
 0x3b1   : > { %3487 = vmatprep.subr.bf16.mxu1 %v9957_v25 }
 0x3b4   : > { %3488 = vmatpush2.bf16.msra.mxu1 %v9955_v24 }
 0x3b5   : > { %3923 = vmatprep.subr.bf16.mxu1 %v9963_v9  ;;  %v9910_v9 = vld [vmem:[#allocation5] ss:$8 sps:$4 sm:$0xff]  }
 0x3d7   : > { %v12796_v21 = vpop.f32.mrf.mxu1  ;;  %v2645_v6 = vpop.f32.mrf.mxu0 }
 0x3d9   : > { %v12798_v31 = vpop.f32.mrf.mxu1  ;;  %v2647_v19 = vpop.f32.mrf.mxu0 }
 0x3db   : > { %v12800_v11 = vpop.f32.mrf.mxu1  ;;  %v2649_v28 = vpop.f32.mrf.mxu0 }
 0x3dc   : > { %v2595_v58 = vpack.c.bf16 %v12800_v11, %v12796_v21  ;;  %v2757_v45 = vpack.c.bf16 %v2649_v28, %v2645_v6  ;;  %v9972_v21 = vld [vmem:[#allocation5 + $0x144] ss:$8 sps:$4 sm:$0xff]   ;;  %v10021_v11 = vld [vmem:[#allocation5 + $0x450] ss:$8 sps:$4 sm:$0xff]  }
 0x3dd   : > { %v12804_v43 = vpop.f32.mrf.mxu1  ;;  %v2651_v3 = vpop.f32.mrf.mxu0 }
 0x3de   : > { %v2758_v18 = vpack.c.bf16 %v2651_v3, %v2647_v19  ;;  %v2596_v25 = vpack.c.bf16 %v12804_v43, %v12798_v31  ;;  %v9918_v19 = vld [vmem:[#allocation5 + $0xf4] ss:$8 sps:$4 sm:$0xff]   ;;  %v9916_v3 = vld [vmem:[#allocation5 + $0xf0] ss:$8 sps:$4 sm:$0xff]   ;;  %v9924_v31 = vld [vmem:[#allocation5 + $0xe4] ss:$8 sps:$4 sm:$0xff]  }
 0x3df   : > { %v12806_v62 = vpop.f32.mrf.mxu1  ;;  %v2655_v44 = vpop.f32.mrf.mxu0 }
 0x3e0   : > { %3416 = vmatprep.mubr.bf16.mxu0 %v2758_v18 }
 0x3e1   : > { %v12808_v27 = vpop.f32.mrf.mxu1  ;;  %v2657_v14 = vpop.f32.mrf.mxu0  ;;  %3417 = vmatmul.mubr.bf16.vlgmr.msra.gmra.mxu0 %v2757_v45 }
 0x3e2   : > { %3851 = vmatpush1.bf16.msra.mxu0 %v9868_v13  ;;  %v9922_v13 = vld [vmem:[#allocation5 + $0xe0] ss:$8 sps:$4 sm:$0xff]  }
 0x3e3   : > { %v12810_v20 = vpop.f32.mrf.mxu1  ;;  %v2659_v5 = vpop.f32.mrf.mxu0  ;;  %3852 = vmatprep.subr.bf16.mxu0 %v9876_v54  ;;  %v9930_v54 = vld [vmem:[#allocation5 + $0xd4] ss:$8 sps:$4 sm:$0xff]  }
 0x3e4   : > { %v2599_v42 = vpack.c.bf16 %v12810_v20, %v12806_v62  ;;  %v2761_v51 = vpack.c.bf16 %v2659_v5, %v2655_v44  ;;  %v9928_v5 = vld [vmem:[#allocation5 + $0xd0] ss:$8 sps:$4 sm:$0xff]  }
 0x3e5   : > { %v12814_v57 = vpop.f32.mrf.mxu1  ;;  %v2661_v30 = vpop.f32.mrf.mxu0  ;;  %v9973_v62 = vld [vmem:[#allocation5 + $0x130] ss:$8 sps:$4 sm:$0xff]  }
 0x3e6   : > { %v2762_v47 = vpack.c.bf16 %v2661_v30, %v2657_v14  ;;  %3853 = vmatpush1.bf16.msra.mxu0 %v9874_v46 }
 0x3e7   : > { %v12816_v16 = vpop.f32.mrf.mxu1  ;;  %v2665_v55 = vpop.f32.mrf.mxu0  ;;  %3854 = vmatprep.subr.bf16.mxu0 %v9882_v12 }
 0x3e8   : > { %3426 = vmatprep.mubr.bf16.mxu0 %v2762_v47  ;;  %v9934_v47 = vld [vmem:[#allocation5 + $0xc0] ss:$8 sps:$4 sm:$0xff]  }
 0x3e9   : > { %v12818_v49 = vpop.f32.mrf.mxu1  ;;  %v2667_v26 = vpop.f32.mrf.mxu0  ;;  %3427 = vmatmul.mubr.bf16.gmra.mxu0 %v2761_v51  ;;  %v9936_v51 = vld [vmem:[#allocation5 + $0xc4] ss:$8 sps:$4 sm:$0xff]  }
 0x3ea   : > { %3855 = vmatpush1.bf16.msra.mxu0 %v9880_v34 }
 0x3eb   : > { %v12820_v10 = vpop.f32.mrf.mxu1  ;;  %v2669_v33 = vpop.f32.mrf.mxu0  ;;  %3856 = vmatprep.subr.bf16.mxu0 %v9888_v2 }
 0x3ec   : > { %v2603_v8 = vpack.c.bf16 %v12820_v10, %v12816_v16  ;;  %v2765_v1 = vpack.c.bf16 %v2669_v33, %v2665_v55  ;;  %v9942_v55 = vld [vmem:[#allocation5 + $0xb4] ss:$8 sps:$4 sm:$0xff]   ;;  %v9979_v16 = vld [vmem:[#allocation5 + $0x110] ss:$8 sps:$4 sm:$0xff]   ;;  %v9984_v10 = vld [vmem:[#allocation5 + $0x104] ss:$8 sps:$4 sm:$0xff]  }
 0x3ed   : > { %v12824_v0 = vpop.f32.mrf.mxu1  ;;  %v2671_v63 = vpop.f32.mrf.mxu0 }
 0x3ee   : > { %v2766_v40 = vpack.c.bf16 %v2671_v63, %v2667_v26  ;;  %3857 = vmatpush1.bf16.msra.mxu0 %v9886_v4  ;;  %v9940_v4 = vld [vmem:[#allocation5 + $0xb0] ss:$8 sps:$4 sm:$0xff]   ;;  %v9946_v63 = vld [vmem:[#allocation5 + $0xa0] ss:$8 sps:$4 sm:$0xff]  }
 0x3ef   : > { %v12826_v38 = vpop.f32.mrf.mxu1  ;;  %v2675_v39 = vpop.f32.mrf.mxu0  ;;  %3858 = vmatprep.subr.bf16.mxu0 %v9894_v53  ;;  %v9948_v53 = vld [vmem:[#allocation5 + $0xa4] ss:$8 sps:$4 sm:$0xff]  }
 0x3f0   : > { %3436 = vmatprep.mubr.bf16.mxu0 %v2766_v40 }
 0x3f1   : > { %v12828_v61 = vpop.f32.mrf.mxu1  ;;  %v2677_v59 = vpop.f32.mrf.mxu0  ;;  %3437 = vmatmul.mubr.bf16.gmra.mxu0 %v2765_v1 }
 0x3f2   : > { %3859 = vmatpush1.bf16.msra.mxu0 %v9892_v56  ;;  %v9954_v56 = vld [vmem:[#allocation5 + $0x94] ss:$8 sps:$4 sm:$0xff]  }
 0x3f3   : > { %v12830_v50 = vpop.f32.mrf.mxu1  ;;  %v2679_v15 = vpop.f32.mrf.mxu0  ;;  %3860 = vmatprep.subr.bf16.mxu0 %v9900_v7 }
 0x3f4   : > { %v2607_v36 = vpack.c.bf16 %v12830_v50, %v12826_v38  ;;  %v2769_v22 = vpack.c.bf16 %v2679_v15, %v2675_v39  ;;  %v9960_v15 = vld [vmem:[#allocation5 + $0x84] ss:$8 sps:$4 sm:$0xff]  }
 0x3f5   : > { %v12834_v41 = vpop.f32.mrf.mxu1  ;;  %v2681_v37 = vpop.f32.mrf.mxu0  ;;  %v10065_v38 = vld [vmem:[#allocation5 + $0x4e4] ss:$8 sps:$4 sm:$0xff]  }
 0x3f6   : > { %v2770_v17 = vpack.c.bf16 %v2681_v37, %v2677_v59  ;;  %3861 = vmatpush1.bf16.msra.mxu0 %v9898_v35  ;;  %v9952_v59 = vld [vmem:[#allocation5 + $0x90] ss:$8 sps:$4 sm:$0xff]  }
 0x3f7   : > { %v12836_v23 = vpop.f32.mrf.mxu1  ;;  %3862 = vmatprep.subr.bf16.mxu0 %v9906_v29 }
 0x3f8   : > { %3446 = vmatprep.mubr.bf16.mxu0 %v2770_v17  ;;  %v10011_v17 = vld [vmem:[#allocation5 + $0x474] ss:$8 sps:$4 sm:$0xff]  }
 0x3f9   : > { %v12840_v24 = vpop.f32.mrf.mxu1  ;;  %3447 = vmatmul.mubr.bf16.gmra.mxu0 %v2769_v22  ;;  %v9958_v22 = vld [vmem:[#allocation5 + $0x80] ss:$8 sps:$4 sm:$0xff]  }
 0x3fa   : > { %3863 = vmatpush1.bf16.msra.mxu0 %v9904_v60  ;;  %3882 = vmatprep.mubr.bf16.mxu0 %v2596_v25  ;;  %v9961_v25 = vld [vmem:[#allocation5 + $0x170] ss:$8 sps:$4 sm:$0xff]  }
 0x3fb   : > { %v12842_v6 = vpop.f32.mrf.mxu1  ;;  %3864 = vmatprep.subr.bf16.mxu0 %v9912_v48 }
 0x3fc   : > { %v2597_v28 = vpack.c.bf16 %v12842_v6, %v12836_v23 }
 0x3fd   : > { %v12846_v45 = vpop.f32.mrf.mxu1 }
 0x3fe   : > { %3865 = vmatpush1.bf16.msra.mxu0 %v9910_v9 }
 0x3ff   : > { %v12848_v18 = vpop.f32.mrf.mxu1  ;;  %3866 = vmatprep.subr.bf16.mxu0 %v9918_v19 }
 0x401   : > { %v12850_v43 = vpop.f32.mrf.mxu1 }
 0x402   : > { %3867 = vmatpush2.bf16.msra.mxu0 %v9916_v3  ;;  %v9966_v3 = vld [vmem:[#allocation5 + $0x164] ss:$8 sps:$4 sm:$0xff]  }
 0x403   : > { %v12852_v44 = vpop.f32.mrf.mxu1  ;;  %3868 = vmatprep.subr.bf16.mxu0 %v9924_v31  ;;  %v10009_v31 = vld [vmem:[#allocation5 + $0x470] ss:$8 sps:$4 sm:$0xff]  }
 0x404   : > { %v2601_v14 = vpack.c.bf16 %v12852_v44, %v12848_v18 }
 0x405   : > { %v12856_v46 = vpop.f32.mrf.mxu1 }
 0x406   : > { %3869 = vmatpush2.bf16.msra.mxu0 %v9922_v13  ;;  %v2600_v13 = vpack.c.bf16 %v12814_v57, %v12808_v27 }
 0x407   : > { %v12858_v12 = vpop.f32.mrf.mxu1  ;;  %3870 = vmatprep.subr.bf16.mxu0 %v9930_v54  ;;  %v10017_v54 = vld [vmem:[#allocation5 + $0x464] ss:$8 sps:$4 sm:$0xff]  }
 0x409   : > { %v12860_v30 = vpop.f32.mrf.mxu1 }
 0x40a   : > { %3871 = vmatpush2.bf16.msra.mxu0 %v9928_v5 }
 0x40b   : > { %v12862_v34 = vpop.f32.mrf.mxu1  ;;  %3872 = vmatprep.subr.bf16.mxu0 %v9936_v51  ;;  %v9964_v51 = vld [vmem:[#allocation5 + $0x160] ss:$8 sps:$4 sm:$0xff]  }
 0x40c   : > { %v2605_v2 = vpack.c.bf16 %v12862_v34, %v12858_v12  ;;  %v10054_v12 = vld [vmem:[#allocation5 + $0x500] ss:$8 sps:$4 sm:$0xff]   ;;  %v10062_v34 = vld [vmem:[#allocation5 + $0x5f4] ss:$8 sps:$4 sm:$0xff]  }
 0x40d   : > { %v12866_v26 = vpop.f32.mrf.mxu1 }
 0x40e   : > { %3873 = vmatpush2.bf16.msra.mxu0 %v9934_v47  ;;  %v2606_v23 = vpack.c.bf16 %v12866_v26, %v12860_v30 }
 0x40f   : > { %v12868_v33 = vpop.f32.mrf.mxu1  ;;  %3874 = vmatprep.subr.bf16.mxu0 %v9942_v55  ;;  %v9969_v55 = vld [vmem:[#allocation5 + $0x154] ss:$8 sps:$4 sm:$0xff]  }
 0x411   : > { %v12870_v1 = vpop.f32.mrf.mxu1 }
 0x412   : > { %3875 = vmatpush2.bf16.msra.mxu0 %v9940_v4  ;;  %v10015_v4 = vld [vmem:[#allocation5 + $0x460] ss:$8 sps:$4 sm:$0xff]  }
 0x413   : > { %v12872_v40 = vpop.f32.mrf.mxu1  ;;  %3876 = vmatprep.subr.bf16.mxu0 %v9948_v53  ;;  %v10023_v53 = vld [vmem:[#allocation5 + $0x454] ss:$8 sps:$4 sm:$0xff]  }
 0x414   : > { %v2609_v39 = vpack.c.bf16 %v12872_v40, %v12868_v33  ;;  %v10072_v33 = vld [vmem:[#allocation5 + $0x5d0] ss:$8 sps:$4 sm:$0xff]   ;;  %v10080_v40 = vld [vmem:[#allocation5 + $0x5c4] ss:$8 sps:$4 sm:$0xff]  }
 0x415   : > { %v12876_v7 = vpop.f32.mrf.mxu1 }
 0x416   : > { %3877 = vmatpush2.bf16.msra.mxu0 %v9946_v63  ;;  %v2610_v18 = vpack.c.bf16 %v12876_v7, %v12870_v1  ;;  %v10068_v1 = vld [vmem:[#allocation5 + $0x5e4] ss:$8 sps:$4 sm:$0xff]  }
 0x417   : > { %v2718_v35 = vpop.f32.mrf.mxu1  ;;  %3878 = vmatprep.subr.bf16.mxu0 %v9954_v56  ;;  %v9967_v56 = vld [vmem:[#allocation5 + $0x150] ss:$8 sps:$4 sm:$0xff]  }
 0x419   : > { %v2720_v29 = vpop.f32.mrf.mxu1 }
 0x41a   : > { %3879 = vmatpush2.bf16.msra.mxu0 %v9952_v59 }
 0x41b   : > { %v2722_v37 = vpop.f32.mrf.mxu1  ;;  %3880 = vmatprep.subr.bf16.mxu0 %v9960_v15 }
 0x41c   : > { %v2759_v9 = vpack.c.bf16 %v2722_v37, %v2718_v35  ;;  %v10029_v35 = vld [vmem:[#allocation5 + $0x444] ss:$8 sps:$4 sm:$0xff]  }
 0x41d   : > { %v2724_v60 = vpop.f32.mrf.mxu1 }
 0x41e   : > { %v2760_v48 = vpack.c.bf16 %v2724_v60, %v2720_v29  ;;  %3881 = vmatpush2.bf16.msra.mxu0 %v9958_v22  ;;  %v12888_v29 = vpop.f32.mrf.mxu0  ;;  %v9970_v22 = vld [vmem:[#allocation5 + $0x140] ss:$8 sps:$4 sm:$0xff]  }
 0x41f   : > { %v2728_v19 = vpop.f32.mrf.mxu1  ;;  %4381 = vmatprep.subr.bf16.mxu0 %v10011_v17  ;;  %v9975_v17 = vld [vmem:[#allocation5 + $0x134] ss:$8 sps:$4 sm:$0xff]   ;;  %v10027_v60 = vld [vmem:[#allocation5 + $0x440] ss:$8 sps:$4 sm:$0xff]  }
 0x420   : > { %3489 = vmatprep.mubr.bf16.mxu1 %v2760_v48 }
 0x421   : > { %3883 = vmatmul.mubr.bf16.vlgmr.msra.gmra.mxu0 %v2595_v58  ;;  %v2730_v5 = vpop.f32.mrf.mxu1  ;;  %3490 = vmatmul.mubr.bf16.vlgmr.msra.gmra.mxu1 %v2759_v9  ;;  %v2604_v58 = vpack.c.bf16 %v12824_v0, %v12818_v49  ;;  %v10035_v49 = vld [vmem:[#allocation5 + $0x434] ss:$8 sps:$4 sm:$0xff]  }
 0x422   : > { %3892 = vmatprep.mubr.bf16.mxu0 %v2600_v13  ;;  %3924 = vmatpush1.bf16.msra.mxu1 %v9961_v25  ;;  %v2809_v25 = vpop.f32.mrf.mxu0 }
 0x423   : > { %v2732_v47 = vpop.f32.mrf.mxu1  ;;  %3925 = vmatprep.subr.bf16.mxu1 %v9966_v3  ;;  %4382 = vmatpush1.bf16.msra.mxu0 %v10009_v31  ;;  %v2608_v3 = vpack.c.bf16 %v12834_v41, %v12828_v61  ;;  %v10041_v31 = vld [vmem:[#allocation5 + $0x424] ss:$8 sps:$4 sm:$0xff]   ;;  %v10047_v61 = vld [vmem:[#allocation5 + $0x414] ss:$8 sps:$4 sm:$0xff]  }
 0x424   : > { %4383 = vmatprep.subr.bf16.mxu0 %v10017_v54  ;;  %v2763_v63 = vpack.c.bf16 %v2732_v47, %v2728_v19  ;;  %v10033_v19 = vld [vmem:[#allocation5 + $0x430] ss:$8 sps:$4 sm:$0xff]   ;;  %v12895_v54 = vpop.f32.mrf.mxu0  ;;  %v9981_v47 = vld [vmem:[#allocation5 + $0x114] ss:$8 sps:$4 sm:$0xff]  }
 0x425   : > { %v2734_v27 = vpop.f32.mrf.mxu1 }
 0x426   : > { %v2764_v57 = vpack.c.bf16 %v2734_v27, %v2730_v5  ;;  %3926 = vmatpush1.bf16.msra.mxu1 %v9964_v51  ;;  %v9976_v5 = vld [vmem:[#allocation5 + $0x120] ss:$8 sps:$4 sm:$0xff]   ;;  %v2598_v27 = vpack.c.bf16 %v12846_v45, %v12840_v24  ;;  %v9985_v24 = vld [vmem:[#allocation5 + $0x1f0] ss:$8 sps:$4 sm:$0xff]   ;;  %v9990_v45 = vld [vmem:[#allocation5 + $0x1e4] ss:$8 sps:$4 sm:$0xff]  }
 0x427   : > { %v2738_v59 = vpop.f32.mrf.mxu1  ;;  %3927 = vmatprep.subr.bf16.mxu1 %v9969_v55  ;;  %4384 = vmatpush1.bf16.msra.mxu0 %v10015_v4  ;;  %v10039_v55 = vld [vmem:[#allocation5 + $0x420] ss:$8 sps:$4 sm:$0xff]  }
 0x428   : > { %3499 = vmatprep.mubr.bf16.mxu1 %v2764_v57  ;;  %4385 = vmatprep.subr.bf16.mxu0 %v10023_v53  ;;  %v2813_v53 = vpop.f32.mrf.mxu0  ;;  %v10053_v57 = vld [vmem:[#allocation5 + $0x404] ss:$8 sps:$4 sm:$0xff]  }
 0x429   : > { %3893 = vmatmul.mubr.bf16.gmra.mxu0 %v2599_v42  ;;  %v2740_v15 = vpop.f32.mrf.mxu1  ;;  %3500 = vmatmul.mubr.bf16.gmra.mxu1 %v2763_v63  ;;  %v9978_v42 = vld [vmem:[#allocation5 + $0x124] ss:$8 sps:$4 sm:$0xff]  }
 0x42a   : > { %3902 = vmatprep.mubr.bf16.mxu0 %v2604_v58  ;;  %3928 = vmatpush1.bf16.msra.mxu1 %v9967_v56  ;;  %v2920_v56 = vpack.c.bf16 %v2813_v53, %v2809_v25  ;;  %v10059_v58 = vld [vmem:[#allocation5 + $0x4f4] ss:$8 sps:$4 sm:$0xff]   ;;  %v12902_v50 = vpop.f32.mrf.mxu0  ;;  %v10003_v53 = vld [vmem:[#allocation5 + $0x190] ss:$8 sps:$4 sm:$0xff]  }
 0x42b   : > { %v2742_v37 = vpop.f32.mrf.mxu1  ;;  %3929 = vmatprep.subr.bf16.mxu1 %v9972_v21  ;;  %4386 = vmatpush1.bf16.msra.mxu0 %v10021_v11  ;;  %v9987_v21 = vld [vmem:[#allocation5 + $0x1f4] ss:$8 sps:$4 sm:$0xff]   ;;  %v10051_v11 = vld [vmem:[#allocation5 + $0x400] ss:$8 sps:$4 sm:$0xff]  }
 0x42c   : > { %4387 = vmatprep.subr.bf16.mxu0 %v10029_v35  ;;  %v2767_v0 = vpack.c.bf16 %v2742_v37, %v2738_v59  ;;  %v9982_v59 = vld [vmem:[#allocation5 + $0x100] ss:$8 sps:$4 sm:$0xff]   ;;  %v10057_v35 = vld [vmem:[#allocation5 + $0x4f0] ss:$8 sps:$4 sm:$0xff]   ;;  %v10071_v37 = vld [vmem:[#allocation5 + $0x4d4] ss:$8 sps:$4 sm:$0xff]  }
 0x42d   : > { %v2744_v48 = vpop.f32.mrf.mxu1 }
 0x42e   : > { %v2768_v9 = vpack.c.bf16 %v2744_v48, %v2740_v15  ;;  %3930 = vmatpush1.bf16.msra.mxu1 %v9970_v22  ;;  %v9993_v15 = vld [vmem:[#allocation5 + $0x1d4] ss:$8 sps:$4 sm:$0xff]   ;;  %v10063_v22 = vld [vmem:[#allocation5 + $0x4e0] ss:$8 sps:$4 sm:$0xff]   ;;  %v10077_v48 = vld [vmem:[#allocation5 + $0x4c4] ss:$8 sps:$4 sm:$0xff]  }
 0x42f   : > { %v2748_v20 = vpop.f32.mrf.mxu1  ;;  %3931 = vmatprep.subr.bf16.mxu1 %v9975_v17  ;;  %4388 = vmatpush1.bf16.msra.mxu0 %v10027_v60  ;;  %v12904_v17 = vpop.f32.mrf.mxu0  ;;  %v9991_v60 = vld [vmem:[#allocation5 + $0x1d0] ss:$8 sps:$4 sm:$0xff]  }
 0x430   : > { %3509 = vmatprep.mubr.bf16.mxu1 %v2768_v9  ;;  %4389 = vmatprep.subr.bf16.mxu0 %v10035_v49  ;;  %v9996_v49 = vld [vmem:[#allocation5 + $0x1c4] ss:$8 sps:$4 sm:$0xff]   ;;  %v9994_v9 = vld [vmem:[#allocation5 + $0x1c0] ss:$8 sps:$4 sm:$0xff]  }
 0x431   : > { %3903 = vmatmul.mubr.bf16.gmra.mxu0 %v2603_v8  ;;  %v2750_v13 = vpop.f32.mrf.mxu1  ;;  %3510 = vmatmul.mubr.bf16.gmra.mxu1 %v2767_v0  ;;  %v10045_v8 = vld [vmem:[#allocation5 + $0x410] ss:$8 sps:$4 sm:$0xff]   ;;  %v12906_v25 = vpop.f32.mrf.mxu0 }
 0x432   : > { %3912 = vmatprep.mubr.bf16.mxu0 %v2608_v3  ;;  %3932 = vmatpush1.bf16.msra.mxu1 %v9973_v62  ;;  %v10069_v0 = vld [vmem:[#allocation5 + $0x4d0] ss:$8 sps:$4 sm:$0xff]   ;;  %v9999_v62 = vld [vmem:[#allocation5 + $0x1b4] ss:$8 sps:$4 sm:$0xff]  }
 0x433   : > { %v2752_v51 = vpop.f32.mrf.mxu1  ;;  %3933 = vmatprep.subr.bf16.mxu1 %v9978_v42  ;;  %4390 = vmatpush1.bf16.msra.mxu0 %v10033_v19  ;;  %v10083_v42 = vld [vmem:[#allocation5 + $0x4b4] ss:$8 sps:$4 sm:$0xff]   ;;  %v2823_v19 = vpop.f32.mrf.mxu0  ;;  %v9997_v3 = vld [vmem:[#allocation5 + $0x1b0] ss:$8 sps:$4 sm:$0xff]  }
 0x434   : > { %4391 = vmatprep.subr.bf16.mxu0 %v10041_v31  ;;  %v2771_v41 = vpack.c.bf16 %v2752_v51, %v2748_v20  ;;  %v10075_v20 = vld [vmem:[#allocation5 + $0x4c0] ss:$8 sps:$4 sm:$0xff]   ;;  %v10002_v31 = vld [vmem:[#allocation5 + $0x1a4] ss:$8 sps:$4 sm:$0xff]  }
 0x435   : > { %v2754_v4 = vpop.f32.mrf.mxu1  ;;  %v12908_v51 = vpop.f32.mrf.mxu0 }
 0x436   : > { %v2772_v63 = vpack.c.bf16 %v2754_v4, %v2750_v13  ;;  %3934 = vmatpush1.bf16.msra.mxu1 %v9976_v5  ;;  %v10081_v13 = vld [vmem:[#allocation5 + $0x4b0] ss:$8 sps:$4 sm:$0xff]   ;;  %v10089_v5 = vld [vmem:[#allocation5 + $0x4a4] ss:$8 sps:$4 sm:$0xff]  }
 0x437   : > { %3935 = vmatprep.subr.bf16.mxu1 %v9981_v47  ;;  %4392 = vmatpush1.bf16.msra.mxu0 %v10039_v55  ;;  %v10000_v47 = vld [vmem:[#allocation5 + $0x1a0] ss:$8 sps:$4 sm:$0xff]   ;;  %v10005_v55 = vld [vmem:[#allocation5 + $0x194] ss:$8 sps:$4 sm:$0xff]   ;;  %v2829_v4 = vpop.f32.mrf.mxu0 }
 0x438   : > { %3519 = vmatprep.mubr.bf16.mxu1 %v2772_v63  ;;  %4393 = vmatprep.subr.bf16.mxu0 %v10047_v61  ;;  %v10087_v61 = vld [vmem:[#allocation5 + $0x4a0] ss:$8 sps:$4 sm:$0xff]   ;;  %v10008_v63 = vld [vmem:[#allocation5 + $0x184] ss:$8 sps:$4 sm:$0xff]  }
 0x439   : > { %3913 = vmatmul.mubr.bf16.gmra.mxu0 %v2607_v36  ;;  %3520 = vmatmul.mubr.bf16.gmra.mxu1 %v2771_v41  ;;  %v9988_v36 = vld [vmem:[#allocation5 + $0x1e0] ss:$8 sps:$4 sm:$0xff]   ;;  %v10095_v41 = vld [vmem:[#allocation5 + $0x494] ss:$8 sps:$4 sm:$0xff]  }
 0x43a   : > { %3936 = vmatpush1.bf16.msra.mxu1 %v9979_v16  ;;  %3955 = vmatprep.mubr.bf16.mxu1 %v2598_v27  ;;  %v10093_v16 = vld [vmem:[#allocation5 + $0x490] ss:$8 sps:$4 sm:$0xff]   ;;  %v10006_v27 = vld [vmem:[#allocation5 + $0x180] ss:$8 sps:$4 sm:$0xff]  }
 0x43b   : > { %3937 = vmatprep.subr.bf16.mxu1 %v9984_v10  ;;  %4394 = vmatpush1.bf16.msra.mxu0 %v10045_v8  ;;  %v10101_v10 = vld [vmem:[#allocation5 + $0x484] ss:$8 sps:$4 sm:$0xff]   ;;  %v2831_v8 = vpop.f32.mrf.mxu0 }
 0x43c   : > { %4395 = vmatprep.subr.bf16.mxu0 %v10053_v57  ;;  %4413 = vmatprep.mubr.bf16.mxu0 %v2920_v56  ;;  %v10014_v57 = vld [vmem:[#allocation5 + $0x574] ss:$8 sps:$4 sm:$0xff]   ;;  %v10099_v56 = vld [vmem:[#allocation5 + $0x480] ss:$8 sps:$4 sm:$0xff]   ;;  %v2927_v26 = vpack.c.bf16 %v2831_v8, %v12908_v51  ;;  %v10084_v51 = vld [vmem:[#allocation5 + $0x5b0] ss:$8 sps:$4 sm:$0xff]  }
 0x43e   : > { %3938 = vmatpush1.bf16.msra.mxu1 %v9982_v59  ;;  %v2833_v59 = vpop.f32.mrf.mxu0 }
 0x43f   : > { %3939 = vmatprep.subr.bf16.mxu1 %v9987_v21  ;;  %4396 = vmatpush1.bf16.msra.mxu0 %v10051_v11  ;;  %v10012_v21 = vld [vmem:[#allocation5 + $0x570] ss:$8 sps:$4 sm:$0xff]   ;;  %v10020_v11 = vld [vmem:[#allocation5 + $0x564] ss:$8 sps:$4 sm:$0xff]   ;;  %v2928_v6 = vpack.c.bf16 %v2833_v59, %v2829_v4 }
 0x440   : > { %4397 = vmatprep.subr.bf16.mxu0 %v10059_v58  ;;  %v2919_v58 = vpack.c.bf16 %v12895_v54, %v12888_v29  ;;  %v10024_v29 = vld [vmem:[#allocation5 + $0x550] ss:$8 sps:$4 sm:$0xff]   ;;  %v10032_v54 = vld [vmem:[#allocation5 + $0x544] ss:$8 sps:$4 sm:$0xff]  }
 0x442   : > { %3940 = vmatpush2.bf16.msra.mxu1 %v9985_v24  ;;  %v2602_v24 = vpack.c.bf16 %v12856_v46, %v12850_v43  ;;  %v12918_v43 = vpop.f32.mrf.mxu1  ;;  %v2923_v46 = vpack.c.bf16 %v12906_v25, %v12902_v50  ;;  %v10036_v50 = vld [vmem:[#allocation5 + $0x530] ss:$8 sps:$4 sm:$0xff]  }
 0x443   : > { %3941 = vmatprep.subr.bf16.mxu1 %v9990_v45  ;;  %4398 = vmatpush2.bf16.msra.mxu0 %v10057_v35  ;;  %v2924_v45 = vpack.c.bf16 %v2823_v19, %v12904_v17  ;;  %v2837_v35 = vpop.f32.mrf.mxu0  ;;  %v10048_v25 = vld [vmem:[#allocation5 + $0x510] ss:$8 sps:$4 sm:$0xff]   ;;  %v10074_v19 = vld [vmem:[#allocation5 + $0x5d4] ss:$8 sps:$4 sm:$0xff]  }
 0x444   : > { %4399 = vmatprep.subr.bf16.mxu0 %v10065_v38  ;;  %v10018_v38 = vld [vmem:[#allocation5 + $0x560] ss:$8 sps:$4 sm:$0xff]   ;;  %v2882_v17 = vpop.f32.mrf.mxu1 }
 0x446   : > { %3942 = vmatpush2.bf16.msra.mxu1 %v9988_v36  ;;  %v10026_v36 = vld [vmem:[#allocation5 + $0x554] ss:$8 sps:$4 sm:$0xff]   ;;  %v12927_v30 = vpop.f32.mrf.mxu1 }
 0x447   : > { %3943 = vmatprep.subr.bf16.mxu1 %v9993_v15  ;;  %4400 = vmatpush2.bf16.msra.mxu0 %v10063_v22  ;;  %v2839_v15 = vpop.f32.mrf.mxu0  ;;  %v10030_v22 = vld [vmem:[#allocation5 + $0x540] ss:$8 sps:$4 sm:$0xff]  }
 0x448   : > { %4401 = vmatprep.subr.bf16.mxu0 %v10071_v37  ;;  %v10038_v37 = vld [vmem:[#allocation5 + $0x534] ss:$8 sps:$4 sm:$0xff]  }
 0x44a   : > { %3944 = vmatpush2.bf16.msra.mxu1 %v9991_v60 }
 0x44b   : > { %3945 = vmatprep.subr.bf16.mxu1 %v9996_v49  ;;  %4402 = vmatpush2.bf16.msra.mxu0 %v10069_v0  ;;  %v10044_v49 = vld [vmem:[#allocation5 + $0x524] ss:$8 sps:$4 sm:$0xff]   ;;  %v10050_v0 = vld [vmem:[#allocation5 + $0x514] ss:$8 sps:$4 sm:$0xff]  }
 0x44c   : > { %4403 = vmatprep.subr.bf16.mxu0 %v10077_v48  ;;  %v2886_v48 = vpop.f32.mrf.mxu1 }
 0x44e   : > { %3946 = vmatpush2.bf16.msra.mxu1 %v9994_v9  ;;  %v2922_v9 = vpack.c.bf16 %v2886_v48, %v2882_v17  ;;  %v2890_v7 = vpop.f32.mrf.mxu1 }
 0x44f   : > { %3947 = vmatprep.subr.bf16.mxu1 %v9999_v62  ;;  %4404 = vmatpush2.bf16.msra.mxu0 %v10075_v20  ;;  %v10056_v62 = vld [vmem:[#allocation5 + $0x504] ss:$8 sps:$4 sm:$0xff]  }
 0x450   : > { %4405 = vmatprep.subr.bf16.mxu0 %v10083_v42  ;;  %v10066_v42 = vld [vmem:[#allocation5 + $0x5e0] ss:$8 sps:$4 sm:$0xff]  }
 0x452   : > { %3948 = vmatpush2.bf16.msra.mxu1 %v9997_v3  ;;  %v2892_v3 = vpop.f32.mrf.mxu1 }
 0x453   : > { %3949 = vmatprep.subr.bf16.mxu1 %v10002_v31  ;;  %4406 = vmatpush2.bf16.msra.mxu0 %v10081_v13  ;;  %v10078_v31 = vld [vmem:[#allocation5 + $0x5c0] ss:$8 sps:$4 sm:$0xff]   ;;  %v10086_v13 = vld [vmem:[#allocation5 + $0x5b4] ss:$8 sps:$4 sm:$0xff]  }
 0x454   : > { %4407 = vmatprep.subr.bf16.mxu0 %v10089_v5 }
 0x456   : > { %3950 = vmatpush2.bf16.msra.mxu1 %v10000_v47  ;;  %v10092_v47 = vld [vmem:[#allocation5 + $0x5a4] ss:$8 sps:$4 sm:$0xff]  }
 0x457   : > { %3951 = vmatprep.subr.bf16.mxu1 %v10005_v55  ;;  %4408 = vmatpush2.bf16.msra.mxu0 %v10087_v61  ;;  %v10090_v61 = vld [vmem:[#allocation5 + $0x5a0] ss:$8 sps:$4 sm:$0xff]  }
 0x458   : > { %4409 = vmatprep.subr.bf16.mxu0 %v10095_v41  ;;  %v10098_v41 = vld [vmem:[#allocation5 + $0x594] ss:$8 sps:$4 sm:$0xff]  }
 0x45a   : > { %3952 = vmatpush2.bf16.msra.mxu1 %v10003_v53  ;;  %v10096_v53 = vld [vmem:[#allocation5 + $0x590] ss:$8 sps:$4 sm:$0xff]  }
 0x45b   : > { %3953 = vmatprep.subr.bf16.mxu1 %v10008_v63  ;;  %4410 = vmatpush2.bf16.msra.mxu0 %v10093_v16  ;;  %v10104_v63 = vld [vmem:[#allocation5 + $0x584] ss:$8 sps:$4 sm:$0xff]  }
 0x45c   : > { %4411 = vmatprep.subr.bf16.mxu0 %v10101_v10  ;;  %v10102_v10 = vld [vmem:[#allocation5 + $0x580] ss:$8 sps:$4 sm:$0xff]  }
 0x45e   : > { %3954 = vmatpush2.bf16.msra.mxu1 %v10006_v27 }
 0x45f   : > { %4454 = vmatprep.subr.bf16.mxu1 %v10014_v57  ;;  %4412 = vmatpush2.bf16.msra.mxu0 %v10099_v56  ;;  %v2921_v57 = vpack.c.bf16 %v12927_v30, %v12918_v43 }
 0x461   : > { %3956 = vmatmul.mubr.bf16.vlgmr.msra.gmra.mxu1 %v2597_v28  ;;  %v2841_v28 = vpop.f32.mrf.mxu0 }
 0x462   : > { %3965 = vmatprep.mubr.bf16.mxu1 %v2602_v24  ;;  %4455 = vmatpush1.bf16.msra.mxu1 %v10012_v21  ;;  %v2931_v20 = vpack.c.bf16 %v2841_v28, %v2837_v35 }
 0x463   : > { %4456 = vmatprep.subr.bf16.mxu1 %v10020_v11  ;;  %4414 = vmatmul.mubr.bf16.vlgmr.msra.gmra.mxu0 %v2919_v58  ;;  %v2843_v60 = vpop.f32.mrf.mxu0 }
 0x464   : > { %4423 = vmatprep.mubr.bf16.mxu0 %v2924_v45  ;;  %v2932_v44 = vpack.c.bf16 %v2843_v60, %v2839_v15 }
 0x466   : > { %4457 = vmatpush1.bf16.msra.mxu1 %v10018_v38 }
 0x467   : > { %4458 = vmatprep.subr.bf16.mxu1 %v10026_v36 }
 0x469   : > { %3966 = vmatmul.mubr.bf16.gmra.mxu1 %v2601_v14  ;;  %v10042_v14 = vld [vmem:[#allocation5 + $0x520] ss:$8 sps:$4 sm:$0xff]  }
 0x46a   : > { %3975 = vmatprep.mubr.bf16.mxu1 %v2606_v23  ;;  %4459 = vmatpush1.bf16.msra.mxu1 %v10024_v29 }
 0x46b   : > { %4460 = vmatprep.subr.bf16.mxu1 %v10032_v54  ;;  %4424 = vmatmul.mubr.bf16.gmra.mxu0 %v2923_v46 }
 0x46c   : > { %4433 = vmatprep.mubr.bf16.mxu0 %v2928_v6 }
 0x46e   : > { %4461 = vmatpush1.bf16.msra.mxu1 %v10030_v22 }
 0x46f   : > { %4462 = vmatprep.subr.bf16.mxu1 %v10038_v37 }
 0x471   : > { %3976 = vmatmul.mubr.bf16.gmra.mxu1 %v2605_v2  ;;  %v10060_v2 = vld [vmem:[#allocation5 + $0x5f0] ss:$8 sps:$4 sm:$0xff]  }
 0x472   : > { %3985 = vmatprep.mubr.bf16.mxu1 %v2610_v18  ;;  %4463 = vmatpush1.bf16.msra.mxu1 %v10036_v50 }
 0x473   : > { %4464 = vmatprep.subr.bf16.mxu1 %v10044_v49  ;;  %4434 = vmatmul.mubr.bf16.gmra.mxu0 %v2927_v26 }
 0x474   : > { %4443 = vmatprep.mubr.bf16.mxu0 %v2932_v44 }
 0x476   : > { %4465 = vmatpush1.bf16.msra.mxu1 %v10042_v14 }
 0x477   : > { %4466 = vmatprep.subr.bf16.mxu1 %v10050_v0 }
 0x479   : > { %3986 = vmatmul.mubr.bf16.gmra.mxu1 %v2609_v39  ;;  %v2894_v39 = vpop.f32.mrf.mxu1 }
 0x47a   : > { %4467 = vmatpush1.bf16.msra.mxu1 %v10048_v25  ;;  %4486 = vmatprep.mubr.bf16.mxu1 %v2922_v9  ;;  %v2925_v24 = vpack.c.bf16 %v2894_v39, %v2890_v7 }
 0x47b   : > { %4468 = vmatprep.subr.bf16.mxu1 %v10056_v62  ;;  %4444 = vmatmul.mubr.bf16.gmra.mxu0 %v2931_v20  ;;  %v2896_v5 = vpop.f32.mrf.mxu1 }
 0x47c   : > { %4634 = vmatprep.mubr.bf16.mxu0 %v14343_v52  ;;  %v2926_v27 = vpack.c.bf16 %v2896_v5, %v2892_v3 }
 0x47d   : > { %v2900_v55 = vpop.f32.mrf.mxu1 }
 0x47e   : > { %4469 = vmatpush1.bf16.msra.mxu1 %v10054_v12 }
 0x47f   : > { %4470 = vmatprep.subr.bf16.mxu1 %v10062_v34  ;;  %v2902_v4 = vpop.f32.mrf.mxu1 }
 0x481   : > { %v2904_v16 = vpop.f32.mrf.mxu1 }
 0x482   : > { %4471 = vmatpush2.bf16.msra.mxu1 %v10060_v2  ;;  %v2929_v29 = vpack.c.bf16 %v2904_v16, %v2900_v55 }
 0x483   : > { %4472 = vmatprep.subr.bf16.mxu1 %v10068_v1  ;;  %v2906_v8 = vpop.f32.mrf.mxu1 }
 0x484   : > { %v2930_v58 = vpack.c.bf16 %v2906_v8, %v2902_v4 }
 0x485   : > { %v2910_v56 = vpop.f32.mrf.mxu1 }
 0x486   : > { %4473 = vmatpush2.bf16.msra.mxu1 %v10066_v42 }
 0x487   : > { %4474 = vmatprep.subr.bf16.mxu1 %v10074_v19  ;;  %v2912_v21 = vpop.f32.mrf.mxu1 }
 0x489   : > { %v2914_v45 = vpop.f32.mrf.mxu1 }
 0x48a   : > { %4475 = vmatpush2.bf16.msra.mxu1 %v10072_v33  ;;  %v2933_v46 = vpack.c.bf16 %v2914_v45, %v2910_v56 }
 0x48b   : > { %4476 = vmatprep.subr.bf16.mxu1 %v10080_v40  ;;  %v2916_v38 = vpop.f32.mrf.mxu1 }
 0x48c   : > { %v2934_v15 = vpack.c.bf16 %v2916_v38, %v2912_v21 }
 0x48e   : > { %4477 = vmatpush2.bf16.msra.mxu1 %v10078_v31 }
 0x48f   : > { %4478 = vmatprep.subr.bf16.mxu1 %v10086_v13 }
 0x492   : > { %4479 = vmatpush2.bf16.msra.mxu1 %v10084_v51 }
 0x493   : > { %4480 = vmatprep.subr.bf16.mxu1 %v10092_v47 }
 0x496   : > { %4481 = vmatpush2.bf16.msra.mxu1 %v10090_v61 }
 0x497   : > { %4482 = vmatprep.subr.bf16.mxu1 %v10098_v41 }
 0x49a   : > { %4483 = vmatpush2.bf16.msra.mxu1 %v10096_v53 }
 0x49b   : > { %4484 = vmatprep.subr.bf16.mxu1 %v10104_v63 }
 0x49e   : > { %4485 = vmatpush2.bf16.msra.mxu1 %v10102_v10 }
 0x4a1   : > { %4487 = vmatmul.mubr.bf16.vlgmr.msra.gmra.mxu1 %v2921_v57  ;;  %v3418_v59 = vpop.f32.mrf.mxu0 }
 0x4a2   : > { %4496 = vmatprep.mubr.bf16.mxu1 %v2926_v27 }
 0x4a3   : > { %v3420_v11 = vpop.f32.mrf.mxu0 }
 0x4a5   : > { %v3422_v35 = vpop.f32.mrf.mxu0 }
 0x4a7   : > { %v3424_v36 = vpop.f32.mrf.mxu0 }
 0x4a9   : > { %4497 = vmatmul.mubr.bf16.gmra.mxu1 %v2925_v24  ;;  %v3428_v54 = vpop.f32.mrf.mxu0 }
 0x4aa   : > { %4506 = vmatprep.mubr.bf16.mxu1 %v2930_v58 }
 0x4ab   : > { %v3430_v43 = vpop.f32.mrf.mxu0 }
 0x4ad   : > { %v3432_v23 = vpop.f32.mrf.mxu0 }
 0x4af   : > { %v12942_v6 = vpop.f32.mrf.mxu0 }
 0x4b1   : > { %4507 = vmatmul.mubr.bf16.gmra.mxu1 %v2929_v29  ;;  %v3438_v28 = vpop.f32.mrf.mxu0 }
 0x4b2   : > { %4516 = vmatprep.mubr.bf16.mxu1 %v2934_v15 }
 0x4b3   : > { %v12944_v22 = vpop.f32.mrf.mxu0 }
 0x4b5   : > { %v3442_v37 = vpop.f32.mrf.mxu0 }
 0x4b7   : > { %v12946_v17 = vpop.f32.mrf.mxu0 }
 0x4b9   : > { %4517 = vmatmul.mubr.bf16.gmra.mxu1 %v2933_v46  ;;  %v3448_v60 = vpop.f32.mrf.mxu0 }
 0x4ba   : > { %4697 = vmatprep.mubr.bf16.mxu1 %v14343_v52 }
 0x4bb   : > { %v12948_v50 = vpop.f32.mrf.mxu0 }
 0x4bd   : > { %v12950_v49 = vpop.f32.mrf.mxu0 }
 0x4bf   : > { %v12952_v30 = vpop.f32.mrf.mxu0 }
 0x4e1   : > { %v3884_v26 = vpop.f32.mrf.mxu0  ;;  %v3491_v18 = vpop.f32.mrf.mxu1 }
 0x4e2   : > { %v3492_v44 = vadd.f32 %v3491_v18, %v3418_v59 }
 0x4e3   : > { %v3886_v14 = vpop.f32.mrf.mxu0  ;;  %v3493_v0 = vpop.f32.mrf.mxu1 }
 0x4e4   : > { %v3494_v48 = vadd.f32 %v3493_v0, %v3420_v11  ;;  %v3885_v25 = vadd.f32 %v3884_v26, %v3492_v44 }
 0x4e5   : > { %v3888_v9 = vpop.f32.mrf.mxu0  ;;  %v3495_v62 = vpop.f32.mrf.mxu1 }
 0x4e6   : > { %v3496_v20 = vadd.f32 %v3495_v62, %v3422_v35  ;;  %v3887_v21 = vadd.f32 %v3886_v14, %v3494_v48 }
 0x4e7   : > { %v3497_v12 = vpop.f32.mrf.mxu1  ;;  %v3890_v1 = vpop.f32.mrf.mxu0 }
 0x4e8   : > { %v3498_v34 = vadd.f32 %v3497_v12, %v3424_v36  ;;  %v3889_v2 = vadd.f32 %v3888_v9, %v3496_v20 }
 0x4e9   : > { %v3501_v7 = vpop.f32.mrf.mxu1  ;;  %v3894_v53 = vpop.f32.mrf.mxu0 }
 0x4ea   : > { %v12954_v42 = vadd.f32 %v3501_v7, %v3428_v54  ;;  %v3891_v19 = vadd.f32 %v3890_v1, %v3498_v34 }
 0x4eb   : > { %v3503_v3 = vpop.f32.mrf.mxu1  ;;  %v12974_v16 = vpop.f32.mrf.mxu0 }
 0x4ec   : > { %v12956_v33 = vadd.f32 %v3503_v3, %v3430_v43 }
 0x4ed   : > { %v3505_v40 = vpop.f32.mrf.mxu1  ;;  %v12978_v8 = vpop.f32.mrf.mxu0 }
 0x4ee   : > { %v12958_v39 = vadd.f32 %v3505_v40, %v3432_v23 }
 0x4ef   : > { %v12960_v31 = vpop.f32.mrf.mxu1  ;;  %v12982_v57 = vpop.f32.mrf.mxu0 }
 0x4f1   : > { %v3511_v13 = vpop.f32.mrf.mxu1  ;;  %v12984_v24 = vpop.f32.mrf.mxu0 }
 0x4f2   : > { %v12962_v5 = vadd.f32 %v3511_v13, %v3438_v28 }
 0x4f3   : > { %v12964_v51 = vpop.f32.mrf.mxu1  ;;  %v12986_v15 = vpop.f32.mrf.mxu0 }
 0x4f5   : > { %v3515_v47 = vpop.f32.mrf.mxu1  ;;  %v12988_v29 = vpop.f32.mrf.mxu0 }
 0x4f6   : > { %v12966_v55 = vadd.f32 %v3515_v47, %v3442_v37  ;;  %v4543_v47 = vld [vmem:[%s13948_s8] sm:$0x3] }
 0x4f7   : > { %v12968_v61 = vpop.f32.mrf.mxu1  ;;  %v12990_v54 = vpop.f32.mrf.mxu0 }
 0x4f9   : > { %v3521_v41 = vpop.f32.mrf.mxu1  ;;  %v12992_v46 = vpop.f32.mrf.mxu0 }
 0x4fa   : > { %v12970_v4 = vadd.f32 %v3521_v41, %v3448_v60  ;;  %14376 = vst [vmem:[#allocation55_spill] sm:$0xff] %v12992_v46 }
 0x4fb   : > { %v12972_v63 = vpop.f32.mrf.mxu1  ;;  %v12994_v28 = vpop.f32.mrf.mxu0 }
 0x4fc   : > { %14375 = vst [vmem:[#allocation57_spill] sm:$0xff] %v12970_v4  ;;  %14377 = vst [vmem:[#allocation71_spill] sm:$0xff] %v12994_v28 }
 0x4fd   : > { %v12976_v10 = vpop.f32.mrf.mxu1  ;;  %v12996_v60 = vpop.f32.mrf.mxu0 }
 0x4fe   : > { %14378 = vst [vmem:[#allocation73_spill] sm:$0xff] %v12996_v60 }
 0x4ff   : > { %v12980_v27 = vpop.f32.mrf.mxu1  ;;  %v13000_v18 = vpop.f32.mrf.mxu0 }
 0x500   : > { %14379 = vst [vmem:[#allocation53_spill] sm:$0xff] %v13000_v18 }
 0x521   : > { %v3957_v56 = vpop.f32.mrf.mxu1 }
 0x522   : > { %v3958_v59 = vadd.f32 %v3957_v56, %v3885_v25 }
 0x523   : > { %v3959_v11 = vpop.f32.mrf.mxu1  ;;  %v4415_v14 = vpop.f32.mrf.mxu0 }
 0x524   : > { %v3960_v58 = vadd.f32 %v3959_v11, %v3887_v21 }
 0x525   : > { %v3961_v45 = vpop.f32.mrf.mxu1  ;;  %v4417_v48 = vpop.f32.mrf.mxu0 }
 0x526   : > { %v3962_v35 = vadd.f32 %v3961_v45, %v3889_v2  ;;  %v14384_v45 = vld [vmem:[#allocation82_spill] sm:$0xff] }
 0x527   : > { %v3963_v38 = vpop.f32.mrf.mxu1  ;;  %v4419_v9 = vpop.f32.mrf.mxu0 }
 0x528   : > { %v3964_v36 = vadd.f32 %v3963_v38, %v3891_v19  ;;  %v13022_v38 = vrot.slane %v4543_v47, %v14384_v45 }
 0x529   : > { %v3967_v43 = vpop.f32.mrf.mxu1  ;;  %v4421_v20 = vpop.f32.mrf.mxu0 }
 0x52b   : > { %v3969_v23 = vpop.f32.mrf.mxu1  ;;  %v4425_v34 = vpop.f32.mrf.mxu0 }
 0x52d   : > { %v3971_v37 = vpop.f32.mrf.mxu1  ;;  %v4427_v1 = vpop.f32.mrf.mxu0 }
 0x52f   : > { %v12998_v26 = vpop.f32.mrf.mxu1  ;;  %v4429_v19 = vpop.f32.mrf.mxu0 }
 0x531   : > { %v13002_v44 = vpop.f32.mrf.mxu1  ;;  %v4431_v40 = vpop.f32.mrf.mxu0 }
 0x533   : > { %v13004_v0 = vpop.f32.mrf.mxu1  ;;  %v4435_v21 = vpop.f32.mrf.mxu0 }
 0x535   : > { %v13006_v25 = vpop.f32.mrf.mxu1 }
 0x537   : > { %v13008_v62 = vpop.f32.mrf.mxu1 }
 0x539   : > { %v13010_v12 = vpop.f32.mrf.mxu1 }
 0x53a   : > { %14380 = vst [vmem:[#allocation67_spill] sm:$0xff] %v13010_v12 }
 0x53b   : > { %v13012_v2 = vpop.f32.mrf.mxu1 }
 0x53c   : > { %14381 = vst [vmem:[#allocation69_spill] sm:$0xff] %v13012_v2  ;;  %v4437_v2 = vpop.f32.mrf.mxu0 }
 0x53d   : > { %v13014_v7 = vpop.f32.mrf.mxu1 }
 0x53e   : > { %14382 = vst [vmem:[#allocation51_spill] sm:$0xff] %v13014_v7  ;;  %v13025_v7 = vrot.slane %v4543_v47, %v12443_v32 }
 0x53f   : > { %v13016_v3 = vpop.f32.mrf.mxu1 }
 0x540   : > { %14383 = vst [vmem:[#allocation64_spill] sm:$0xff] %v13016_v3 }
 0x561   : > { %v4488_v13 = vpop.f32.mrf.mxu1 }
 0x562   : > { %v4489_v41 = vadd.f32 %v4488_v13, %v4415_v14  ;;  %v3508_v14 = vadd.f32 %v12960_v31, %v12942_v6 }
 0x563   : > { %v4490_v56 = vpop.f32.mrf.mxu1 }
 0x564   : > { %v4527_v11 = vadd.f32 %v4489_v41, %v3958_v59  ;;  %v4491_v52 = vadd.f32 %v4490_v56, %v4417_v48  ;;  %v3895_v59 = vadd.f32 %v3894_v53, %v12954_v42  ;;  %v4439_v56 = vpop.f32.mrf.mxu0  ;;  %v3899_v42 = vadd.f32 %v12978_v8, %v12958_v39 }
 0x565   : > { %v4492_v18 = vpop.f32.mrf.mxu1  ;;  %v3901_v53 = vadd.f32 %v12982_v57, %v3508_v14  ;;  %v3905_v39 = vadd.f32 %v12984_v24, %v12962_v5 }
 0x566   : > { %v4528_v60 = vadd.f32 %v4491_v52, %v3960_v58  ;;  %v4493_v3 = vadd.f32 %v4492_v18, %v4419_v9  ;;  %v4555_v46 = vadd.f32 %v13022_v38, %v4527_v11  ;;  %v3968_v41 = vadd.f32 %v3967_v43, %v3895_v59 }
 0x567   : > { %v4494_v12 = vpop.f32.mrf.mxu1  ;;  %v3897_v18 = vadd.f32 %v12974_v16, %v12956_v33  ;;  %v3514_v43 = vadd.f32 %v12964_v51, %v12944_v22  ;;  %v3518_v22 = vadd.f32 %v12968_v61, %v12946_v17 }
 0x568   : > { %v4529_v4 = vadd.f32 %v4493_v3, %v3962_v35  ;;  %v4495_v28 = vadd.f32 %v4494_v12, %v4421_v20  ;;  %v4556_v48 = vadd.f32 %v13025_v7, %v4528_v60  ;;  %v4571_v35 = vmax.f32 %v4555_v46, 0.0 }
 0x569   : > { %v4498_v13 = vpop.f32.mrf.mxu1  ;;  %v3970_v31 = vadd.f32 %v3969_v23, %v3897_v18  ;;  %v3972_v46 = vadd.f32 %v3971_v37, %v3899_v42  ;;  %v3974_v23 = vadd.f32 %v12998_v26, %v3901_v53  ;;  %v3978_v37 = vadd.f32 %v13002_v44, %v3905_v39 }
 0x56a   : > { %v4557_v52 = vadd.f32 %v13022_v38, %v4529_v4  ;;  %v4530_v58 = vadd.f32 %v4495_v28, %v3964_v36  ;;  %v4499_v47 = vadd.f32 %v4498_v13, %v4425_v34  ;;  %v4572_v28 = vmax.f32 %v4556_v48, 0.0 }
 0x56b   : > { %v4500_v9 = vpop.f32.mrf.mxu1  ;;  %v3909_v26 = vadd.f32 %v12988_v29, %v12966_v55  ;;  %v3911_v44 = vadd.f32 %v12990_v54, %v3518_v22  ;;  %v3526_v54 = vadd.f32 %v12976_v10, %v12950_v49 }
 0x56c   : > { %v4573_v20 = vmax.f32 %v4557_v52, 0.0  ;;  %v4558_v12 = vadd.f32 %v13025_v7, %v4530_v58  ;;  %v4501_v6 = vadd.f32 %v4500_v9, %v4427_v1  ;;  %v4531_v4 = vadd.f32 %v4499_v47, %v3968_v41  ;;  %v4441_v1 = vpop.f32.mrf.mxu0 }
 0x56d   : > { %v4502_v36 = vpop.f32.mrf.mxu1  ;;  %v3982_v29 = vadd.f32 %v13006_v25, %v3909_v26  ;;  %v3528_v25 = vadd.f32 %v12980_v27, %v12952_v30  ;;  %v14392_v26 = vld [vmem:[#allocation51_spill] sm:$0xff] }
 0x56e   : > { %v13041_v33 = vpack.c.bf16 %v4573_v20, %v4571_v35  ;;  %v4574_v16 = vmax.f32 %v4558_v12, 0.0  ;;  %v4532_v60 = vadd.f32 %v4501_v6, %v3970_v31  ;;  %v4503_v34 = vadd.f32 %v4502_v36, %v4429_v19  ;;  %v4445_v48 = vpop.f32.mrf.mxu0  ;;  %v14385_v31 = vld [vmem:[#allocation71_spill] sm:$0xff] }
 0x56f   : > { %v4504_v3 = vpop.f32.mrf.mxu1  ;;  %v4559_v51 = vadd.f32 %v13022_v38, %v4531_v4  ;;  %v3907_v19 = vadd.f32 %v12986_v15, %v3514_v43  ;;  %v3524_v15 = vadd.f32 %v12972_v63, %v12948_v50  ;;  %v14386_v43 = vld [vmem:[#allocation57_spill] sm:$0xff] }
 0x570   : > { %v4505_v8 = vadd.f32 %v4504_v3, %v4431_v40  ;;  %v13046_v57 = vpack.c.bf16 %v4574_v16, %v4572_v28  ;;  %v4533_v11 = vadd.f32 %v4503_v34, %v3972_v46  ;;  %v4560_v5 = vadd.f32 %v13025_v7, %v4532_v60  ;;  %v4447_v12 = vpop.f32.mrf.mxu0  ;;  %v14387_v28 = vld [vmem:[#allocation55_spill] sm:$0xff]  ;;  %v14388_v46 = vld [vmem:[#allocation69_spill] sm:$0xff] }
 0x571   : > { %v4508_v14 = vpop.f32.mrf.mxu1  ;;  %v3980_v17 = vadd.f32 %v13004_v0, %v3907_v19  ;;  %v3917_v42 = vadd.f32 %v14385_v31, %v3524_v15  ;;  %v3915_v16 = vadd.f32 %v14387_v28, %v14386_v43  ;;  %v10113_v31 = vld [vmem:[#allocation7 + $0x154] ss:$8 sps:$4 sm:$0xff]  }
 0x572   : > { %v4534_v59 = vadd.f32 %v4505_v8, %v3974_v23  ;;  %v4509_v13 = vadd.f32 %v4508_v14, %v4435_v21  ;;  %v4561_v24 = vadd.f32 %v13022_v38, %v4533_v11  ;;  %v4575_v21 = vmax.f32 %v4559_v51, 0.0  ;;  %v4449_v10 = vpop.f32.mrf.mxu0  ;;  %v14389_v23 = vld [vmem:[#allocation67_spill] sm:$0xff]  ;;  %v14390_v8 = vld [vmem:[#allocation73_spill] sm:$0xff] }
 0x573   : > { %v4510_v40 = vpop.f32.mrf.mxu1  ;;  %v4576_v35 = vmax.f32 %v4560_v5, 0.0  ;;  %v3990_v60 = vadd.f32 %v14388_v46, %v3917_v42  ;;  %v3988_v39 = vadd.f32 %v14389_v23, %v3915_v16  ;;  %v3919_v22 = vadd.f32 %v14390_v8, %v3526_v54  ;;  %v14391_v51 = vld [vmem:[#allocation53_spill] sm:$0xff]  ;;  %v10111_v42 = vld [vmem:[#allocation7 + $0x150] ss:$8 sps:$4 sm:$0xff]  }
 0x574   : > { %v4562_v61 = vadd.f32 %v13025_v7, %v4534_v59  ;;  %v4535_v52 = vadd.f32 %v4509_v13, %v3978_v37  ;;  %v4511_v58 = vadd.f32 %v4510_v40, %v4437_v2  ;;  %v4577_v47 = vmax.f32 %v4561_v24, 0.0  ;;  %v14401_v43 = vld [vmem:[#allocation27_spill] sm:$0xff]  ;;  %v10116_v16 = vld [vmem:[#allocation7 + $0x144] ss:$8 sps:$4 sm:$0xff]   ;;  %v10114_v46 = vld [vmem:[#allocation7 + $0x140] ss:$8 sps:$4 sm:$0xff]  }
 0x575   : > { %v4512_v55 = vpop.f32.mrf.mxu1  ;;  %v3984_v2 = vadd.f32 %v13008_v62, %v3911_v44  ;;  %v3921_v11 = vadd.f32 %v14391_v51, %v3528_v25  ;;  %v3992_v5 = vadd.f32 %v14392_v26, %v3919_v22  ;;  %v14396_v54 = vmov 0   ;;  %v10108_v25 = vld [vmem:[#allocation7 + $0x160] ss:$8 sps:$4 sm:$0xff]   ;;  %v10137_v23 = vld [vmem:[#allocation7 + $0x44] ss:$8 sps:$4 sm:$0xff]   ;;  %v14404_v8 = vld [vmem:[#allocation39_spill] sm:$0xff] }
 0x576   : > { %v4578_v41 = vmax.f32 %v4562_v61, 0.0  ;;  %v4536_v18 = vadd.f32 %v4511_v58, %v3980_v17  ;;  %v4513_v9 = vadd.f32 %v4512_v55, %v4439_v56  ;;  %v13063_v20 = vpack.c.bf16 %v4577_v47, %v4575_v21  ;;  %v14393_v61 = vld [vmem:[#allocation64_spill] sm:$0xff]  ;;  %v14405_v22 = vld [vmem:[#allocation37_spill] sm:$0xff] }
 0x577   : > { %v4514_v0 = vpop.f32.mrf.mxu1  ;;  %v4563_v6 = vadd.f32 %v13022_v38, %v4535_v52  ;;  %v3994_v52 = vadd.f32 %v14393_v61, %v3921_v11  ;;  %v14406_v51 = vpack.c.bf16 %v14404_v8, %v14405_v22  ;;  %v10140_v11 = vld [vmem:[#allocation7 + $0x104] ss:$8 sps:$4 sm:$0xff]   ;;  %v10158_v61 = vld [vmem:[#allocation7 + $0x1d4] ss:$8 sps:$4 sm:$0xff]  }
 0x578   : > { %v4537_v50 = vadd.f32 %v4513_v9, %v3982_v29  ;;  %v4515_v63 = vadd.f32 %v4514_v0, %v4441_v1  ;;  %v13072_v53 = vpack.c.bf16 %v4578_v41, %v4576_v35  ;;  %v4564_v4 = vadd.f32 %v13025_v7, %v4536_v18  ;;  %v10149_v26 = vld [vmem:[#allocation7 + $0x24] ss:$8 sps:$4 sm:$0xff]  }
 0x579   : > { %v4518_v56 = vpop.f32.mrf.mxu1  ;;  %v4579_v3 = vmax.f32 %v4563_v6, 0.0  ;;  %v14394_v6 = vld [vmem:[#allocation26_spill] sm:$0xff] }
 0x57a   : > { %v4565_v36 = vadd.f32 %v13022_v38, %v4537_v50  ;;  %v4538_v62 = vadd.f32 %v4515_v63, %v3984_v2  ;;  %v4519_v34 = vadd.f32 %v4518_v56, %v4445_v48  ;;  %v4580_v37 = vmax.f32 %v4564_v4, 0.0  ;;  %v4451_v48 = vpop.f32.mrf.mxu0  ;;  %v14395_v50 = vld [vmem:[#allocation30_spill] sm:$0xff]  ;;  %v14397_v56 = vld [vmem:[#allocation32_spill] sm:$0xff]  ;;  %v14398_v4 = vld [vmem:[#allocation31_spill] sm:$0xff] }
 0x57b   : > { %v4520_v49 = vpop.f32.mrf.mxu1  ;;  %v10110_v63 = vld [vmem:[#allocation7 + $0x164] ss:$8 sps:$4 sm:$0xff]  }
 0x57c   : > { %v4581_v30 = vmax.f32 %v4565_v36, 0.0  ;;  %v4566_v27 = vadd.f32 %v13025_v7, %v4538_v62  ;;  %v4521_v1 = vadd.f32 %v4520_v49, %v4447_v12  ;;  %v4539_v24 = vadd.f32 %v4519_v34, %v3988_v39  ;;  %v14400_v62 = vld [vmem:[#allocation28_spill] sm:$0xff]  ;;  %v10125_v49 = vld [vmem:[#allocation7 + $0x64] ss:$8 sps:$4 sm:$0xff]  }
 0x57d   : > { %v4522_v14 = vpop.f32.mrf.mxu1  ;;  %v14399_v36 = vpack.c.bf16 %v14397_v56, %v14398_v4  ;;  %v14402_v28 = vpack.c.bf16 %v14400_v62, %v14401_v43  ;;  %v10117_v34 = vld [vmem:[#allocation7 + $0x70] ss:$8 sps:$4 sm:$0xff]   ;;  %v10182_v4 = vld [vmem:[#allocation7 + $0x194] ss:$8 sps:$4 sm:$0xff]   ;;  %v10188_v43 = vld [vmem:[#allocation7 + $0x184] ss:$8 sps:$4 sm:$0xff]  }
 0x57e   : > { %v4591_v19 = vpack.c.bf16 %v4581_v30, %v4579_v3  ;;  %v4582_v59 = vmax.f32 %v4566_v27, 0.0  ;;  %v4540_v13 = vadd.f32 %v4521_v1, %v3990_v60  ;;  %v4523_v40 = vadd.f32 %v4522_v14, %v4449_v10  ;;  %v10122_v60 = vld [vmem:[#allocation7 + $0x134] ss:$8 sps:$4 sm:$0xff]   ;;  %v10120_v10 = vld [vmem:[#allocation7 + $0x130] ss:$8 sps:$4 sm:$0xff]  }
 0x57f   : > { %v4524_v17 = vpop.f32.mrf.mxu1  ;;  %v4567_v55 = vadd.f32 %v13022_v38, %v4539_v24  ;;  %v14403_v3 = vld [vmem:[#allocation36_spill] sm:$0xff]  ;;  %v10152_v24 = vld [vmem:[#allocation7 + $0x1e4] ss:$8 sps:$4 sm:$0xff]  }
 0x580   : > { %v4525_v58 = vadd.f32 %v4524_v17, %v4451_v48  ;;  %v4592_v15 = vpack.c.bf16 %v4582_v59, %v4580_v37  ;;  %v4541_v44 = vadd.f32 %v4523_v40, %v3992_v5  ;;  %v4568_v21 = vadd.f32 %v13025_v7, %v4540_v13  ;;  %v10131_v30 = vld [vmem:[#allocation7 + $0x54] ss:$8 sps:$4 sm:$0xff]   ;;  %v10126_v27 = vld [vmem:[#allocation7 + $0x120] ss:$8 sps:$4 sm:$0xff]   ;;  %v10129_v1 = vld [vmem:[#allocation7 + $0x50] ss:$8 sps:$4 sm:$0xff]  }
 0x581   : > { %v4583_v0 = vmax.f32 %v4567_v55, 0.0  ;;  %v10132_v39 = vld [vmem:[#allocation7 + $0x110] ss:$8 sps:$4 sm:$0xff]   ;;  %v10135_v14 = vld [vmem:[#allocation7 + $0x40] ss:$8 sps:$4 sm:$0xff]  }
 0x582   : > { %v4542_v47 = vadd.f32 %v4525_v58, %v3994_v52  ;;  %v4569_v29 = vadd.f32 %v13022_v38, %v4541_v44  ;;  %v4584_v9 = vmax.f32 %v4568_v21, 0.0  ;;  %v10105_v38 = vld [vmem:[#allocation7 + $0x170] ss:$8 sps:$4 sm:$0xff]   ;;  %v10143_v37 = vld [vmem:[#allocation7 + $0x34] ss:$8 sps:$4 sm:$0xff]  }
 0x583   : > { %v10146_v59 = vld [vmem:[#allocation7 + $0x1f4] ss:$8 sps:$4 sm:$0xff]   ;;  %v10141_v13 = vld [vmem:[#allocation7 + $0x30] ss:$8 sps:$4 sm:$0xff]   ;;  %v10147_v40 = vld [vmem:[#allocation7 + $0x20] ss:$8 sps:$4 sm:$0xff]  }
 0x584   : > { %v4570_v41 = vadd.f32 %v13025_v7, %v4542_v47  ;;  %v4585_v18 = vmax.f32 %v4569_v29, 0.0  ;;  %v10107_v7 = vld [vmem:[#allocation7 + $0x174] ss:$8 sps:$4 sm:$0xff]   ;;  %v10144_v5 = vld [vmem:[#allocation7 + $0x1f0] ss:$8 sps:$4 sm:$0xff]  }
 0x585   : > { %v10155_v48 = vld [vmem:[#allocation7 + $0x14] ss:$8 sps:$4 sm:$0xff]   ;;  %v10150_v17 = vld [vmem:[#allocation7 + $0x1e0] ss:$8 sps:$4 sm:$0xff]   ;;  %v10153_v52 = vld [vmem:[#allocation7 + $0x10] ss:$8 sps:$4 sm:$0xff]  }
 0x586   : > { %v4586_v35 = vmax.f32 %v4570_v41, 0.0  ;;  %v4593_v2 = vpack.c.bf16 %v4585_v18, %v4583_v0  ;;  %v10161_v58 = vld [vmem:[#allocation7 + $0x4] ss:$8 sps:$4 sm:$0xff]   ;;  %v10159_v21 = vld [vmem:[#allocation7] ss:$8 sps:$4 sm:$0xff]  }
 0x587   : > { %v10164_v44 = vld [vmem:[#allocation7 + $0x1c4] ss:$8 sps:$4 sm:$0xff]   ;;  %v10167_v47 = vld [vmem:[#allocation7 + $0xf4] ss:$8 sps:$4 sm:$0xff]   ;;  %v10162_v55 = vld [vmem:[#allocation7 + $0x1c0] ss:$8 sps:$4 sm:$0xff]  }
 0x588   : > { %v4594_v12 = vpack.c.bf16 %v4586_v35, %v4584_v9  ;;  %v10170_v29 = vld [vmem:[#allocation7 + $0x1b4] ss:$8 sps:$4 sm:$0xff]   ;;  %v10165_v41 = vld [vmem:[#allocation7 + $0xf0] ss:$8 sps:$4 sm:$0xff]   ;;  %v10173_v18 = vld [vmem:[#allocation7 + $0xe4] ss:$8 sps:$4 sm:$0xff]  }
 0x589   : > { %v10168_v9 = vld [vmem:[#allocation7 + $0x1b0] ss:$8 sps:$4 sm:$0xff]   ;;  %v10176_v35 = vld [vmem:[#allocation7 + $0x1a4] ss:$8 sps:$4 sm:$0xff]   ;;  %v10171_v0 = vld [vmem:[#allocation7 + $0xe0] ss:$8 sps:$4 sm:$0xff]  }
 0x58a   : > { %4610 = vmatprep.subr.bf16.mxu0 %v4594_v12  ;;  %4673 = vmatprep.subr.bf16.mxu1 %v4594_v12  ;;  %v10180_v56 = vld [vmem:[#allocation7 + $0x190] ss:$8 sps:$4 sm:$0xff]   ;;  %v10200_v62 = vld [vmem:[#allocation7 + $0x94] ss:$8 sps:$4 sm:$0xff]  }
 0x58b   : > { %4611 = vmatpush1.bf16.msra.mxu0 %v4593_v2  ;;  %4674 = vmatpush1.bf16.msra.mxu1 %v4593_v2 }
 0x58c   : > { %4612 = vmatprep.subr.bf16.mxu0 %v4592_v15  ;;  %4675 = vmatprep.subr.bf16.mxu1 %v4592_v15 }
 0x58f   : > { %4613 = vmatpush1.bf16.msra.mxu0 %v4591_v19  ;;  %4676 = vmatpush1.bf16.msra.mxu1 %v4591_v19 }
 0x590   : > { %4614 = vmatprep.subr.bf16.mxu0 %v13072_v53  ;;  %4677 = vmatprep.subr.bf16.mxu1 %v13072_v53 }
 0x593   : > { %4615 = vmatpush1.bf16.msra.mxu0 %v13063_v20  ;;  %4678 = vmatpush1.bf16.msra.mxu1 %v13063_v20 }
 0x594   : > { %4616 = vmatprep.subr.bf16.mxu0 %v13046_v57  ;;  %4679 = vmatprep.subr.bf16.mxu1 %v13046_v57 }
 0x597   : > { %4617 = vmatpush1.bf16.msra.mxu0 %v13041_v33  ;;  %4680 = vmatpush1.bf16.msra.mxu1 %v13041_v33 }
 0x598   : > { %4736 = vmatprep.subr.bf16.mxu0 %v4594_v12  ;;  %5010 = vmatprep.subr.bf16.mxu1 %v10107_v7  ;;  %v10179_v12 = vld [vmem:[#allocation7 + $0xd4] ss:$8 sps:$4 sm:$0xff]   ;;  %v10177_v7 = vld [vmem:[#allocation7 + $0xd0] ss:$8 sps:$4 sm:$0xff]  }
 0x59a   : > { %8661 = vmatmul.mubr.msk.bf16.vlgmr.msra.gmra.mxu1 %vm4595_vm7, %v14394_v6  ;;  %8659 = vmatmul.mubr.msk.bf16.vlgmr.msra.gmra.mxu0 %vm4595_vm7, %v14395_v50 }
 0x59b   : > { %4737 = vmatpush1.bf16.msra.mxu0 %v4593_v2  ;;  %4644 = vmatprep.mubr.bf16.mxu0 %v14396_v54  ;;  %v10174_v2 = vld [vmem:[#allocation7 + $0x1a0] ss:$8 sps:$4 sm:$0xff]  }
 0x59c   : > { %4738 = vmatprep.subr.bf16.mxu0 %v4592_v15  ;;  %4707 = vmatprep.mubr.bf16.mxu1 %v14396_v54  ;;  %v10156_v15 = vld [vmem:[#allocation7 + $0x1d0] ss:$8 sps:$4 sm:$0xff]  }
 0x59d   : > { %5011 = vmatpush1.bf16.msra.mxu1 %v10105_v38  ;;  %v10185_v38 = vld [vmem:[#allocation7 + $0xc4] ss:$8 sps:$4 sm:$0xff]  }
 0x59e   : > { %5012 = vmatprep.subr.bf16.mxu1 %v10110_v63  ;;  %v10183_v63 = vld [vmem:[#allocation7 + $0xc0] ss:$8 sps:$4 sm:$0xff]  }
 0x59f   : > { %4739 = vmatpush1.bf16.msra.mxu0 %v4591_v19  ;;  %v10138_v19 = vld [vmem:[#allocation7 + $0x100] ss:$8 sps:$4 sm:$0xff]  }
 0x5a0   : > { %4740 = vmatprep.subr.bf16.mxu0 %v13072_v53  ;;  %v10119_v53 = vld [vmem:[#allocation7 + $0x74] ss:$8 sps:$4 sm:$0xff]  }
 0x5a1   : > { %5013 = vmatpush1.bf16.msra.mxu1 %v10108_v25  ;;  %v10191_v25 = vld [vmem:[#allocation7 + $0xb4] ss:$8 sps:$4 sm:$0xff]  }
 0x5a2   : > { %8660 = vmatmul.mubr.msk.bf16.gmra.mxu0 %vm4595_vm7, %v14399_v36  ;;  %8662 = vmatmul.mubr.msk.bf16.gmra.mxu1 %vm4595_vm7, %v14402_v28  ;;  %v10192_v36 = vld [vmem:[#allocation7 + $0xa0] ss:$8 sps:$4 sm:$0xff]  }
 0x5a3   : > { %4741 = vmatpush1.bf16.msra.mxu0 %v13063_v20  ;;  %4760 = vmatprep.mubr.bf16.mxu0 %v14396_v54  ;;  %v10128_v20 = vld [vmem:[#allocation7 + $0x124] ss:$8 sps:$4 sm:$0xff]   ;;  %v10186_v28 = vld [vmem:[#allocation7 + $0x180] ss:$8 sps:$4 sm:$0xff]  }
 0x5a4   : > { %4742 = vmatprep.subr.bf16.mxu0 %v13046_v57  ;;  %5014 = vmatprep.subr.bf16.mxu1 %v10113_v31  ;;  %v10123_v57 = vld [vmem:[#allocation7 + $0x60] ss:$8 sps:$4 sm:$0xff]   ;;  %v10189_v31 = vld [vmem:[#allocation7 + $0xb0] ss:$8 sps:$4 sm:$0xff]  }
 0x5a5   : > { %5015 = vmatpush1.bf16.msra.mxu1 %v10111_v42  ;;  %v10194_v42 = vld [vmem:[#allocation7 + $0xa4] ss:$8 sps:$4 sm:$0xff]  }
 0x5a6   : > { %5016 = vmatprep.subr.bf16.mxu1 %v10116_v16  ;;  %v10198_v16 = vld [vmem:[#allocation7 + $0x90] ss:$8 sps:$4 sm:$0xff]  }
 0x5a7   : > { %4743 = vmatpush1.bf16.msra.mxu0 %v13041_v33  ;;  %v10134_v33 = vld [vmem:[#allocation7 + $0x114] ss:$8 sps:$4 sm:$0xff]  }
 0x5a8   : > { %5223 = vmatprep.subr.bf16.mxu0 %v10119_v53  ;;  %v10206_v53 = vld [vmem:[#allocation7 + $0x84] ss:$8 sps:$4 sm:$0xff]  }
 0x5a9   : > { %5017 = vmatpush1.bf16.msra.mxu1 %v10114_v46  ;;  %v10197_v46 = vld [vmem:[#allocation7 + $0x274] ss:$8 sps:$4 sm:$0xff]  }
 0x5aa   : > { %8663 = vmatmul.mubr.msk.bf16.vlgmr.msra.gmra.mxu0 %vm4595_vm7, %v14403_v3  ;;  %5018 = vmatprep.subr.bf16.mxu1 %v10122_v60  ;;  %v10204_v60 = vld [vmem:[#allocation7 + $0x80] ss:$8 sps:$4 sm:$0xff]  }
 0x5ab   : > { %4770 = vmatprep.mubr.bf16.mxu0 %v14396_v54  ;;  %5224 = vmatpush1.bf16.msra.mxu0 %v10117_v34 }
 0x5ac   : > { %5225 = vmatprep.subr.bf16.mxu0 %v10125_v49 }
 0x5ad   : > { %5019 = vmatpush1.bf16.msra.mxu1 %v10120_v10 }
 0x5ae   : > { %5020 = vmatprep.subr.bf16.mxu1 %v10128_v20 }
 0x5af   : > { %5226 = vmatpush1.bf16.msra.mxu0 %v10123_v57 }
 0x5b0   : > { %5227 = vmatprep.subr.bf16.mxu0 %v10131_v30 }
 0x5b1   : > { %5021 = vmatpush1.bf16.msra.mxu1 %v10126_v27 }
 0x5b2   : > { %8664 = vmatmul.mubr.msk.bf16.gmra.mxu0 %vm4595_vm7, %v14406_v51  ;;  %5022 = vmatprep.subr.bf16.mxu1 %v10134_v33  ;;  %v10203_v51 = vld [vmem:[#allocation7 + $0x264] ss:$8 sps:$4 sm:$0xff]  }
 0x5b3   : > { %5228 = vmatpush1.bf16.msra.mxu0 %v10129_v1 }
 0x5b4   : > { %5229 = vmatprep.subr.bf16.mxu0 %v10137_v23 }
 0x5b5   : > { %5023 = vmatpush1.bf16.msra.mxu1 %v10132_v39  ;;  %v10195_v39 = vld [vmem:[#allocation7 + $0x270] ss:$8 sps:$4 sm:$0xff]  }
 0x5b6   : > { %5024 = vmatprep.subr.bf16.mxu1 %v10140_v11 }
 0x5b7   : > { %5230 = vmatpush1.bf16.msra.mxu0 %v10135_v14 }
 0x5b8   : > { %5231 = vmatprep.subr.bf16.mxu0 %v10143_v37 }
 0x5b9   : > { %5025 = vmatpush1.bf16.msra.mxu1 %v10138_v19 }
 0x5ba   : > { %5026 = vmatprep.subr.bf16.mxu1 %v10146_v59  ;;  %v10201_v59 = vld [vmem:[#allocation7 + $0x260] ss:$8 sps:$4 sm:$0xff]  }
 0x5bb   : > { %5232 = vmatpush1.bf16.msra.mxu0 %v10141_v13  ;;  %v10209_v13 = vld [vmem:[#allocation7 + $0x254] ss:$8 sps:$4 sm:$0xff]  }
 0x5bc   : > { %5233 = vmatprep.subr.bf16.mxu0 %v10149_v26 }
 0x5bd   : > { %5027 = vmatpush2.bf16.msra.mxu1 %v10144_v5 }
 0x5be   : > { %5028 = vmatprep.subr.bf16.mxu1 %v10152_v24 }
 0x5bf   : > { %5234 = vmatpush1.bf16.msra.mxu0 %v10147_v40 }
 0x5c0   : > { %5235 = vmatprep.subr.bf16.mxu0 %v10155_v48 }
 0x5c1   : > { %5029 = vmatpush2.bf16.msra.mxu1 %v10150_v17 }
 0x5c2   : > { %5030 = vmatprep.subr.bf16.mxu1 %v10158_v61  ;;  %v10207_v61 = vld [vmem:[#allocation7 + $0x250] ss:$8 sps:$4 sm:$0xff]  }
 0x5c3   : > { %5236 = vmatpush1.bf16.msra.mxu0 %v10153_v52 }
 0x5c4   : > { %5237 = vmatprep.subr.bf16.mxu0 %v10161_v58 }
 0x5c5   : > { %5031 = vmatpush2.bf16.msra.mxu1 %v10156_v15  ;;  %v10212_v15 = vld [vmem:[#allocation7 + $0x244] ss:$8 sps:$4 sm:$0xff]  }
 0x5c6   : > { %5032 = vmatprep.subr.bf16.mxu1 %v10164_v44 }
 0x5c7   : > { %5238 = vmatpush1.bf16.msra.mxu0 %v10159_v21 }
 0x5c8   : > { %5239 = vmatprep.subr.bf16.mxu0 %v10167_v47  ;;  %v10210_v47 = vld [vmem:[#allocation7 + $0x240] ss:$8 sps:$4 sm:$0xff]  }
 0x5c9   : > { %5033 = vmatpush2.bf16.msra.mxu1 %v10162_v55  ;;  %v10215_v55 = vld [vmem:[#allocation7 + $0x234] ss:$8 sps:$4 sm:$0xff]  }
 0x5ca   : > { %5034 = vmatprep.subr.bf16.mxu1 %v10170_v29 }
 0x5cb   : > { %5240 = vmatpush2.bf16.msra.mxu0 %v10165_v41 }
 0x5cc   : > { %5241 = vmatprep.subr.bf16.mxu0 %v10173_v18  ;;  %v10213_v18 = vld [vmem:[#allocation7 + $0x230] ss:$8 sps:$4 sm:$0xff]  }
 0x5cd   : > { %5035 = vmatpush2.bf16.msra.mxu1 %v10168_v9 }
 0x5ce   : > { %5036 = vmatprep.subr.bf16.mxu1 %v10176_v35  ;;  %v10218_v35 = vld [vmem:[#allocation7 + $0x224] ss:$8 sps:$4 sm:$0xff]  }
 0x5cf   : > { %5242 = vmatpush2.bf16.msra.mxu0 %v10171_v0  ;;  %v10216_v0 = vld [vmem:[#allocation7 + $0x220] ss:$8 sps:$4 sm:$0xff]  }
 0x5d0   : > { %5243 = vmatprep.subr.bf16.mxu0 %v10179_v12  ;;  %v10221_v12 = vld [vmem:[#allocation7 + $0x214] ss:$8 sps:$4 sm:$0xff]  }
 0x5d1   : > { %5037 = vmatpush2.bf16.msra.mxu1 %v10174_v2  ;;  %v10219_v2 = vld [vmem:[#allocation7 + $0x210] ss:$8 sps:$4 sm:$0xff]  }
 0x5d2   : > { %5038 = vmatprep.subr.bf16.mxu1 %v10182_v4  ;;  %v10231_v4 = vld [vmem:[#allocation7 + $0x2d0] ss:$8 sps:$4 sm:$0xff]  }
 0x5d3   : > { %5244 = vmatpush2.bf16.msra.mxu0 %v10177_v7  ;;  %v10224_v7 = vld [vmem:[#allocation7 + $0x204] ss:$8 sps:$4 sm:$0xff]  }
 0x5d4   : > { %5245 = vmatprep.subr.bf16.mxu0 %v10185_v38  ;;  %v10222_v38 = vld [vmem:[#allocation7 + $0x200] ss:$8 sps:$4 sm:$0xff]  }
 0x5d5   : > { %5039 = vmatpush2.bf16.msra.mxu1 %v10180_v56  ;;  %v10233_v56 = vld [vmem:[#allocation7 + $0x2d4] ss:$8 sps:$4 sm:$0xff]  }
 0x5d6   : > { %5040 = vmatprep.subr.bf16.mxu1 %v10188_v43  ;;  %v10239_v43 = vld [vmem:[#allocation7 + $0x2b4] ss:$8 sps:$4 sm:$0xff]  }
 0x5d7   : > { %5246 = vmatpush2.bf16.msra.mxu0 %v10183_v63  ;;  %v10227_v63 = vld [vmem:[#allocation7 + $0x2f4] ss:$8 sps:$4 sm:$0xff]  }
 0x5d8   : > { %5247 = vmatprep.subr.bf16.mxu0 %v10191_v25  ;;  %v10225_v25 = vld [vmem:[#allocation7 + $0x2f0] ss:$8 sps:$4 sm:$0xff]  }
 0x5d9   : > { %5041 = vmatpush2.bf16.msra.mxu1 %v10186_v28  ;;  %v10237_v28 = vld [vmem:[#allocation7 + $0x2b0] ss:$8 sps:$4 sm:$0xff]  }
 0x5da   : > { %5469 = vmatprep.subr.bf16.mxu1 %v10197_v46  ;;  %v10240_v46 = vld [vmem:[#allocation7 + $0x2a0] ss:$8 sps:$4 sm:$0xff]  }
 0x5db   : > { %5248 = vmatpush2.bf16.msra.mxu0 %v10189_v31  ;;  %v10230_v31 = vld [vmem:[#allocation7 + $0x2e4] ss:$8 sps:$4 sm:$0xff]  }
 0x5dc   : > { %5249 = vmatprep.subr.bf16.mxu0 %v10194_v42  ;;  %v10228_v42 = vld [vmem:[#allocation7 + $0x2e0] ss:$8 sps:$4 sm:$0xff]  }
 0x5df   : > { %5250 = vmatpush2.bf16.msra.mxu0 %v10192_v36  ;;  %v10236_v36 = vld [vmem:[#allocation7 + $0x2c4] ss:$8 sps:$4 sm:$0xff]  }
 0x5e0   : > { %5251 = vmatprep.subr.bf16.mxu0 %v10200_v62  ;;  %v10234_v62 = vld [vmem:[#allocation7 + $0x2c0] ss:$8 sps:$4 sm:$0xff]  }
 0x5e3   : > { %5252 = vmatpush2.bf16.msra.mxu0 %v10198_v16  ;;  %v10242_v16 = vld [vmem:[#allocation7 + $0x2a4] ss:$8 sps:$4 sm:$0xff]  }
 0x5e4   : > { %5253 = vmatprep.subr.bf16.mxu0 %v10206_v53 }
 0x5e7   : > { %5254 = vmatpush2.bf16.msra.mxu0 %v10204_v60  ;;  %v10245_v60 = vld [vmem:[#allocation7 + $0x294] ss:$8 sps:$4 sm:$0xff]  }
 0x65a   : > { %v4699_v34 = vpop.f32.mrf.mxu1  ;;  %v4636_v49 = vpop.f32.mrf.mxu0 }
 0x65c   : > { %v4701_v10 = vpop.f32.mrf.mxu1  ;;  %v4638_v20 = vpop.f32.mrf.mxu0 }
 0x65e   : > { %v4703_v57 = vpop.f32.mrf.mxu1  ;;  %v4640_v30 = vpop.f32.mrf.mxu0 }
 0x65f   : > { %v4655_v33 = vpack.c.bf16 %v4640_v30, %v4636_v49  ;;  %v4718_v22 = vpack.c.bf16 %v4703_v57, %v4699_v34  ;;  %v10243_v49 = vld [vmem:[#allocation7 + $0x290] ss:$8 sps:$4 sm:$0xff]   ;;  %v10246_v57 = vld [vmem:[#allocation7 + $0x280] ss:$8 sps:$4 sm:$0xff]  }
 0x660   : > { %v4705_v27 = vpop.f32.mrf.mxu1  ;;  %v4642_v1 = vpop.f32.mrf.mxu0 }
 0x661   : > { %v4719_v23 = vpack.c.bf16 %v4705_v27, %v4701_v10  ;;  %v4656_v8 = vpack.c.bf16 %v4642_v1, %v4638_v20  ;;  %v10248_v10 = vld [vmem:[#allocation7 + $0x284] ss:$8 sps:$4 sm:$0xff]  }
 0x662   : > { %v4646_v11 = vpop.f32.mrf.mxu0  ;;  %v4709_v14 = vpop.f32.mrf.mxu1 }
 0x663   : > { %5042 = vmatprep.mubr.bf16.mxu1 %v4719_v23  ;;  %5255 = vmatprep.mubr.bf16.mxu0 %v4656_v8  ;;  %v10254_v23 = vld [vmem:[#allocation8 + $0x78] sm:$0xff]   ;;  %v10258_v8 = vld [vmem:[#allocation8 + $0x70] sm:$0xff]  }
 0x664   : > { %5043 = vmatmul.mubr.bf16.vlgmr.msra.gmra.mxu1 %v4718_v22  ;;  %5256 = vmatmul.mubr.bf16.vlgmr.msra.gmra.mxu0 %v4655_v33  ;;  %v4648_v37 = vpop.f32.mrf.mxu0  ;;  %v4711_v19 = vpop.f32.mrf.mxu1  ;;  %v10260_v22 = vld [vmem:[#allocation8 + $0x30] sm:$0xff]  }
 0x665   : > { %5470 = vmatpush1.bf16.msra.mxu1 %v10195_v39  ;;  %v10256_v39 = vld [vmem:[#allocation8 + $0x38] sm:$0xff]  }
 0x666   : > { %5471 = vmatprep.subr.bf16.mxu1 %v10203_v51  ;;  %v4650_v26 = vpop.f32.mrf.mxu0  ;;  %v4713_v5 = vpop.f32.mrf.mxu1 }
 0x667   : > { %v4657_v24 = vpack.c.bf16 %v4650_v26, %v4646_v11  ;;  %v4720_v40 = vpack.c.bf16 %v4713_v5, %v4709_v14 }
 0x668   : > { %v4652_v48 = vpop.f32.mrf.mxu0  ;;  %v4715_v17 = vpop.f32.mrf.mxu1 }
 0x669   : > { %5472 = vmatpush1.bf16.msra.mxu1 %v10201_v59  ;;  %v4658_v52 = vpack.c.bf16 %v4652_v48, %v4648_v37  ;;  %v4721_v58 = vpack.c.bf16 %v4715_v17, %v4711_v19 }
 0x66a   : > { %5473 = vmatprep.subr.bf16.mxu1 %v10209_v13  ;;  %v13123_v44 = vpop.f32.mrf.mxu0 }
 0x66b   : > { %5052 = vmatprep.mubr.bf16.mxu1 %v4721_v58  ;;  %5265 = vmatprep.mubr.bf16.mxu0 %v4658_v52 }
 0x66c   : > { %v4764_v21 = vpop.f32.mrf.mxu0  ;;  %5053 = vmatmul.mubr.bf16.gmra.mxu1 %v4720_v40  ;;  %5266 = vmatmul.mubr.bf16.gmra.mxu0 %v4657_v24 }
 0x66d   : > { %5474 = vmatpush1.bf16.msra.mxu1 %v10207_v61  ;;  %5596 = vmatprep.mubr.bf16.mxu0 %v14396_v54 }
 0x66e   : > { %5475 = vmatprep.subr.bf16.mxu1 %v10212_v15  ;;  %v4766_v29 = vpop.f32.mrf.mxu0 }
 0x66f   : > { %v4781_v33 = vpack.c.bf16 %v4766_v29, %v13123_v44  ;;  %v5530_v29 = vld [vmem:[%s13949_s9] sm:$0x3] }
 0x670   : > { %v4768_v41 = vpop.f32.mrf.mxu0 }
 0x671   : > { %5476 = vmatpush1.bf16.msra.mxu1 %v10210_v47  ;;  %v4782_v9 = vpack.c.bf16 %v4768_v41, %v4764_v21 }
 0x672   : > { %5477 = vmatprep.subr.bf16.mxu1 %v10215_v55  ;;  %v4772_v53 = vpop.f32.mrf.mxu0 }
 0x673   : > { %5501 = vmatprep.mubr.bf16.mxu1 %v4782_v9 }
 0x674   : > { %v4774_v34 = vpop.f32.mrf.mxu0 }
 0x675   : > { %5478 = vmatpush1.bf16.msra.mxu1 %v10213_v18 }
 0x676   : > { %5479 = vmatprep.subr.bf16.mxu1 %v10218_v35  ;;  %v4776_v20 = vpop.f32.mrf.mxu0 }
 0x677   : > { %v4783_v1 = vpack.c.bf16 %v4776_v20, %v4772_v53 }
 0x678   : > { %v4778_v30 = vpop.f32.mrf.mxu0 }
 0x679   : > { %5480 = vmatpush1.bf16.msra.mxu1 %v10216_v0  ;;  %v4784_v27 = vpack.c.bf16 %v4778_v30, %v4774_v34 }
 0x67a   : > { %5481 = vmatprep.subr.bf16.mxu1 %v10221_v12 }
 0x67d   : > { %5482 = vmatpush1.bf16.msra.mxu1 %v10219_v2 }
 0x67e   : > { %5483 = vmatprep.subr.bf16.mxu1 %v10224_v7 }
 0x681   : > { %5484 = vmatpush1.bf16.msra.mxu1 %v10222_v38 }
 0x682   : > { %5485 = vmatprep.subr.bf16.mxu1 %v10227_v63  ;;  %v5535_v63 = vrot.slane %v5530_v29, %v14384_v45 }
 0x685   : > { %5486 = vmatpush2.bf16.msra.mxu1 %v10225_v25 }
 0x686   : > { %5487 = vmatprep.subr.bf16.mxu1 %v10230_v31 }
 0x689   : > { %5488 = vmatpush2.bf16.msra.mxu1 %v10228_v42 }
 0x68a   : > { %5489 = vmatprep.subr.bf16.mxu1 %v10233_v56  ;;  %v5539_v56 = vrot.slane %v5530_v29, %v12443_v32  ;;  %v10265_v29 = vld [vmem:[#allocation8 + $0xd0] sm:$0xff]  }
 0x68d   : > { %5490 = vmatpush2.bf16.msra.mxu1 %v10231_v4 }
 0x68e   : > { %5491 = vmatprep.subr.bf16.mxu1 %v10236_v36 }
 0x691   : > { %5492 = vmatpush2.bf16.msra.mxu1 %v10234_v62 }
 0x692   : > { %5493 = vmatprep.subr.bf16.mxu1 %v10239_v43 }
 0x695   : > { %5494 = vmatpush2.bf16.msra.mxu1 %v10237_v28 }
 0x696   : > { %5495 = vmatprep.subr.bf16.mxu1 %v10242_v16 }
 0x699   : > { %5496 = vmatpush2.bf16.msra.mxu1 %v10240_v46 }
 0x69a   : > { %5497 = vmatprep.subr.bf16.mxu1 %v10245_v60 }
 0x69d   : > { %5498 = vmatpush2.bf16.msra.mxu1 %v10243_v49 }
 0x69e   : > { %5499 = vmatprep.subr.bf16.mxu1 %v10248_v10 }
 0x6a1   : > { %5500 = vmatpush2.bf16.msra.mxu1 %v10246_v57 }
 0x6a2   : > { %9127 = vmatprep.subr.bf16.mxu1 %v10254_v23 }
 0x6a4   : > { %5502 = vmatmul.mubr.bf16.vlgmr.msra.gmra.mxu1 %v4781_v33 }
 0x6a5   : > { %5511 = vmatprep.mubr.bf16.mxu1 %v4784_v27  ;;  %9128 = vmatpush3.bf16.msra.mxu1 %v10256_v39 }
 0x6a6   : > { %9129 = vmatprep.subr.bf16.mxu1 %v10258_v8 }
 0x6a9   : > { %9130 = vmatpush3.bf16.msra.mxu1 %v10260_v22 }
 0x6ac   : > { %5512 = vmatmul.mubr.bf16.gmra.mxu1 %v4783_v1 }
 0x724   : > { %v5044_v51 = vpop.f32.mrf.mxu1  ;;  %v5257_v37 = vpop.f32.mrf.mxu0 }
 0x725   : > { %v5258_v62 = vadd.f32 %v5257_v37, %v5044_v51 }
 0x726   : > { %v5046_v11 = vpop.f32.mrf.mxu1  ;;  %v5259_v13 = vpop.f32.mrf.mxu0 }
 0x727   : > { %v5260_v0 = vadd.f32 %v5259_v13, %v5046_v11  ;;  %v10250_v13 = vld [vmem:[#allocation8 + $0xb8] sm:$0xff]  }
 0x728   : > { %v5048_v14 = vpop.f32.mrf.mxu1  ;;  %v5261_v5 = vpop.f32.mrf.mxu0 }
 0x729   : > { %v5262_v38 = vadd.f32 %v5261_v5, %v5048_v14  ;;  %v10253_v5 = vld [vmem:[#allocation8 + $0xe8] sm:$0xff]  }
 0x72a   : > { %v5050_v19 = vpop.f32.mrf.mxu1  ;;  %v5263_v40 = vpop.f32.mrf.mxu0 }
 0x72b   : > { %v5264_v55 = vadd.f32 %v5263_v40, %v5050_v19  ;;  %v10259_v40 = vld [vmem:[#allocation8 + $0xa0] sm:$0xff]  }
 0x72c   : > { %v5054_v59 = vpop.f32.mrf.mxu1  ;;  %v5267_v17 = vpop.f32.mrf.mxu0 }
 0x72d   : > { %v5268_v18 = vadd.f32 %v5267_v17, %v5054_v59  ;;  %v10249_v59 = vld [vmem:[#allocation8 + $0xf8] sm:$0xff]   ;;  %v10266_v17 = vld [vmem:[#allocation8 + $0x60] sm:$0xff]  }
 0x72e   : > { %v5056_v26 = vpop.f32.mrf.mxu1  ;;  %v5269_v58 = vpop.f32.mrf.mxu0 }
 0x72f   : > { %v5270_v41 = vadd.f32 %v5269_v58, %v5056_v26  ;;  %v10251_v26 = vld [vmem:[#allocation8 + $0xf0] sm:$0xff]  }
 0x730   : > { %v5058_v24 = vpop.f32.mrf.mxu1  ;;  %v5271_v21 = vpop.f32.mrf.mxu0  ;;  %v10274_v58 = vld [vmem:[#allocation8 + $0x50] sm:$0xff]  }
 0x731   : > { %v5272_v2 = vadd.f32 %v5271_v21, %v5058_v24  ;;  %v10255_v24 = vld [vmem:[#allocation8 + $0xa8] sm:$0xff]   ;;  %v10263_v21 = vld [vmem:[#allocation8 + $0x98] sm:$0xff]  }
 0x732   : > { %v5060_v48 = vpop.f32.mrf.mxu1  ;;  %v5273_v9 = vpop.f32.mrf.mxu0 }
 0x733   : > { %v5274_v4 = vadd.f32 %v5273_v9, %v5060_v48  ;;  %v10264_v48 = vld [vmem:[#allocation8 + $0x28] sm:$0xff]   ;;  %v10283_v9 = vld [vmem:[#allocation8] sm:$0xff]  }
 0x764   : > { %v5503_v61 = vpop.f32.mrf.mxu1 }
 0x765   : > { %v5522_v34 = vadd.f32 %v5503_v61, %v5258_v62  ;;  %v10268_v61 = vld [vmem:[#allocation8 + $0x20] sm:$0xff]  }
 0x766   : > { %v5505_v52 = vpop.f32.mrf.mxu1 }
 0x767   : > { %v5523_v42 = vadd.f32 %v5505_v52, %v5260_v0  ;;  %v5542_v23 = vadd.f32 %v5535_v63, %v5522_v34  ;;  %v10272_v52 = vld [vmem:[#allocation8 + $0x18] sm:$0xff]   ;;  %v10271_v0 = vld [vmem:[#allocation8 + $0x88] sm:$0xff]  }
 0x768   : > { %v5507_v15 = vpop.f32.mrf.mxu1 }
 0x769   : > { %v5524_v43 = vadd.f32 %v5507_v15, %v5262_v38  ;;  %v5543_v10 = vadd.f32 %v5539_v56, %v5523_v42  ;;  %v5550_v37 = vmax.f32 %v5542_v23, 0.0  ;;  %v10276_v15 = vld [vmem:[#allocation8 + $0x10] sm:$0xff]   ;;  %v10278_v38 = vld [vmem:[#allocation8 + $0x178] sm:$0xff]   ;;  %v10288_v23 = vld [vmem:[#allocation8 + $0x120] sm:$0xff]  }
 0x76a   : > { %v5509_v44 = vpop.f32.mrf.mxu1 }
 0x76b   : > { %v5525_v12 = vadd.f32 %v5509_v44, %v5264_v55  ;;  %v5544_v57 = vadd.f32 %v5535_v63, %v5524_v43  ;;  %v5551_v8 = vmax.f32 %v5543_v10, 0.0  ;;  %v10261_v44 = vld [vmem:[#allocation8 + $0xd8] sm:$0xff]   ;;  %v10279_v55 = vld [vmem:[#allocation8 + $0x8] sm:$0xff]   ;;  %v10284_v10 = vld [vmem:[#allocation8 + $0x130] sm:$0xff]  }
 0x76c   : > { %v5513_v47 = vpop.f32.mrf.mxu1 }
 0x76d   : > { %v5526_v25 = vadd.f32 %v5513_v47, %v5268_v18  ;;  %v5545_v16 = vadd.f32 %v5539_v56, %v5525_v12  ;;  %v5552_v51 = vmax.f32 %v5544_v57, 0.0  ;;  %v10277_v47 = vld [vmem:[#allocation8 + $0x48] sm:$0xff]   ;;  %v10281_v18 = vld [vmem:[#allocation8 + $0x40] sm:$0xff]   ;;  %v14407_v12 = vmov 0.0  }
 0x76e   : > { %v5515_v35 = vpop.f32.mrf.mxu1 }
 0x76f   : > { %v5527_v7 = vadd.f32 %v5515_v35, %v5270_v41  ;;  %v5546_v49 = vadd.f32 %v5535_v63, %v5526_v25  ;;  %v5553_v27 = vmax.f32 %v5545_v16, 0.0  ;;  %v5558_v19 = vpack.c.bf16 %v5552_v51, %v5550_v37  ;;  %v10267_v41 = vld [vmem:[#allocation8 + $0x90] sm:$0xff]   ;;  %v10269_v35 = vld [vmem:[#allocation8 + $0xc8] sm:$0xff]   ;;  %v10295_v37 = vld [vmem:[#allocation8 + $0x140] sm:$0xff]  }
 0x770   : > { %v5517_v31 = vpop.f32.mrf.mxu1  ;;  %v10292_v51 = vld [vmem:[#allocation8 + $0x110] sm:$0xff]  }
 0x771   : > { %v5528_v36 = vadd.f32 %v5517_v31, %v5272_v2  ;;  %v5547_v53 = vadd.f32 %v5539_v56, %v5527_v7  ;;  %v5554_v39 = vmax.f32 %v5546_v49, 0.0  ;;  %v5559_v14 = vpack.c.bf16 %v5553_v27, %v5551_v8  ;;  %v10273_v2 = vld [vmem:[#allocation8 + $0xc0] sm:$0xff]   ;;  %v10286_v27 = vld [vmem:[#allocation8 + $0x128] sm:$0xff]   ;;  %v10290_v8 = vld [vmem:[#allocation8 + $0x118] sm:$0xff]  }
 0x772   : > { %v5519_v28 = vpop.f32.mrf.mxu1  ;;  %v10275_v7 = vld [vmem:[#allocation8 + $0x80] sm:$0xff]  }
 0x773   : > { %v5548_v46 = vadd.f32 %v5535_v63, %v5528_v36  ;;  %v5529_v60 = vadd.f32 %v5519_v28, %v5274_v4  ;;  %v5555_v33 = vmax.f32 %v5547_v53, 0.0  ;;  %v10280_v53 = vld [vmem:[#allocation8 + $0x138] sm:$0xff]  }
 0x775   : > { %v5549_v20 = vadd.f32 %v5539_v56, %v5529_v60  ;;  %v5556_v30 = vmax.f32 %v5548_v46, 0.0  ;;  %v10282_v60 = vld [vmem:[#allocation8 + $0x170] sm:$0xff]  }
 0x777   : > { %v5557_v1 = vmax.f32 %v5549_v20, 0.0  ;;  %v5560_v11 = vpack.c.bf16 %v5556_v30, %v5554_v39  ;;  %v10285_v20 = vld [vmem:[#allocation8 + $0x168] sm:$0xff]   ;;  %v10289_v39 = vld [vmem:[#allocation8 + $0x158] sm:$0xff]  }
 0x779   : > { %v5561_v22 = vpack.c.bf16 %v5557_v1, %v5555_v33  ;;  %v10287_v1 = vld [vmem:[#allocation8 + $0x160] sm:$0xff]  }
 0x77b   : > { %5576 = vmatprep.subr.bf16.mxu0 %v5561_v22 }
 0x77c   : > { %5577 = vmatpush1.bf16.msra.mxu0 %v5560_v11 }
 0x77d   : > { %5578 = vmatprep.subr.bf16.mxu0 %v5559_v14 }
 0x780   : > { %5579 = vmatpush1.bf16.msra.mxu0 %v5558_v19 }
 0x781   : > { %5623 = vmatprep.subr.bf16.mxu0 %v5561_v22 }
 0x783   : > { %8761 = vmatmul.mubr.msk.bf16.vlgmr.msra.gmra.mxu0 %vm1363_vm10, %v14395_v50  ;;  %v10252_v50 = vld [vmem:[#allocation8 + $0xb0] sm:$0xff]  }
 0x784   : > { %5624 = vmatpush1.bf16.msra.mxu0 %v5560_v11  ;;  %5643 = vmatprep.mubr.bf16.mxu0 %v14396_v54 }
 0x785   : > { %5625 = vmatprep.subr.bf16.mxu0 %v5559_v14 }
 0x788   : > { %5626 = vmatpush1.bf16.msra.mxu0 %v5558_v19 }
 0x789   : > { %5670 = vmatprep.subr.bf16.mxu0 %v5561_v22  ;;  %v10291_v22 = vld [vmem:[#allocation8 + $0x150] sm:$0xff]  }
 0x78b   : > { %8762 = vmatmul.mubr.msk.bf16.vlgmr.msra.gmra.mxu0 %vm1363_vm10, %v14394_v6  ;;  %v10257_v6 = vld [vmem:[#allocation8 + $0xe0] sm:$0xff]  }
 0x78c   : > { %5671 = vmatpush1.bf16.msra.mxu0 %v5560_v11  ;;  %5690 = vmatprep.mubr.bf16.mxu0 %v14396_v54  ;;  %v10262_v54 = vld [vmem:[#allocation8 + $0x68] sm:$0xff]  }
 0x78d   : > { %5672 = vmatprep.subr.bf16.mxu0 %v5559_v14  ;;  %9131 = vmatprep.subr.bf16.mxu1 %v10262_v54  ;;  %v10293_v11 = vld [vmem:[#allocation8 + $0x148] sm:$0xff]  }
 0x78e   : > { %9132 = vmatpush3.bf16.msra.mxu1 %v10264_v48  ;;  %v10294_v14 = vld [vmem:[#allocation8 + $0x108] sm:$0xff]  }
 0x78f   : > { %9133 = vmatprep.subr.bf16.mxu1 %v10266_v17 }
 0x790   : > { %5673 = vmatpush1.bf16.msra.mxu0 %v5558_v19  ;;  %v10296_v19 = vld [vmem:[#allocation8 + $0x100] sm:$0xff]  }
 0x791   : > { %9105 = vmatprep.subr.bf16.mxu0 %v10249_v59 }
 0x792   : > { %9134 = vmatpush3.bf16.msra.mxu1 %v10268_v61 }
 0x793   : > { %8763 = vmatmul.mubr.msk.bf16.vlgmr.msra.gmra.mxu0 %vm1363_vm10, %v14403_v3  ;;  %v10270_v3 = vld [vmem:[#allocation8 + $0x58] sm:$0xff]  }
 0x794   : > { %9106 = vmatpush3.bf16.msra.mxu0 %v10250_v13  ;;  %9135 = vmatprep.subr.bf16.mxu1 %v10270_v3 }
 0x795   : > { %9107 = vmatprep.subr.bf16.mxu0 %v10251_v26 }
 0x796   : > { %9136 = vmatpush3.bf16.msra.mxu1 %v10272_v52 }
 0x797   : > { %9137 = vmatprep.subr.bf16.mxu1 %v10274_v58 }
 0x798   : > { %9108 = vmatpush3.bf16.msra.mxu0 %v10252_v50 }
 0x799   : > { %9109 = vmatprep.subr.bf16.mxu0 %v10253_v5 }
 0x79a   : > { %9138 = vmatpush3.bf16.msra.mxu1 %v10276_v15 }
 0x79b   : > { %9139 = vmatprep.subr.bf16.mxu1 %v10277_v47 }
 0x79c   : > { %9110 = vmatpush3.bf16.msra.mxu0 %v10255_v24 }
 0x79d   : > { %9111 = vmatprep.subr.bf16.mxu0 %v10257_v6 }
 0x79e   : > { %9140 = vmatpush3.bf16.msra.mxu1 %v10279_v55  ;;  %v8812_v55 = vld [vmem:[%s13950_s10] ss:$0 sm:$0xff] }
 0x79f   : > { %9141 = vmatprep.subr.bf16.mxu1 %v10281_v18 }
 0x7a0   : > { %9112 = vmatpush3.bf16.msra.mxu0 %v10259_v40 }
 0x7a1   : > { %9113 = vmatprep.subr.bf16.mxu0 %v10261_v44 }
 0x7a2   : > { %9142 = vmatpush3.bf16.msra.mxu1 %v10283_v9 }
 0x7a3   : > { %9322 = vmatprep.subr.bf16.mxu1 %v14407_v12 }
 0x7a4   : > { %9114 = vmatpush3.bf16.msra.mxu0 %v10263_v21 }
 0x7a5   : > { %9115 = vmatprep.subr.bf16.mxu0 %v10265_v29 }
 0x7a8   : > { %9116 = vmatpush3.bf16.msra.mxu0 %v10267_v41 }
 0x7a9   : > { %9117 = vmatprep.subr.bf16.mxu0 %v10269_v35 }
 0x7ac   : > { %9118 = vmatpush3.bf16.msra.mxu0 %v10271_v0 }
 0x7ad   : > { %9119 = vmatprep.subr.bf16.mxu0 %v10273_v2 }
 0x7b0   : > { %9120 = vmatpush3.bf16.msra.mxu0 %v10275_v7 }
 0x7b1   : > { %9149 = vmatprep.subr.bf16.mxu0 %v10278_v38 }
 0x843   : > { %v5598_v63 = vpop.f32.mrf.mxu0 }
 0x845   : > { %v5600_v25 = vpop.f32.mrf.mxu0 }
 0x847   : > { %v5602_v31 = vpop.f32.mrf.mxu0 }
 0x848   : > { %v5607_v4 = vpack.c.bf16 %v5602_v31, %v5598_v63  ;;  %v14408_v63 = vld [vmem:[#allocation29_spill] sm:$0xff]  ;;  %v14409_v31 = vld [vmem:[#allocation35_spill] sm:$0xff] }
 0x849   : > { %v5604_v42 = vpop.f32.mrf.mxu0 }
 0x84a   : > { %v5608_v56 = vpack.c.bf16 %v5604_v42, %v5600_v25  ;;  %v13151_v25 = vpack.c.bf16 %v14408_v63, %v14408_v63  ;;  %v13155_v42 = vpack.c.bf16 %v14409_v31, %v14409_v31 }
 0x84b   : > { %v5645_v36 = vpop.f32.mrf.mxu0 }
 0x84c   : > { %6033 = vmatprep.mubr.bf16.mxu1 %v5608_v56  ;;  %v10301_v56 = vld [vmem:[#allocation10 + $0x38] sm:$0xff]  }
 0x84d   : > { %v5647_v62 = vpop.f32.mrf.mxu0  ;;  %6034 = vmatmul.mubr.bf16.vlgmr.msra.gmra.mxu1 %v5607_v4  ;;  %v10303_v4 = vld [vmem:[#allocation10 + $0x30] sm:$0xff]  }
 0x84e   : > { %9324 = vmatprep.mubr.msk.bf16.mxu1 %vm10636_vm6, %v14407_v12 }
 0x84f   : > { %v5649_v43 = vpop.f32.mrf.mxu0 }
 0x850   : > { %v5654_v46 = vpack.c.bf16 %v5649_v43, %v5645_v36  ;;  %v14410_v36 = vld [vmem:[#allocation25_spill] sm:$0xff]  ;;  %v10297_v43 = vld [vmem:[#allocation10 + $0x78] sm:$0xff]  }
 0x851   : > { %v5651_v28 = vpop.f32.mrf.mxu0 }
 0x852   : > { %v5655_v16 = vpack.c.bf16 %v5651_v28, %v5647_v62  ;;  %v13171_v62 = vpack.c.bf16 %v14410_v36, %v14410_v36  ;;  %v10298_v28 = vld [vmem:[#allocation10 + $0x70] sm:$0xff]   ;;  %v10321_v36 = vld [vmem:[%s13946_s6 + $0x78] sm:$0xff]  }
 0x853   : > { %v5692_v34 = vpop.f32.mrf.mxu0 }
 0x854   : > { %5896 = vmatprep.mubr.bf16.mxu0 %v5655_v16  ;;  %v10299_v16 = vld [vmem:[#allocation10 + $0x68] sm:$0xff]  }
 0x855   : > { %5897 = vmatmul.mubr.bf16.vlgmr.msra.gmra.mxu0 %v5654_v46  ;;  %v5694_v49 = vpop.f32.mrf.mxu0  ;;  %v10302_v46 = vld [vmem:[#allocation10 + $0x58] sm:$0xff]  }
 0x856   : > { %9150 = vmatpush3.bf16.msra.mxu0 %v10280_v53  ;;  %v10300_v53 = vld [vmem:[#allocation10 + $0x60] sm:$0xff]  }
 0x857   : > { %9151 = vmatprep.subr.bf16.mxu0 %v10282_v60  ;;  %v5696_v57 = vpop.f32.mrf.mxu0  ;;  %v10304_v60 = vld [vmem:[#allocation10 + $0x50] sm:$0xff]  }
 0x858   : > { %v5701_v59 = vpack.c.bf16 %v5696_v57, %v5692_v34  ;;  %v10305_v34 = vld [vmem:[#allocation10 + $0x28] sm:$0xff]  }
 0x859   : > { %v5698_v30 = vpop.f32.mrf.mxu0  ;;  %v10313_v57 = vld [vmem:[#allocation10 + $0x8] sm:$0xff]  }
 0x85a   : > { %9152 = vmatpush3.bf16.msra.mxu0 %v10284_v10  ;;  %v5702_v33 = vpack.c.bf16 %v5698_v30, %v5694_v49  ;;  %v10307_v49 = vld [vmem:[#allocation10 + $0x20] sm:$0xff]   ;;  %v10309_v10 = vld [vmem:[#allocation10 + $0x18] sm:$0xff]  }
 0x85b   : > { %9153 = vmatprep.subr.bf16.mxu0 %v10285_v20  ;;  %v10311_v20 = vld [vmem:[#allocation10 + $0x10] sm:$0xff]   ;;  %v10315_v30 = vld [vmem:[#allocation10] sm:$0xff]  }
 0x85c   : > { %6203 = vmatprep.mubr.bf16.mxu0 %v5702_v33  ;;  %v10308_v33 = vld [vmem:[#allocation10 + $0x40] sm:$0xff]  }
 0x85e   : > { %9154 = vmatpush3.bf16.msra.mxu0 %v10286_v27  ;;  %v10306_v27 = vld [vmem:[#allocation10 + $0x48] sm:$0xff]  }
 0x85f   : > { %9155 = vmatprep.subr.bf16.mxu0 %v10287_v1 }
 0x862   : > { %9156 = vmatpush3.bf16.msra.mxu0 %v10288_v23 }
 0x863   : > { %9157 = vmatprep.subr.bf16.mxu0 %v10289_v39 }
 0x866   : > { %9158 = vmatpush3.bf16.msra.mxu0 %v10290_v8 }
 0x867   : > { %9159 = vmatprep.subr.bf16.mxu0 %v10291_v22 }
 0x86a   : > { %9160 = vmatpush3.bf16.msra.mxu0 %v10292_v51 }
 0x86b   : > { %9161 = vmatprep.subr.bf16.mxu0 %v10293_v11 }
 0x86e   : > { %9162 = vmatpush3.bf16.msra.mxu0 %v10294_v14 }
 0x86f   : > { %9163 = vmatprep.subr.bf16.mxu0 %v10295_v37 }
 0x872   : > { %9164 = vmatpush3.bf16.msra.mxu0 %v10296_v19 }
 0x873   : > { %9334 = vmatprep.subr.bf16.mxu0 %v14407_v12 }
 0x875   : > { %6204 = vmatmul.mubr.bf16.vlgmr.msra.gmra.mxu0 %v5701_v59  ;;  %v10310_v59 = vld [vmem:[#allocation10 + $0xb8] sm:$0xff]  }
 0x876   : > { %9336 = vmatprep.mubr.msk.bf16.mxu0 %vm10636_vm6, %v14407_v12 }
 0x90d   : > { %v9143_v26 = vpop.f32.mrf.mxu1 }
 0x90f   : > { %v9144_v5 = vpop.f32.mrf.mxu1 }
 0x910   : > { %v9145_v17 = vadd.f32 %v9144_v5, %v9143_v26 }
 0x911   : > { %v9146_v6 = vpop.f32.mrf.mxu1 }
 0x913   : > { %v9147_v61 = vpop.f32.mrf.mxu1 }
 0x914   : > { %v9148_v21 = vadd.f32 %v9147_v61, %v9146_v6  ;;  %v10314_v6 = vld [vmem:[#allocation10 + $0xa8] sm:$0xff]   ;;  %v10320_v61 = vld [vmem:[#allocation10 + $0x80] sm:$0xff]  }
 0x915   : > { %v9121_v13 = vpop.f32.mrf.mxu0 }
 0x917   : > { %v9122_v50 = vpop.f32.mrf.mxu0 }
 0x918   : > { %v9123_v54 = vadd.f32 %v9122_v50, %v9121_v13  ;;  %v10312_v50 = vld [vmem:[#allocation10 + $0xb0] sm:$0xff]  }
 0x919   : > { %v9124_v24 = vpop.f32.mrf.mxu0 }
 0x91a   : > { %v6036_v52 = vadd.f32 %v9145_v17, %v9123_v54  ;;  %v10317_v54 = vld [vmem:[#allocation10 + $0x98] sm:$0xff]   ;;  %v10319_v17 = vld [vmem:[#allocation10 + $0x88] sm:$0xff]  }
 0x91b   : > { %v9125_v40 = vpop.f32.mrf.mxu0 }
 0x91c   : > { %v9126_v58 = vadd.f32 %v9125_v40, %v9124_v24  ;;  %v10316_v40 = vld [vmem:[#allocation10 + $0xa0] sm:$0xff]  }
 0x91e   : > { %v6039_v41 = vadd.f32 %v9148_v21, %v9126_v58 }
 0x935   : > { %v9165_v48 = vpop.f32.mrf.mxu0 }
 0x937   : > { %v9166_v3 = vpop.f32.mrf.mxu0 }
 0x938   : > { %v9167_v15 = vadd.f32 %v9166_v3, %v9165_v48  ;;  %v10318_v48 = vld [vmem:[#allocation10 + $0x90] sm:$0xff]  }
 0x939   : > { %v9168_v44 = vpop.f32.mrf.mxu0 }
 0x93a   : > { %v6212_v47 = vadd.f32 %v9167_v15, %v6036_v52  ;;  %v10327_v52 = vld [vmem:[%s13946_s6 + $0x38] sm:$0xff]  }
 0x93b   : > { %v9169_v29 = vpop.f32.mrf.mxu0 }
 0x93c   : > { %v9170_v18 = vadd.f32 %v9169_v29, %v9168_v44  ;;  %v6221_v9 = vadd.f32 %v8812_v55, %v6212_v47 }
 0x93e   : > { %v6213_v35 = vadd.f32 %v9170_v18, %v6039_v41  ;;  %v6223_v2 = vmax.f32 %v6221_v9, 0.0 }
 0x940   : > { %v6222_v0 = vadd.f32 %v8812_v55, %v6213_v35  ;;  %v8840_v35 = vld [vmem:[%s13951_s11] ss:$0 sm:$0xff] }
 0x942   : > { %v6224_v7 = vmax.f32 %v6222_v0, 0.0 }
 0x944   : > { %v6225_v38 = vpack.c.bf16 %v6224_v7, %v6223_v2 }
 0x946   : > { %9323 = vmatpush3.bf16.msra.mxu1 %v6225_v38  ;;  %9335 = vmatpush3.bf16.msra.mxu0 %v6225_v38 }
 0x947   : > { %9328 = vmatprep.subr.bf16.mxu1 %v14407_v12  ;;  %9360 = vmatprep.subr.bf16.mxu0 %v14407_v12 }
 0x949   : > { %9325 = vmatmul.mubr.msk.bf16.vlgmr.msra.gmra.mxu1 %vm6227_vm2, %v13151_v25  ;;  %9337 = vmatmul.mubr.msk.bf16.vlgmr.msra.gmra.mxu0 %vm6227_vm2, %v13155_v42 }
 0x94a   : > { %9329 = vmatpush3.bf16.msra.mxu1 %v6225_v38  ;;  %9330 = vmatprep.mubr.msk.bf16.mxu1 %vm10636_vm6, %v14407_v12 }
 0x94b   : > { %9340 = vmatprep.subr.bf16.mxu1 %v14407_v12  ;;  %9361 = vmatpush3.bf16.msra.mxu0 %v10301_v56 }
 0x94c   : > { %9362 = vmatprep.subr.bf16.mxu0 %v14407_v12  ;;  %9376 = vmatprep.mubr.msk.bf16.mxu0 %vm10636_vm6, %v14407_v12 }
 0x94f   : > { %9363 = vmatpush3.bf16.msra.mxu0 %v10303_v4 }
 0x950   : > { %9364 = vmatprep.subr.bf16.mxu0 %v14407_v12 }
 0x951   : > { %9331 = vmatmul.mubr.msk.bf16.vlgmr.msra.gmra.mxu1 %vm6227_vm2, %v13171_v62 }
 0x952   : > { %9341 = vmatpush3.bf16.msra.mxu1 %v10297_v43  ;;  %9356 = vmatprep.mubr.msk.bf16.mxu1 %vm10636_vm6, %v14407_v12  ;;  %v10325_v43 = vld [vmem:[%s13946_s6 + $0x58] sm:$0xff]  }
 0x953   : > { %9342 = vmatprep.subr.bf16.mxu1 %v14407_v12  ;;  %9365 = vmatpush3.bf16.msra.mxu0 %v10305_v34  ;;  %v10336_v34 = vld [vmem:[%s13946_s6 + $0x10] sm:$0xff]  }
 0x954   : > { %9366 = vmatprep.subr.bf16.mxu0 %v14407_v12 }
 0x956   : > { %9343 = vmatpush3.bf16.msra.mxu1 %v10298_v28  ;;  %v10326_v28 = vld [vmem:[%s13946_s6 + $0x50] sm:$0xff]  }
 0x957   : > { %9344 = vmatprep.subr.bf16.mxu1 %v14407_v12  ;;  %9367 = vmatpush3.bf16.msra.mxu0 %v10307_v49  ;;  %v10338_v49 = vld [vmem:[%s13946_s6 + $0x8] sm:$0xff]  }
 0x958   : > { %9368 = vmatprep.subr.bf16.mxu0 %v14407_v12 }
 0x95a   : > { %9345 = vmatpush3.bf16.msra.mxu1 %v10299_v16  ;;  %v10329_v16 = vld [vmem:[%s13946_s6 + $0x30] sm:$0xff]  }
 0x95b   : > { %9346 = vmatprep.subr.bf16.mxu1 %v14407_v12  ;;  %9369 = vmatpush3.bf16.msra.mxu0 %v10309_v10  ;;  %v10340_v10 = vld [vmem:[%s13946_s6] sm:$0xff]  }
 0x95c   : > { %9370 = vmatprep.subr.bf16.mxu0 %v14407_v12 }
 0x95e   : > { %9347 = vmatpush3.bf16.msra.mxu1 %v10300_v53  ;;  %v10331_v53 = vld [vmem:[%s13946_s6 + $0x28] sm:$0xff]  }
 0x95f   : > { %9348 = vmatprep.subr.bf16.mxu1 %v14407_v12  ;;  %9371 = vmatpush3.bf16.msra.mxu0 %v10311_v20  ;;  %v10328_v20 = vld [vmem:[%s13946_s6 + $0x48] sm:$0xff]  }
 0x960   : > { %9372 = vmatprep.subr.bf16.mxu0 %v14407_v12 }
 0x962   : > { %9349 = vmatpush3.bf16.msra.mxu1 %v10302_v46  ;;  %v10332_v46 = vld [vmem:[%s13946_s6 + $0x20] sm:$0xff]  }
 0x963   : > { %9350 = vmatprep.subr.bf16.mxu1 %v14407_v12  ;;  %9373 = vmatpush3.bf16.msra.mxu0 %v10313_v57  ;;  %v10330_v57 = vld [vmem:[%s13946_s6 + $0x40] sm:$0xff]  }
 0x964   : > { %9374 = vmatprep.subr.bf16.mxu0 %v14407_v12 }
 0x966   : > { %9351 = vmatpush3.bf16.msra.mxu1 %v10304_v60  ;;  %v10334_v60 = vld [vmem:[%s13946_s6 + $0x18] sm:$0xff]  }
 0x967   : > { %9352 = vmatprep.subr.bf16.mxu1 %v14407_v12  ;;  %9375 = vmatpush3.bf16.msra.mxu0 %v10315_v30  ;;  %v7191_v30 = vld [vmem:[#allocation11 + $0x170] sm:$0xff] }
 0x968   : > { %9400 = vmatprep.subr.bf16.mxu0 %v14407_v12 }
 0x96a   : > { %9353 = vmatpush3.bf16.msra.mxu1 %v10306_v27 }
 0x96b   : > { %9354 = vmatprep.subr.bf16.mxu1 %v14407_v12 }
 0x96e   : > { %9355 = vmatpush3.bf16.msra.mxu1 %v10308_v33 }
 0x96f   : > { %9380 = vmatprep.subr.bf16.mxu1 %v14407_v12 }
 0xa09   : > { %v6265_v1 = vpop.f32.mrf.mxu1  ;;  %v6355_v23 = vpop.f32.mrf.mxu0 }
 0xa0a   : > { %v6271_v39 = vpack.c.bf16 %v6265_v1, %v6265_v1  ;;  %v6361_v3 = vpack.c.bf16 %v6355_v23, %v6355_v23  ;;  %v7190_v1 = vld [vmem:[#allocation11 + $0x168] sm:$0xff] }
 0xa0b   : > { %v9326_v8 = vpop.f32.mrf.mxu1  ;;  %v9338_v22 = vpop.f32.mrf.mxu0 }
 0xa0c   : > { %9377 = vmatmul.mubr.bf16.vlgmr.msra.gmra.mxu0 %v6271_v39  ;;  %v7188_v39 = vld [vmem:[#allocation11 + $0x158] sm:$0xff]  ;;  %v7187_v8 = vld [vmem:[#allocation11 + $0x150] sm:$0xff] }
 0xa0d   : > { %v6268_v51 = vpop.f32.mrf.mxu1  ;;  %v6358_v11 = vpop.f32.mrf.mxu0  ;;  %9402 = vmatprep.mubr.msk.bf16.mxu0 %vm10636_vm6, %v14407_v12 }
 0xa0e   : > { %v7185_v51 = vld [vmem:[#allocation11 + $0x140] sm:$0xff]  ;;  %v7184_v11 = vld [vmem:[#allocation11 + $0x138] sm:$0xff] }
 0xa0f   : > { %v9327_v14 = vpop.f32.mrf.mxu1  ;;  %v9339_v37 = vpop.f32.mrf.mxu0 }
 0xa10   : > { %v7182_v37 = vld [vmem:[#allocation11 + $0x128] sm:$0xff] }
 0xa11   : > { %v6310_v19 = vpop.f32.mrf.mxu1 }
 0xa12   : > { %v6316_v13 = vpack.c.bf16 %v6310_v19, %v6310_v19  ;;  %v7181_v19 = vld [vmem:[#allocation11 + $0x120] sm:$0xff] }
 0xa13   : > { %v9332_v26 = vpop.f32.mrf.mxu1 }
 0xa14   : > { %9357 = vmatmul.mubr.bf16.vlgmr.msra.gmra.mxu1 %v6316_v13  ;;  %v10333_v13 = vld [vmem:[%s13946_s6 + $0xb8] sm:$0xff]   ;;  %v7179_v26 = vld [vmem:[#allocation11 + $0x110] sm:$0xff] }
 0xa15   : > { %9381 = vmatpush3.bf16.msra.mxu1 %v10310_v59  ;;  %v6313_v5 = vpop.f32.mrf.mxu1  ;;  %9396 = vmatprep.mubr.msk.bf16.mxu1 %vm10636_vm6, %v14407_v12 }
 0xa16   : > { %9382 = vmatprep.subr.bf16.mxu1 %v14407_v12 }
 0xa17   : > { %v9333_v24 = vpop.f32.mrf.mxu1 }
 0xa18   : > { %v7178_v24 = vld [vmem:[#allocation11 + $0x108] sm:$0xff] }
 0xa19   : > { %9383 = vmatpush3.bf16.msra.mxu1 %v10312_v50 }
 0xa1a   : > { %9384 = vmatprep.subr.bf16.mxu1 %v14407_v12 }
 0xa1d   : > { %9385 = vmatpush3.bf16.msra.mxu1 %v10314_v6  ;;  %v7176_v6 = vld [vmem:[#allocation11 + $0xf8] sm:$0xff] }
 0xa1e   : > { %9386 = vmatprep.subr.bf16.mxu1 %v14407_v12 }
 0xa21   : > { %9387 = vmatpush3.bf16.msra.mxu1 %v10316_v40  ;;  %v10335_v40 = vld [vmem:[%s13946_s6 + $0xb0] sm:$0xff]  }
 0xa22   : > { %9388 = vmatprep.subr.bf16.mxu1 %v14407_v12 }
 0xa25   : > { %9389 = vmatpush3.bf16.msra.mxu1 %v10317_v54 }
 0xa26   : > { %9390 = vmatprep.subr.bf16.mxu1 %v14407_v12 }
 0xa29   : > { %9391 = vmatpush3.bf16.msra.mxu1 %v10318_v48  ;;  %v7175_v48 = vld [vmem:[#allocation11 + $0xf0] sm:$0xff] }
 0xa2a   : > { %9392 = vmatprep.subr.bf16.mxu1 %v14407_v12 }
 0xa2d   : > { %9393 = vmatpush3.bf16.msra.mxu1 %v10319_v17  ;;  %v7173_v17 = vld [vmem:[#allocation11 + $0xe0] sm:$0xff] }
 0xa2e   : > { %9394 = vmatprep.subr.bf16.mxu1 %v14407_v12 }
 0xa31   : > { %9395 = vmatpush3.bf16.msra.mxu1 %v10320_v61 }
 0xa32   : > { %9438 = vmatprep.subr.bf16.mxu1 %v14407_v12 }
 0xa34   : > { %9397 = vmatmul.mubr.bf16.vlgmr.msra.gmra.mxu1 %v6361_v3  ;;  %v7172_v3 = vld [vmem:[#allocation11 + $0xd8] sm:$0xff] }
 0xa35   : > { %9454 = vmatprep.mubr.msk.bf16.mxu1 %vm10636_vm6, %v14407_v12  ;;  %9439 = vmatpush3.bf16.msra.mxu1 %v10327_v52  ;;  %v10337_v52 = vld [vmem:[%s13946_s6 + $0xa8] sm:$0xff]  }
 0xa36   : > { %9440 = vmatprep.subr.bf16.mxu1 %v14407_v12 }
 0xa39   : > { %9441 = vmatpush3.bf16.msra.mxu1 %v10329_v16  ;;  %v7161_v16 = vld [vmem:[#allocation11 + $0x80] sm:$0xff] }
 0xa3a   : > { %9442 = vmatprep.subr.bf16.mxu1 %v14407_v12 }
 0xa3d   : > { %9443 = vmatpush3.bf16.msra.mxu1 %v10331_v53  ;;  %v7165_v53 = vld [vmem:[#allocation11 + $0xa0] sm:$0xff] }
 0xa3e   : > { %9444 = vmatprep.subr.bf16.mxu1 %v14407_v12 }
 0xa41   : > { %9445 = vmatpush3.bf16.msra.mxu1 %v10332_v46  ;;  %v7160_v46 = vld [vmem:[#allocation11 + $0x78] sm:$0xff] }
 0xa42   : > { %9446 = vmatprep.subr.bf16.mxu1 %v14407_v12 }
 0xa45   : > { %9447 = vmatpush3.bf16.msra.mxu1 %v10334_v60  ;;  %v7158_v60 = vld [vmem:[#allocation11 + $0x68] sm:$0xff] }
 0xa46   : > { %9448 = vmatprep.subr.bf16.mxu1 %v14407_v12 }
 0xa49   : > { %9449 = vmatpush3.bf16.msra.mxu1 %v10336_v34  ;;  %v7162_v34 = vld [vmem:[#allocation11 + $0x88] sm:$0xff] }
 0xa4a   : > { %9450 = vmatprep.subr.bf16.mxu1 %v14407_v12 }
 0xa4d   : > { %9451 = vmatpush3.bf16.msra.mxu1 %v10338_v49  ;;  %v7157_v49 = vld [vmem:[#allocation11 + $0x60] sm:$0xff] }
 0xa4e   : > { %9452 = vmatprep.subr.bf16.mxu1 %v14407_v12 }
 0xa51   : > { %9453 = vmatpush3.bf16.msra.mxu1 %v10340_v10  ;;  %v7155_v10 = vld [vmem:[#allocation11 + $0x50] sm:$0xff] }
 0xa52   : > { %7210 = vmatprep.subr.mxu1 %v7191_v30  ;;  %v7152_v30 = vld [vmem:[#allocation11 + $0x38] sm:$0xff] }
 0xacc   : > { %v6565_v58 = vpop.f32.mrf.mxu0 }
 0xace   : > { %v9378_v15 = vpop.f32.mrf.mxu0 }
 0xad0   : > { %v6568_v44 = vpop.f32.mrf.mxu0 }
 0xad1   : > { %v10339_v44 = vld [vmem:[%s13946_s6 + $0xa0] sm:$0xff]  }
 0xad2   : > { %v9379_v21 = vpop.f32.mrf.mxu0 }
 0xad4   : > { %v6477_v47 = vpop.f32.mrf.mxu1 }
 0xad5   : > { %v6566_v18 = vadd.f32 %v6565_v58, %v6477_v47 }
 0xad6   : > { %v9358_v55 = vpop.f32.mrf.mxu1 }
 0xad7   : > { %v10341_v55 = vld [vmem:[%s13946_s6 + $0x98] sm:$0xff]  }
 0xad8   : > { %v6480_v29 = vpop.f32.mrf.mxu1 }
 0xad9   : > { %v10342_v29 = vld [vmem:[%s13946_s6 + $0x90] sm:$0xff]  }
 0xada   : > { %v9359_v41 = vpop.f32.mrf.mxu1 }
 0xadb   : > { %v10343_v41 = vld [vmem:[%s13946_s6 + $0x88] sm:$0xff]  }
 0xaf4   : > { %v6670_v9 = vpop.f32.mrf.mxu1 }
 0xaf5   : > { %v6676_v0 = vadd.f32 %v6670_v9, %v6566_v18  ;;  %v10344_v18 = vld [vmem:[%s13946_s6 + $0x80] sm:$0xff]  }
 0xaf6   : > { %v9398_v2 = vpop.f32.mrf.mxu1 }
 0xaf7   : > { %v6684_v7 = vadd.f32 %v8840_v35, %v6676_v0  ;;  %v7192_v35 = vld [vmem:[#allocation11 + $0x178] sm:$0xff]  ;;  %v7189_v0 = vld [vmem:[#allocation11 + $0x160] sm:$0xff]  ;;  %v7186_v2 = vld [vmem:[#allocation11 + $0x148] sm:$0xff] }
 0xaf8   : > { %v6673_v38 = vpop.f32.mrf.mxu1 }
 0xaf9   : > { %v6685_v63 = vmax.f32 %v6684_v7, 0.0  ;;  %v7183_v7 = vld [vmem:[#allocation11 + $0x130] sm:$0xff]  ;;  %v7180_v38 = vld [vmem:[#allocation11 + $0x118] sm:$0xff] }
 0xafa   : > { %v9399_v31 = vpop.f32.mrf.mxu1 }
 0xafb   : > { %v6686_v56 = vpack.c.bf16 %v6685_v63, %v6685_v63  ;;  %v7177_v63 = vld [vmem:[#allocation11 + $0x100] sm:$0xff]  ;;  %v7170_v31 = vld [vmem:[#allocation11 + $0xc8] sm:$0xff] }
 0xafd   : > { %v6692_v4 = vsel %vm6690_vm14, %v6686_v56, 0  ;;  %v7174_v56 = vld [vmem:[#allocation11 + $0xe8] sm:$0xff] }
 0xafe   : > { %9401 = vmatpush3.bf16.msra.mxu0 %v6692_v4 }
 0xaff   : > { %9406 = vmatprep.subr.bf16.mxu0 %v14407_v12 }
 0xb01   : > { %9403 = vmatmul.mubr.msk.bf16.vlgmr.msra.gmra.mxu0 %vm6687_vm3, %v13151_v25  ;;  %v10322_v25 = vld [vmem:[%s13946_s6 + $0x70] sm:$0xff]  }
 0xb02   : > { %9407 = vmatpush3.bf16.msra.mxu0 %v6692_v4  ;;  %9408 = vmatprep.mubr.msk.bf16.mxu0 %vm10636_vm6, %v14407_v12 }
 0xb03   : > { %9412 = vmatprep.subr.bf16.mxu0 %v14407_v12 }
 0xb09   : > { %9409 = vmatmul.mubr.msk.bf16.vlgmr.msra.gmra.mxu0 %vm6687_vm3, %v13171_v62  ;;  %v10323_v62 = vld [vmem:[%s13946_s6 + $0x68] sm:$0xff]  }
 0xb0a   : > { %9413 = vmatpush3.bf16.msra.mxu0 %v6692_v4  ;;  %9414 = vmatprep.mubr.msk.bf16.mxu0 %vm10636_vm6, %v14407_v12  ;;  %v7169_v4 = vld [vmem:[#allocation11 + $0xc0] sm:$0xff] }
 0xb0b   : > { %9418 = vmatprep.subr.bf16.mxu0 %v14407_v12 }
 0xb11   : > { %9415 = vmatmul.mubr.msk.bf16.vlgmr.msra.gmra.mxu0 %vm6687_vm3, %v13155_v42  ;;  %v10324_v42 = vld [vmem:[%s13946_s6 + $0x60] sm:$0xff]  }
 0xb12   : > { %9419 = vmatpush3.bf16.msra.mxu0 %v10321_v36  ;;  %9434 = vmatprep.mubr.msk.bf16.mxu0 %vm10636_vm6, %v14407_v12  ;;  %v7167_v36 = vld [vmem:[#allocation11 + $0xb0] sm:$0xff] }
 0xb13   : > { %9420 = vmatprep.subr.bf16.mxu0 %v14407_v12 }
 0xb16   : > { %9421 = vmatpush3.bf16.msra.mxu0 %v10322_v25  ;;  %v7171_v25 = vld [vmem:[#allocation11 + $0xd0] sm:$0xff] }
 0xb17   : > { %9422 = vmatprep.subr.bf16.mxu0 %v14407_v12 }
 0xb1a   : > { %9423 = vmatpush3.bf16.msra.mxu0 %v10323_v62  ;;  %v7166_v62 = vld [vmem:[#allocation11 + $0xa8] sm:$0xff] }
 0xb1b   : > { %9424 = vmatprep.subr.bf16.mxu0 %v14407_v12 }
 0xb1e   : > { %9425 = vmatpush3.bf16.msra.mxu0 %v10324_v42  ;;  %v7164_v42 = vld [vmem:[#allocation11 + $0x98] sm:$0xff] }
 0xb1f   : > { %9426 = vmatprep.subr.bf16.mxu0 %v14407_v12 }
 0xb22   : > { %9427 = vmatpush3.bf16.msra.mxu0 %v10325_v43  ;;  %v7168_v43 = vld [vmem:[#allocation11 + $0xb8] sm:$0xff] }
 0xb23   : > { %9428 = vmatprep.subr.bf16.mxu0 %v14407_v12 }
 0xb26   : > { %9429 = vmatpush3.bf16.msra.mxu0 %v10326_v28  ;;  %v7163_v28 = vld [vmem:[#allocation11 + $0x90] sm:$0xff] }
 0xb27   : > { %9430 = vmatprep.subr.bf16.mxu0 %v14407_v12 }
 0xb2a   : > { %9431 = vmatpush3.bf16.msra.mxu0 %v10328_v20  ;;  %v7159_v20 = vld [vmem:[#allocation11 + $0x70] sm:$0xff] }
 0xb2b   : > { %9432 = vmatprep.subr.bf16.mxu0 %v14407_v12 }
 0xb2e   : > { %9433 = vmatpush3.bf16.msra.mxu0 %v10330_v57  ;;  %v7154_v57 = vld [vmem:[#allocation11 + $0x48] sm:$0xff] }
 0xb2f   : > { %9458 = vmatprep.subr.bf16.mxu0 %v14407_v12 }
 0xbc1   : > { %v6728_v27 = vpop.f32.mrf.mxu0 }
 0xbc2   : > { %v6734_v33 = vpack.c.bf16 %v6728_v27, %v6728_v27  ;;  %v7156_v27 = vld [vmem:[#allocation11 + $0x58] sm:$0xff] }
 0xbc3   : > { %v9404_v23 = vpop.f32.mrf.mxu0 }
 0xbc4   : > { %9455 = vmatmul.mubr.bf16.vlgmr.msra.gmra.mxu1 %v6734_v33  ;;  %v7151_v33 = vld [vmem:[#allocation11 + $0x30] sm:$0xff]  ;;  %v7153_v23 = vld [vmem:[#allocation11 + $0x40] sm:$0xff] }
 0xbc5   : > { %v6731_v22 = vpop.f32.mrf.mxu0  ;;  %7211 = vmatpush1.msra.mxu1 %v7190_v1  ;;  %7274 = vmatprep.mubr.f32.mxu1 %v14407_v12  ;;  %v7149_v1 = vld [vmem:[#allocation11 + $0x20] sm:$0xff] }
 0xbc6   : > { %7212 = vmatprep.subr.mxu1 %v7188_v39  ;;  %v7148_v39 = vld [vmem:[#allocation11 + $0x18] sm:$0xff]  ;;  %v7150_v22 = vld [vmem:[#allocation11 + $0x28] sm:$0xff] }
 0xbc7   : > { %v9405_v14 = vpop.f32.mrf.mxu0  ;;  %7213 = vmatpush1.msra.mxu1 %v7187_v8  ;;  %v7146_v8 = vld [vmem:[#allocation11 + $0x8] sm:$0xff] }
 0xbc8   : > { %7214 = vmatprep.subr.mxu1 %v7185_v51  ;;  %v7145_v51 = vld [vmem:[#allocation11] sm:$0xff]  ;;  %v13339_v14 = vld [vmem:[%s13955_s15 + $0x170] sm:$0xff] }
 0xbc9   : > { %v6771_v59 = vpop.f32.mrf.mxu0  ;;  %7215 = vmatpush1.msra.mxu1 %v7184_v11  ;;  %v7147_v11 = vld [vmem:[#allocation11 + $0x10] sm:$0xff]  ;;  %14411 = vst [vmem:[#allocation66_spill] sm:$0xff] %v13339_v14 }
 0xbca   : > { %v6777_v50 = vpack.c.bf16 %v6771_v59, %v6771_v59  ;;  %7216 = vmatprep.subr.mxu1 %v7182_v37 }
 0xbcb   : > { %v9410_v5 = vpop.f32.mrf.mxu0  ;;  %7217 = vmatpush1.msra.mxu1 %v7181_v19 }
 0xbcc   : > { %9435 = vmatmul.mubr.bf16.vlgmr.msra.gmra.mxu0 %v6777_v50  ;;  %7218 = vmatprep.subr.mxu1 %v7179_v26 }
 0xbcd   : > { %9459 = vmatpush3.bf16.msra.mxu0 %v10333_v13  ;;  %v6774_v54 = vpop.f32.mrf.mxu0  ;;  %9474 = vmatprep.mubr.msk.bf16.mxu0 %vm10636_vm6, %v14407_v12 }
 0xbce   : > { %9460 = vmatprep.subr.bf16.mxu0 %v14407_v12  ;;  %7219 = vmatpush1.msra.mxu1 %v7178_v24  ;;  %v8900_v54 = vld [vmem:[%s13952_s12] ss:$0 sm:$0xff] }
 0xbcf   : > { %v9411_v61 = vpop.f32.mrf.mxu0  ;;  %7220 = vmatprep.subr.mxu1 %v7176_v6 }
 0xbd0   : > { %7221 = vmatpush1.msra.mxu1 %v7175_v48 }
 0xbd1   : > { %9461 = vmatpush3.bf16.msra.mxu0 %v10335_v40  ;;  %v6814_v58 = vpop.f32.mrf.mxu0  ;;  %7222 = vmatprep.subr.mxu1 %v7173_v17 }
 0xbd2   : > { %9462 = vmatprep.subr.bf16.mxu0 %v14407_v12  ;;  %7223 = vmatpush1.msra.mxu1 %v7172_v3  ;;  %v6820_v9 = vpack.c.bf16 %v6814_v58, %v6814_v58  ;;  %v13349_v58 = vld [vmem:[%s13955_s15 + $0x168] sm:$0xff] }
 0xbd3   : > { %v9416_v15 = vpop.f32.mrf.mxu0  ;;  %7224 = vmatprep.subr.mxu1 %v7170_v31  ;;  %v13439_v31 = vld [vmem:[%s13955_s15 + $0xf0] sm:$0xff] }
 0xbd4   : > { %7225 = vmatpush1.msra.mxu1 %v7169_v4  ;;  %v13354_v15 = vld [vmem:[%s13955_s15 + $0x158] sm:$0xff]  ;;  %v13452_v4 = vld [vmem:[%s13955_s15 + $0x100] sm:$0xff] }
 0xbd5   : > { %9463 = vmatpush3.bf16.msra.mxu0 %v10337_v52  ;;  %v6817_v21 = vpop.f32.mrf.mxu0  ;;  %7226 = vmatprep.subr.mxu1 %v7167_v36  ;;  %v13458_v36 = vld [vmem:[%s13955_s15 + $0xd8] sm:$0xff] }
 0xbd6   : > { %9464 = vmatprep.subr.bf16.mxu0 %v14407_v12  ;;  %7227 = vmatpush1.msra.mxu1 %v7166_v62  ;;  %v13359_v21 = vld [vmem:[%s13955_s15 + $0x178] sm:$0xff]  ;;  %v13471_v62 = vld [vmem:[%s13955_s15 + $0xe8] sm:$0xff] }
 0xbd7   : > { %v9417_v47 = vpop.f32.mrf.mxu0  ;;  %7228 = vmatprep.subr.mxu1 %v7164_v42  ;;  %v13477_v42 = vld [vmem:[%s13955_s15 + $0xc0] sm:$0xff] }
 0xbd8   : > { %7229 = vmatpush1.msra.mxu1 %v7163_v28  ;;  %v13364_v47 = vld [vmem:[%s13955_s15 + $0x150] sm:$0xff] }
 0xbd9   : > { %9465 = vmatpush3.bf16.msra.mxu0 %v10339_v44  ;;  %7230 = vmatprep.subr.mxu1 %v7161_v16  ;;  %v13490_v28 = vld [vmem:[%s13955_s15 + $0xd0] sm:$0xff]  ;;  %v13496_v16 = vld [vmem:[%s13955_s15 + $0xa8] sm:$0xff] }
 0xbda   : > { %9466 = vmatprep.subr.bf16.mxu0 %v14407_v12  ;;  %7231 = vmatpush1.msra.mxu1 %v7160_v46  ;;  %v13509_v46 = vld [vmem:[%s13955_s15 + $0xb8] sm:$0xff] }
 0xbdb   : > { %7232 = vmatprep.subr.mxu1 %v7158_v60  ;;  %v13515_v60 = vld [vmem:[%s13955_s15 + $0x90] sm:$0xff] }
 0xbdc   : > { %7233 = vmatpush1.msra.mxu1 %v7157_v49  ;;  %v13528_v49 = vld [vmem:[%s13955_s15 + $0xa0] sm:$0xff] }
 0xbdd   : > { %9467 = vmatpush3.bf16.msra.mxu0 %v10341_v55  ;;  %7234 = vmatprep.subr.mxu1 %v7155_v10  ;;  %v13370_v55 = vld [vmem:[%s13955_s15 + $0x140] sm:$0xff]  ;;  %v13534_v10 = vld [vmem:[%s13955_s15 + $0x78] sm:$0xff] }
 0xbde   : > { %9468 = vmatprep.subr.bf16.mxu0 %v14407_v12  ;;  %7235 = vmatpush1.msra.mxu1 %v7154_v57  ;;  %v13547_v57 = vld [vmem:[%s13955_s15 + $0x88] sm:$0xff] }
 0xbdf   : > { %7236 = vmatprep.subr.mxu1 %v7152_v30  ;;  %v13553_v30 = vld [vmem:[%s13955_s15 + $0x60] sm:$0xff] }
 0xbe0   : > { %7237 = vmatpush1.msra.mxu1 %v7151_v33  ;;  %v13566_v33 = vld [vmem:[%s13955_s15 + $0x70] sm:$0xff] }
 0xbe1   : > { %9469 = vmatpush3.bf16.msra.mxu0 %v10342_v29  ;;  %7238 = vmatprep.subr.mxu1 %v7149_v1  ;;  %v13376_v29 = vld [vmem:[%s13955_s15 + $0x160] sm:$0xff]  ;;  %v13572_v1 = vld [vmem:[%s13955_s15 + $0x48] sm:$0xff] }
 0xbe2   : > { %9470 = vmatprep.subr.bf16.mxu0 %v14407_v12  ;;  %7239 = vmatpush1.msra.mxu1 %v7148_v39  ;;  %v13585_v39 = vld [vmem:[%s13955_s15 + $0x58] sm:$0xff] }
 0xbe3   : > { %7240 = vmatprep.subr.mxu1 %v7146_v8  ;;  %v13591_v8 = vld [vmem:[%s13955_s15 + $0x30] sm:$0xff] }
 0xbe4   : > { %7241 = vmatpush1.msra.mxu1 %v7145_v51  ;;  %v13604_v51 = vld [vmem:[%s13955_s15 + $0x40] sm:$0xff] }
 0xbe5   : > { %9471 = vmatpush3.bf16.msra.mxu0 %v10343_v41  ;;  %7416 = vmatprep.subr.mxu1 %v13339_v14  ;;  %v13382_v41 = vld [vmem:[%s13955_s15 + $0x138] sm:$0xff]  ;;  %14413 = vst [vmem:[#allocation62_spill] sm:$0xff] %v13604_v51 }
 0xbe6   : > { %9472 = vmatprep.subr.bf16.mxu0 %v14407_v12 }
 0xbe9   : > { %9473 = vmatpush3.bf16.msra.mxu0 %v10344_v18  ;;  %v13389_v18 = vld [vmem:[%s13955_s15 + $0x128] sm:$0xff] }
 0xbea   : > { %9478 = vmatprep.subr.mxu0 %v14407_v12 }
 0xbec   : > { %9475 = vmatmul.mubr.bf16.vlgmr.msra.gmra.mxu0 %v6820_v9  ;;  %v13395_v9 = vld [vmem:[%s13955_s15 + $0x148] sm:$0xff] }
 0xbed   : > { %9479 = vmatpush3.msra.mxu0 %v7192_v35  ;;  %9510 = vmatprep.mubr.msk.f32.mxu0 %vm10636_vm6, %v14407_v12  ;;  %v13401_v35 = vld [vmem:[%s13955_s15 + $0x120] sm:$0xff] }
 0xbee   : > { %9480 = vmatprep.subr.mxu0 %v14407_v12 }
 0xbef   : > { %9481 = vmatpush3.msra.mxu0 %v7189_v0  ;;  %v13408_v0 = vld [vmem:[%s13955_s15 + $0x110] sm:$0xff] }
 0xbf0   : > { %9482 = vmatprep.subr.mxu0 %v14407_v12 }
 0xbf1   : > { %9483 = vmatpush3.msra.mxu0 %v7186_v2  ;;  %v13414_v2 = vld [vmem:[%s13955_s15 + $0x130] sm:$0xff] }
 0xbf2   : > { %9484 = vmatprep.subr.mxu0 %v14407_v12 }
 0xbf3   : > { %9485 = vmatpush3.msra.mxu0 %v7183_v7  ;;  %v13420_v7 = vld [vmem:[%s13955_s15 + $0x108] sm:$0xff] }
 0xbf4   : > { %9486 = vmatprep.subr.mxu0 %v14407_v12 }
 0xbf5   : > { %9487 = vmatpush3.msra.mxu0 %v7180_v38  ;;  %v13427_v38 = vld [vmem:[%s13955_s15 + $0xf8] sm:$0xff] }
 0xbf6   : > { %9488 = vmatprep.subr.mxu0 %v14407_v12 }
 0xbf7   : > { %9489 = vmatpush3.msra.mxu0 %v7177_v63  ;;  %v13433_v63 = vld [vmem:[%s13955_s15 + $0x118] sm:$0xff] }
 0xbf8   : > { %9490 = vmatprep.subr.mxu0 %v14407_v12 }
 0xbf9   : > { %9491 = vmatpush3.msra.mxu0 %v7174_v56  ;;  %v13446_v56 = vld [vmem:[%s13955_s15 + $0xe0] sm:$0xff] }
 0xbfa   : > { %9492 = vmatprep.subr.mxu0 %v14407_v12 }
 0xbfb   : > { %9493 = vmatpush3.msra.mxu0 %v7171_v25  ;;  %v13465_v25 = vld [vmem:[%s13955_s15 + $0xc8] sm:$0xff] }
 0xbfc   : > { %9494 = vmatprep.subr.mxu0 %v14407_v12 }
 0xbfd   : > { %9495 = vmatpush3.msra.mxu0 %v7168_v43  ;;  %v13484_v43 = vld [vmem:[%s13955_s15 + $0xb0] sm:$0xff] }
 0xbfe   : > { %9496 = vmatprep.subr.mxu0 %v14407_v12 }
 0xbff   : > { %9497 = vmatpush3.msra.mxu0 %v7165_v53  ;;  %v13503_v53 = vld [vmem:[%s13955_s15 + $0x98] sm:$0xff] }
 0xc00   : > { %9498 = vmatprep.subr.mxu0 %v14407_v12 }
 0xc01   : > { %9499 = vmatpush3.msra.mxu0 %v7162_v34  ;;  %v13522_v34 = vld [vmem:[%s13955_s15 + $0x80] sm:$0xff] }
 0xc02   : > { %9500 = vmatprep.subr.mxu0 %v14407_v12 }
 0xc03   : > { %9501 = vmatpush3.msra.mxu0 %v7159_v20  ;;  %v13541_v20 = vld [vmem:[%s13955_s15 + $0x68] sm:$0xff] }
 0xc04   : > { %9502 = vmatprep.subr.mxu0 %v14407_v12 }
 0xc05   : > { %9503 = vmatpush3.msra.mxu0 %v7156_v27  ;;  %v13560_v27 = vld [vmem:[%s13955_s15 + $0x50] sm:$0xff] }
 0xc06   : > { %9504 = vmatprep.subr.mxu0 %v14407_v12 }
 0xc07   : > { %9505 = vmatpush3.msra.mxu0 %v7153_v23  ;;  %v13579_v23 = vld [vmem:[%s13955_s15 + $0x38] sm:$0xff] }
 0xc08   : > { %9506 = vmatprep.subr.mxu0 %v14407_v12 }
 0xc09   : > { %9507 = vmatpush3.msra.mxu0 %v7150_v22  ;;  %v13598_v22 = vld [vmem:[%s13955_s15 + $0x20] sm:$0xff] }
 0xc0a   : > { %9508 = vmatprep.subr.mxu0 %v14407_v12  ;;  %14412 = vst [vmem:[#allocation49_spill] sm:$0xff] %v13598_v22 }
 0xc0b   : > { %9509 = vmatpush3.msra.mxu0 %v7147_v11  ;;  %v13610_v11 = vld [vmem:[%s13955_s15 + $0x18] sm:$0xff] }
 0xc0c   : > { %9513 = vmatprep.subr.mxu0 %v14407_v12  ;;  %14414 = vst [vmem:[#allocation86_spill] sm:$0xff] %v13610_v11 }
 0xc84   : > { %v7024_v37 = vpop.f32.mrf.mxu1 }
 0xc86   : > { %v9456_v19 = vpop.f32.mrf.mxu1 }
 0xc87   : > { %v13623_v19 = vld [vmem:[%s13955_s15 + $0x28] sm:$0xff] }
 0xc88   : > { %v7027_v59 = vpop.f32.mrf.mxu1  ;;  %14416 = vst [vmem:[#allocation81_spill] sm:$0xff] %v13623_v19 }
 0xc89   : > { %v13629_v59 = vld [vmem:[%s13955_s15] sm:$0xff] }
 0xc8a   : > { %v9457_v13 = vpop.f32.mrf.mxu1  ;;  %14417 = vst [vmem:[#allocation60_spill] sm:$0xff] %v13629_v59 }
 0xc8b   : > { %v13637_v13 = vld [vmem:[%s13955_s15 + $0x10] sm:$0xff] }
 0xc8c   : > { %v6936_v26 = vpop.f32.mrf.mxu0  ;;  %14418 = vst [vmem:[#allocation79_spill] sm:$0xff] %v13637_v13 }
 0xc8d   : > { %v7025_v6 = vadd.f32 %v7024_v37, %v6936_v26  ;;  %v13617_v37 = vld [vmem:[%s13955_s15 + $0x8] sm:$0xff] }
 0xc8e   : > { %v9436_v50 = vpop.f32.mrf.mxu0  ;;  %14415 = vst [vmem:[#allocation61_spill] sm:$0xff] %v13617_v37 }
 0xc90   : > { %v6939_v5 = vpop.f32.mrf.mxu0 }
 0xc91   : > { %v7193_v5 = vld [vmem:[%s13954_s14] sm:$0x7] }
 0xc92   : > { %v9437_v24 = vpop.f32.mrf.mxu0 }
 0xcac   : > { %v7129_v40 = vpop.f32.mrf.mxu0 }
 0xcad   : > { %v7135_v48 = vadd.f32 %v7129_v40, %v7025_v6  ;;  %v7399_v6 = vld [vmem:[%s13956_s16] sm:$0x7]  ;;  %v7198_v40 = vrot.slane %v7193_v5, %v14384_v45 }
 0xcae   : > { %v9476_v17 = vpop.f32.mrf.mxu0 }
 0xcaf   : > { %v7143_v61 = vadd.f32 %v8900_v54, %v7135_v48  ;;  %v13725_v54 = vrot.slane %v7399_v6, %v14384_v45 }
 0xcb0   : > { %v7132_v3 = vpop.f32.mrf.mxu0 }
 0xcb1   : > { %v7144_v52 = vmax.f32 %v7143_v61, 0.0  ;;  %14419 = vst [vmem:[#allocation84_spill] sm:$0xff] %v13725_v54 }
 0xcb2   : > { %v9477_v44 = vpop.f32.mrf.mxu0 }
 0xcb3   : > { %7275 = vmatmul.mubr.f32.vlgmr.msra.gmra.mxu1 %v7144_v52  ;;  %9511 = vmatmul.mubr.f32.vlgmr.msra.gmra.mxu0 %v7144_v52  ;;  %v13731_v52 = vrot.slane %v7399_v6, %v12443_v32 }
 0xcb4   : > { %7417 = vmatpush1.msra.mxu1 %v13349_v58  ;;  %7480 = vmatprep.mubr.f32.mxu1 %v14407_v12 }
 0xcb5   : > { %7418 = vmatprep.subr.mxu1 %v13354_v15  ;;  %9514 = vmatpush3.msra.mxu0 %v13359_v21 }
 0xcb6   : > { %7419 = vmatpush1.msra.mxu1 %v13364_v47  ;;  %9515 = vmatprep.subr.mxu0 %v14407_v12 }
 0xcb7   : > { %7420 = vmatprep.subr.mxu1 %v13370_v55  ;;  %9516 = vmatpush3.msra.mxu0 %v13376_v29 }
 0xcb8   : > { %7421 = vmatpush1.msra.mxu1 %v13382_v41  ;;  %9517 = vmatprep.subr.mxu0 %v14407_v12 }
 0xcb9   : > { %7422 = vmatprep.subr.mxu1 %v13389_v18  ;;  %9518 = vmatpush3.msra.mxu0 %v13395_v9 }
 0xcba   : > { %7423 = vmatpush1.msra.mxu1 %v13401_v35  ;;  %9519 = vmatprep.subr.mxu0 %v14407_v12 }
 0xcbb   : > { %7424 = vmatprep.subr.mxu1 %v13408_v0  ;;  %9520 = vmatpush3.msra.mxu0 %v13414_v2 }
 0xcbc   : > { %7425 = vmatpush1.msra.mxu1 %v13420_v7  ;;  %9521 = vmatprep.subr.mxu0 %v14407_v12 }
 0xcbd   : > { %7426 = vmatprep.subr.mxu1 %v13427_v38  ;;  %9522 = vmatpush3.msra.mxu0 %v13433_v63 }
 0xcbe   : > { %7427 = vmatpush1.msra.mxu1 %v13439_v31  ;;  %9523 = vmatprep.subr.mxu0 %v14407_v12 }
 0xcbf   : > { %7428 = vmatprep.subr.mxu1 %v13446_v56  ;;  %9524 = vmatpush3.msra.mxu0 %v13452_v4 }
 0xcc0   : > { %7429 = vmatpush1.msra.mxu1 %v13458_v36  ;;  %9525 = vmatprep.subr.mxu0 %v14407_v12 }
 0xcc1   : > { %7430 = vmatprep.subr.mxu1 %v13465_v25  ;;  %9526 = vmatpush3.msra.mxu0 %v13471_v62 }
 0xcc2   : > { %7431 = vmatpush1.msra.mxu1 %v13477_v42  ;;  %9527 = vmatprep.subr.mxu0 %v14407_v12 }
 0xcc3   : > { %7432 = vmatprep.subr.mxu1 %v13484_v43  ;;  %9528 = vmatpush3.msra.mxu0 %v13490_v28 }
 0xcc4   : > { %7433 = vmatpush1.msra.mxu1 %v13496_v16  ;;  %9529 = vmatprep.subr.mxu0 %v14407_v12 }
 0xcc5   : > { %7434 = vmatprep.subr.mxu1 %v13503_v53  ;;  %9530 = vmatpush3.msra.mxu0 %v13509_v46 }
 0xcc6   : > { %7435 = vmatpush1.msra.mxu1 %v13515_v60  ;;  %9531 = vmatprep.subr.mxu0 %v14407_v12 }
 0xcc7   : > { %7436 = vmatprep.subr.mxu1 %v13522_v34  ;;  %9532 = vmatpush3.msra.mxu0 %v13528_v49 }
 0xcc8   : > { %7437 = vmatpush1.msra.mxu1 %v13534_v10  ;;  %9533 = vmatprep.subr.mxu0 %v14407_v12 }
 0xcc9   : > { %7438 = vmatprep.subr.mxu1 %v13541_v20  ;;  %9534 = vmatpush3.msra.mxu0 %v13547_v57 }
 0xcca   : > { %7439 = vmatpush1.msra.mxu1 %v13553_v30  ;;  %9535 = vmatprep.subr.mxu0 %v14407_v12 }
 0xccb   : > { %7440 = vmatprep.subr.mxu1 %v13560_v27  ;;  %9536 = vmatpush3.msra.mxu0 %v13566_v33 }
 0xccc   : > { %7441 = vmatpush1.msra.mxu1 %v13572_v1  ;;  %9537 = vmatprep.subr.mxu0 %v14407_v12 }
 0xccd   : > { %7442 = vmatprep.subr.mxu1 %v13579_v23  ;;  %9538 = vmatpush3.msra.mxu0 %v13585_v39 }
 0xcce   : > { %7443 = vmatpush1.msra.mxu1 %v13591_v8  ;;  %9539 = vmatprep.subr.mxu0 %v14407_v12 }
 0xccf   : > { %7444 = vmatprep.subr.mxu1 %v13598_v22  ;;  %9540 = vmatpush3.msra.mxu0 %v13604_v51 }
 0xcd0   : > { %7445 = vmatpush1.msra.mxu1 %v13610_v11  ;;  %9541 = vmatprep.subr.mxu0 %v14407_v12 }
 0xcd1   : > { %7446 = vmatprep.subr.mxu1 %v13617_v37  ;;  %9542 = vmatpush3.msra.mxu0 %v13623_v19 }
 0xcd2   : > { %7447 = vmatpush1.msra.mxu1 %v13629_v59  ;;  %9543 = vmatprep.subr.mxu0 %v14407_v12 }
 0xcd3   : > { %7481 = vmatmul.mubr.f32.vlgmr.msra.gmra.mxu1 %v14407_v12  ;;  %9544 = vmatpush3.msra.mxu0 %v13637_v13 }
 0xcd4   : > { %9545 = vmatprep.mubr.msk.f32.mxu0 %vm10636_vm6, %v14407_v12  ;;  %7578 = vmatprep.subr.mxu1 %v13339_v14 }
 0xcd5   : > { %9546 = vmatmul.mubr.f32.vlgmr.msra.gmra.mxu0 %v14407_v12  ;;  %9548 = vmatprep.subr.mxu0 %v14407_v12 }
 0xcd6   : > { %7579 = vmatpush1.msra.mxu1 %v13349_v58  ;;  %9549 = vmatpush3.msra.mxu0 %v13359_v21 }
 0xcd7   : > { %7580 = vmatprep.subr.mxu1 %v13354_v15  ;;  %9550 = vmatprep.subr.mxu0 %v14407_v12 }
 0xcd8   : > { %7581 = vmatpush1.msra.mxu1 %v13364_v47  ;;  %9551 = vmatpush3.msra.mxu0 %v13376_v29 }
 0xcd9   : > { %7582 = vmatprep.subr.mxu1 %v13370_v55  ;;  %9552 = vmatprep.subr.mxu0 %v14407_v12 }
 0xcda   : > { %7583 = vmatpush1.msra.mxu1 %v13382_v41  ;;  %9553 = vmatpush3.msra.mxu0 %v13395_v9 }
 0xcdb   : > { %7584 = vmatprep.subr.mxu1 %v13389_v18  ;;  %9554 = vmatprep.subr.mxu0 %v14407_v12 }
 0xcdc   : > { %7585 = vmatpush1.msra.mxu1 %v13401_v35  ;;  %9555 = vmatpush3.msra.mxu0 %v13414_v2 }
 0xcdd   : > { %7586 = vmatprep.subr.mxu1 %v13408_v0  ;;  %9556 = vmatprep.subr.mxu0 %v14407_v12 }
 0xcde   : > { %7587 = vmatpush1.msra.mxu1 %v13420_v7  ;;  %9557 = vmatpush3.msra.mxu0 %v13433_v63 }
 0xcdf   : > { %7588 = vmatprep.subr.mxu1 %v13427_v38  ;;  %9558 = vmatprep.subr.mxu0 %v14407_v12 }
 0xce0   : > { %7589 = vmatpush1.msra.mxu1 %v13439_v31  ;;  %9559 = vmatpush3.msra.mxu0 %v13452_v4 }
 0xce1   : > { %7590 = vmatprep.subr.mxu1 %v13446_v56  ;;  %9560 = vmatprep.subr.mxu0 %v14407_v12 }
 0xce2   : > { %7591 = vmatpush1.msra.mxu1 %v13458_v36  ;;  %9561 = vmatpush3.msra.mxu0 %v13471_v62 }
 0xce3   : > { %7592 = vmatprep.subr.mxu1 %v13465_v25  ;;  %9562 = vmatprep.subr.mxu0 %v14407_v12 }
 0xce4   : > { %7593 = vmatpush1.msra.mxu1 %v13477_v42  ;;  %9563 = vmatpush3.msra.mxu0 %v13490_v28 }
 0xce5   : > { %7594 = vmatprep.subr.mxu1 %v13484_v43  ;;  %9564 = vmatprep.subr.mxu0 %v14407_v12 }
 0xce6   : > { %7595 = vmatpush1.msra.mxu1 %v13496_v16  ;;  %9565 = vmatpush3.msra.mxu0 %v13509_v46 }
 0xce7   : > { %7596 = vmatprep.subr.mxu1 %v13503_v53  ;;  %9566 = vmatprep.subr.mxu0 %v14407_v12 }
 0xce8   : > { %7597 = vmatpush1.msra.mxu1 %v13515_v60  ;;  %9567 = vmatpush3.msra.mxu0 %v13528_v49 }
 0xce9   : > { %7598 = vmatprep.subr.mxu1 %v13522_v34  ;;  %9568 = vmatprep.subr.mxu0 %v14407_v12 }
 0xcea   : > { %7599 = vmatpush1.msra.mxu1 %v13534_v10  ;;  %9569 = vmatpush3.msra.mxu0 %v13547_v57 }
 0xceb   : > { %7600 = vmatprep.subr.mxu1 %v13541_v20  ;;  %9570 = vmatprep.subr.mxu0 %v14407_v12 }
 0xcec   : > { %7601 = vmatpush1.msra.mxu1 %v13553_v30  ;;  %9571 = vmatpush3.msra.mxu0 %v13566_v33 }
 0xced   : > { %7602 = vmatprep.subr.mxu1 %v13560_v27  ;;  %9572 = vmatprep.subr.mxu0 %v14407_v12 }
 0xcee   : > { %7603 = vmatpush1.msra.mxu1 %v13572_v1  ;;  %9573 = vmatpush3.msra.mxu0 %v13585_v39 }
 0xcef   : > { %7604 = vmatprep.subr.mxu1 %v13579_v23  ;;  %9574 = vmatprep.subr.mxu0 %v14407_v12 }
 0xcf0   : > { %7605 = vmatpush1.msra.mxu1 %v13591_v8  ;;  %9575 = vmatpush3.msra.mxu0 %v13604_v51 }
 0xcf1   : > { %7606 = vmatprep.subr.mxu1 %v13598_v22  ;;  %9576 = vmatprep.subr.mxu0 %v14407_v12 }
 0xcf2   : > { %7607 = vmatpush1.msra.mxu1 %v13610_v11  ;;  %9577 = vmatpush3.msra.mxu0 %v13623_v19  ;;  %v14420_v11 = vld [vmem:[#allocation83_spill] sm:$0xff] }
 0xcf3   : > { %7608 = vmatprep.subr.mxu1 %v13617_v37  ;;  %9578 = vmatprep.subr.mxu0 %v14407_v12  ;;  %v13740_v22 = vrot.slane %v7399_v6, %v14420_v11 }
 0xcf4   : > { %7609 = vmatpush1.msra.mxu1 %v13629_v59  ;;  %7642 = vmatprep.mubr.f32.mxu1 %v14407_v12 }
 0xcf5   : > { %9579 = vmatpush3.msra.mxu0 %v13637_v13  ;;  %9580 = vmatprep.mubr.msk.f32.mxu0 %vm10636_vm6, %v14407_v12 }
 0xcf6   : > { %7755 = vmatprep.subr.mxu1 %v13339_v14  ;;  %9583 = vmatprep.subr.mxu0 %v14407_v12  ;;  %v7202_v14 = vrot.slane %v7193_v5, %v12443_v32 }
 0xd73   : > { %v7347_v26 = vpop.f32.mrf.mxu0  ;;  %v7276_v24 = vpop.f32.mrf.mxu1 }
 0xd74   : > { %v13727_v61 = vadd.f32 %v7276_v24, %v7198_v40 }
 0xd75   : > { %v9512_v50 = vpop.f32.mrf.mxu0  ;;  %v7278_v48 = vpop.f32.mrf.mxu1 }
 0xd76   : > { %v13736_v19 = vadd.f32 %v7278_v48, %v7202_v14 }
 0xd93   : > { %v7482_v17 = vpop.f32.mrf.mxu1 }
 0xd94   : > { %v7483_v3 = vadd.f32 %v7482_v17, %v13725_v54 }
 0xd95   : > { %v7484_v44 = vpop.f32.mrf.mxu1  ;;  %v7553_v50 = vpop.f32.mrf.mxu0 }
 0xd96   : > { %v7557_v13 = vadd.f32 %v7483_v3, %v13727_v61  ;;  %v7485_v45 = vadd.f32 %v7484_v44, %v13731_v52  ;;  %v7206_v3 = vrot.slane %v7193_v5, %v14420_v11  ;;  %v14421_v11 = vld [vmem:[#allocation49_spill] sm:$0xff] }
 0xd97   : > { %v9547_v59 = vpop.f32.mrf.mxu0  ;;  %v14423_v5 = vld [vmem:[#allocation81_spill] sm:$0xff] }
 0xd98   : > { %v8901_v37 = vmul.f32 -1.442695, %v7557_v13  ;;  %v7564_v24 = vadd.f32 %v7485_v45, %v13736_v19  ;;  %v7554_v13 = vadd.f32 %v7553_v50, %v13740_v22  ;;  %v13744_v14 = vadd.f32 %v7347_v26, %v7206_v3  ;;  %v14422_v26 = vld [vmem:[#allocation86_spill] sm:$0xff]  ;;  %v14424_v50 = vld [vmem:[#allocation61_spill] sm:$0xff]  ;;  %v14426_v3 = vld [vmem:[#allocation79_spill] sm:$0xff] }
 0xd9a   : > { %10345 = vpow2.f32 %v8901_v37  ;;  %v8902_v40 = vmul.f32 -1.442695, %v7564_v24 }
 0xd9c   : > { %10347 = vpow2.f32 %v8902_v40 }
 0xda7   : > { %v10346_v17 = vpop.eup %10345 }
 0xda8   : > { %v7561_v54 = vadd.f32 1.0, %v10346_v17 }
 0xda9   : > { %v10348_v32 = vpop.eup %10347 }
 0xdaa   : > { %10349 = vrcp.f32 %v7561_v54  ;;  %v7568_v59 = vadd.f32 1.0, %v10348_v32  ;;  %v14425_v32 = vld [vmem:[#allocation60_spill] sm:$0xff] }
 0xdac   : > { %10351 = vrcp.f32 %v7568_v59  ;;  %v14427_v59 = vld [vmem:[#allocation66_spill] sm:$0xff] }
 0xdb7   : > { %v10350_v44 = vpop.eup %10349 }
 0xdb8   : > { %v7571_v37 = vmul.f32 %v10350_v44, %v7554_v13 }
 0xdb9   : > { %v10352_v45 = vpop.eup %10351 }
 0xdba   : > { %v7572_v48 = vadd.f32 %v7571_v37, %v13744_v14  ;;  %v7574_v24 = vsub.f32 1.0, %v10352_v45  ;;  %v7576_v6 = vmul.f32 0.0, %v10352_v45  ;;  %v14428_v37 = vld [vmem:[#allocation84_spill] sm:$0xff] }
 0xdbc   : > { %10353 = vtanh.f32 %v7572_v48 }
 0xdc9   : > { %v10354_v54 = vpop.eup %10353 }
 0xdca   : > { %v7575_v40 = vmul.f32 %v10354_v54, %v7574_v24 }
 0xdcc   : > { %v13747_v17 = vadd.f32 %v7576_v6, %v7575_v40 }
 0xdce   : > { %7643 = vmatmul.mubr.f32.vlgmr.msra.gmra.mxu1 %v13747_v17  ;;  %9581 = vmatmul.mubr.f32.vlgmr.msra.gmra.mxu0 %v13747_v17 }
 0xdcf   : > { %7756 = vmatpush1.msra.mxu1 %v13349_v58  ;;  %9584 = vmatpush3.msra.mxu0 %v13359_v21 }
 0xdd0   : > { %7757 = vmatprep.subr.mxu1 %v13354_v15  ;;  %9585 = vmatprep.subr.mxu0 %v14407_v12 }
 0xdd1   : > { %7758 = vmatpush1.msra.mxu1 %v13364_v47  ;;  %9586 = vmatpush3.msra.mxu0 %v13376_v29 }
 0xdd2   : > { %7759 = vmatprep.subr.mxu1 %v13370_v55  ;;  %9587 = vmatprep.subr.mxu0 %v14407_v12 }
 0xdd3   : > { %7760 = vmatpush1.msra.mxu1 %v13382_v41  ;;  %9588 = vmatpush3.msra.mxu0 %v13395_v9 }
 0xdd4   : > { %7761 = vmatprep.subr.mxu1 %v13389_v18  ;;  %9589 = vmatprep.subr.mxu0 %v14407_v12 }
 0xdd5   : > { %7762 = vmatpush1.msra.mxu1 %v13401_v35  ;;  %9590 = vmatpush3.msra.mxu0 %v13414_v2 }
 0xdd6   : > { %7763 = vmatprep.subr.mxu1 %v13408_v0  ;;  %9591 = vmatprep.subr.mxu0 %v14407_v12 }
 0xdd7   : > { %7764 = vmatpush1.msra.mxu1 %v13420_v7  ;;  %9592 = vmatpush3.msra.mxu0 %v13433_v63 }
 0xdd8   : > { %7765 = vmatprep.subr.mxu1 %v13427_v38  ;;  %9593 = vmatprep.subr.mxu0 %v14407_v12 }
 0xdd9   : > { %7766 = vmatpush1.msra.mxu1 %v13439_v31  ;;  %9594 = vmatpush3.msra.mxu0 %v13452_v4 }
 0xdda   : > { %7767 = vmatprep.subr.mxu1 %v13446_v56  ;;  %9595 = vmatprep.subr.mxu0 %v14407_v12 }
 0xddb   : > { %7768 = vmatpush1.msra.mxu1 %v13458_v36  ;;  %9596 = vmatpush3.msra.mxu0 %v13471_v62 }
 0xddc   : > { %7769 = vmatprep.subr.mxu1 %v13465_v25  ;;  %9597 = vmatprep.subr.mxu0 %v14407_v12 }
 0xddd   : > { %7770 = vmatpush1.msra.mxu1 %v13477_v42  ;;  %9598 = vmatpush3.msra.mxu0 %v13490_v28 }
 0xdde   : > { %7771 = vmatprep.subr.mxu1 %v13484_v43  ;;  %9599 = vmatprep.subr.mxu0 %v14407_v12 }
 0xddf   : > { %7772 = vmatpush1.msra.mxu1 %v13496_v16  ;;  %9600 = vmatpush3.msra.mxu0 %v13509_v46 }
 0xde0   : > { %7773 = vmatprep.subr.mxu1 %v13503_v53  ;;  %9601 = vmatprep.subr.mxu0 %v14407_v12 }
 0xde1   : > { %7774 = vmatpush1.msra.mxu1 %v13515_v60  ;;  %9602 = vmatpush3.msra.mxu0 %v13528_v49 }
 0xde2   : > { %7775 = vmatprep.subr.mxu1 %v13522_v34  ;;  %9603 = vmatprep.subr.mxu0 %v14407_v12 }
 0xde3   : > { %7776 = vmatpush1.msra.mxu1 %v13534_v10  ;;  %9604 = vmatpush3.msra.mxu0 %v13547_v57 }
 0xde4   : > { %7777 = vmatprep.subr.mxu1 %v13541_v20  ;;  %9605 = vmatprep.subr.mxu0 %v14407_v12 }
 0xde5   : > { %7778 = vmatpush1.msra.mxu1 %v13553_v30  ;;  %9606 = vmatpush3.msra.mxu0 %v13566_v33 }
 0xde6   : > { %7779 = vmatprep.subr.mxu1 %v13560_v27  ;;  %9607 = vmatprep.subr.mxu0 %v14407_v12 }
 0xde7   : > { %7780 = vmatpush1.msra.mxu1 %v13572_v1  ;;  %9608 = vmatpush3.msra.mxu0 %v13585_v39 }
 0xde8   : > { %7781 = vmatprep.subr.mxu1 %v13579_v23  ;;  %9609 = vmatprep.subr.mxu0 %v14407_v12 }
 0xde9   : > { %7782 = vmatpush1.msra.mxu1 %v13591_v8  ;;  %9610 = vmatpush3.msra.mxu0 %v13604_v51 }
 0xdea   : > { %7783 = vmatprep.subr.mxu1 %v14421_v11  ;;  %9611 = vmatprep.subr.mxu0 %v14407_v12 }
 0xdeb   : > { %7784 = vmatpush1.msra.mxu1 %v14422_v26  ;;  %9612 = vmatpush3.msra.mxu0 %v14423_v5 }
 0xdec   : > { %7785 = vmatprep.subr.mxu1 %v14424_v50  ;;  %9613 = vmatprep.subr.mxu0 %v14407_v12 }
 0xded   : > { %7786 = vmatpush1.msra.mxu1 %v14425_v32  ;;  %7819 = vmatprep.mubr.f32.mxu1 %v14407_v12 }
 0xdee   : > { %9614 = vmatpush3.msra.mxu0 %v14426_v3  ;;  %9615 = vmatprep.mubr.msk.f32.mxu0 %vm10636_vm6, %v14407_v12 }
 0xdef   : > { %7931 = vmatprep.subr.mxu1 %v14427_v59  ;;  %9618 = vmatprep.subr.mxu0 %v14407_v12 }
 0xe8e   : > { %v7644_v13 = vpop.f32.mrf.mxu1  ;;  %v7715_v44 = vpop.f32.mrf.mxu0 }
 0xe8f   : > { %v7645_v48 = vadd.f32 %v7644_v13, %v14428_v37  ;;  %v7716_v13 = vadd.f32 %v7715_v44, %v13740_v22 }
 0xe90   : > { %v7646_v45 = vpop.f32.mrf.mxu1  ;;  %v9582_v24 = vpop.f32.mrf.mxu0 }
 0xe91   : > { %v7720_v54 = vrot.slane %v7645_v48, 7  ;;  %v7647_v40 = vadd.f32 %v7646_v45, %v13731_v52  ;;  %v7740_v24 = vrot.slane %v7716_v13, 7 }
 0xe93   : > { %v7722_v6 = vadd.f32 %v7720_v54, %v13727_v61  ;;  %v7730_v3 = vrot.slane %v7647_v40, 7 }
 0xe95   : > { %v8903_v32 = vmul.f32 -1.442695, %v7722_v6  ;;  %v7732_v50 = vadd.f32 %v7730_v3, %v13736_v19 }
 0xe97   : > { %10355 = vpow2.f32 %v8903_v32  ;;  %v8904_v5 = vmul.f32 -1.442695, %v7732_v50  ;;  %v7748_v32 = vrot.slane %v13747_v17, 7 }
 0xe99   : > { %10357 = vpow2.f32 %v8904_v5 }
 0xea4   : > { %v10356_v59 = vpop.eup %10355 }
 0xea5   : > { %v7726_v26 = vadd.f32 1.0, %v10356_v59 }
 0xea6   : > { %v10358_v11 = vpop.eup %10357 }
 0xea7   : > { %10359 = vrcp.f32 %v7726_v26  ;;  %v7736_v37 = vadd.f32 1.0, %v10358_v11 }
 0xea9   : > { %10361 = vrcp.f32 %v7736_v37 }
 0xeb4   : > { %v10360_v48 = vpop.eup %10359 }
 0xeb5   : > { %v7742_v51 = vmul.f32 %v10360_v48, %v7740_v24 }
 0xeb6   : > { %v10362_v54 = vpop.eup %10361 }
 0xeb7   : > { %v7743_v45 = vadd.f32 %v7742_v51, %v13744_v14  ;;  %v7745_v3 = vsub.f32 1.0, %v10362_v54  ;;  %v7750_v40 = vmul.f32 %v10362_v54, %v7748_v32 }
 0xeb9   : > { %10363 = vtanh.f32 %v7743_v45 }
 0xec6   : > { %v10364_v50 = vpop.eup %10363 }
 0xec7   : > { %v7746_v5 = vmul.f32 %v10364_v50, %v7745_v3 }
 0xec9   : > { %v13825_v6 = vadd.f32 %v7750_v40, %v7746_v5 }
 0xecb   : > { %v7753_v26 = vrot.slane %v13825_v6, 1 }
 0xecd   : > { %7820 = vmatmul.mubr.f32.vlgmr.msra.gmra.mxu1 %v7753_v26  ;;  %9616 = vmatmul.mubr.f32.vlgmr.msra.gmra.mxu0 %v7753_v26 }
 0xece   : > { %7932 = vmatpush1.msra.mxu1 %v13349_v58  ;;  %9619 = vmatpush3.msra.mxu0 %v13359_v21  ;;  %v14429_v58 = vld [vmem:[#allocation62_spill] sm:$0xff] }
 0xecf   : > { %7933 = vmatprep.subr.mxu1 %v13354_v15  ;;  %9620 = vmatprep.subr.mxu0 %v14407_v12  ;;  %v14430_v15 = vld [vmem:[#allocation49_spill] sm:$0xff]  ;;  %v14431_v21 = vld [vmem:[#allocation86_spill] sm:$0xff] }
 0xed0   : > { %7934 = vmatpush1.msra.mxu1 %v13364_v47  ;;  %9621 = vmatpush3.msra.mxu0 %v13376_v29  ;;  %v14432_v47 = vld [vmem:[#allocation81_spill] sm:$0xff]  ;;  %v14434_v29 = vld [vmem:[#allocation60_spill] sm:$0xff] }
 0xed1   : > { %7935 = vmatprep.subr.mxu1 %v13370_v55  ;;  %9622 = vmatprep.subr.mxu0 %v14407_v12  ;;  %v14433_v55 = vld [vmem:[#allocation61_spill] sm:$0xff] }
 0xed2   : > { %7936 = vmatpush1.msra.mxu1 %v13382_v41  ;;  %9623 = vmatpush3.msra.mxu0 %v13395_v9  ;;  %v14435_v41 = vld [vmem:[#allocation79_spill] sm:$0xff] }
 0xed3   : > { %7937 = vmatprep.subr.mxu1 %v13389_v18  ;;  %9624 = vmatprep.subr.mxu0 %v14407_v12 }
 0xed4   : > { %7938 = vmatpush1.msra.mxu1 %v13401_v35  ;;  %9625 = vmatpush3.msra.mxu0 %v13414_v2  ;;  %v14436_v35 = vld [vmem:[#allocation84_spill] sm:$0xff] }
 0xed5   : > { %7939 = vmatprep.subr.mxu1 %v13408_v0  ;;  %9626 = vmatprep.subr.mxu0 %v14407_v12 }
 0xed6   : > { %7940 = vmatpush1.msra.mxu1 %v13420_v7  ;;  %9627 = vmatpush3.msra.mxu0 %v13433_v63 }
 0xed7   : > { %7941 = vmatprep.subr.mxu1 %v13427_v38  ;;  %9628 = vmatprep.subr.mxu0 %v14407_v12 }
 0xed8   : > { %7942 = vmatpush1.msra.mxu1 %v13439_v31  ;;  %9629 = vmatpush3.msra.mxu0 %v13452_v4 }
 0xed9   : > { %7943 = vmatprep.subr.mxu1 %v13446_v56  ;;  %9630 = vmatprep.subr.mxu0 %v14407_v12 }
 0xeda   : > { %7944 = vmatpush1.msra.mxu1 %v13458_v36  ;;  %9631 = vmatpush3.msra.mxu0 %v13471_v62 }
 0xedb   : > { %7945 = vmatprep.subr.mxu1 %v13465_v25  ;;  %9632 = vmatprep.subr.mxu0 %v14407_v12 }
 0xedc   : > { %7946 = vmatpush1.msra.mxu1 %v13477_v42  ;;  %9633 = vmatpush3.msra.mxu0 %v13490_v28 }
 0xedd   : > { %7947 = vmatprep.subr.mxu1 %v13484_v43  ;;  %9634 = vmatprep.subr.mxu0 %v14407_v12 }
 0xede   : > { %7948 = vmatpush1.msra.mxu1 %v13496_v16  ;;  %9635 = vmatpush3.msra.mxu0 %v13509_v46 }
 0xedf   : > { %7949 = vmatprep.subr.mxu1 %v13503_v53  ;;  %9636 = vmatprep.subr.mxu0 %v14407_v12 }
 0xee0   : > { %7950 = vmatpush1.msra.mxu1 %v13515_v60  ;;  %9637 = vmatpush3.msra.mxu0 %v13528_v49  ;;  %v7924_v49 = vrot.slane %v13825_v6, 7 }
 0xee1   : > { %7951 = vmatprep.subr.mxu1 %v13522_v34  ;;  %9638 = vmatprep.subr.mxu0 %v14407_v12 }
 0xee2   : > { %7952 = vmatpush1.msra.mxu1 %v13534_v10  ;;  %9639 = vmatpush3.msra.mxu0 %v13547_v57 }
 0xee3   : > { %7953 = vmatprep.subr.mxu1 %v13541_v20  ;;  %9640 = vmatprep.subr.mxu0 %v14407_v12 }
 0xee4   : > { %7954 = vmatpush1.msra.mxu1 %v13553_v30  ;;  %9641 = vmatpush3.msra.mxu0 %v13566_v33 }
 0xee5   : > { %7955 = vmatprep.subr.mxu1 %v13560_v27  ;;  %9642 = vmatprep.subr.mxu0 %v14407_v12 }
 0xee6   : > { %7956 = vmatpush1.msra.mxu1 %v13572_v1  ;;  %9643 = vmatpush3.msra.mxu0 %v13585_v39 }
 0xee7   : > { %7957 = vmatprep.subr.mxu1 %v13579_v23  ;;  %9644 = vmatprep.subr.mxu0 %v14407_v12 }
 0xee8   : > { %7958 = vmatpush1.msra.mxu1 %v13591_v8  ;;  %9645 = vmatpush3.msra.mxu0 %v14429_v58 }
 0xee9   : > { %7959 = vmatprep.subr.mxu1 %v14430_v15  ;;  %9646 = vmatprep.subr.mxu0 %v14407_v12 }
 0xeea   : > { %7960 = vmatpush1.msra.mxu1 %v14431_v21  ;;  %9647 = vmatpush3.msra.mxu0 %v14432_v47 }
 0xeeb   : > { %7961 = vmatprep.subr.mxu1 %v14433_v55  ;;  %9648 = vmatprep.subr.mxu0 %v14407_v12 }
 0xeec   : > { %7962 = vmatpush1.msra.mxu1 %v14434_v29  ;;  %7995 = vmatprep.mubr.f32.mxu1 %v14407_v12 }
 0xeed   : > { %9649 = vmatpush3.msra.mxu0 %v14435_v41  ;;  %9650 = vmatprep.mubr.msk.f32.mxu0 %vm10636_vm6, %v14407_v12 }
 0xf8d   : > { %v7821_v18 = vpop.f32.mrf.mxu1  ;;  %v7892_v9 = vpop.f32.mrf.mxu0 }
 0xf8e   : > { %v7822_v0 = vadd.f32 %v7821_v18, %v14436_v35  ;;  %v7893_v43 = vadd.f32 %v7892_v9, %v13740_v22 }
 0xf8f   : > { %v7823_v2 = vpop.f32.mrf.mxu1  ;;  %v9617_v7 = vpop.f32.mrf.mxu0 }
 0xf90   : > { %v7897_v38 = vrot.slane %v7822_v0, 6  ;;  %v7824_v63 = vadd.f32 %v7823_v2, %v13731_v52  ;;  %v7917_v16 = vrot.slane %v7893_v43, 6 }
 0xf92   : > { %v7899_v31 = vadd.f32 %v7897_v38, %v13727_v61  ;;  %v7907_v4 = vrot.slane %v7824_v63, 6 }
 0xf94   : > { %v8905_v56 = vmul.f32 -1.442695, %v7899_v31  ;;  %v7909_v36 = vadd.f32 %v7907_v4, %v13736_v19 }
 0xf96   : > { %10365 = vpow2.f32 %v8905_v56  ;;  %v8906_v25 = vmul.f32 -1.442695, %v7909_v36 }
 0xf98   : > { %10367 = vpow2.f32 %v8906_v25 }
 0xfa3   : > { %v10366_v62 = vpop.eup %10365 }
 0xfa4   : > { %v7903_v12 = vadd.f32 1.0, %v10366_v62 }
 0xfa5   : > { %v10368_v42 = vpop.eup %10367 }
 0xfa6   : > { %10369 = vrcp.f32 %v7903_v12  ;;  %v7913_v28 = vadd.f32 1.0, %v10368_v42 }
 0xfa8   : > { %10371 = vrcp.f32 %v7913_v28 }
 0xfb3   : > { %v10370_v53 = vpop.eup %10369 }
 0xfb4   : > { %v7919_v46 = vmul.f32 %v10370_v53, %v7917_v16 }
 0xfb5   : > { %v10372_v34 = vpop.eup %10371 }
 0xfb6   : > { %v7920_v60 = vadd.f32 %v7919_v46, %v13744_v14  ;;  %v7922_v10 = vsub.f32 1.0, %v10372_v34  ;;  %v7926_v30 = vmul.f32 %v10372_v34, %v7924_v49 }
 0xfb8   : > { %10373 = vtanh.f32 %v7920_v60 }
 0xfc5   : > { %v10374_v20 = vpop.eup %10373 }
 0xfc6   : > { %v7923_v57 = vmul.f32 %v10374_v20, %v7922_v10 }
 0xfc8   : > { %v7927_v27 = vadd.f32 %v7926_v30, %v7923_v57 }
 0xfca   : > { %v7929_v33 = vrot.slane %v7927_v27, 2  ;;  %v8100_v6 = vrot.slane %v7927_v27, 7 }
 0xfcc   : > { %7996 = vmatmul.mubr.f32.vlgmr.msra.gmra.mxu1 %v7929_v33  ;;  %9651 = vmatmul.mubr.f32.vlgmr.msra.gmra.mxu0 %v7929_v33 }
0x108c   : > { %v7997_v1 = vpop.f32.mrf.mxu1  ;;  %v8068_v23 = vpop.f32.mrf.mxu0 }
0x108d   : > { %v7998_v39 = vadd.f32 %v7997_v1, %v14436_v35  ;;  %v8069_v32 = vadd.f32 %v8068_v23, %v13740_v22 }
0x108e   : > { %v7999_v8 = vpop.f32.mrf.mxu1  ;;  %v9652_v51 = vpop.f32.mrf.mxu0 }
0x108f   : > { %v8073_v17 = vrot.slane %v7998_v39, 5  ;;  %v8000_v11 = vadd.f32 %v7999_v8, %v13731_v52  ;;  %v8093_v50 = vrot.slane %v8069_v32, 5 }
0x1091   : > { %v8075_v44 = vadd.f32 %v8073_v17, %v13727_v61  ;;  %v8083_v59 = vrot.slane %v8000_v11, 5 }
0x1093   : > { %v8907_v37 = vmul.f32 -1.442695, %v8075_v44  ;;  %v8085_v13 = vadd.f32 %v8083_v59, %v13736_v19 }
0x1095   : > { %10375 = vpow2.f32 %v8907_v37  ;;  %v8908_v24 = vmul.f32 -1.442695, %v8085_v13 }
0x1097   : > { %10377 = vpow2.f32 %v8908_v24 }
0x10a2   : > { %v10376_v48 = vpop.eup %10375 }
0x10a3   : > { %v8079_v45 = vadd.f32 1.0, %v10376_v48 }
0x10a4   : > { %v10378_v54 = vpop.eup %10377 }
0x10a5   : > { %10379 = vrcp.f32 %v8079_v45  ;;  %v8089_v3 = vadd.f32 1.0, %v10378_v54 }
0x10a7   : > { %10381 = vrcp.f32 %v8089_v3 }
0x10b2   : > { %v10380_v52 = vpop.eup %10379 }
0x10b3   : > { %v8095_v5 = vmul.f32 %v10380_v52, %v8093_v50 }
0x10b4   : > { %v10382_v40 = vpop.eup %10381 }
0x10b5   : > { %v8096_v61 = vadd.f32 %v8095_v5, %v13744_v14  ;;  %v8098_v19 = vsub.f32 1.0, %v10382_v40  ;;  %v8102_v15 = vmul.f32 %v10382_v40, %v8100_v6 }
0x10b7   : > { %10383 = vtanh.f32 %v8096_v61 }
0x10c4   : > { %v10384_v26 = vpop.eup %10383 }
0x10c5   : > { %v8099_v58 = vmul.f32 %v10384_v26, %v8098_v19 }
0x10c7   : > { %v8103_v22 = vadd.f32 %v8102_v15, %v8099_v58 }
0x10c9   : > { %8104 = vst [vmem:[%s628_s29 - $0x3] sm:$0x8] %v8103_v22 }
0x10ca   : > { %10554 = shalt.err (!%p10551_p3)
}
0x10cb   : > { %s10555_s22 = scalar_lea.hbm %s8116_s26, 16  ;;  %s10559_s19 = scalar_lea.hbm %s14437_s20, 32 }
0x10cc   : > { %p10556_p2 = scmp.ne.s32.totalorder %s8116_s26, %s10555_s22  ;;  %p10560_p9 = scmp.lt.s32.totalorder %s8116_s26, %s14437_s20 }
0x10cd   : > { %p10561_p4 = scmp.lt.s32.totalorder %s10559_s19, %s10555_s22 }
0x10ce   : > { %p10557_p12 = pnand %p10556_p2, %p10766_p5 }
0x10cf   : > { %p10562_p7 = por %p10561_p4, %p10560_p9 }
0x10d0   : > { %p10558_p10 = pneg %p10557_p12 }
0x10d2   : > { %p10563_p8 = pnand %p10562_p7, %p10558_p10 }
0x10d4   : > { %10566 = shalt.err (!%p10563_p8)
}
0x10d5   : > { %9693 = dma.vmem_to_hbm [thread:$0]  (%p10766_p5), %s8119_s17, 16, %s8116_s26, %s8106_s23  }
0x10d6 PF: > { %s14438_s24 = sld [smem:[#allocation21_spill]] }
0x10d7   : > { %s14439_s18 = sld [smem:[#allocation19_spill]] }
0x10dc   : > { %p9730_p0 = scmp.ge.s32.totalorder %s14438_s24, 2 }
0x10dd   : > { %s8130_s0 = sand.u32 1, %s14439_s18  }
0x10de   : > { %p9715_p11 = pnand %p9730_p0, %p10770_p6  ;;  %s8131_s2 = scalar_lea.sflag [#allocation4], %s8130_s0 }
0x10e0   : > { %p9716_p13 = pneg %p9715_p11 }
0x10e2   : > { %10600 = dma.done.wait (%p9716_p13), %s8131_s2, 16  }
0x10e3   : > { %10602 = vsyncadd (%p9716_p13), %s8131_s2, 4294967280  ;;  %s14441_s27 = sld [smem:[#allocation22_spill]]  ;;  %s14444_s24 = smov %s10609_s25 }
0x10e4   : > { %s14442_s28 = sld [smem:[#allocation20_spill]] }
0x10e5   : > { %s14443_s26 = sld [smem:[#allocation23_spill]] }
0x10e9   : > { %p31_p1 = scmp.ge.s32.totalorder %s14441_s27, 4  }
0x10ea   : > { %s14445_s25 = smov %s14442_s28 }
0x10eb   :  { %33 = sbr.rel (!%p31_p1) target bundleno = 13 (0xd), region = 160 }
0x10f0   :  { %8135 = vsyncpa [#allocation3], 1 }
0x10f1   :  { %8137 = vsyncpa [#allocation3 + $0x1], 1 }
0x10f2   :  { %8138 = vsyncpa [#allocation6], 1 }
0x10f3   :  { %8139 = vsyncpa [#allocation9], 1 }
0x10f4   :  { %8140 = vsyncpa [#allocation12], 1 }
0x10f5   :  { %8141 = vsyncpa [#allocation4], 1 }
0x10f6   :  { %8143 = vsyncpa [#allocation4 + $0x1], 1 }

</bundles_post_ra>
